<compile_context>
chip_gen: v7x
topology: tpu7x:2x2x1
jax: 0.10.0
libtpu: 0.0.40
codegen_flags: <defaults>
</compile_context>

<pallas_src>
import numpy as np
import jax
import jax.numpy as jnp
from jax.experimental import pallas as pl
from jax.experimental.pallas import tpu as pltpu  # noqa: F401  (TPU backend)

# ----------------------------- configuration --------------------------------
IMG = 32            # image_encoder.img_size
PATCH = 8           # patch size -> 4x4 token grid
IN_CH = 3
ENC_DIM = 32        # ViT embed dim
ENC_DEPTH = 2
ENC_HEADS = 2
ENC_DH = ENC_DIM // ENC_HEADS            # 16
MLP_RATIO = 4
EMB_HW = IMG // PATCH                    # 4
N_TOK = EMB_HW * EMB_HW                  # 16
PROMPT_DIM = 32                          # neck out_chans == transformer dim
DEC_HEADS = 2
DEC_DEPTH = 2
DEC_MLP = 64
DEC_SELF_DH = PROMPT_DIM // DEC_HEADS            # 16
DEC_CROSS_DIM = PROMPT_DIM // 2                  # 16
DEC_CROSS_DH = DEC_CROSS_DIM // DEC_HEADS        # 8
NUM_MASK_TOKENS = 4                      # num_multimask_outputs(3) + 1
IOU_HIDDEN = 32
OUT_SIZE = 32                            # args.out_size
LOWRES = EMB_HW * 4                      # 16 : low-res mask side

MXU_DTYPE = jnp.bfloat16
ENC_SCALE = ENC_DH ** -0.5
DEC_SELF_SCALE = DEC_SELF_DH ** -0.5
DEC_CROSS_SCALE = DEC_CROSS_DH ** -0.5
BLOB_W = 128


# ------------------------- in-kernel math helpers ----------------------------
def _mm(a, b):
    """a @ b on the MXU (bf16 operands, f32 accumulation). astype on already-bf16
    weights is a no-op that tracing elides."""
    return jax.lax.dot_general(
        a.astype(MXU_DTYPE), b.astype(MXU_DTYPE),
        (((1,), (0,)), ((), ())), preferred_element_type=jnp.float32)


def _mm_bt(a, b):
    """a @ b.T (contract last dims of both)."""
    return jax.lax.dot_general(
        a.astype(MXU_DTYPE), b.astype(MXU_DTYPE),
        (((1,), (1,)), ((), ())), preferred_element_type=jnp.float32)


def _ln(x, g, b, eps):
    """LayerNorm over the last axis (one-pass mean / sum-of-squares)."""
    m = jnp.mean(x, axis=-1, keepdims=True)
    ms = jnp.mean(x * x, axis=-1, keepdims=True)
    var = jnp.maximum(ms - m * m, 0.0)
    return (x - m) * jax.lax.rsqrt(var + eps) * g + b


def _ln_cm(x, g_col, b_col, eps):
    """LayerNorm2d in channel-major layout: normalize over axis 0 (channels)."""
    m = jnp.mean(x, axis=0, keepdims=True)
    ms = jnp.mean(x * x, axis=0, keepdims=True)
    var = jnp.maximum(ms - m * m, 0.0)
    return (x - m) * jax.lax.rsqrt(var + eps) * g_col + b_col


def _softmax(s):
    s = s - jnp.max(s, axis=-1, keepdims=True)
    p = jnp.exp(s)
    return p * pl.reciprocal(jnp.sum(p, axis=-1, keepdims=True), approx=True)


def _relu(x):
    return jnp.maximum(x, 0.0)


def _erf(x):
    # Abramowitz & Stegun 7.1.26 (|err| < 1.5e-7): only exp/abs/where inside Mosaic.
    a1, a2, a3, a4, a5 = 0.254829592, -0.284496736, 1.421413741, -1.453152027, 1.061405429
    p = 0.3275911
    sgn = jnp.where(x < 0.0, -1.0, 1.0)
    ax = jnp.abs(x)
    t = 1.0 / (1.0 + p * ax)
    poly = ((((a5 * t + a4) * t + a3) * t + a2) * t + a1) * t
    return sgn * (1.0 - poly * jnp.exp(-ax * ax))


def _gelu(x):
    return 0.5 * x * (1.0 + _erf(x * 0.7071067811865476))


# ----------------------------- wrapper (XLA glue) -----------------------------
def _patchify(imgs):
    """(B,3,H,W) -> (B*gh*gw, 3*PATCH*PATCH) non-overlapping patches (im2col)."""
    B = imgs.shape[0]
    x = imgs.reshape(B, IN_CH, EMB_HW, PATCH, EMB_HW, PATCH)
    x = x.transpose(0, 2, 4, 1, 3, 5)
    return x.reshape(B * EMB_HW * EMB_HW, IN_CH * PATCH * PATCH)


def _upsample_nearest_int(x, out_size):
    """F.interpolate(mode='nearest') for an exact integer scale (16->32)."""
    B, C, H, W = x.shape
    rh, rw = out_size // H, out_size // W
    x = jnp.broadcast_to(x[:, :, :, None, :, None], (B, C, H, rh, W, rw))
    return x.reshape(B, C, H * rh, W * rw)


# ----------------------------- constants (host) ------------------------------
def _conv3x3_shift_mats(hw):
    """3x3 conv (pad=1) shift matrices, token-major (y*hw+x), zero boundary."""
    mats = []
    for dy in (-1, 0, 1):
        for dx in (-1, 0, 1):
            m = np.zeros((hw * hw, hw * hw), np.float32)
            for y in range(hw):
                for x in range(hw):
                    yy, xx = y + dy, x + dx
                    if 0 <= yy < hw and 0 <= xx < hw:
                        m[y * hw + x, yy * hw + xx] = 1.0
            mats.append(m)
    return mats


def _convT_gather_mats(h):
    """ConvTranspose2d(k=2,s=2) tap (di,dj): out[2y+di, 2x+dj] <- in[y, x]."""
    mats = []
    for di in range(2):
        for dj in range(2):
            g = np.zeros((4 * h * h, h * h), np.float32)
            for y in range(h):
                for x in range(h):
                    g[(2 * y + di) * (2 * h) + (2 * x + dj), y * h + x] = 1.0
            mats.append(g)
    return mats


def _dense_pe_tokens(pe_gauss):
    """PromptEncoder.get_dense_pe() flattened to (HW, C) token-major (host-side,
    input-independent)."""
    h = w = EMB_HW
    ys = (np.arange(h, dtype=np.float32) + 0.5) / h
    xs = (np.arange(w, dtype=np.float32) + 0.5) / w
    yy, xx = np.meshgrid(ys, xs, indexing="ij")
    coords = 2.0 * np.stack([xx, yy], axis=-1) - 1.0          # (h, w, 2) (x, y)
    coords = coords @ pe_gauss
    coords = 2.0 * np.pi * coords
    pe = np.concatenate([np.sin(coords), np.cos(coords)], axis=-1)
    return pe.reshape(h * w, PROMPT_DIM).astype(np.float32)


# ----------------------------- parameter packing -----------------------------
class _Packer:
    """Packs many small 2-D arrays into one (rows, 128) blob. Every entry starts
    at a tile-aligned row offset and is addressed in-kernel with a static slice."""

    def __init__(self, width=BLOB_W, align=8):
        self.width = width
        self.align = align
        self.blocks = []
        self.index = {}
        self.off = 0

    def add(self, name, arr):
        arr = np.asarray(arr, np.float32)
        if arr.ndim == 1:
            arr = arr[None, :]
        r, c = arr.shape
        assert c <= self.width and name not in self.index, name
        rp = ((r + self.align - 1) // self.align) * self.align
        blk = np.zeros((rp, self.width), np.float32)
        blk[:r, :c] = arr
        self.blocks.append(blk)
        self.index[name] = (self.off, r, c)
        self.off += rp

    def blob(self, dtype):
        return jnp.asarray(np.concatenate(self.blocks, axis=0), dtype)


def init_params(seed=0):
    rng = np.random.default_rng(seed)

    def w(shape, scale=0.02):
        return rng.normal(0.0, scale, shape).astype(np.float32)

    def ones(c):
        return np.ones((1, c), np.float32)

    def zeros(c):
        return np.zeros((1, c), np.float32)

    wp = _Packer(align=16)   # bf16 blob: 16-row (tile) aligned entries
    fp = _Packer(align=8)    # f32 blob : 8-row aligned entries

    # ---- image encoder ----
    wp.add("patch_w", w((IN_CH * PATCH * PATCH, ENC_DIM)))
    fp.add("patch_b", w((1, ENC_DIM), 0.01))
    fp.add("pos_embed", w((N_TOK, ENC_DIM)))
    for b in range(ENC_DEPTH):
        pfx = f"enc_b{b}"
        fp.add(pfx + "_ln1_g", ones(ENC_DIM))
        fp.add(pfx + "_ln1_b", zeros(ENC_DIM))
        wp.add(pfx + "_wqkv", w((ENC_DIM, 3 * ENC_DIM)))
        fp.add(pfx + "_bqkv", w((1, 3 * ENC_DIM), 0.01))
        wo = w((ENC_DIM, ENC_DIM))
        for h in range(ENC_HEADS):                       # pre-split (tile aligned)
            wp.add(f"{pfx}_wo_h{h}", wo[h * ENC_DH:(h + 1) * ENC_DH, :])
        fp.add(pfx + "_bo", w((1, ENC_DIM), 0.01))
        fp.add(pfx + "_ln2_g", ones(ENC_DIM))
        fp.add(pfx + "_ln2_b", zeros(ENC_DIM))
        wp.add(pfx + "_mlp_w1", w((ENC_DIM, ENC_DIM * MLP_RATIO)))
        fp.add(pfx + "_mlp_b1", w((1, ENC_DIM * MLP_RATIO), 0.01))
        wp.add(pfx + "_mlp_w2", w((ENC_DIM * MLP_RATIO, ENC_DIM)))
        fp.add(pfx + "_mlp_b2", w((1, ENC_DIM), 0.01))
    wp.add("neck_w1", w((ENC_DIM, PROMPT_DIM)))
    fp.add("neck_ln1_g", ones(PROMPT_DIM))
    fp.add("neck_ln1_b", zeros(PROMPT_DIM))
    taps = [w((PROMPT_DIM, PROMPT_DIM)) for _ in range(9)]
    for g in range(3):                                   # fused [W|W|W] tap groups
        wp.add(f"neck_w2_g{g}", np.concatenate(taps[3 * g:3 * g + 3], axis=1))
    for i, s in enumerate(_conv3x3_shift_mats(EMB_HW)):
        wp.add(f"neck_S{i}", s)
    fp.add("neck_ln2_g", ones(PROMPT_DIM))
    fp.add("neck_ln2_b", zeros(PROMPT_DIM))

    # ---- prompt encoder (no prompts) ----
    fp.add("no_mask", w((1, PROMPT_DIM)))
    pe_gauss = rng.normal(0.0, 1.0, (2, PROMPT_DIM // 2)).astype(np.float32)
    fp.add("image_pe", _dense_pe_tokens(pe_gauss))

    # ---- mask decoder ----
    C = PROMPT_DIM
    fp.add("out_tokens", w((1 + NUM_MASK_TOKENS, C)))    # [iou_token ; mask_tokens]

    def add_attn(pfx, cint):
        dh = cint // DEC_HEADS
        wp.add(pfx + "_wq", w((C, cint)))
        fp.add(pfx + "_bq", w((1, cint), 0.01))
        wp.add(pfx + "_wk", w((C, cint)))
        fp.add(pfx + "_bk", w((1, cint), 0.01))
        wp.add(pfx + "_wv", w((C, cint)))
        fp.add(pfx + "_bv", w((1, cint), 0.01))
        wo = w((cint, C))
        for h in range(DEC_HEADS):
            wp.add(f"{pfx}_wo_h{h}", wo[h * dh:(h + 1) * dh, :])
        fp.add(pfx + "_bo", w((1, C), 0.01))

    for l in range(DEC_DEPTH):
        pfx = f"dec_l{l}"
        add_attn(pfx + "_self", C)
        add_attn(pfx + "_t2i", DEC_CROSS_DIM)
        add_attn(pfx + "_i2t", DEC_CROSS_DIM)
        for j in range(1, 5):
            fp.add(pfx + f"_n{j}_g", ones(C))
            fp.add(pfx + f"_n{j}_b", zeros(C))
        wp.add(pfx + "_mlp_w1", w((C, DEC_MLP)))
        fp.add(pfx + "_mlp_b1", w((1, DEC_MLP), 0.01))
        wp.add(pfx + "_mlp_w2", w((DEC_MLP, C)))
        fp.add(pfx + "_mlp_b2", w((1, C), 0.01))
    add_attn("dec_final", DEC_CROSS_DIM)
    fp.add("dec_nf_g", ones(C))
    fp.add("dec_nf_b", zeros(C))

    # output upscaling (ConvTranspose k=2 s=2, stored transposed for channel-major use)
    g1 = _convT_gather_mats(EMB_HW)          # 4 x (64, 16)
    g2 = _convT_gather_mats(EMB_HW * 2)      # 4 x (256, 64)
    for tap in range(4):
        wp.add(f"up1_wT{tap}", w((C, C // 4)).T)         # (8, 32)
        wp.add(f"up1_G{tap}", g1[tap])
        wp.add(f"up2_wT{tap}", w((C // 4, C // 8)).T)    # (4, 8)
        wp.add(f"up2_G{tap}", g2[tap])
    fp.add("up1_b_col", w((C // 4, 1), 0.01))
    fp.add("up_ln_g_col", np.ones((C // 4, 1), np.float32))
    fp.add("up_ln_b_col", np.zeros((C // 4, 1), np.float32))
    fp.add("up2_b_col", w((C // 8, 1), 0.01))

    # hypernet MLP (mask token 0; multimask_output=False) + IoU head
    wp.add("hyp_w1", w((C, C)));              fp.add("hyp_b1", w((1, C), 0.01))
    wp.add("hyp_w2", w((C, C)));              fp.add("hyp_b2", w((1, C), 0.01))
    wp.add("hyp_w3", w((C, C // 8)));         fp.add("hyp_b3", w((1, C // 8), 0.01))
    wp.add("iou_w1", w((C, IOU_HIDDEN)));     fp.add("iou_b1", w((1, IOU_HIDDEN), 0.01))
    wp.add("iou_w2", w((IOU_HIDDEN, IOU_HIDDEN)))
    fp.add("iou_b2", w((1, IOU_HIDDEN), 0.01))
    wp.add("iou_w3", w((IOU_HIDDEN, NUM_MASK_TOKENS)))
    fp.add("iou_b3", w((1, NUM_MASK_TOKENS), 0.01))

    blobs = {"w": wp.blob(MXU_DTYPE), "f": fp.blob(jnp.float32)}
    layout = {"w": wp.index, "f": fp.index}
    return blobs, layout


# ----------------------------- fused forward kernel --------------------------
def make_forward(layout):
    wl, fl = layout["w"], layout["f"]

    def kernel(x_ref, w_ref, f_ref, out_ref):
        def W(name):                                   # bf16 weight slab slice
            off, r, c = wl[name]
            return w_ref[off:off + r, 0:c]

        def F(name):                                   # f32 vector/constant slice
            off, r, c = fl[name]
            return f_ref[off:off + r, 0:c]

        def attention(pfx, qin, kin, vin, dh, scale):
            # full-width projections (all heads at once), per-head lane slices
            q = _mm(qin, W(pfx + "_wq")) + F(pfx + "_bq")
            k = _mm(kin, W(pfx + "_wk")) + F(pfx + "_bk")
            v = _mm(vin, W(pfx + "_wv")) + F(pfx + "_bv")
            out = None
            for h in range(DEC_HEADS):
                lo = h * dh
                s = _mm_bt(q[:, lo:lo + dh], k[:, lo:lo + dh]) * scale
                p = _softmax(s)
                o = _mm(p, v[:, lo:lo + dh])
                c = _mm(o, W(f"{pfx}_wo_h{h}"))        # per-head out-proj, summed
                out = c if out is None else out + c
            return out + F(pfx + "_bo")

        # ------------------------- image encoder -----------------------------
        x = _mm(x_ref[...], W("patch_w")) + F("patch_b") + F("pos_embed")   # (16,32)
        for b in range(ENC_DEPTH):
            pfx = f"enc_b{b}"
            h = _ln(x, F(pfx + "_ln1_g"), F(pfx + "_ln1_b"), 1e-6)
            qkv = _mm(h, W(pfx + "_wqkv")) + F(pfx + "_bqkv")               # (16,96)
            att = None
            for hd in range(ENC_HEADS):
                lo = hd * ENC_DH
                qh = qkv[:, lo:lo + ENC_DH]
                kh = qkv[:, ENC_DIM + lo:ENC_DIM + lo + ENC_DH]
                vh = qkv[:, 2 * ENC_DIM + lo:2 * ENC_DIM + lo + ENC_DH]
                s = _mm_bt(qh, kh) * ENC_SCALE
                p = _softmax(s)
                o = _mm(p, vh)
                c = _mm(o, W(f"{pfx}_wo_h{hd}"))
                att = c if att is None else att + c
            x = x + att + F(pfx + "_bo")
            h = _ln(x, F(pfx + "_ln2_g"), F(pfx + "_ln2_b"), 1e-6)
            m = _gelu(_mm(h, W(pfx + "_mlp_w1")) + F(pfx + "_mlp_b1"))
            x = x + _mm(m, W(pfx + "_mlp_w2")) + F(pfx + "_mlp_b2")

        # neck: 1x1 conv -> LN2d -> 3x3 conv (fused tap-groups + shift matmuls) -> LN2d
        y = _mm(x, W("neck_w1"))
        y = _ln(y, F("neck_ln1_g"), F("neck_ln1_b"), 1e-6)
        acc = None
        for g in range(3):
            z = _mm(y, W(f"neck_w2_g{g}"))                     # (16, 96) = 3 taps
            for j in range(3):
                tap = 3 * g + j
                t = _mm(W(f"neck_S{tap}"), z[:, 32 * j:32 * j + 32])
                acc = t if acc is None else acc + t
        img_tokens = _ln(acc, F("neck_ln2_g"), F("neck_ln2_b"), 1e-6)       # (16,32)

        # --------------- prompt encoder (no prompts) + mask decoder ----------
        queries = F("out_tokens")            # (5, 32)  [iou_token ; mask_tokens]
        query_pe = queries                   # point_embedding (kept fixed)
        keys = img_tokens + F("no_mask")     # src = img_emb + no-mask dense embed
        key_pe = F("image_pe")               # (16, 32)

        for l in range(DEC_DEPTH):
            pfx = f"dec_l{l}"
            if l == 0:                       # skip_first_layer_pe
                queries = attention(pfx + "_self", queries, queries, queries,
                                    DEC_SELF_DH, DEC_SELF_SCALE)
            else:
                q = queries + query_pe
                queries = queries + attention(pfx + "_self", q, q, queries,
                                              DEC_SELF_DH, DEC_SELF_SCALE)
            queries = _ln(queries, F(pfx + "_n1_g"), F(pfx + "_n1_b"), 1e-5)

            q = queries + query_pe
            k = keys + key_pe
            queries = queries + attention(pfx + "_t2i", q, k, keys,
                                          DEC_CROSS_DH, DEC_CROSS_SCALE)
            queries = _ln(queries, F(pfx + "_n2_g"), F(pfx + "_n2_b"), 1e-5)

            m = _relu(_mm(queries, W(pfx + "_mlp_w1")) + F(pfx + "_mlp_b1"))
            queries = queries + _mm(m, W(pfx + "_mlp_w2")) + F(pfx + "_mlp_b2")
            queries = _ln(queries, F(pfx + "_n3_g"), F(pfx + "_n3_b"), 1e-5)

            q = queries + query_pe
            k = keys + key_pe
            keys = keys + attention(pfx + "_i2t", k, q, queries,
                                    DEC_CROSS_DH, DEC_CROSS_SCALE)
            keys = _ln(keys, F(pfx + "_n4_g"), F(pfx + "_n4_b"), 1e-5)

        q = queries + query_pe
        k = keys + key_pe
        queries = queries + attention("dec_final", q, k, keys,
                                      DEC_CROSS_DH, DEC_CROSS_SCALE)
        queries = _ln(queries, F("dec_nf_g"), F("dec_nf_b"), 1e-5)

        iou_tok = queries[0:1, :]            # static sublane slices (no selector matmuls)
        mask_tok = queries[1:2, :]

        # output upscaling (channel-major, lane-dense): up (8,64), up2 (4,256)
        up = None
        for tap in range(4):
            a = _mm_bt(W(f"up1_wT{tap}"), keys)      # (8,32)·(16,32)^T -> (8,16)
            t = _mm_bt(a, W(f"up1_G{tap}"))          # (8,16)·(64,16)^T -> (8,64)
            up = t if up is None else up + t
        up = up + F("up1_b_col")
        up = _gelu(_ln_cm(up, F("up_ln_g_col"), F("up_ln_b_col"), 1e-6))
        up2 = None
        for tap in range(4):
            a = _mm(W(f"up2_wT{tap}"), up)           # (4,8)@(8,64)   -> (4,64)
            t = _mm_bt(a, W(f"up2_G{tap}"))          # (4,64)·(256,64)^T -> (4,256)
            up2 = t if up2 is None else up2 + t
        up2 = _gelu(up2 + F("up2_b_col"))

        # hypernetwork MLP of mask token 0 (multimask_output=False -> slice(0,1))
        hm = _relu(_mm(mask_tok, W("hyp_w1")) + F("hyp_b1"))
        hm = _relu(_mm(hm, W("hyp_w2")) + F("hyp_b2"))
        h0 = _mm(hm, W("hyp_w3")) + F("hyp_b3")      # (1, 4)
        mask = _mm(h0, up2)                          # (1, 256) lane-dense logits

        # IoU head (discarded by Sam.forward; kept for MaskDecoder parity)
        it = _relu(_mm(iou_tok, W("iou_w1")) + F("iou_b1"))
        it = _relu(_mm(it, W("iou_w2")) + F("iou_b2"))
        iou = _mm(it, W("iou_w3")) + F("iou_b3")     # (1, 4)

        out_ref[...] = jnp.zeros((2, LOWRES * LOWRES), jnp.float32)
        out_ref[0:1, :] = mask
        out_ref[1:2, 0:NUM_MASK_TOKENS] = iou        # small masked store

    def fwd(blobs, imgs):
        # decoder path assumes a single prompt batch (pt=None)
        x_patches = _patchify(imgs.astype(jnp.float32))
        out = pl.pallas_call(
            kernel,
            out_shape=jax.ShapeDtypeStruct((2, LOWRES * LOWRES), jnp.float32),
        )(x_patches, blobs["w"], blobs["f"])
        pred = out[0:1, :].reshape(1, 1, LOWRES, LOWRES)
        return _upsample_nearest_int(pred, OUT_SIZE)   # F.interpolate (nearest)

    return jax.jit(fwd)


# ----------------------------------- main ------------------------------------
if __name__ == "__main__":
    blobs, layout = init_params(seed=0)
    fwd = make_forward(layout)
    imgs = jax.random.normal(jax.random.PRNGKey(0), (1, IN_CH, IMG, IMG), jnp.float32)
    pred = jax.block_until_ready(fwd(blobs, imgs))
    assert pred.shape == (1, 1, OUT_SIZE, OUT_SIZE), pred.shape
    assert bool(jnp.all(jnp.isfinite(pred)))
    print("KERNEL_OK")
</pallas_src>

<mosaic_0001>
module attributes {stable_mosaic.version = 11 : i64} {
  func.func @kernel(%arg0: memref<16x192xf32, #tpu.memory_space<vmem>>, %arg1: memref<3600x128xbf16, #tpu.memory_space<vmem>>, %arg2: memref<696x128xf32, #tpu.memory_space<vmem>>, %arg3: memref<2x256xf32, #tpu.memory_space<vmem>>) attributes {dimension_semantics = [], scalar_prefetch = 0 : i64, scratch_operands = 0 : i64, tpu.core_type = #tpu.core_type<tc>} {
    %c0 = arith.constant 0 : index
    %c0_0 = arith.constant 0 : index
    %0 = vector.load %arg0[%c0, %c0_0] : memref<16x192xf32, #tpu.memory_space<vmem>>, vector<16x192xf32>
    %c0_1 = arith.constant 0 : index
    %c0_2 = arith.constant 0 : index
    %1 = vector.load %arg1[%c0_1, %c0_2] : memref<3600x128xbf16, #tpu.memory_space<vmem>>, vector<192x32xbf16>
    %2 = arith.truncf %0 : vector<16x192xf32> to vector<16x192xbf16>
    %cst = arith.constant dense<0.000000e+00> : vector<16x32xf32>
    %3 = tpu.matmul %2, %1, %cst {dimension_numbers = #tpu.dot_dimension_numbers<[1], [0], [0], [1], [0, 0, 1, 1], [], []>} : vector<16x192xbf16>, vector<192x32xbf16>, vector<16x32xf32> -> vector<16x32xf32>
    %c0_3 = arith.constant 0 : index
    %c0_4 = arith.constant 0 : index
    %4 = vector.load %arg2[%c0_3, %c0_4] : memref<696x128xf32, #tpu.memory_space<vmem>>, vector<1x32xf32>
    %5 = vector.broadcast %4 : vector<1x32xf32> to vector<16x32xf32>
    %6 = arith.addf %3, %5 : vector<16x32xf32>
    %c8 = arith.constant 8 : index
    %c0_5 = arith.constant 0 : index
    %7 = vector.load %arg2[%c8, %c0_5] : memref<696x128xf32, #tpu.memory_space<vmem>>, vector<16x32xf32>
    %8 = arith.addf %6, %7 : vector<16x32xf32>
    %c24 = arith.constant 24 : index
    %c0_6 = arith.constant 0 : index
    %9 = vector.load %arg2[%c24, %c0_6] : memref<696x128xf32, #tpu.memory_space<vmem>>, vector<1x32xf32>
    %c32 = arith.constant 32 : index
    %c0_7 = arith.constant 0 : index
    %10 = vector.load %arg2[%c32, %c0_7] : memref<696x128xf32, #tpu.memory_space<vmem>>, vector<1x32xf32>
    %cst_8 = arith.constant dense<0.000000e+00> : vector<16xf32>
    %11 = vector.multi_reduction <add>, %8, %cst_8 [1] : vector<16x32xf32> to vector<16xf32>
    %12 = vector.shape_cast %11 : vector<16xf32> to vector<16x1xf32>
    %cst_9 = arith.constant 3.200000e+01 : f32
    %13 = vector.broadcast %cst_9 : f32 to vector<16x1xf32>
    %14 = arith.divf %12, %13 : vector<16x1xf32>
    %15 = arith.mulf %8, %8 : vector<16x32xf32>
    %cst_10 = arith.constant dense<0.000000e+00> : vector<16xf32>
    %16 = vector.multi_reduction <add>, %15, %cst_10 [1] : vector<16x32xf32> to vector<16xf32>
    %17 = vector.shape_cast %16 : vector<16xf32> to vector<16x1xf32>
    %cst_11 = arith.constant 3.200000e+01 : f32
    %18 = vector.broadcast %cst_11 : f32 to vector<16x1xf32>
    %19 = arith.divf %17, %18 : vector<16x1xf32>
    %20 = arith.mulf %14, %14 : vector<16x1xf32>
    %21 = arith.subf %19, %20 : vector<16x1xf32>
    %cst_12 = arith.constant 0.000000e+00 : f32
    %22 = vector.broadcast %cst_12 : f32 to vector<16x1xf32>
    %23 = arith.maximumf %21, %22 : vector<16x1xf32>
    %24 = vector.broadcast %14 : vector<16x1xf32> to vector<16x32xf32>
    %25 = arith.subf %8, %24 : vector<16x32xf32>
    %cst_13 = arith.constant 9.99999997E-7 : f32
    %26 = vector.broadcast %cst_13 : f32 to vector<16x1xf32>
    %27 = arith.addf %23, %26 : vector<16x1xf32>
    %28 = math.rsqrt %27 : vector<16x1xf32>
    %29 = vector.broadcast %28 : vector<16x1xf32> to vector<16x32xf32>
    %30 = arith.mulf %25, %29 : vector<16x32xf32>
    %31 = vector.broadcast %9 : vector<1x32xf32> to vector<16x32xf32>
    %32 = arith.mulf %30, %31 : vector<16x32xf32>
    %33 = vector.broadcast %10 : vector<1x32xf32> to vector<16x32xf32>
    %34 = arith.addf %32, %33 : vector<16x32xf32>
    %c192 = arith.constant 192 : index
    %c0_14 = arith.constant 0 : index
    %35 = vector.load %arg1[%c192, %c0_14] : memref<3600x128xbf16, #tpu.memory_space<vmem>>, vector<32x96xbf16>
    %36 = arith.truncf %34 : vector<16x32xf32> to vector<16x32xbf16>
    %cst_15 = arith.constant dense<0.000000e+00> : vector<16x96xf32>
    %37 = tpu.matmul %36, %35, %cst_15 {dimension_numbers = #tpu.dot_dimension_numbers<[1], [0], [0], [1], [0, 0, 1, 1], [], []>} : vector<16x32xbf16>, vector<32x96xbf16>, vector<16x96xf32> -> vector<16x96xf32>
    %c40 = arith.constant 40 : index
    %c0_16 = arith.constant 0 : index
    %38 = vector.load %arg2[%c40, %c0_16] : memref<696x128xf32, #tpu.memory_space<vmem>>, vector<1x96xf32>
    %39 = vector.broadcast %38 : vector<1x96xf32> to vector<16x96xf32>
    %40 = arith.addf %37, %39 : vector<16x96xf32>
    %41 = vector.extract_strided_slice %40 {offsets = [0, 0], sizes = [16, 16], strides = [1, 1]} : vector<16x96xf32> to vector<16x16xf32>
    %42 = vector.extract_strided_slice %40 {offsets = [0, 32], sizes = [16, 16], strides = [1, 1]} : vector<16x96xf32> to vector<16x16xf32>
    %43 = vector.extract_strided_slice %40 {offsets = [0, 64], sizes = [16, 16], strides = [1, 1]} : vector<16x96xf32> to vector<16x16xf32>
    %44 = arith.truncf %41 : vector<16x16xf32> to vector<16x16xbf16>
    %45 = arith.truncf %42 : vector<16x16xf32> to vector<16x16xbf16>
    %cst_17 = arith.constant dense<0.000000e+00> : vector<16x16xf32>
    %46 = tpu.matmul %44, %45, %cst_17 {dimension_numbers = #tpu.dot_dimension_numbers<[1], [1], [0], [0], [0, 0, 1, 0], [], []>} : vector<16x16xbf16>, vector<16x16xbf16>, vector<16x16xf32> -> vector<16x16xf32>
    %cst_18 = arith.constant 2.500000e-01 : f32
    %47 = vector.broadcast %cst_18 : f32 to vector<16x16xf32>
    %48 = arith.mulf %46, %47 : vector<16x16xf32>
    %cst_19 = arith.constant dense<0xFF800000> : vector<16xf32>
    %49 = vector.multi_reduction <maximumf>, %48, %cst_19 [1] : vector<16x16xf32> to vector<16xf32>
    %50 = vector.shape_cast %49 : vector<16xf32> to vector<16x1xf32>
    %51 = vector.broadcast %50 : vector<16x1xf32> to vector<16x16xf32>
    %52 = arith.subf %48, %51 : vector<16x16xf32>
    %53 = math.exp %52 : vector<16x16xf32>
    %cst_20 = arith.constant dense<0.000000e+00> : vector<16xf32>
    %54 = vector.multi_reduction <add>, %53, %cst_20 [1] : vector<16x16xf32> to vector<16xf32>
    %55 = vector.shape_cast %54 : vector<16xf32> to vector<16x1xf32>
    %56 = tpu.reciprocal %55 {approx = true} : vector<16x1xf32> -> vector<16x1xf32>
    %57 = vector.broadcast %56 : vector<16x1xf32> to vector<16x16xf32>
    %58 = arith.mulf %53, %57 : vector<16x16xf32>
    %59 = arith.truncf %58 : vector<16x16xf32> to vector<16x16xbf16>
    %60 = arith.truncf %43 : vector<16x16xf32> to vector<16x16xbf16>
    %cst_21 = arith.constant dense<0.000000e+00> : vector<16x16xf32>
    %61 = tpu.matmul %59, %60, %cst_21 {dimension_numbers = #tpu.dot_dimension_numbers<[1], [0], [0], [1], [0, 0, 1, 1], [], []>} : vector<16x16xbf16>, vector<16x16xbf16>, vector<16x16xf32> -> vector<16x16xf32>
    %c224 = arith.constant 224 : index
    %c0_22 = arith.constant 0 : index
    %62 = vector.load %arg1[%c224, %c0_22] : memref<3600x128xbf16, #tpu.memory_space<vmem>>, vector<16x32xbf16>
    %63 = arith.truncf %61 : vector<16x16xf32> to vector<16x16xbf16>
    %cst_23 = arith.constant dense<0.000000e+00> : vector<16x32xf32>
    %64 = tpu.matmul %63, %62, %cst_23 {dimension_numbers = #tpu.dot_dimension_numbers<[1], [0], [0], [1], [0, 0, 1, 1], [], []>} : vector<16x16xbf16>, vector<16x32xbf16>, vector<16x32xf32> -> vector<16x32xf32>
    %65 = vector.extract_strided_slice %40 {offsets = [0, 16], sizes = [16, 16], strides = [1, 1]} : vector<16x96xf32> to vector<16x16xf32>
    %66 = vector.extract_strided_slice %40 {offsets = [0, 48], sizes = [16, 16], strides = [1, 1]} : vector<16x96xf32> to vector<16x16xf32>
    %67 = vector.extract_strided_slice %40 {offsets = [0, 80], sizes = [16, 16], strides = [1, 1]} : vector<16x96xf32> to vector<16x16xf32>
    %68 = arith.truncf %65 : vector<16x16xf32> to vector<16x16xbf16>
    %69 = arith.truncf %66 : vector<16x16xf32> to vector<16x16xbf16>
    %cst_24 = arith.constant dense<0.000000e+00> : vector<16x16xf32>
    %70 = tpu.matmul %68, %69, %cst_24 {dimension_numbers = #tpu.dot_dimension_numbers<[1], [1], [0], [0], [0, 0, 1, 0], [], []>} : vector<16x16xbf16>, vector<16x16xbf16>, vector<16x16xf32> -> vector<16x16xf32>
    %cst_25 = arith.constant 2.500000e-01 : f32
    %71 = vector.broadcast %cst_25 : f32 to vector<16x16xf32>
    %72 = arith.mulf %70, %71 : vector<16x16xf32>
    %cst_26 = arith.constant dense<0xFF800000> : vector<16xf32>
    %73 = vector.multi_reduction <maximumf>, %72, %cst_26 [1] : vector<16x16xf32> to vector<16xf32>
    %74 = vector.shape_cast %73 : vector<16xf32> to vector<16x1xf32>
    %75 = vector.broadcast %74 : vector<16x1xf32> to vector<16x16xf32>
    %76 = arith.subf %72, %75 : vector<16x16xf32>
    %77 = math.exp %76 : vector<16x16xf32>
    %cst_27 = arith.constant dense<0.000000e+00> : vector<16xf32>
    %78 = vector.multi_reduction <add>, %77, %cst_27 [1] : vector<16x16xf32> to vector<16xf32>
    %79 = vector.shape_cast %78 : vector<16xf32> to vector<16x1xf32>
    %80 = tpu.reciprocal %79 {approx = true} : vector<16x1xf32> -> vector<16x1xf32>
    %81 = vector.broadcast %80 : vector<16x1xf32> to vector<16x16xf32>
    %82 = arith.mulf %77, %81 : vector<16x16xf32>
    %83 = arith.truncf %82 : vector<16x16xf32> to vector<16x16xbf16>
    %84 = arith.truncf %67 : vector<16x16xf32> to vector<16x16xbf16>
    %cst_28 = arith.constant dense<0.000000e+00> : vector<16x16xf32>
    %85 = tpu.matmul %83, %84, %cst_28 {dimension_numbers = #tpu.dot_dimension_numbers<[1], [0], [0], [1], [0, 0, 1, 1], [], []>} : vector<16x16xbf16>, vector<16x16xbf16>, vector<16x16xf32> -> vector<16x16xf32>
    %c240 = arith.constant 240 : index
    %c0_29 = arith.constant 0 : index
    %86 = vector.load %arg1[%c240, %c0_29] : memref<3600x128xbf16, #tpu.memory_space<vmem>>, vector<16x32xbf16>
    %87 = arith.truncf %85 : vector<16x16xf32> to vector<16x16xbf16>
    %cst_30 = arith.constant dense<0.000000e+00> : vector<16x32xf32>
    %88 = tpu.matmul %87, %86, %cst_30 {dimension_numbers = #tpu.dot_dimension_numbers<[1], [0], [0], [1], [0, 0, 1, 1], [], []>} : vector<16x16xbf16>, vector<16x32xbf16>, vector<16x32xf32> -> vector<16x32xf32>
    %89 = arith.addf %64, %88 : vector<16x32xf32>
    %90 = arith.addf %8, %89 : vector<16x32xf32>
    %c48 = arith.constant 48 : index
    %c0_31 = arith.constant 0 : index
    %91 = vector.load %arg2[%c48, %c0_31] : memref<696x128xf32, #tpu.memory_space<vmem>>, vector<1x32xf32>
    %92 = vector.broadcast %91 : vector<1x32xf32> to vector<16x32xf32>
    %93 = arith.addf %90, %92 : vector<16x32xf32>
    %c56 = arith.constant 56 : index
    %c0_32 = arith.constant 0 : index
    %94 = vector.load %arg2[%c56, %c0_32] : memref<696x128xf32, #tpu.memory_space<vmem>>, vector<1x32xf32>
    %c64 = arith.constant 64 : index
    %c0_33 = arith.constant 0 : index
    %95 = vector.load %arg2[%c64, %c0_33] : memref<696x128xf32, #tpu.memory_space<vmem>>, vector<1x32xf32>
    %cst_34 = arith.constant dense<0.000000e+00> : vector<16xf32>
    %96 = vector.multi_reduction <add>, %93, %cst_34 [1] : vector<16x32xf32> to vector<16xf32>
    %97 = vector.shape_cast %96 : vector<16xf32> to vector<16x1xf32>
    %cst_35 = arith.constant 3.200000e+01 : f32
    %98 = vector.broadcast %cst_35 : f32 to vector<16x1xf32>
    %99 = arith.divf %97, %98 : vector<16x1xf32>
    %100 = arith.mulf %93, %93 : vector<16x32xf32>
    %cst_36 = arith.constant dense<0.000000e+00> : vector<16xf32>
    %101 = vector.multi_reduction <add>, %100, %cst_36 [1] : vector<16x32xf32> to vector<16xf32>
    %102 = vector.shape_cast %101 : vector<16xf32> to vector<16x1xf32>
    %cst_37 = arith.constant 3.200000e+01 : f32
    %103 = vector.broadcast %cst_37 : f32 to vector<16x1xf32>
    %104 = arith.divf %102, %103 : vector<16x1xf32>
    %105 = arith.mulf %99, %99 : vector<16x1xf32>
    %106 = arith.subf %104, %105 : vector<16x1xf32>
    %cst_38 = arith.constant 0.000000e+00 : f32
    %107 = vector.broadcast %cst_38 : f32 to vector<16x1xf32>
    %108 = arith.maximumf %106, %107 : vector<16x1xf32>
    %109 = vector.broadcast %99 : vector<16x1xf32> to vector<16x32xf32>
    %110 = arith.subf %93, %109 : vector<16x32xf32>
    %cst_39 = arith.constant 9.99999997E-7 : f32
    %111 = vector.broadcast %cst_39 : f32 to vector<16x1xf32>
    %112 = arith.addf %108, %111 : vector<16x1xf32>
    %113 = math.rsqrt %112 : vector<16x1xf32>
    %114 = vector.broadcast %113 : vector<16x1xf32> to vector<16x32xf32>
    %115 = arith.mulf %110, %114 : vector<16x32xf32>
    %116 = vector.broadcast %94 : vector<1x32xf32> to vector<16x32xf32>
    %117 = arith.mulf %115, %116 : vector<16x32xf32>
    %118 = vector.broadcast %95 : vector<1x32xf32> to vector<16x32xf32>
    %119 = arith.addf %117, %118 : vector<16x32xf32>
    %c256 = arith.constant 256 : index
    %c0_40 = arith.constant 0 : index
    %120 = vector.load %arg1[%c256, %c0_40] : memref<3600x128xbf16, #tpu.memory_space<vmem>>, vector<32x128xbf16>
    %121 = arith.truncf %119 : vector<16x32xf32> to vector<16x32xbf16>
    %cst_41 = arith.constant dense<0.000000e+00> : vector<16x128xf32>
    %122 = tpu.matmul %121, %120, %cst_41 {dimension_numbers = #tpu.dot_dimension_numbers<[1], [0], [0], [1], [0, 0, 1, 1], [], []>} : vector<16x32xbf16>, vector<32x128xbf16>, vector<16x128xf32> -> vector<16x128xf32>
    %c72 = arith.constant 72 : index
    %c0_42 = arith.constant 0 : index
    %123 = vector.load %arg2[%c72, %c0_42] : memref<696x128xf32, #tpu.memory_space<vmem>>, vector<1x128xf32>
    %124 = vector.broadcast %123 : vector<1x128xf32> to vector<16x128xf32>
    %125 = arith.addf %122, %124 : vector<16x128xf32>
    %cst_43 = arith.constant 5.000000e-01 : f32
    %126 = vector.broadcast %cst_43 : f32 to vector<16x128xf32>
    %127 = arith.mulf %126, %125 : vector<16x128xf32>
    %cst_44 = arith.constant 0.707106769 : f32
    %128 = vector.broadcast %cst_44 : f32 to vector<16x128xf32>
    %129 = arith.mulf %125, %128 : vector<16x128xf32>
    %cst_45 = arith.constant 0.000000e+00 : f32
    %130 = vector.broadcast %cst_45 : f32 to vector<16x128xf32>
    %131 = arith.cmpf olt, %129, %130 : vector<16x128xf32>
    %cst_46 = arith.constant -1.000000e+00 : f32
    %cst_47 = arith.constant 1.000000e+00 : f32
    %132 = vector.broadcast %cst_46 : f32 to vector<16x128xf32>
    %133 = vector.broadcast %cst_47 : f32 to vector<16x128xf32>
    %134 = arith.select %131, %132, %133 : vector<16x128xi1>, vector<16x128xf32>
    %135 = math.absf %129 : vector<16x128xf32>
    %cst_48 = arith.constant 0.327591091 : f32
    %136 = vector.broadcast %cst_48 : f32 to vector<16x128xf32>
    %137 = arith.mulf %136, %135 : vector<16x128xf32>
    %cst_49 = arith.constant 1.000000e+00 : f32
    %138 = vector.broadcast %cst_49 : f32 to vector<16x128xf32>
    %139 = arith.addf %138, %137 : vector<16x128xf32>
    %cst_50 = arith.constant 1.000000e+00 : f32
    %140 = vector.broadcast %cst_50 : f32 to vector<16x128xf32>
    %141 = arith.divf %140, %139 : vector<16x128xf32>
    %cst_51 = arith.constant 1.06140542 : f32
    %142 = vector.broadcast %cst_51 : f32 to vector<16x128xf32>
    %143 = arith.mulf %142, %141 : vector<16x128xf32>
    %cst_52 = arith.constant -1.45315206 : f32
    %144 = vector.broadcast %cst_52 : f32 to vector<16x128xf32>
    %145 = arith.addf %143, %144 : vector<16x128xf32>
    %146 = arith.mulf %145, %141 : vector<16x128xf32>
    %cst_53 = arith.constant 1.42141378 : f32
    %147 = vector.broadcast %cst_53 : f32 to vector<16x128xf32>
    %148 = arith.addf %146, %147 : vector<16x128xf32>
    %149 = arith.mulf %148, %141 : vector<16x128xf32>
    %cst_54 = arith.constant -0.284496725 : f32
    %150 = vector.broadcast %cst_54 : f32 to vector<16x128xf32>
    %151 = arith.addf %149, %150 : vector<16x128xf32>
    %152 = arith.mulf %151, %141 : vector<16x128xf32>
    %cst_55 = arith.constant 0.254829586 : f32
    %153 = vector.broadcast %cst_55 : f32 to vector<16x128xf32>
    %154 = arith.addf %152, %153 : vector<16x128xf32>
    %155 = arith.mulf %154, %141 : vector<16x128xf32>
    %cst_56 = arith.constant 0.000000e+00 : f32
    %156 = vector.broadcast %cst_56 : f32 to vector<16x128xf32>
    %157 = arith.subf %156, %135 : vector<16x128xf32>
    %158 = arith.mulf %157, %135 : vector<16x128xf32>
    %159 = math.exp %158 : vector<16x128xf32>
    %160 = arith.mulf %155, %159 : vector<16x128xf32>
    %cst_57 = arith.constant 1.000000e+00 : f32
    %161 = vector.broadcast %cst_57 : f32 to vector<16x128xf32>
    %162 = arith.subf %161, %160 : vector<16x128xf32>
    %163 = arith.mulf %134, %162 : vector<16x128xf32>
    %cst_58 = arith.constant 1.000000e+00 : f32
    %164 = vector.broadcast %cst_58 : f32 to vector<16x128xf32>
    %165 = arith.addf %164, %163 : vector<16x128xf32>
    %166 = arith.mulf %127, %165 : vector<16x128xf32>
    %c288 = arith.constant 288 : index
    %c0_59 = arith.constant 0 : index
    %167 = vector.load %arg1[%c288, %c0_59] : memref<3600x128xbf16, #tpu.memory_space<vmem>>, vector<128x32xbf16>
    %168 = arith.truncf %166 : vector<16x128xf32> to vector<16x128xbf16>
    %cst_60 = arith.constant dense<0.000000e+00> : vector<16x32xf32>
    %169 = tpu.matmul %168, %167, %cst_60 {dimension_numbers = #tpu.dot_dimension_numbers<[1], [0], [0], [1], [0, 0, 1, 1], [], []>} : vector<16x128xbf16>, vector<128x32xbf16>, vector<16x32xf32> -> vector<16x32xf32>
    %170 = arith.addf %93, %169 : vector<16x32xf32>
    %c80 = arith.constant 80 : index
    %c0_61 = arith.constant 0 : index
    %171 = vector.load %arg2[%c80, %c0_61] : memref<696x128xf32, #tpu.memory_space<vmem>>, vector<1x32xf32>
    %172 = vector.broadcast %171 : vector<1x32xf32> to vector<16x32xf32>
    %173 = arith.addf %170, %172 : vector<16x32xf32>
    %c88 = arith.constant 88 : index
    %c0_62 = arith.constant 0 : index
    %174 = vector.load %arg2[%c88, %c0_62] : memref<696x128xf32, #tpu.memory_space<vmem>>, vector<1x32xf32>
    %c96 = arith.constant 96 : index
    %c0_63 = arith.constant 0 : index
    %175 = vector.load %arg2[%c96, %c0_63] : memref<696x128xf32, #tpu.memory_space<vmem>>, vector<1x32xf32>
    %cst_64 = arith.constant dense<0.000000e+00> : vector<16xf32>
    %176 = vector.multi_reduction <add>, %173, %cst_64 [1] : vector<16x32xf32> to vector<16xf32>
    %177 = vector.shape_cast %176 : vector<16xf32> to vector<16x1xf32>
    %cst_65 = arith.constant 3.200000e+01 : f32
    %178 = vector.broadcast %cst_65 : f32 to vector<16x1xf32>
    %179 = arith.divf %177, %178 : vector<16x1xf32>
    %180 = arith.mulf %173, %173 : vector<16x32xf32>
    %cst_66 = arith.constant dense<0.000000e+00> : vector<16xf32>
    %181 = vector.multi_reduction <add>, %180, %cst_66 [1] : vector<16x32xf32> to vector<16xf32>
    %182 = vector.shape_cast %181 : vector<16xf32> to vector<16x1xf32>
    %cst_67 = arith.constant 3.200000e+01 : f32
    %183 = vector.broadcast %cst_67 : f32 to vector<16x1xf32>
    %184 = arith.divf %182, %183 : vector<16x1xf32>
    %185 = arith.mulf %179, %179 : vector<16x1xf32>
    %186 = arith.subf %184, %185 : vector<16x1xf32>
    %cst_68 = arith.constant 0.000000e+00 : f32
    %187 = vector.broadcast %cst_68 : f32 to vector<16x1xf32>
    %188 = arith.maximumf %186, %187 : vector<16x1xf32>
    %189 = vector.broadcast %179 : vector<16x1xf32> to vector<16x32xf32>
    %190 = arith.subf %173, %189 : vector<16x32xf32>
    %cst_69 = arith.constant 9.99999997E-7 : f32
    %191 = vector.broadcast %cst_69 : f32 to vector<16x1xf32>
    %192 = arith.addf %188, %191 : vector<16x1xf32>
    %193 = math.rsqrt %192 : vector<16x1xf32>
    %194 = vector.broadcast %193 : vector<16x1xf32> to vector<16x32xf32>
    %195 = arith.mulf %190, %194 : vector<16x32xf32>
    %196 = vector.broadcast %174 : vector<1x32xf32> to vector<16x32xf32>
    %197 = arith.mulf %195, %196 : vector<16x32xf32>
    %198 = vector.broadcast %175 : vector<1x32xf32> to vector<16x32xf32>
    %199 = arith.addf %197, %198 : vector<16x32xf32>
    %c416 = arith.constant 416 : index
    %c0_70 = arith.constant 0 : index
    %200 = vector.load %arg1[%c416, %c0_70] : memref<3600x128xbf16, #tpu.memory_space<vmem>>, vector<32x96xbf16>
    %201 = arith.truncf %199 : vector<16x32xf32> to vector<16x32xbf16>
    %cst_71 = arith.constant dense<0.000000e+00> : vector<16x96xf32>
    %202 = tpu.matmul %201, %200, %cst_71 {dimension_numbers = #tpu.dot_dimension_numbers<[1], [0], [0], [1], [0, 0, 1, 1], [], []>} : vector<16x32xbf16>, vector<32x96xbf16>, vector<16x96xf32> -> vector<16x96xf32>
    %c104 = arith.constant 104 : index
    %c0_72 = arith.constant 0 : index
    %203 = vector.load %arg2[%c104, %c0_72] : memref<696x128xf32, #tpu.memory_space<vmem>>, vector<1x96xf32>
    %204 = vector.broadcast %203 : vector<1x96xf32> to vector<16x96xf32>
    %205 = arith.addf %202, %204 : vector<16x96xf32>
    %206 = vector.extract_strided_slice %205 {offsets = [0, 0], sizes = [16, 16], strides = [1, 1]} : vector<16x96xf32> to vector<16x16xf32>
    %207 = vector.extract_strided_slice %205 {offsets = [0, 32], sizes = [16, 16], strides = [1, 1]} : vector<16x96xf32> to vector<16x16xf32>
    %208 = vector.extract_strided_slice %205 {offsets = [0, 64], sizes = [16, 16], strides = [1, 1]} : vector<16x96xf32> to vector<16x16xf32>
    %209 = arith.truncf %206 : vector<16x16xf32> to vector<16x16xbf16>
    %210 = arith.truncf %207 : vector<16x16xf32> to vector<16x16xbf16>
    %cst_73 = arith.constant dense<0.000000e+00> : vector<16x16xf32>
    %211 = tpu.matmul %209, %210, %cst_73 {dimension_numbers = #tpu.dot_dimension_numbers<[1], [1], [0], [0], [0, 0, 1, 0], [], []>} : vector<16x16xbf16>, vector<16x16xbf16>, vector<16x16xf32> -> vector<16x16xf32>
    %cst_74 = arith.constant 2.500000e-01 : f32
    %212 = vector.broadcast %cst_74 : f32 to vector<16x16xf32>
    %213 = arith.mulf %211, %212 : vector<16x16xf32>
    %cst_75 = arith.constant dense<0xFF800000> : vector<16xf32>
    %214 = vector.multi_reduction <maximumf>, %213, %cst_75 [1] : vector<16x16xf32> to vector<16xf32>
    %215 = vector.shape_cast %214 : vector<16xf32> to vector<16x1xf32>
    %216 = vector.broadcast %215 : vector<16x1xf32> to vector<16x16xf32>
    %217 = arith.subf %213, %216 : vector<16x16xf32>
    %218 = math.exp %217 : vector<16x16xf32>
    %cst_76 = arith.constant dense<0.000000e+00> : vector<16xf32>
    %219 = vector.multi_reduction <add>, %218, %cst_76 [1] : vector<16x16xf32> to vector<16xf32>
    %220 = vector.shape_cast %219 : vector<16xf32> to vector<16x1xf32>
    %221 = tpu.reciprocal %220 {approx = true} : vector<16x1xf32> -> vector<16x1xf32>
    %222 = vector.broadcast %221 : vector<16x1xf32> to vector<16x16xf32>
    %223 = arith.mulf %218, %222 : vector<16x16xf32>
    %224 = arith.truncf %223 : vector<16x16xf32> to vector<16x16xbf16>
    %225 = arith.truncf %208 : vector<16x16xf32> to vector<16x16xbf16>
    %cst_77 = arith.constant dense<0.000000e+00> : vector<16x16xf32>
    %226 = tpu.matmul %224, %225, %cst_77 {dimension_numbers = #tpu.dot_dimension_numbers<[1], [0], [0], [1], [0, 0, 1, 1], [], []>} : vector<16x16xbf16>, vector<16x16xbf16>, vector<16x16xf32> -> vector<16x16xf32>
    %c448 = arith.constant 448 : index
    %c0_78 = arith.constant 0 : index
    %227 = vector.load %arg1[%c448, %c0_78] : memref<3600x128xbf16, #tpu.memory_space<vmem>>, vector<16x32xbf16>
    %228 = arith.truncf %226 : vector<16x16xf32> to vector<16x16xbf16>
    %cst_79 = arith.constant dense<0.000000e+00> : vector<16x32xf32>
    %229 = tpu.matmul %228, %227, %cst_79 {dimension_numbers = #tpu.dot_dimension_numbers<[1], [0], [0], [1], [0, 0, 1, 1], [], []>} : vector<16x16xbf16>, vector<16x32xbf16>, vector<16x32xf32> -> vector<16x32xf32>
    %230 = vector.extract_strided_slice %205 {offsets = [0, 16], sizes = [16, 16], strides = [1, 1]} : vector<16x96xf32> to vector<16x16xf32>
    %231 = vector.extract_strided_slice %205 {offsets = [0, 48], sizes = [16, 16], strides = [1, 1]} : vector<16x96xf32> to vector<16x16xf32>
    %232 = vector.extract_strided_slice %205 {offsets = [0, 80], sizes = [16, 16], strides = [1, 1]} : vector<16x96xf32> to vector<16x16xf32>
    %233 = arith.truncf %230 : vector<16x16xf32> to vector<16x16xbf16>
    %234 = arith.truncf %231 : vector<16x16xf32> to vector<16x16xbf16>
    %cst_80 = arith.constant dense<0.000000e+00> : vector<16x16xf32>
    %235 = tpu.matmul %233, %234, %cst_80 {dimension_numbers = #tpu.dot_dimension_numbers<[1], [1], [0], [0], [0, 0, 1, 0], [], []>} : vector<16x16xbf16>, vector<16x16xbf16>, vector<16x16xf32> -> vector<16x16xf32>
    %cst_81 = arith.constant 2.500000e-01 : f32
    %236 = vector.broadcast %cst_81 : f32 to vector<16x16xf32>
    %237 = arith.mulf %235, %236 : vector<16x16xf32>
    %cst_82 = arith.constant dense<0xFF800000> : vector<16xf32>
    %238 = vector.multi_reduction <maximumf>, %237, %cst_82 [1] : vector<16x16xf32> to vector<16xf32>
    %239 = vector.shape_cast %238 : vector<16xf32> to vector<16x1xf32>
    %240 = vector.broadcast %239 : vector<16x1xf32> to vector<16x16xf32>
    %241 = arith.subf %237, %240 : vector<16x16xf32>
    %242 = math.exp %241 : vector<16x16xf32>
    %cst_83 = arith.constant dense<0.000000e+00> : vector<16xf32>
    %243 = vector.multi_reduction <add>, %242, %cst_83 [1] : vector<16x16xf32> to vector<16xf32>
    %244 = vector.shape_cast %243 : vector<16xf32> to vector<16x1xf32>
    %245 = tpu.reciprocal %244 {approx = true} : vector<16x1xf32> -> vector<16x1xf32>
    %246 = vector.broadcast %245 : vector<16x1xf32> to vector<16x16xf32>
    %247 = arith.mulf %242, %246 : vector<16x16xf32>
    %248 = arith.truncf %247 : vector<16x16xf32> to vector<16x16xbf16>
    %249 = arith.truncf %232 : vector<16x16xf32> to vector<16x16xbf16>
    %cst_84 = arith.constant dense<0.000000e+00> : vector<16x16xf32>
    %250 = tpu.matmul %248, %249, %cst_84 {dimension_numbers = #tpu.dot_dimension_numbers<[1], [0], [0], [1], [0, 0, 1, 1], [], []>} : vector<16x16xbf16>, vector<16x16xbf16>, vector<16x16xf32> -> vector<16x16xf32>
    %c464 = arith.constant 464 : index
    %c0_85 = arith.constant 0 : index
    %251 = vector.load %arg1[%c464, %c0_85] : memref<3600x128xbf16, #tpu.memory_space<vmem>>, vector<16x32xbf16>
    %252 = arith.truncf %250 : vector<16x16xf32> to vector<16x16xbf16>
    %cst_86 = arith.constant dense<0.000000e+00> : vector<16x32xf32>
    %253 = tpu.matmul %252, %251, %cst_86 {dimension_numbers = #tpu.dot_dimension_numbers<[1], [0], [0], [1], [0, 0, 1, 1], [], []>} : vector<16x16xbf16>, vector<16x32xbf16>, vector<16x32xf32> -> vector<16x32xf32>
    %254 = arith.addf %229, %253 : vector<16x32xf32>
    %255 = arith.addf %173, %254 : vector<16x32xf32>
    %c112 = arith.constant 112 : index
    %c0_87 = arith.constant 0 : index
    %256 = vector.load %arg2[%c112, %c0_87] : memref<696x128xf32, #tpu.memory_space<vmem>>, vector<1x32xf32>
    %257 = vector.broadcast %256 : vector<1x32xf32> to vector<16x32xf32>
    %258 = arith.addf %255, %257 : vector<16x32xf32>
    %c120 = arith.constant 120 : index
    %c0_88 = arith.constant 0 : index
    %259 = vector.load %arg2[%c120, %c0_88] : memref<696x128xf32, #tpu.memory_space<vmem>>, vector<1x32xf32>
    %c128 = arith.constant 128 : index
    %c0_89 = arith.constant 0 : index
    %260 = vector.load %arg2[%c128, %c0_89] : memref<696x128xf32, #tpu.memory_space<vmem>>, vector<1x32xf32>
    %cst_90 = arith.constant dense<0.000000e+00> : vector<16xf32>
    %261 = vector.multi_reduction <add>, %258, %cst_90 [1] : vector<16x32xf32> to vector<16xf32>
    %262 = vector.shape_cast %261 : vector<16xf32> to vector<16x1xf32>
    %cst_91 = arith.constant 3.200000e+01 : f32
    %263 = vector.broadcast %cst_91 : f32 to vector<16x1xf32>
    %264 = arith.divf %262, %263 : vector<16x1xf32>
    %265 = arith.mulf %258, %258 : vector<16x32xf32>
    %cst_92 = arith.constant dense<0.000000e+00> : vector<16xf32>
    %266 = vector.multi_reduction <add>, %265, %cst_92 [1] : vector<16x32xf32> to vector<16xf32>
    %267 = vector.shape_cast %266 : vector<16xf32> to vector<16x1xf32>
    %cst_93 = arith.constant 3.200000e+01 : f32
    %268 = vector.broadcast %cst_93 : f32 to vector<16x1xf32>
    %269 = arith.divf %267, %268 : vector<16x1xf32>
    %270 = arith.mulf %264, %264 : vector<16x1xf32>
    %271 = arith.subf %269, %270 : vector<16x1xf32>
    %cst_94 = arith.constant 0.000000e+00 : f32
    %272 = vector.broadcast %cst_94 : f32 to vector<16x1xf32>
    %273 = arith.maximumf %271, %272 : vector<16x1xf32>
    %274 = vector.broadcast %264 : vector<16x1xf32> to vector<16x32xf32>
    %275 = arith.subf %258, %274 : vector<16x32xf32>
    %cst_95 = arith.constant 9.99999997E-7 : f32
    %276 = vector.broadcast %cst_95 : f32 to vector<16x1xf32>
    %277 = arith.addf %273, %276 : vector<16x1xf32>
    %278 = math.rsqrt %277 : vector<16x1xf32>
    %279 = vector.broadcast %278 : vector<16x1xf32> to vector<16x32xf32>
    %280 = arith.mulf %275, %279 : vector<16x32xf32>
    %281 = vector.broadcast %259 : vector<1x32xf32> to vector<16x32xf32>
    %282 = arith.mulf %280, %281 : vector<16x32xf32>
    %283 = vector.broadcast %260 : vector<1x32xf32> to vector<16x32xf32>
    %284 = arith.addf %282, %283 : vector<16x32xf32>
    %c480 = arith.constant 480 : index
    %c0_96 = arith.constant 0 : index
    %285 = vector.load %arg1[%c480, %c0_96] : memref<3600x128xbf16, #tpu.memory_space<vmem>>, vector<32x128xbf16>
    %286 = arith.truncf %284 : vector<16x32xf32> to vector<16x32xbf16>
    %cst_97 = arith.constant dense<0.000000e+00> : vector<16x128xf32>
    %287 = tpu.matmul %286, %285, %cst_97 {dimension_numbers = #tpu.dot_dimension_numbers<[1], [0], [0], [1], [0, 0, 1, 1], [], []>} : vector<16x32xbf16>, vector<32x128xbf16>, vector<16x128xf32> -> vector<16x128xf32>
    %c136 = arith.constant 136 : index
    %c0_98 = arith.constant 0 : index
    %288 = vector.load %arg2[%c136, %c0_98] : memref<696x128xf32, #tpu.memory_space<vmem>>, vector<1x128xf32>
    %289 = vector.broadcast %288 : vector<1x128xf32> to vector<16x128xf32>
    %290 = arith.addf %287, %289 : vector<16x128xf32>
    %cst_99 = arith.constant 5.000000e-01 : f32
    %291 = vector.broadcast %cst_99 : f32 to vector<16x128xf32>
    %292 = arith.mulf %291, %290 : vector<16x128xf32>
    %cst_100 = arith.constant 0.707106769 : f32
    %293 = vector.broadcast %cst_100 : f32 to vector<16x128xf32>
    %294 = arith.mulf %290, %293 : vector<16x128xf32>
    %cst_101 = arith.constant 0.000000e+00 : f32
    %295 = vector.broadcast %cst_101 : f32 to vector<16x128xf32>
    %296 = arith.cmpf olt, %294, %295 : vector<16x128xf32>
    %cst_102 = arith.constant -1.000000e+00 : f32
    %cst_103 = arith.constant 1.000000e+00 : f32
    %297 = vector.broadcast %cst_102 : f32 to vector<16x128xf32>
    %298 = vector.broadcast %cst_103 : f32 to vector<16x128xf32>
    %299 = arith.select %296, %297, %298 : vector<16x128xi1>, vector<16x128xf32>
    %300 = math.absf %294 : vector<16x128xf32>
    %cst_104 = arith.constant 0.327591091 : f32
    %301 = vector.broadcast %cst_104 : f32 to vector<16x128xf32>
    %302 = arith.mulf %301, %300 : vector<16x128xf32>
    %cst_105 = arith.constant 1.000000e+00 : f32
    %303 = vector.broadcast %cst_105 : f32 to vector<16x128xf32>
    %304 = arith.addf %303, %302 : vector<16x128xf32>
    %cst_106 = arith.constant 1.000000e+00 : f32
    %305 = vector.broadcast %cst_106 : f32 to vector<16x128xf32>
    %306 = arith.divf %305, %304 : vector<16x128xf32>
    %cst_107 = arith.constant 1.06140542 : f32
    %307 = vector.broadcast %cst_107 : f32 to vector<16x128xf32>
    %308 = arith.mulf %307, %306 : vector<16x128xf32>
    %cst_108 = arith.constant -1.45315206 : f32
    %309 = vector.broadcast %cst_108 : f32 to vector<16x128xf32>
    %310 = arith.addf %308, %309 : vector<16x128xf32>
    %311 = arith.mulf %310, %306 : vector<16x128xf32>
    %cst_109 = arith.constant 1.42141378 : f32
    %312 = vector.broadcast %cst_109 : f32 to vector<16x128xf32>
    %313 = arith.addf %311, %312 : vector<16x128xf32>
    %314 = arith.mulf %313, %306 : vector<16x128xf32>
    %cst_110 = arith.constant -0.284496725 : f32
    %315 = vector.broadcast %cst_110 : f32 to vector<16x128xf32>
    %316 = arith.addf %314, %315 : vector<16x128xf32>
    %317 = arith.mulf %316, %306 : vector<16x128xf32>
    %cst_111 = arith.constant 0.254829586 : f32
    %318 = vector.broadcast %cst_111 : f32 to vector<16x128xf32>
    %319 = arith.addf %317, %318 : vector<16x128xf32>
    %320 = arith.mulf %319, %306 : vector<16x128xf32>
    %cst_112 = arith.constant 0.000000e+00 : f32
    %321 = vector.broadcast %cst_112 : f32 to vector<16x128xf32>
    %322 = arith.subf %321, %300 : vector<16x128xf32>
    %323 = arith.mulf %322, %300 : vector<16x128xf32>
    %324 = math.exp %323 : vector<16x128xf32>
    %325 = arith.mulf %320, %324 : vector<16x128xf32>
    %cst_113 = arith.constant 1.000000e+00 : f32
    %326 = vector.broadcast %cst_113 : f32 to vector<16x128xf32>
    %327 = arith.subf %326, %325 : vector<16x128xf32>
    %328 = arith.mulf %299, %327 : vector<16x128xf32>
    %cst_114 = arith.constant 1.000000e+00 : f32
    %329 = vector.broadcast %cst_114 : f32 to vector<16x128xf32>
    %330 = arith.addf %329, %328 : vector<16x128xf32>
    %331 = arith.mulf %292, %330 : vector<16x128xf32>
    %c512 = arith.constant 512 : index
    %c0_115 = arith.constant 0 : index
    %332 = vector.load %arg1[%c512, %c0_115] : memref<3600x128xbf16, #tpu.memory_space<vmem>>, vector<128x32xbf16>
    %333 = arith.truncf %331 : vector<16x128xf32> to vector<16x128xbf16>
    %cst_116 = arith.constant dense<0.000000e+00> : vector<16x32xf32>
    %334 = tpu.matmul %333, %332, %cst_116 {dimension_numbers = #tpu.dot_dimension_numbers<[1], [0], [0], [1], [0, 0, 1, 1], [], []>} : vector<16x128xbf16>, vector<128x32xbf16>, vector<16x32xf32> -> vector<16x32xf32>
    %335 = arith.addf %258, %334 : vector<16x32xf32>
    %c144 = arith.constant 144 : index
    %c0_117 = arith.constant 0 : index
    %336 = vector.load %arg2[%c144, %c0_117] : memref<696x128xf32, #tpu.memory_space<vmem>>, vector<1x32xf32>
    %337 = vector.broadcast %336 : vector<1x32xf32> to vector<16x32xf32>
    %338 = arith.addf %335, %337 : vector<16x32xf32>
    %c640 = arith.constant 640 : index
    %c0_118 = arith.constant 0 : index
    %339 = vector.load %arg1[%c640, %c0_118] : memref<3600x128xbf16, #tpu.memory_space<vmem>>, vector<32x32xbf16>
    %340 = arith.truncf %338 : vector<16x32xf32> to vector<16x32xbf16>
    %cst_119 = arith.constant dense<0.000000e+00> : vector<16x32xf32>
    %341 = tpu.matmul %340, %339, %cst_119 {dimension_numbers = #tpu.dot_dimension_numbers<[1], [0], [0], [1], [0, 0, 1, 1], [], []>} : vector<16x32xbf16>, vector<32x32xbf16>, vector<16x32xf32> -> vector<16x32xf32>
    %c152 = arith.constant 152 : index
    %c0_120 = arith.constant 0 : index
    %342 = vector.load %arg2[%c152, %c0_120] : memref<696x128xf32, #tpu.memory_space<vmem>>, vector<1x32xf32>
    %c160 = arith.constant 160 : index
    %c0_121 = arith.constant 0 : index
    %343 = vector.load %arg2[%c160, %c0_121] : memref<696x128xf32, #tpu.memory_space<vmem>>, vector<1x32xf32>
    %cst_122 = arith.constant dense<0.000000e+00> : vector<16xf32>
    %344 = vector.multi_reduction <add>, %341, %cst_122 [1] : vector<16x32xf32> to vector<16xf32>
    %345 = vector.shape_cast %344 : vector<16xf32> to vector<16x1xf32>
    %cst_123 = arith.constant 3.200000e+01 : f32
    %346 = vector.broadcast %cst_123 : f32 to vector<16x1xf32>
    %347 = arith.divf %345, %346 : vector<16x1xf32>
    %348 = arith.mulf %341, %341 : vector<16x32xf32>
    %cst_124 = arith.constant dense<0.000000e+00> : vector<16xf32>
    %349 = vector.multi_reduction <add>, %348, %cst_124 [1] : vector<16x32xf32> to vector<16xf32>
    %350 = vector.shape_cast %349 : vector<16xf32> to vector<16x1xf32>
    %cst_125 = arith.constant 3.200000e+01 : f32
    %351 = vector.broadcast %cst_125 : f32 to vector<16x1xf32>
    %352 = arith.divf %350, %351 : vector<16x1xf32>
    %353 = arith.mulf %347, %347 : vector<16x1xf32>
    %354 = arith.subf %352, %353 : vector<16x1xf32>
    %cst_126 = arith.constant 0.000000e+00 : f32
    %355 = vector.broadcast %cst_126 : f32 to vector<16x1xf32>
    %356 = arith.maximumf %354, %355 : vector<16x1xf32>
    %357 = vector.broadcast %347 : vector<16x1xf32> to vector<16x32xf32>
    %358 = arith.subf %341, %357 : vector<16x32xf32>
    %cst_127 = arith.constant 9.99999997E-7 : f32
    %359 = vector.broadcast %cst_127 : f32 to vector<16x1xf32>
    %360 = arith.addf %356, %359 : vector<16x1xf32>
    %361 = math.rsqrt %360 : vector<16x1xf32>
    %362 = vector.broadcast %361 : vector<16x1xf32> to vector<16x32xf32>
    %363 = arith.mulf %358, %362 : vector<16x32xf32>
    %364 = vector.broadcast %342 : vector<1x32xf32> to vector<16x32xf32>
    %365 = arith.mulf %363, %364 : vector<16x32xf32>
    %366 = vector.broadcast %343 : vector<1x32xf32> to vector<16x32xf32>
    %367 = arith.addf %365, %366 : vector<16x32xf32>
    %c672 = arith.constant 672 : index
    %c0_128 = arith.constant 0 : index
    %368 = vector.load %arg1[%c672, %c0_128] : memref<3600x128xbf16, #tpu.memory_space<vmem>>, vector<32x96xbf16>
    %369 = arith.truncf %367 : vector<16x32xf32> to vector<16x32xbf16>
    %cst_129 = arith.constant dense<0.000000e+00> : vector<16x96xf32>
    %370 = tpu.matmul %369, %368, %cst_129 {dimension_numbers = #tpu.dot_dimension_numbers<[1], [0], [0], [1], [0, 0, 1, 1], [], []>} : vector<16x32xbf16>, vector<32x96xbf16>, vector<16x96xf32> -> vector<16x96xf32>
    %c768 = arith.constant 768 : index
    %c0_130 = arith.constant 0 : index
    %371 = vector.load %arg1[%c768, %c0_130] : memref<3600x128xbf16, #tpu.memory_space<vmem>>, vector<16x16xbf16>
    %372 = vector.extract_strided_slice %370 {offsets = [0, 0], sizes = [16, 32], strides = [1, 1]} : vector<16x96xf32> to vector<16x32xf32>
    %373 = arith.truncf %372 : vector<16x32xf32> to vector<16x32xbf16>
    %cst_131 = arith.constant dense<0.000000e+00> : vector<16x32xf32>
    %374 = tpu.matmul %371, %373, %cst_131 {dimension_numbers = #tpu.dot_dimension_numbers<[1], [0], [0], [1], [0, 0, 1, 1], [], []>} : vector<16x16xbf16>, vector<16x32xbf16>, vector<16x32xf32> -> vector<16x32xf32>
    %c784 = arith.constant 784 : index
    %c0_132 = arith.constant 0 : index
    %375 = vector.load %arg1[%c784, %c0_132] : memref<3600x128xbf16, #tpu.memory_space<vmem>>, vector<16x16xbf16>
    %376 = vector.extract_strided_slice %370 {offsets = [0, 32], sizes = [16, 32], strides = [1, 1]} : vector<16x96xf32> to vector<16x32xf32>
    %377 = arith.truncf %376 : vector<16x32xf32> to vector<16x32xbf16>
    %cst_133 = arith.constant dense<0.000000e+00> : vector<16x32xf32>
    %378 = tpu.matmul %375, %377, %cst_133 {dimension_numbers = #tpu.dot_dimension_numbers<[1], [0], [0], [1], [0, 0, 1, 1], [], []>} : vector<16x16xbf16>, vector<16x32xbf16>, vector<16x32xf32> -> vector<16x32xf32>
    %379 = arith.addf %374, %378 : vector<16x32xf32>
    %c800 = arith.constant 800 : index
    %c0_134 = arith.constant 0 : index
    %380 = vector.load %arg1[%c800, %c0_134] : memref<3600x128xbf16, #tpu.memory_space<vmem>>, vector<16x16xbf16>
    %381 = vector.extract_strided_slice %370 {offsets = [0, 64], sizes = [16, 32], strides = [1, 1]} : vector<16x96xf32> to vector<16x32xf32>
    %382 = arith.truncf %381 : vector<16x32xf32> to vector<16x32xbf16>
    %cst_135 = arith.constant dense<0.000000e+00> : vector<16x32xf32>
    %383 = tpu.matmul %380, %382, %cst_135 {dimension_numbers = #tpu.dot_dimension_numbers<[1], [0], [0], [1], [0, 0, 1, 1], [], []>} : vector<16x16xbf16>, vector<16x32xbf16>, vector<16x32xf32> -> vector<16x32xf32>
    %384 = arith.addf %379, %383 : vector<16x32xf32>
    %c704 = arith.constant 704 : index
    %c0_136 = arith.constant 0 : index
    %385 = vector.load %arg1[%c704, %c0_136] : memref<3600x128xbf16, #tpu.memory_space<vmem>>, vector<32x96xbf16>
    %386 = arith.truncf %367 : vector<16x32xf32> to vector<16x32xbf16>
    %cst_137 = arith.constant dense<0.000000e+00> : vector<16x96xf32>
    %387 = tpu.matmul %386, %385, %cst_137 {dimension_numbers = #tpu.dot_dimension_numbers<[1], [0], [0], [1], [0, 0, 1, 1], [], []>} : vector<16x32xbf16>, vector<32x96xbf16>, vector<16x96xf32> -> vector<16x96xf32>
    %c816 = arith.constant 816 : index
    %c0_138 = arith.constant 0 : index
    %388 = vector.load %arg1[%c816, %c0_138] : memref<3600x128xbf16, #tpu.memory_space<vmem>>, vector<16x16xbf16>
    %389 = vector.extract_strided_slice %387 {offsets = [0, 0], sizes = [16, 32], strides = [1, 1]} : vector<16x96xf32> to vector<16x32xf32>
    %390 = arith.truncf %389 : vector<16x32xf32> to vector<16x32xbf16>
    %cst_139 = arith.constant dense<0.000000e+00> : vector<16x32xf32>
    %391 = tpu.matmul %388, %390, %cst_139 {dimension_numbers = #tpu.dot_dimension_numbers<[1], [0], [0], [1], [0, 0, 1, 1], [], []>} : vector<16x16xbf16>, vector<16x32xbf16>, vector<16x32xf32> -> vector<16x32xf32>
    %392 = arith.addf %384, %391 : vector<16x32xf32>
    %c832 = arith.constant 832 : index
    %c0_140 = arith.constant 0 : index
    %393 = vector.load %arg1[%c832, %c0_140] : memref<3600x128xbf16, #tpu.memory_space<vmem>>, vector<16x16xbf16>
    %394 = vector.extract_strided_slice %387 {offsets = [0, 32], sizes = [16, 32], strides = [1, 1]} : vector<16x96xf32> to vector<16x32xf32>
    %395 = arith.truncf %394 : vector<16x32xf32> to vector<16x32xbf16>
    %cst_141 = arith.constant dense<0.000000e+00> : vector<16x32xf32>
    %396 = tpu.matmul %393, %395, %cst_141 {dimension_numbers = #tpu.dot_dimension_numbers<[1], [0], [0], [1], [0, 0, 1, 1], [], []>} : vector<16x16xbf16>, vector<16x32xbf16>, vector<16x32xf32> -> vector<16x32xf32>
    %397 = arith.addf %392, %396 : vector<16x32xf32>
    %c848 = arith.constant 848 : index
    %c0_142 = arith.constant 0 : index
    %398 = vector.load %arg1[%c848, %c0_142] : memref<3600x128xbf16, #tpu.memory_space<vmem>>, vector<16x16xbf16>
    %399 = vector.extract_strided_slice %387 {offsets = [0, 64], sizes = [16, 32], strides = [1, 1]} : vector<16x96xf32> to vector<16x32xf32>
    %400 = arith.truncf %399 : vector<16x32xf32> to vector<16x32xbf16>
    %cst_143 = arith.constant dense<0.000000e+00> : vector<16x32xf32>
    %401 = tpu.matmul %398, %400, %cst_143 {dimension_numbers = #tpu.dot_dimension_numbers<[1], [0], [0], [1], [0, 0, 1, 1], [], []>} : vector<16x16xbf16>, vector<16x32xbf16>, vector<16x32xf32> -> vector<16x32xf32>
    %402 = arith.addf %397, %401 : vector<16x32xf32>
    %c736 = arith.constant 736 : index
    %c0_144 = arith.constant 0 : index
    %403 = vector.load %arg1[%c736, %c0_144] : memref<3600x128xbf16, #tpu.memory_space<vmem>>, vector<32x96xbf16>
    %404 = arith.truncf %367 : vector<16x32xf32> to vector<16x32xbf16>
    %cst_145 = arith.constant dense<0.000000e+00> : vector<16x96xf32>
    %405 = tpu.matmul %404, %403, %cst_145 {dimension_numbers = #tpu.dot_dimension_numbers<[1], [0], [0], [1], [0, 0, 1, 1], [], []>} : vector<16x32xbf16>, vector<32x96xbf16>, vector<16x96xf32> -> vector<16x96xf32>
    %c864 = arith.constant 864 : index
    %c0_146 = arith.constant 0 : index
    %406 = vector.load %arg1[%c864, %c0_146] : memref<3600x128xbf16, #tpu.memory_space<vmem>>, vector<16x16xbf16>
    %407 = vector.extract_strided_slice %405 {offsets = [0, 0], sizes = [16, 32], strides = [1, 1]} : vector<16x96xf32> to vector<16x32xf32>
    %408 = arith.truncf %407 : vector<16x32xf32> to vector<16x32xbf16>
    %cst_147 = arith.constant dense<0.000000e+00> : vector<16x32xf32>
    %409 = tpu.matmul %406, %408, %cst_147 {dimension_numbers = #tpu.dot_dimension_numbers<[1], [0], [0], [1], [0, 0, 1, 1], [], []>} : vector<16x16xbf16>, vector<16x32xbf16>, vector<16x32xf32> -> vector<16x32xf32>
    %410 = arith.addf %402, %409 : vector<16x32xf32>
    %c880 = arith.constant 880 : index
    %c0_148 = arith.constant 0 : index
    %411 = vector.load %arg1[%c880, %c0_148] : memref<3600x128xbf16, #tpu.memory_space<vmem>>, vector<16x16xbf16>
    %412 = vector.extract_strided_slice %405 {offsets = [0, 32], sizes = [16, 32], strides = [1, 1]} : vector<16x96xf32> to vector<16x32xf32>
    %413 = arith.truncf %412 : vector<16x32xf32> to vector<16x32xbf16>
    %cst_149 = arith.constant dense<0.000000e+00> : vector<16x32xf32>
    %414 = tpu.matmul %411, %413, %cst_149 {dimension_numbers = #tpu.dot_dimension_numbers<[1], [0], [0], [1], [0, 0, 1, 1], [], []>} : vector<16x16xbf16>, vector<16x32xbf16>, vector<16x32xf32> -> vector<16x32xf32>
    %415 = arith.addf %410, %414 : vector<16x32xf32>
    %c896 = arith.constant 896 : index
    %c0_150 = arith.constant 0 : index
    %416 = vector.load %arg1[%c896, %c0_150] : memref<3600x128xbf16, #tpu.memory_space<vmem>>, vector<16x16xbf16>
    %417 = vector.extract_strided_slice %405 {offsets = [0, 64], sizes = [16, 32], strides = [1, 1]} : vector<16x96xf32> to vector<16x32xf32>
    %418 = arith.truncf %417 : vector<16x32xf32> to vector<16x32xbf16>
    %cst_151 = arith.constant dense<0.000000e+00> : vector<16x32xf32>
    %419 = tpu.matmul %416, %418, %cst_151 {dimension_numbers = #tpu.dot_dimension_numbers<[1], [0], [0], [1], [0, 0, 1, 1], [], []>} : vector<16x16xbf16>, vector<16x32xbf16>, vector<16x32xf32> -> vector<16x32xf32>
    %420 = arith.addf %415, %419 : vector<16x32xf32>
    %c168 = arith.constant 168 : index
    %c0_152 = arith.constant 0 : index
    %421 = vector.load %arg2[%c168, %c0_152] : memref<696x128xf32, #tpu.memory_space<vmem>>, vector<1x32xf32>
    %c176 = arith.constant 176 : index
    %c0_153 = arith.constant 0 : index
    %422 = vector.load %arg2[%c176, %c0_153] : memref<696x128xf32, #tpu.memory_space<vmem>>, vector<1x32xf32>
    %cst_154 = arith.constant dense<0.000000e+00> : vector<16xf32>
    %423 = vector.multi_reduction <add>, %420, %cst_154 [1] : vector<16x32xf32> to vector<16xf32>
    %424 = vector.shape_cast %423 : vector<16xf32> to vector<16x1xf32>
    %cst_155 = arith.constant 3.200000e+01 : f32
    %425 = vector.broadcast %cst_155 : f32 to vector<16x1xf32>
    %426 = arith.divf %424, %425 : vector<16x1xf32>
    %427 = arith.mulf %420, %420 : vector<16x32xf32>
    %cst_156 = arith.constant dense<0.000000e+00> : vector<16xf32>
    %428 = vector.multi_reduction <add>, %427, %cst_156 [1] : vector<16x32xf32> to vector<16xf32>
    %429 = vector.shape_cast %428 : vector<16xf32> to vector<16x1xf32>
    %cst_157 = arith.constant 3.200000e+01 : f32
    %430 = vector.broadcast %cst_157 : f32 to vector<16x1xf32>
    %431 = arith.divf %429, %430 : vector<16x1xf32>
    %432 = arith.mulf %426, %426 : vector<16x1xf32>
    %433 = arith.subf %431, %432 : vector<16x1xf32>
    %cst_158 = arith.constant 0.000000e+00 : f32
    %434 = vector.broadcast %cst_158 : f32 to vector<16x1xf32>
    %435 = arith.maximumf %433, %434 : vector<16x1xf32>
    %436 = vector.broadcast %426 : vector<16x1xf32> to vector<16x32xf32>
    %437 = arith.subf %420, %436 : vector<16x32xf32>
    %cst_159 = arith.constant 9.99999997E-7 : f32
    %438 = vector.broadcast %cst_159 : f32 to vector<16x1xf32>
    %439 = arith.addf %435, %438 : vector<16x1xf32>
    %440 = math.rsqrt %439 : vector<16x1xf32>
    %441 = vector.broadcast %440 : vector<16x1xf32> to vector<16x32xf32>
    %442 = arith.mulf %437, %441 : vector<16x32xf32>
    %443 = vector.broadcast %421 : vector<1x32xf32> to vector<16x32xf32>
    %444 = arith.mulf %442, %443 : vector<16x32xf32>
    %445 = vector.broadcast %422 : vector<1x32xf32> to vector<16x32xf32>
    %446 = arith.addf %444, %445 : vector<16x32xf32>
    %c208 = arith.constant 208 : index
    %c0_160 = arith.constant 0 : index
    %447 = vector.load %arg2[%c208, %c0_160] : memref<696x128xf32, #tpu.memory_space<vmem>>, vector<5x32xf32>
    %c184 = arith.constant 184 : index
    %c0_161 = arith.constant 0 : index
    %448 = vector.load %arg2[%c184, %c0_161] : memref<696x128xf32, #tpu.memory_space<vmem>>, vector<1x32xf32>
    %449 = vector.broadcast %448 : vector<1x32xf32> to vector<16x32xf32>
    %450 = arith.addf %446, %449 : vector<16x32xf32>
    %c192_162 = arith.constant 192 : index
    %c0_163 = arith.constant 0 : index
    %451 = vector.load %arg2[%c192_162, %c0_163] : memref<696x128xf32, #tpu.memory_space<vmem>>, vector<16x32xf32>
    %c912 = arith.constant 912 : index
    %c0_164 = arith.constant 0 : index
    %452 = vector.load %arg1[%c912, %c0_164] : memref<3600x128xbf16, #tpu.memory_space<vmem>>, vector<32x32xbf16>
    %453 = arith.truncf %447 : vector<5x32xf32> to vector<5x32xbf16>
    %cst_165 = arith.constant dense<0.000000e+00> : vector<5x32xf32>
    %454 = tpu.matmul %453, %452, %cst_165 {dimension_numbers = #tpu.dot_dimension_numbers<[1], [0], [0], [1], [0, 0, 1, 1], [], []>} : vector<5x32xbf16>, vector<32x32xbf16>, vector<5x32xf32> -> vector<5x32xf32>
    %c216 = arith.constant 216 : index
    %c0_166 = arith.constant 0 : index
    %455 = vector.load %arg2[%c216, %c0_166] : memref<696x128xf32, #tpu.memory_space<vmem>>, vector<1x32xf32>
    %456 = vector.broadcast %455 : vector<1x32xf32> to vector<5x32xf32>
    %457 = arith.addf %454, %456 : vector<5x32xf32>
    %c944 = arith.constant 944 : index
    %c0_167 = arith.constant 0 : index
    %458 = vector.load %arg1[%c944, %c0_167] : memref<3600x128xbf16, #tpu.memory_space<vmem>>, vector<32x32xbf16>
    %459 = arith.truncf %447 : vector<5x32xf32> to vector<5x32xbf16>
    %cst_168 = arith.constant dense<0.000000e+00> : vector<5x32xf32>
    %460 = tpu.matmul %459, %458, %cst_168 {dimension_numbers = #tpu.dot_dimension_numbers<[1], [0], [0], [1], [0, 0, 1, 1], [], []>} : vector<5x32xbf16>, vector<32x32xbf16>, vector<5x32xf32> -> vector<5x32xf32>
    %c224_169 = arith.constant 224 : index
    %c0_170 = arith.constant 0 : index
    %461 = vector.load %arg2[%c224_169, %c0_170] : memref<696x128xf32, #tpu.memory_space<vmem>>, vector<1x32xf32>
    %462 = vector.broadcast %461 : vector<1x32xf32> to vector<5x32xf32>
    %463 = arith.addf %460, %462 : vector<5x32xf32>
    %c976 = arith.constant 976 : index
    %c0_171 = arith.constant 0 : index
    %464 = vector.load %arg1[%c976, %c0_171] : memref<3600x128xbf16, #tpu.memory_space<vmem>>, vector<32x32xbf16>
    %465 = arith.truncf %447 : vector<5x32xf32> to vector<5x32xbf16>
    %cst_172 = arith.constant dense<0.000000e+00> : vector<5x32xf32>
    %466 = tpu.matmul %465, %464, %cst_172 {dimension_numbers = #tpu.dot_dimension_numbers<[1], [0], [0], [1], [0, 0, 1, 1], [], []>} : vector<5x32xbf16>, vector<32x32xbf16>, vector<5x32xf32> -> vector<5x32xf32>
    %c232 = arith.constant 232 : index
    %c0_173 = arith.constant 0 : index
    %467 = vector.load %arg2[%c232, %c0_173] : memref<696x128xf32, #tpu.memory_space<vmem>>, vector<1x32xf32>
    %468 = vector.broadcast %467 : vector<1x32xf32> to vector<5x32xf32>
    %469 = arith.addf %466, %468 : vector<5x32xf32>
    %470 = vector.extract_strided_slice %457 {offsets = [0, 0], sizes = [5, 16], strides = [1, 1]} : vector<5x32xf32> to vector<5x16xf32>
    %471 = vector.extract_strided_slice %463 {offsets = [0, 0], sizes = [5, 16], strides = [1, 1]} : vector<5x32xf32> to vector<5x16xf32>
    %472 = arith.truncf %470 : vector<5x16xf32> to vector<5x16xbf16>
    %473 = arith.truncf %471 : vector<5x16xf32> to vector<5x16xbf16>
    %cst_174 = arith.constant dense<0.000000e+00> : vector<5x5xf32>
    %474 = tpu.matmul %472, %473, %cst_174 {dimension_numbers = #tpu.dot_dimension_numbers<[1], [1], [0], [0], [0, 0, 1, 0], [], []>} : vector<5x16xbf16>, vector<5x16xbf16>, vector<5x5xf32> -> vector<5x5xf32>
    %cst_175 = arith.constant 2.500000e-01 : f32
    %475 = vector.broadcast %cst_175 : f32 to vector<5x5xf32>
    %476 = arith.mulf %474, %475 : vector<5x5xf32>
    %cst_176 = arith.constant dense<0xFF800000> : vector<5xf32>
    %477 = vector.multi_reduction <maximumf>, %476, %cst_176 [1] : vector<5x5xf32> to vector<5xf32>
    %478 = vector.shape_cast %477 : vector<5xf32> to vector<5x1xf32>
    %479 = vector.broadcast %478 : vector<5x1xf32> to vector<5x5xf32>
    %480 = arith.subf %476, %479 : vector<5x5xf32>
    %481 = math.exp %480 : vector<5x5xf32>
    %cst_177 = arith.constant dense<0.000000e+00> : vector<5xf32>
    %482 = vector.multi_reduction <add>, %481, %cst_177 [1] : vector<5x5xf32> to vector<5xf32>
    %483 = vector.shape_cast %482 : vector<5xf32> to vector<5x1xf32>
    %484 = tpu.reciprocal %483 {approx = true} : vector<5x1xf32> -> vector<5x1xf32>
    %485 = vector.broadcast %484 : vector<5x1xf32> to vector<5x5xf32>
    %486 = arith.mulf %481, %485 : vector<5x5xf32>
    %487 = vector.extract_strided_slice %469 {offsets = [0, 0], sizes = [5, 16], strides = [1, 1]} : vector<5x32xf32> to vector<5x16xf32>
    %488 = arith.truncf %486 : vector<5x5xf32> to vector<5x5xbf16>
    %489 = arith.truncf %487 : vector<5x16xf32> to vector<5x16xbf16>
    %cst_178 = arith.constant dense<0.000000e+00> : vector<5x16xf32>
    %490 = tpu.matmul %488, %489, %cst_178 {dimension_numbers = #tpu.dot_dimension_numbers<[1], [0], [0], [1], [0, 0, 1, 1], [], []>} : vector<5x5xbf16>, vector<5x16xbf16>, vector<5x16xf32> -> vector<5x16xf32>
    %c1008 = arith.constant 1008 : index
    %c0_179 = arith.constant 0 : index
    %491 = vector.load %arg1[%c1008, %c0_179] : memref<3600x128xbf16, #tpu.memory_space<vmem>>, vector<16x32xbf16>
    %492 = arith.truncf %490 : vector<5x16xf32> to vector<5x16xbf16>
    %cst_180 = arith.constant dense<0.000000e+00> : vector<5x32xf32>
    %493 = tpu.matmul %492, %491, %cst_180 {dimension_numbers = #tpu.dot_dimension_numbers<[1], [0], [0], [1], [0, 0, 1, 1], [], []>} : vector<5x16xbf16>, vector<16x32xbf16>, vector<5x32xf32> -> vector<5x32xf32>
    %494 = vector.extract_strided_slice %457 {offsets = [0, 16], sizes = [5, 16], strides = [1, 1]} : vector<5x32xf32> to vector<5x16xf32>
    %495 = vector.extract_strided_slice %463 {offsets = [0, 16], sizes = [5, 16], strides = [1, 1]} : vector<5x32xf32> to vector<5x16xf32>
    %496 = arith.truncf %494 : vector<5x16xf32> to vector<5x16xbf16>
    %497 = arith.truncf %495 : vector<5x16xf32> to vector<5x16xbf16>
    %cst_181 = arith.constant dense<0.000000e+00> : vector<5x5xf32>
    %498 = tpu.matmul %496, %497, %cst_181 {dimension_numbers = #tpu.dot_dimension_numbers<[1], [1], [0], [0], [0, 0, 1, 0], [], []>} : vector<5x16xbf16>, vector<5x16xbf16>, vector<5x5xf32> -> vector<5x5xf32>
    %cst_182 = arith.constant 2.500000e-01 : f32
    %499 = vector.broadcast %cst_182 : f32 to vector<5x5xf32>
    %500 = arith.mulf %498, %499 : vector<5x5xf32>
    %cst_183 = arith.constant dense<0xFF800000> : vector<5xf32>
    %501 = vector.multi_reduction <maximumf>, %500, %cst_183 [1] : vector<5x5xf32> to vector<5xf32>
    %502 = vector.shape_cast %501 : vector<5xf32> to vector<5x1xf32>
    %503 = vector.broadcast %502 : vector<5x1xf32> to vector<5x5xf32>
    %504 = arith.subf %500, %503 : vector<5x5xf32>
    %505 = math.exp %504 : vector<5x5xf32>
    %cst_184 = arith.constant dense<0.000000e+00> : vector<5xf32>
    %506 = vector.multi_reduction <add>, %505, %cst_184 [1] : vector<5x5xf32> to vector<5xf32>
    %507 = vector.shape_cast %506 : vector<5xf32> to vector<5x1xf32>
    %508 = tpu.reciprocal %507 {approx = true} : vector<5x1xf32> -> vector<5x1xf32>
    %509 = vector.broadcast %508 : vector<5x1xf32> to vector<5x5xf32>
    %510 = arith.mulf %505, %509 : vector<5x5xf32>
    %511 = vector.extract_strided_slice %469 {offsets = [0, 16], sizes = [5, 16], strides = [1, 1]} : vector<5x32xf32> to vector<5x16xf32>
    %512 = arith.truncf %510 : vector<5x5xf32> to vector<5x5xbf16>
    %513 = arith.truncf %511 : vector<5x16xf32> to vector<5x16xbf16>
    %cst_185 = arith.constant dense<0.000000e+00> : vector<5x16xf32>
    %514 = tpu.matmul %512, %513, %cst_185 {dimension_numbers = #tpu.dot_dimension_numbers<[1], [0], [0], [1], [0, 0, 1, 1], [], []>} : vector<5x5xbf16>, vector<5x16xbf16>, vector<5x16xf32> -> vector<5x16xf32>
    %c1024 = arith.constant 1024 : index
    %c0_186 = arith.constant 0 : index
    %515 = vector.load %arg1[%c1024, %c0_186] : memref<3600x128xbf16, #tpu.memory_space<vmem>>, vector<16x32xbf16>
    %516 = arith.truncf %514 : vector<5x16xf32> to vector<5x16xbf16>
    %cst_187 = arith.constant dense<0.000000e+00> : vector<5x32xf32>
    %517 = tpu.matmul %516, %515, %cst_187 {dimension_numbers = #tpu.dot_dimension_numbers<[1], [0], [0], [1], [0, 0, 1, 1], [], []>} : vector<5x16xbf16>, vector<16x32xbf16>, vector<5x32xf32> -> vector<5x32xf32>
    %518 = arith.addf %493, %517 : vector<5x32xf32>
    %c240_188 = arith.constant 240 : index
    %c0_189 = arith.constant 0 : index
    %519 = vector.load %arg2[%c240_188, %c0_189] : memref<696x128xf32, #tpu.memory_space<vmem>>, vector<1x32xf32>
    %520 = vector.broadcast %519 : vector<1x32xf32> to vector<5x32xf32>
    %521 = arith.addf %518, %520 : vector<5x32xf32>
    %c312 = arith.constant 312 : index
    %c0_190 = arith.constant 0 : index
    %522 = vector.load %arg2[%c312, %c0_190] : memref<696x128xf32, #tpu.memory_space<vmem>>, vector<1x32xf32>
    %c320 = arith.constant 320 : index
    %c0_191 = arith.constant 0 : index
    %523 = vector.load %arg2[%c320, %c0_191] : memref<696x128xf32, #tpu.memory_space<vmem>>, vector<1x32xf32>
    %cst_192 = arith.constant dense<0.000000e+00> : vector<5xf32>
    %524 = vector.multi_reduction <add>, %521, %cst_192 [1] : vector<5x32xf32> to vector<5xf32>
    %525 = vector.shape_cast %524 : vector<5xf32> to vector<5x1xf32>
    %cst_193 = arith.constant 3.200000e+01 : f32
    %526 = vector.broadcast %cst_193 : f32 to vector<5x1xf32>
    %527 = arith.divf %525, %526 : vector<5x1xf32>
    %528 = arith.mulf %521, %521 : vector<5x32xf32>
    %cst_194 = arith.constant dense<0.000000e+00> : vector<5xf32>
    %529 = vector.multi_reduction <add>, %528, %cst_194 [1] : vector<5x32xf32> to vector<5xf32>
    %530 = vector.shape_cast %529 : vector<5xf32> to vector<5x1xf32>
    %cst_195 = arith.constant 3.200000e+01 : f32
    %531 = vector.broadcast %cst_195 : f32 to vector<5x1xf32>
    %532 = arith.divf %530, %531 : vector<5x1xf32>
    %533 = arith.mulf %527, %527 : vector<5x1xf32>
    %534 = arith.subf %532, %533 : vector<5x1xf32>
    %cst_196 = arith.constant 0.000000e+00 : f32
    %535 = vector.broadcast %cst_196 : f32 to vector<5x1xf32>
    %536 = arith.maximumf %534, %535 : vector<5x1xf32>
    %537 = vector.broadcast %527 : vector<5x1xf32> to vector<5x32xf32>
    %538 = arith.subf %521, %537 : vector<5x32xf32>
    %cst_197 = arith.constant 9.99999974E-6 : f32
    %539 = vector.broadcast %cst_197 : f32 to vector<5x1xf32>
    %540 = arith.addf %536, %539 : vector<5x1xf32>
    %541 = math.rsqrt %540 : vector<5x1xf32>
    %542 = vector.broadcast %541 : vector<5x1xf32> to vector<5x32xf32>
    %543 = arith.mulf %538, %542 : vector<5x32xf32>
    %544 = vector.broadcast %522 : vector<1x32xf32> to vector<5x32xf32>
    %545 = arith.mulf %543, %544 : vector<5x32xf32>
    %546 = vector.broadcast %523 : vector<1x32xf32> to vector<5x32xf32>
    %547 = arith.addf %545, %546 : vector<5x32xf32>
    %548 = arith.addf %547, %447 : vector<5x32xf32>
    %549 = arith.addf %450, %451 : vector<16x32xf32>
    %c1040 = arith.constant 1040 : index
    %c0_198 = arith.constant 0 : index
    %550 = vector.load %arg1[%c1040, %c0_198] : memref<3600x128xbf16, #tpu.memory_space<vmem>>, vector<32x16xbf16>
    %551 = arith.truncf %548 : vector<5x32xf32> to vector<5x32xbf16>
    %cst_199 = arith.constant dense<0.000000e+00> : vector<5x16xf32>
    %552 = tpu.matmul %551, %550, %cst_199 {dimension_numbers = #tpu.dot_dimension_numbers<[1], [0], [0], [1], [0, 0, 1, 1], [], []>} : vector<5x32xbf16>, vector<32x16xbf16>, vector<5x16xf32> -> vector<5x16xf32>
    %c248 = arith.constant 248 : index
    %c0_200 = arith.constant 0 : index
    %553 = vector.load %arg2[%c248, %c0_200] : memref<696x128xf32, #tpu.memory_space<vmem>>, vector<1x16xf32>
    %554 = vector.broadcast %553 : vector<1x16xf32> to vector<5x16xf32>
    %555 = arith.addf %552, %554 : vector<5x16xf32>
    %c1072 = arith.constant 1072 : index
    %c0_201 = arith.constant 0 : index
    %556 = vector.load %arg1[%c1072, %c0_201] : memref<3600x128xbf16, #tpu.memory_space<vmem>>, vector<32x16xbf16>
    %557 = arith.truncf %549 : vector<16x32xf32> to vector<16x32xbf16>
    %cst_202 = arith.constant dense<0.000000e+00> : vector<16x16xf32>
    %558 = tpu.matmul %557, %556, %cst_202 {dimension_numbers = #tpu.dot_dimension_numbers<[1], [0], [0], [1], [0, 0, 1, 1], [], []>} : vector<16x32xbf16>, vector<32x16xbf16>, vector<16x16xf32> -> vector<16x16xf32>
    %c256_203 = arith.constant 256 : index
    %c0_204 = arith.constant 0 : index
    %559 = vector.load %arg2[%c256_203, %c0_204] : memref<696x128xf32, #tpu.memory_space<vmem>>, vector<1x16xf32>
    %560 = vector.broadcast %559 : vector<1x16xf32> to vector<16x16xf32>
    %561 = arith.addf %558, %560 : vector<16x16xf32>
    %c1104 = arith.constant 1104 : index
    %c0_205 = arith.constant 0 : index
    %562 = vector.load %arg1[%c1104, %c0_205] : memref<3600x128xbf16, #tpu.memory_space<vmem>>, vector<32x16xbf16>
    %563 = arith.truncf %450 : vector<16x32xf32> to vector<16x32xbf16>
    %cst_206 = arith.constant dense<0.000000e+00> : vector<16x16xf32>
    %564 = tpu.matmul %563, %562, %cst_206 {dimension_numbers = #tpu.dot_dimension_numbers<[1], [0], [0], [1], [0, 0, 1, 1], [], []>} : vector<16x32xbf16>, vector<32x16xbf16>, vector<16x16xf32> -> vector<16x16xf32>
    %c264 = arith.constant 264 : index
    %c0_207 = arith.constant 0 : index
    %565 = vector.load %arg2[%c264, %c0_207] : memref<696x128xf32, #tpu.memory_space<vmem>>, vector<1x16xf32>
    %566 = vector.broadcast %565 : vector<1x16xf32> to vector<16x16xf32>
    %567 = arith.addf %564, %566 : vector<16x16xf32>
    %568 = vector.extract_strided_slice %555 {offsets = [0, 0], sizes = [5, 8], strides = [1, 1]} : vector<5x16xf32> to vector<5x8xf32>
    %569 = vector.extract_strided_slice %561 {offsets = [0, 0], sizes = [16, 8], strides = [1, 1]} : vector<16x16xf32> to vector<16x8xf32>
    %570 = arith.truncf %568 : vector<5x8xf32> to vector<5x8xbf16>
    %571 = arith.truncf %569 : vector<16x8xf32> to vector<16x8xbf16>
    %cst_208 = arith.constant dense<0.000000e+00> : vector<5x16xf32>
    %572 = tpu.matmul %570, %571, %cst_208 {dimension_numbers = #tpu.dot_dimension_numbers<[1], [1], [0], [0], [0, 0, 1, 0], [], []>} : vector<5x8xbf16>, vector<16x8xbf16>, vector<5x16xf32> -> vector<5x16xf32>
    %cst_209 = arith.constant 0.353553385 : f32
    %573 = vector.broadcast %cst_209 : f32 to vector<5x16xf32>
    %574 = arith.mulf %572, %573 : vector<5x16xf32>
    %cst_210 = arith.constant dense<0xFF800000> : vector<5xf32>
    %575 = vector.multi_reduction <maximumf>, %574, %cst_210 [1] : vector<5x16xf32> to vector<5xf32>
    %576 = vector.shape_cast %575 : vector<5xf32> to vector<5x1xf32>
    %577 = vector.broadcast %576 : vector<5x1xf32> to vector<5x16xf32>
    %578 = arith.subf %574, %577 : vector<5x16xf32>
    %579 = math.exp %578 : vector<5x16xf32>
    %cst_211 = arith.constant dense<0.000000e+00> : vector<5xf32>
    %580 = vector.multi_reduction <add>, %579, %cst_211 [1] : vector<5x16xf32> to vector<5xf32>
    %581 = vector.shape_cast %580 : vector<5xf32> to vector<5x1xf32>
    %582 = tpu.reciprocal %581 {approx = true} : vector<5x1xf32> -> vector<5x1xf32>
    %583 = vector.broadcast %582 : vector<5x1xf32> to vector<5x16xf32>
    %584 = arith.mulf %579, %583 : vector<5x16xf32>
    %585 = vector.extract_strided_slice %567 {offsets = [0, 0], sizes = [16, 8], strides = [1, 1]} : vector<16x16xf32> to vector<16x8xf32>
    %586 = arith.truncf %584 : vector<5x16xf32> to vector<5x16xbf16>
    %587 = arith.truncf %585 : vector<16x8xf32> to vector<16x8xbf16>
    %cst_212 = arith.constant dense<0.000000e+00> : vector<5x8xf32>
    %588 = tpu.matmul %586, %587, %cst_212 {dimension_numbers = #tpu.dot_dimension_numbers<[1], [0], [0], [1], [0, 0, 1, 1], [], []>} : vector<5x16xbf16>, vector<16x8xbf16>, vector<5x8xf32> -> vector<5x8xf32>
    %c1136 = arith.constant 1136 : index
    %c0_213 = arith.constant 0 : index
    %589 = vector.load %arg1[%c1136, %c0_213] : memref<3600x128xbf16, #tpu.memory_space<vmem>>, vector<8x32xbf16>
    %590 = arith.truncf %588 : vector<5x8xf32> to vector<5x8xbf16>
    %cst_214 = arith.constant dense<0.000000e+00> : vector<5x32xf32>
    %591 = tpu.matmul %590, %589, %cst_214 {dimension_numbers = #tpu.dot_dimension_numbers<[1], [0], [0], [1], [0, 0, 1, 1], [], []>} : vector<5x8xbf16>, vector<8x32xbf16>, vector<5x32xf32> -> vector<5x32xf32>
    %592 = vector.extract_strided_slice %555 {offsets = [0, 8], sizes = [5, 8], strides = [1, 1]} : vector<5x16xf32> to vector<5x8xf32>
    %593 = vector.extract_strided_slice %561 {offsets = [0, 8], sizes = [16, 8], strides = [1, 1]} : vector<16x16xf32> to vector<16x8xf32>
    %594 = arith.truncf %592 : vector<5x8xf32> to vector<5x8xbf16>
    %595 = arith.truncf %593 : vector<16x8xf32> to vector<16x8xbf16>
    %cst_215 = arith.constant dense<0.000000e+00> : vector<5x16xf32>
    %596 = tpu.matmul %594, %595, %cst_215 {dimension_numbers = #tpu.dot_dimension_numbers<[1], [1], [0], [0], [0, 0, 1, 0], [], []>} : vector<5x8xbf16>, vector<16x8xbf16>, vector<5x16xf32> -> vector<5x16xf32>
    %cst_216 = arith.constant 0.353553385 : f32
    %597 = vector.broadcast %cst_216 : f32 to vector<5x16xf32>
    %598 = arith.mulf %596, %597 : vector<5x16xf32>
    %cst_217 = arith.constant dense<0xFF800000> : vector<5xf32>
    %599 = vector.multi_reduction <maximumf>, %598, %cst_217 [1] : vector<5x16xf32> to vector<5xf32>
    %600 = vector.shape_cast %599 : vector<5xf32> to vector<5x1xf32>
    %601 = vector.broadcast %600 : vector<5x1xf32> to vector<5x16xf32>
    %602 = arith.subf %598, %601 : vector<5x16xf32>
    %603 = math.exp %602 : vector<5x16xf32>
    %cst_218 = arith.constant dense<0.000000e+00> : vector<5xf32>
    %604 = vector.multi_reduction <add>, %603, %cst_218 [1] : vector<5x16xf32> to vector<5xf32>
    %605 = vector.shape_cast %604 : vector<5xf32> to vector<5x1xf32>
    %606 = tpu.reciprocal %605 {approx = true} : vector<5x1xf32> -> vector<5x1xf32>
    %607 = vector.broadcast %606 : vector<5x1xf32> to vector<5x16xf32>
    %608 = arith.mulf %603, %607 : vector<5x16xf32>
    %609 = vector.extract_strided_slice %567 {offsets = [0, 8], sizes = [16, 8], strides = [1, 1]} : vector<16x16xf32> to vector<16x8xf32>
    %610 = arith.truncf %608 : vector<5x16xf32> to vector<5x16xbf16>
    %611 = arith.truncf %609 : vector<16x8xf32> to vector<16x8xbf16>
    %cst_219 = arith.constant dense<0.000000e+00> : vector<5x8xf32>
    %612 = tpu.matmul %610, %611, %cst_219 {dimension_numbers = #tpu.dot_dimension_numbers<[1], [0], [0], [1], [0, 0, 1, 1], [], []>} : vector<5x16xbf16>, vector<16x8xbf16>, vector<5x8xf32> -> vector<5x8xf32>
    %c1152 = arith.constant 1152 : index
    %c0_220 = arith.constant 0 : index
    %613 = vector.load %arg1[%c1152, %c0_220] : memref<3600x128xbf16, #tpu.memory_space<vmem>>, vector<8x32xbf16>
    %614 = arith.truncf %612 : vector<5x8xf32> to vector<5x8xbf16>
    %cst_221 = arith.constant dense<0.000000e+00> : vector<5x32xf32>
    %615 = tpu.matmul %614, %613, %cst_221 {dimension_numbers = #tpu.dot_dimension_numbers<[1], [0], [0], [1], [0, 0, 1, 1], [], []>} : vector<5x8xbf16>, vector<8x32xbf16>, vector<5x32xf32> -> vector<5x32xf32>
    %616 = arith.addf %591, %615 : vector<5x32xf32>
    %c272 = arith.constant 272 : index
    %c0_222 = arith.constant 0 : index
    %617 = vector.load %arg2[%c272, %c0_222] : memref<696x128xf32, #tpu.memory_space<vmem>>, vector<1x32xf32>
    %618 = vector.broadcast %617 : vector<1x32xf32> to vector<5x32xf32>
    %619 = arith.addf %616, %618 : vector<5x32xf32>
    %620 = arith.addf %547, %619 : vector<5x32xf32>
    %c328 = arith.constant 328 : index
    %c0_223 = arith.constant 0 : index
    %621 = vector.load %arg2[%c328, %c0_223] : memref<696x128xf32, #tpu.memory_space<vmem>>, vector<1x32xf32>
    %c336 = arith.constant 336 : index
    %c0_224 = arith.constant 0 : index
    %622 = vector.load %arg2[%c336, %c0_224] : memref<696x128xf32, #tpu.memory_space<vmem>>, vector<1x32xf32>
    %cst_225 = arith.constant dense<0.000000e+00> : vector<5xf32>
    %623 = vector.multi_reduction <add>, %620, %cst_225 [1] : vector<5x32xf32> to vector<5xf32>
    %624 = vector.shape_cast %623 : vector<5xf32> to vector<5x1xf32>
    %cst_226 = arith.constant 3.200000e+01 : f32
    %625 = vector.broadcast %cst_226 : f32 to vector<5x1xf32>
    %626 = arith.divf %624, %625 : vector<5x1xf32>
    %627 = arith.mulf %620, %620 : vector<5x32xf32>
    %cst_227 = arith.constant dense<0.000000e+00> : vector<5xf32>
    %628 = vector.multi_reduction <add>, %627, %cst_227 [1] : vector<5x32xf32> to vector<5xf32>
    %629 = vector.shape_cast %628 : vector<5xf32> to vector<5x1xf32>
    %cst_228 = arith.constant 3.200000e+01 : f32
    %630 = vector.broadcast %cst_228 : f32 to vector<5x1xf32>
    %631 = arith.divf %629, %630 : vector<5x1xf32>
    %632 = arith.mulf %626, %626 : vector<5x1xf32>
    %633 = arith.subf %631, %632 : vector<5x1xf32>
    %cst_229 = arith.constant 0.000000e+00 : f32
    %634 = vector.broadcast %cst_229 : f32 to vector<5x1xf32>
    %635 = arith.maximumf %633, %634 : vector<5x1xf32>
    %636 = vector.broadcast %626 : vector<5x1xf32> to vector<5x32xf32>
    %637 = arith.subf %620, %636 : vector<5x32xf32>
    %cst_230 = arith.constant 9.99999974E-6 : f32
    %638 = vector.broadcast %cst_230 : f32 to vector<5x1xf32>
    %639 = arith.addf %635, %638 : vector<5x1xf32>
    %640 = math.rsqrt %639 : vector<5x1xf32>
    %641 = vector.broadcast %640 : vector<5x1xf32> to vector<5x32xf32>
    %642 = arith.mulf %637, %641 : vector<5x32xf32>
    %643 = vector.broadcast %621 : vector<1x32xf32> to vector<5x32xf32>
    %644 = arith.mulf %642, %643 : vector<5x32xf32>
    %645 = vector.broadcast %622 : vector<1x32xf32> to vector<5x32xf32>
    %646 = arith.addf %644, %645 : vector<5x32xf32>
    %c1296 = arith.constant 1296 : index
    %c0_231 = arith.constant 0 : index
    %647 = vector.load %arg1[%c1296, %c0_231] : memref<3600x128xbf16, #tpu.memory_space<vmem>>, vector<32x64xbf16>
    %648 = arith.truncf %646 : vector<5x32xf32> to vector<5x32xbf16>
    %cst_232 = arith.constant dense<0.000000e+00> : vector<5x64xf32>
    %649 = tpu.matmul %648, %647, %cst_232 {dimension_numbers = #tpu.dot_dimension_numbers<[1], [0], [0], [1], [0, 0, 1, 1], [], []>} : vector<5x32xbf16>, vector<32x64xbf16>, vector<5x64xf32> -> vector<5x64xf32>
    %c376 = arith.constant 376 : index
    %c0_233 = arith.constant 0 : index
    %650 = vector.load %arg2[%c376, %c0_233] : memref<696x128xf32, #tpu.memory_space<vmem>>, vector<1x64xf32>
    %651 = vector.broadcast %650 : vector<1x64xf32> to vector<5x64xf32>
    %652 = arith.addf %649, %651 : vector<5x64xf32>
    %cst_234 = arith.constant 0.000000e+00 : f32
    %653 = vector.broadcast %cst_234 : f32 to vector<5x64xf32>
    %654 = arith.maximumf %652, %653 : vector<5x64xf32>
    %c1328 = arith.constant 1328 : index
    %c0_235 = arith.constant 0 : index
    %655 = vector.load %arg1[%c1328, %c0_235] : memref<3600x128xbf16, #tpu.memory_space<vmem>>, vector<64x32xbf16>
    %656 = arith.truncf %654 : vector<5x64xf32> to vector<5x64xbf16>
    %cst_236 = arith.constant dense<0.000000e+00> : vector<5x32xf32>
    %657 = tpu.matmul %656, %655, %cst_236 {dimension_numbers = #tpu.dot_dimension_numbers<[1], [0], [0], [1], [0, 0, 1, 1], [], []>} : vector<5x64xbf16>, vector<64x32xbf16>, vector<5x32xf32> -> vector<5x32xf32>
    %658 = arith.addf %646, %657 : vector<5x32xf32>
    %c384 = arith.constant 384 : index
    %c0_237 = arith.constant 0 : index
    %659 = vector.load %arg2[%c384, %c0_237] : memref<696x128xf32, #tpu.memory_space<vmem>>, vector<1x32xf32>
    %660 = vector.broadcast %659 : vector<1x32xf32> to vector<5x32xf32>
    %661 = arith.addf %658, %660 : vector<5x32xf32>
    %c344 = arith.constant 344 : index
    %c0_238 = arith.constant 0 : index
    %662 = vector.load %arg2[%c344, %c0_238] : memref<696x128xf32, #tpu.memory_space<vmem>>, vector<1x32xf32>
    %c352 = arith.constant 352 : index
    %c0_239 = arith.constant 0 : index
    %663 = vector.load %arg2[%c352, %c0_239] : memref<696x128xf32, #tpu.memory_space<vmem>>, vector<1x32xf32>
    %cst_240 = arith.constant dense<0.000000e+00> : vector<5xf32>
    %664 = vector.multi_reduction <add>, %661, %cst_240 [1] : vector<5x32xf32> to vector<5xf32>
    %665 = vector.shape_cast %664 : vector<5xf32> to vector<5x1xf32>
    %cst_241 = arith.constant 3.200000e+01 : f32
    %666 = vector.broadcast %cst_241 : f32 to vector<5x1xf32>
    %667 = arith.divf %665, %666 : vector<5x1xf32>
    %668 = arith.mulf %661, %661 : vector<5x32xf32>
    %cst_242 = arith.constant dense<0.000000e+00> : vector<5xf32>
    %669 = vector.multi_reduction <add>, %668, %cst_242 [1] : vector<5x32xf32> to vector<5xf32>
    %670 = vector.shape_cast %669 : vector<5xf32> to vector<5x1xf32>
    %cst_243 = arith.constant 3.200000e+01 : f32
    %671 = vector.broadcast %cst_243 : f32 to vector<5x1xf32>
    %672 = arith.divf %670, %671 : vector<5x1xf32>
    %673 = arith.mulf %667, %667 : vector<5x1xf32>
    %674 = arith.subf %672, %673 : vector<5x1xf32>
    %cst_244 = arith.constant 0.000000e+00 : f32
    %675 = vector.broadcast %cst_244 : f32 to vector<5x1xf32>
    %676 = arith.maximumf %674, %675 : vector<5x1xf32>
    %677 = vector.broadcast %667 : vector<5x1xf32> to vector<5x32xf32>
    %678 = arith.subf %661, %677 : vector<5x32xf32>
    %cst_245 = arith.constant 9.99999974E-6 : f32
    %679 = vector.broadcast %cst_245 : f32 to vector<5x1xf32>
    %680 = arith.addf %676, %679 : vector<5x1xf32>
    %681 = math.rsqrt %680 : vector<5x1xf32>
    %682 = vector.broadcast %681 : vector<5x1xf32> to vector<5x32xf32>
    %683 = arith.mulf %678, %682 : vector<5x32xf32>
    %684 = vector.broadcast %662 : vector<1x32xf32> to vector<5x32xf32>
    %685 = arith.mulf %683, %684 : vector<5x32xf32>
    %686 = vector.broadcast %663 : vector<1x32xf32> to vector<5x32xf32>
    %687 = arith.addf %685, %686 : vector<5x32xf32>
    %688 = arith.addf %687, %447 : vector<5x32xf32>
    %689 = arith.addf %450, %451 : vector<16x32xf32>
    %c1168 = arith.constant 1168 : index
    %c0_246 = arith.constant 0 : index
    %690 = vector.load %arg1[%c1168, %c0_246] : memref<3600x128xbf16, #tpu.memory_space<vmem>>, vector<32x16xbf16>
    %691 = arith.truncf %689 : vector<16x32xf32> to vector<16x32xbf16>
    %cst_247 = arith.constant dense<0.000000e+00> : vector<16x16xf32>
    %692 = tpu.matmul %691, %690, %cst_247 {dimension_numbers = #tpu.dot_dimension_numbers<[1], [0], [0], [1], [0, 0, 1, 1], [], []>} : vector<16x32xbf16>, vector<32x16xbf16>, vector<16x16xf32> -> vector<16x16xf32>
    %c280 = arith.constant 280 : index
    %c0_248 = arith.constant 0 : index
    %693 = vector.load %arg2[%c280, %c0_248] : memref<696x128xf32, #tpu.memory_space<vmem>>, vector<1x16xf32>
    %694 = vector.broadcast %693 : vector<1x16xf32> to vector<16x16xf32>
    %695 = arith.addf %692, %694 : vector<16x16xf32>
    %c1200 = arith.constant 1200 : index
    %c0_249 = arith.constant 0 : index
    %696 = vector.load %arg1[%c1200, %c0_249] : memref<3600x128xbf16, #tpu.memory_space<vmem>>, vector<32x16xbf16>
    %697 = arith.truncf %688 : vector<5x32xf32> to vector<5x32xbf16>
    %cst_250 = arith.constant dense<0.000000e+00> : vector<5x16xf32>
    %698 = tpu.matmul %697, %696, %cst_250 {dimension_numbers = #tpu.dot_dimension_numbers<[1], [0], [0], [1], [0, 0, 1, 1], [], []>} : vector<5x32xbf16>, vector<32x16xbf16>, vector<5x16xf32> -> vector<5x16xf32>
    %c288_251 = arith.constant 288 : index
    %c0_252 = arith.constant 0 : index
    %699 = vector.load %arg2[%c288_251, %c0_252] : memref<696x128xf32, #tpu.memory_space<vmem>>, vector<1x16xf32>
    %700 = vector.broadcast %699 : vector<1x16xf32> to vector<5x16xf32>
    %701 = arith.addf %698, %700 : vector<5x16xf32>
    %c1232 = arith.constant 1232 : index
    %c0_253 = arith.constant 0 : index
    %702 = vector.load %arg1[%c1232, %c0_253] : memref<3600x128xbf16, #tpu.memory_space<vmem>>, vector<32x16xbf16>
    %703 = arith.truncf %687 : vector<5x32xf32> to vector<5x32xbf16>
    %cst_254 = arith.constant dense<0.000000e+00> : vector<5x16xf32>
    %704 = tpu.matmul %703, %702, %cst_254 {dimension_numbers = #tpu.dot_dimension_numbers<[1], [0], [0], [1], [0, 0, 1, 1], [], []>} : vector<5x32xbf16>, vector<32x16xbf16>, vector<5x16xf32> -> vector<5x16xf32>
    %c296 = arith.constant 296 : index
    %c0_255 = arith.constant 0 : index
    %705 = vector.load %arg2[%c296, %c0_255] : memref<696x128xf32, #tpu.memory_space<vmem>>, vector<1x16xf32>
    %706 = vector.broadcast %705 : vector<1x16xf32> to vector<5x16xf32>
    %707 = arith.addf %704, %706 : vector<5x16xf32>
    %708 = vector.extract_strided_slice %695 {offsets = [0, 0], sizes = [16, 8], strides = [1, 1]} : vector<16x16xf32> to vector<16x8xf32>
    %709 = vector.extract_strided_slice %701 {offsets = [0, 0], sizes = [5, 8], strides = [1, 1]} : vector<5x16xf32> to vector<5x8xf32>
    %710 = arith.truncf %708 : vector<16x8xf32> to vector<16x8xbf16>
    %711 = arith.truncf %709 : vector<5x8xf32> to vector<5x8xbf16>
    %cst_256 = arith.constant dense<0.000000e+00> : vector<16x5xf32>
    %712 = tpu.matmul %710, %711, %cst_256 {dimension_numbers = #tpu.dot_dimension_numbers<[1], [1], [0], [0], [0, 0, 1, 0], [], []>} : vector<16x8xbf16>, vector<5x8xbf16>, vector<16x5xf32> -> vector<16x5xf32>
    %cst_257 = arith.constant 0.353553385 : f32
    %713 = vector.broadcast %cst_257 : f32 to vector<16x5xf32>
    %714 = arith.mulf %712, %713 : vector<16x5xf32>
    %cst_258 = arith.constant dense<0xFF800000> : vector<16xf32>
    %715 = vector.multi_reduction <maximumf>, %714, %cst_258 [1] : vector<16x5xf32> to vector<16xf32>
    %716 = vector.shape_cast %715 : vector<16xf32> to vector<16x1xf32>
    %717 = vector.broadcast %716 : vector<16x1xf32> to vector<16x5xf32>
    %718 = arith.subf %714, %717 : vector<16x5xf32>
    %719 = math.exp %718 : vector<16x5xf32>
    %cst_259 = arith.constant dense<0.000000e+00> : vector<16xf32>
    %720 = vector.multi_reduction <add>, %719, %cst_259 [1] : vector<16x5xf32> to vector<16xf32>
    %721 = vector.shape_cast %720 : vector<16xf32> to vector<16x1xf32>
    %722 = tpu.reciprocal %721 {approx = true} : vector<16x1xf32> -> vector<16x1xf32>
    %723 = vector.broadcast %722 : vector<16x1xf32> to vector<16x5xf32>
    %724 = arith.mulf %719, %723 : vector<16x5xf32>
    %725 = vector.extract_strided_slice %707 {offsets = [0, 0], sizes = [5, 8], strides = [1, 1]} : vector<5x16xf32> to vector<5x8xf32>
    %726 = arith.truncf %724 : vector<16x5xf32> to vector<16x5xbf16>
    %727 = arith.truncf %725 : vector<5x8xf32> to vector<5x8xbf16>
    %cst_260 = arith.constant dense<0.000000e+00> : vector<16x8xf32>
    %728 = tpu.matmul %726, %727, %cst_260 {dimension_numbers = #tpu.dot_dimension_numbers<[1], [0], [0], [1], [0, 0, 1, 1], [], []>} : vector<16x5xbf16>, vector<5x8xbf16>, vector<16x8xf32> -> vector<16x8xf32>
    %c1264 = arith.constant 1264 : index
    %c0_261 = arith.constant 0 : index
    %729 = vector.load %arg1[%c1264, %c0_261] : memref<3600x128xbf16, #tpu.memory_space<vmem>>, vector<8x32xbf16>
    %730 = arith.truncf %728 : vector<16x8xf32> to vector<16x8xbf16>
    %cst_262 = arith.constant dense<0.000000e+00> : vector<16x32xf32>
    %731 = tpu.matmul %730, %729, %cst_262 {dimension_numbers = #tpu.dot_dimension_numbers<[1], [0], [0], [1], [0, 0, 1, 1], [], []>} : vector<16x8xbf16>, vector<8x32xbf16>, vector<16x32xf32> -> vector<16x32xf32>
    %732 = vector.extract_strided_slice %695 {offsets = [0, 8], sizes = [16, 8], strides = [1, 1]} : vector<16x16xf32> to vector<16x8xf32>
    %733 = vector.extract_strided_slice %701 {offsets = [0, 8], sizes = [5, 8], strides = [1, 1]} : vector<5x16xf32> to vector<5x8xf32>
    %734 = arith.truncf %732 : vector<16x8xf32> to vector<16x8xbf16>
    %735 = arith.truncf %733 : vector<5x8xf32> to vector<5x8xbf16>
    %cst_263 = arith.constant dense<0.000000e+00> : vector<16x5xf32>
    %736 = tpu.matmul %734, %735, %cst_263 {dimension_numbers = #tpu.dot_dimension_numbers<[1], [1], [0], [0], [0, 0, 1, 0], [], []>} : vector<16x8xbf16>, vector<5x8xbf16>, vector<16x5xf32> -> vector<16x5xf32>
    %cst_264 = arith.constant 0.353553385 : f32
    %737 = vector.broadcast %cst_264 : f32 to vector<16x5xf32>
    %738 = arith.mulf %736, %737 : vector<16x5xf32>
    %cst_265 = arith.constant dense<0xFF800000> : vector<16xf32>
    %739 = vector.multi_reduction <maximumf>, %738, %cst_265 [1] : vector<16x5xf32> to vector<16xf32>
    %740 = vector.shape_cast %739 : vector<16xf32> to vector<16x1xf32>
    %741 = vector.broadcast %740 : vector<16x1xf32> to vector<16x5xf32>
    %742 = arith.subf %738, %741 : vector<16x5xf32>
    %743 = math.exp %742 : vector<16x5xf32>
    %cst_266 = arith.constant dense<0.000000e+00> : vector<16xf32>
    %744 = vector.multi_reduction <add>, %743, %cst_266 [1] : vector<16x5xf32> to vector<16xf32>
    %745 = vector.shape_cast %744 : vector<16xf32> to vector<16x1xf32>
    %746 = tpu.reciprocal %745 {approx = true} : vector<16x1xf32> -> vector<16x1xf32>
    %747 = vector.broadcast %746 : vector<16x1xf32> to vector<16x5xf32>
    %748 = arith.mulf %743, %747 : vector<16x5xf32>
    %749 = vector.extract_strided_slice %707 {offsets = [0, 8], sizes = [5, 8], strides = [1, 1]} : vector<5x16xf32> to vector<5x8xf32>
    %750 = arith.truncf %748 : vector<16x5xf32> to vector<16x5xbf16>
    %751 = arith.truncf %749 : vector<5x8xf32> to vector<5x8xbf16>
    %cst_267 = arith.constant dense<0.000000e+00> : vector<16x8xf32>
    %752 = tpu.matmul %750, %751, %cst_267 {dimension_numbers = #tpu.dot_dimension_numbers<[1], [0], [0], [1], [0, 0, 1, 1], [], []>} : vector<16x5xbf16>, vector<5x8xbf16>, vector<16x8xf32> -> vector<16x8xf32>
    %c1280 = arith.constant 1280 : index
    %c0_268 = arith.constant 0 : index
    %753 = vector.load %arg1[%c1280, %c0_268] : memref<3600x128xbf16, #tpu.memory_space<vmem>>, vector<8x32xbf16>
    %754 = arith.truncf %752 : vector<16x8xf32> to vector<16x8xbf16>
    %cst_269 = arith.constant dense<0.000000e+00> : vector<16x32xf32>
    %755 = tpu.matmul %754, %753, %cst_269 {dimension_numbers = #tpu.dot_dimension_numbers<[1], [0], [0], [1], [0, 0, 1, 1], [], []>} : vector<16x8xbf16>, vector<8x32xbf16>, vector<16x32xf32> -> vector<16x32xf32>
    %756 = arith.addf %731, %755 : vector<16x32xf32>
    %c304 = arith.constant 304 : index
    %c0_270 = arith.constant 0 : index
    %757 = vector.load %arg2[%c304, %c0_270] : memref<696x128xf32, #tpu.memory_space<vmem>>, vector<1x32xf32>
    %758 = vector.broadcast %757 : vector<1x32xf32> to vector<16x32xf32>
    %759 = arith.addf %756, %758 : vector<16x32xf32>
    %760 = arith.addf %450, %759 : vector<16x32xf32>
    %c360 = arith.constant 360 : index
    %c0_271 = arith.constant 0 : index
    %761 = vector.load %arg2[%c360, %c0_271] : memref<696x128xf32, #tpu.memory_space<vmem>>, vector<1x32xf32>
    %c368 = arith.constant 368 : index
    %c0_272 = arith.constant 0 : index
    %762 = vector.load %arg2[%c368, %c0_272] : memref<696x128xf32, #tpu.memory_space<vmem>>, vector<1x32xf32>
    %cst_273 = arith.constant dense<0.000000e+00> : vector<16xf32>
    %763 = vector.multi_reduction <add>, %760, %cst_273 [1] : vector<16x32xf32> to vector<16xf32>
    %764 = vector.shape_cast %763 : vector<16xf32> to vector<16x1xf32>
    %cst_274 = arith.constant 3.200000e+01 : f32
    %765 = vector.broadcast %cst_274 : f32 to vector<16x1xf32>
    %766 = arith.divf %764, %765 : vector<16x1xf32>
    %767 = arith.mulf %760, %760 : vector<16x32xf32>
    %cst_275 = arith.constant dense<0.000000e+00> : vector<16xf32>
    %768 = vector.multi_reduction <add>, %767, %cst_275 [1] : vector<16x32xf32> to vector<16xf32>
    %769 = vector.shape_cast %768 : vector<16xf32> to vector<16x1xf32>
    %cst_276 = arith.constant 3.200000e+01 : f32
    %770 = vector.broadcast %cst_276 : f32 to vector<16x1xf32>
    %771 = arith.divf %769, %770 : vector<16x1xf32>
    %772 = arith.mulf %766, %766 : vector<16x1xf32>
    %773 = arith.subf %771, %772 : vector<16x1xf32>
    %cst_277 = arith.constant 0.000000e+00 : f32
    %774 = vector.broadcast %cst_277 : f32 to vector<16x1xf32>
    %775 = arith.maximumf %773, %774 : vector<16x1xf32>
    %776 = vector.broadcast %766 : vector<16x1xf32> to vector<16x32xf32>
    %777 = arith.subf %760, %776 : vector<16x32xf32>
    %cst_278 = arith.constant 9.99999974E-6 : f32
    %778 = vector.broadcast %cst_278 : f32 to vector<16x1xf32>
    %779 = arith.addf %775, %778 : vector<16x1xf32>
    %780 = math.rsqrt %779 : vector<16x1xf32>
    %781 = vector.broadcast %780 : vector<16x1xf32> to vector<16x32xf32>
    %782 = arith.mulf %777, %781 : vector<16x32xf32>
    %783 = vector.broadcast %761 : vector<1x32xf32> to vector<16x32xf32>
    %784 = arith.mulf %782, %783 : vector<16x32xf32>
    %785 = vector.broadcast %762 : vector<1x32xf32> to vector<16x32xf32>
    %786 = arith.addf %784, %785 : vector<16x32xf32>
    %787 = arith.addf %687, %447 : vector<5x32xf32>
    %c1392 = arith.constant 1392 : index
    %c0_279 = arith.constant 0 : index
    %788 = vector.load %arg1[%c1392, %c0_279] : memref<3600x128xbf16, #tpu.memory_space<vmem>>, vector<32x32xbf16>
    %789 = arith.truncf %787 : vector<5x32xf32> to vector<5x32xbf16>
    %cst_280 = arith.constant dense<0.000000e+00> : vector<5x32xf32>
    %790 = tpu.matmul %789, %788, %cst_280 {dimension_numbers = #tpu.dot_dimension_numbers<[1], [0], [0], [1], [0, 0, 1, 1], [], []>} : vector<5x32xbf16>, vector<32x32xbf16>, vector<5x32xf32> -> vector<5x32xf32>
    %c392 = arith.constant 392 : index
    %c0_281 = arith.constant 0 : index
    %791 = vector.load %arg2[%c392, %c0_281] : memref<696x128xf32, #tpu.memory_space<vmem>>, vector<1x32xf32>
    %792 = vector.broadcast %791 : vector<1x32xf32> to vector<5x32xf32>
    %793 = arith.addf %790, %792 : vector<5x32xf32>
    %c1424 = arith.constant 1424 : index
    %c0_282 = arith.constant 0 : index
    %794 = vector.load %arg1[%c1424, %c0_282] : memref<3600x128xbf16, #tpu.memory_space<vmem>>, vector<32x32xbf16>
    %795 = arith.truncf %787 : vector<5x32xf32> to vector<5x32xbf16>
    %cst_283 = arith.constant dense<0.000000e+00> : vector<5x32xf32>
    %796 = tpu.matmul %795, %794, %cst_283 {dimension_numbers = #tpu.dot_dimension_numbers<[1], [0], [0], [1], [0, 0, 1, 1], [], []>} : vector<5x32xbf16>, vector<32x32xbf16>, vector<5x32xf32> -> vector<5x32xf32>
    %c400 = arith.constant 400 : index
    %c0_284 = arith.constant 0 : index
    %797 = vector.load %arg2[%c400, %c0_284] : memref<696x128xf32, #tpu.memory_space<vmem>>, vector<1x32xf32>
    %798 = vector.broadcast %797 : vector<1x32xf32> to vector<5x32xf32>
    %799 = arith.addf %796, %798 : vector<5x32xf32>
    %c1456 = arith.constant 1456 : index
    %c0_285 = arith.constant 0 : index
    %800 = vector.load %arg1[%c1456, %c0_285] : memref<3600x128xbf16, #tpu.memory_space<vmem>>, vector<32x32xbf16>
    %801 = arith.truncf %687 : vector<5x32xf32> to vector<5x32xbf16>
    %cst_286 = arith.constant dense<0.000000e+00> : vector<5x32xf32>
    %802 = tpu.matmul %801, %800, %cst_286 {dimension_numbers = #tpu.dot_dimension_numbers<[1], [0], [0], [1], [0, 0, 1, 1], [], []>} : vector<5x32xbf16>, vector<32x32xbf16>, vector<5x32xf32> -> vector<5x32xf32>
    %c408 = arith.constant 408 : index
    %c0_287 = arith.constant 0 : index
    %803 = vector.load %arg2[%c408, %c0_287] : memref<696x128xf32, #tpu.memory_space<vmem>>, vector<1x32xf32>
    %804 = vector.broadcast %803 : vector<1x32xf32> to vector<5x32xf32>
    %805 = arith.addf %802, %804 : vector<5x32xf32>
    %806 = vector.extract_strided_slice %793 {offsets = [0, 0], sizes = [5, 16], strides = [1, 1]} : vector<5x32xf32> to vector<5x16xf32>
    %807 = vector.extract_strided_slice %799 {offsets = [0, 0], sizes = [5, 16], strides = [1, 1]} : vector<5x32xf32> to vector<5x16xf32>
    %808 = arith.truncf %806 : vector<5x16xf32> to vector<5x16xbf16>
    %809 = arith.truncf %807 : vector<5x16xf32> to vector<5x16xbf16>
    %cst_288 = arith.constant dense<0.000000e+00> : vector<5x5xf32>
    %810 = tpu.matmul %808, %809, %cst_288 {dimension_numbers = #tpu.dot_dimension_numbers<[1], [1], [0], [0], [0, 0, 1, 0], [], []>} : vector<5x16xbf16>, vector<5x16xbf16>, vector<5x5xf32> -> vector<5x5xf32>
    %cst_289 = arith.constant 2.500000e-01 : f32
    %811 = vector.broadcast %cst_289 : f32 to vector<5x5xf32>
    %812 = arith.mulf %810, %811 : vector<5x5xf32>
    %cst_290 = arith.constant dense<0xFF800000> : vector<5xf32>
    %813 = vector.multi_reduction <maximumf>, %812, %cst_290 [1] : vector<5x5xf32> to vector<5xf32>
    %814 = vector.shape_cast %813 : vector<5xf32> to vector<5x1xf32>
    %815 = vector.broadcast %814 : vector<5x1xf32> to vector<5x5xf32>
    %816 = arith.subf %812, %815 : vector<5x5xf32>
    %817 = math.exp %816 : vector<5x5xf32>
    %cst_291 = arith.constant dense<0.000000e+00> : vector<5xf32>
    %818 = vector.multi_reduction <add>, %817, %cst_291 [1] : vector<5x5xf32> to vector<5xf32>
    %819 = vector.shape_cast %818 : vector<5xf32> to vector<5x1xf32>
    %820 = tpu.reciprocal %819 {approx = true} : vector<5x1xf32> -> vector<5x1xf32>
    %821 = vector.broadcast %820 : vector<5x1xf32> to vector<5x5xf32>
    %822 = arith.mulf %817, %821 : vector<5x5xf32>
    %823 = vector.extract_strided_slice %805 {offsets = [0, 0], sizes = [5, 16], strides = [1, 1]} : vector<5x32xf32> to vector<5x16xf32>
    %824 = arith.truncf %822 : vector<5x5xf32> to vector<5x5xbf16>
    %825 = arith.truncf %823 : vector<5x16xf32> to vector<5x16xbf16>
    %cst_292 = arith.constant dense<0.000000e+00> : vector<5x16xf32>
    %826 = tpu.matmul %824, %825, %cst_292 {dimension_numbers = #tpu.dot_dimension_numbers<[1], [0], [0], [1], [0, 0, 1, 1], [], []>} : vector<5x5xbf16>, vector<5x16xbf16>, vector<5x16xf32> -> vector<5x16xf32>
    %c1488 = arith.constant 1488 : index
    %c0_293 = arith.constant 0 : index
    %827 = vector.load %arg1[%c1488, %c0_293] : memref<3600x128xbf16, #tpu.memory_space<vmem>>, vector<16x32xbf16>
    %828 = arith.truncf %826 : vector<5x16xf32> to vector<5x16xbf16>
    %cst_294 = arith.constant dense<0.000000e+00> : vector<5x32xf32>
    %829 = tpu.matmul %828, %827, %cst_294 {dimension_numbers = #tpu.dot_dimension_numbers<[1], [0], [0], [1], [0, 0, 1, 1], [], []>} : vector<5x16xbf16>, vector<16x32xbf16>, vector<5x32xf32> -> vector<5x32xf32>
    %830 = vector.extract_strided_slice %793 {offsets = [0, 16], sizes = [5, 16], strides = [1, 1]} : vector<5x32xf32> to vector<5x16xf32>
    %831 = vector.extract_strided_slice %799 {offsets = [0, 16], sizes = [5, 16], strides = [1, 1]} : vector<5x32xf32> to vector<5x16xf32>
    %832 = arith.truncf %830 : vector<5x16xf32> to vector<5x16xbf16>
    %833 = arith.truncf %831 : vector<5x16xf32> to vector<5x16xbf16>
    %cst_295 = arith.constant dense<0.000000e+00> : vector<5x5xf32>
    %834 = tpu.matmul %832, %833, %cst_295 {dimension_numbers = #tpu.dot_dimension_numbers<[1], [1], [0], [0], [0, 0, 1, 0], [], []>} : vector<5x16xbf16>, vector<5x16xbf16>, vector<5x5xf32> -> vector<5x5xf32>
    %cst_296 = arith.constant 2.500000e-01 : f32
    %835 = vector.broadcast %cst_296 : f32 to vector<5x5xf32>
    %836 = arith.mulf %834, %835 : vector<5x5xf32>
    %cst_297 = arith.constant dense<0xFF800000> : vector<5xf32>
    %837 = vector.multi_reduction <maximumf>, %836, %cst_297 [1] : vector<5x5xf32> to vector<5xf32>
    %838 = vector.shape_cast %837 : vector<5xf32> to vector<5x1xf32>
    %839 = vector.broadcast %838 : vector<5x1xf32> to vector<5x5xf32>
    %840 = arith.subf %836, %839 : vector<5x5xf32>
    %841 = math.exp %840 : vector<5x5xf32>
    %cst_298 = arith.constant dense<0.000000e+00> : vector<5xf32>
    %842 = vector.multi_reduction <add>, %841, %cst_298 [1] : vector<5x5xf32> to vector<5xf32>
    %843 = vector.shape_cast %842 : vector<5xf32> to vector<5x1xf32>
    %844 = tpu.reciprocal %843 {approx = true} : vector<5x1xf32> -> vector<5x1xf32>
    %845 = vector.broadcast %844 : vector<5x1xf32> to vector<5x5xf32>
    %846 = arith.mulf %841, %845 : vector<5x5xf32>
    %847 = vector.extract_strided_slice %805 {offsets = [0, 16], sizes = [5, 16], strides = [1, 1]} : vector<5x32xf32> to vector<5x16xf32>
    %848 = arith.truncf %846 : vector<5x5xf32> to vector<5x5xbf16>
    %849 = arith.truncf %847 : vector<5x16xf32> to vector<5x16xbf16>
    %cst_299 = arith.constant dense<0.000000e+00> : vector<5x16xf32>
    %850 = tpu.matmul %848, %849, %cst_299 {dimension_numbers = #tpu.dot_dimension_numbers<[1], [0], [0], [1], [0, 0, 1, 1], [], []>} : vector<5x5xbf16>, vector<5x16xbf16>, vector<5x16xf32> -> vector<5x16xf32>
    %c1504 = arith.constant 1504 : index
    %c0_300 = arith.constant 0 : index
    %851 = vector.load %arg1[%c1504, %c0_300] : memref<3600x128xbf16, #tpu.memory_space<vmem>>, vector<16x32xbf16>
    %852 = arith.truncf %850 : vector<5x16xf32> to vector<5x16xbf16>
    %cst_301 = arith.constant dense<0.000000e+00> : vector<5x32xf32>
    %853 = tpu.matmul %852, %851, %cst_301 {dimension_numbers = #tpu.dot_dimension_numbers<[1], [0], [0], [1], [0, 0, 1, 1], [], []>} : vector<5x16xbf16>, vector<16x32xbf16>, vector<5x32xf32> -> vector<5x32xf32>
    %854 = arith.addf %829, %853 : vector<5x32xf32>
    %c416_302 = arith.constant 416 : index
    %c0_303 = arith.constant 0 : index
    %855 = vector.load %arg2[%c416_302, %c0_303] : memref<696x128xf32, #tpu.memory_space<vmem>>, vector<1x32xf32>
    %856 = vector.broadcast %855 : vector<1x32xf32> to vector<5x32xf32>
    %857 = arith.addf %854, %856 : vector<5x32xf32>
    %858 = arith.addf %687, %857 : vector<5x32xf32>
    %c488 = arith.constant 488 : index
    %c0_304 = arith.constant 0 : index
    %859 = vector.load %arg2[%c488, %c0_304] : memref<696x128xf32, #tpu.memory_space<vmem>>, vector<1x32xf32>
    %c496 = arith.constant 496 : index
    %c0_305 = arith.constant 0 : index
    %860 = vector.load %arg2[%c496, %c0_305] : memref<696x128xf32, #tpu.memory_space<vmem>>, vector<1x32xf32>
    %cst_306 = arith.constant dense<0.000000e+00> : vector<5xf32>
    %861 = vector.multi_reduction <add>, %858, %cst_306 [1] : vector<5x32xf32> to vector<5xf32>
    %862 = vector.shape_cast %861 : vector<5xf32> to vector<5x1xf32>
    %cst_307 = arith.constant 3.200000e+01 : f32
    %863 = vector.broadcast %cst_307 : f32 to vector<5x1xf32>
    %864 = arith.divf %862, %863 : vector<5x1xf32>
    %865 = arith.mulf %858, %858 : vector<5x32xf32>
    %cst_308 = arith.constant dense<0.000000e+00> : vector<5xf32>
    %866 = vector.multi_reduction <add>, %865, %cst_308 [1] : vector<5x32xf32> to vector<5xf32>
    %867 = vector.shape_cast %866 : vector<5xf32> to vector<5x1xf32>
    %cst_309 = arith.constant 3.200000e+01 : f32
    %868 = vector.broadcast %cst_309 : f32 to vector<5x1xf32>
    %869 = arith.divf %867, %868 : vector<5x1xf32>
    %870 = arith.mulf %864, %864 : vector<5x1xf32>
    %871 = arith.subf %869, %870 : vector<5x1xf32>
    %cst_310 = arith.constant 0.000000e+00 : f32
    %872 = vector.broadcast %cst_310 : f32 to vector<5x1xf32>
    %873 = arith.maximumf %871, %872 : vector<5x1xf32>
    %874 = vector.broadcast %864 : vector<5x1xf32> to vector<5x32xf32>
    %875 = arith.subf %858, %874 : vector<5x32xf32>
    %cst_311 = arith.constant 9.99999974E-6 : f32
    %876 = vector.broadcast %cst_311 : f32 to vector<5x1xf32>
    %877 = arith.addf %873, %876 : vector<5x1xf32>
    %878 = math.rsqrt %877 : vector<5x1xf32>
    %879 = vector.broadcast %878 : vector<5x1xf32> to vector<5x32xf32>
    %880 = arith.mulf %875, %879 : vector<5x32xf32>
    %881 = vector.broadcast %859 : vector<1x32xf32> to vector<5x32xf32>
    %882 = arith.mulf %880, %881 : vector<5x32xf32>
    %883 = vector.broadcast %860 : vector<1x32xf32> to vector<5x32xf32>
    %884 = arith.addf %882, %883 : vector<5x32xf32>
    %885 = arith.addf %884, %447 : vector<5x32xf32>
    %886 = arith.addf %786, %451 : vector<16x32xf32>
    %c1520 = arith.constant 1520 : index
    %c0_312 = arith.constant 0 : index
    %887 = vector.load %arg1[%c1520, %c0_312] : memref<3600x128xbf16, #tpu.memory_space<vmem>>, vector<32x16xbf16>
    %888 = arith.truncf %885 : vector<5x32xf32> to vector<5x32xbf16>
    %cst_313 = arith.constant dense<0.000000e+00> : vector<5x16xf32>
    %889 = tpu.matmul %888, %887, %cst_313 {dimension_numbers = #tpu.dot_dimension_numbers<[1], [0], [0], [1], [0, 0, 1, 1], [], []>} : vector<5x32xbf16>, vector<32x16xbf16>, vector<5x16xf32> -> vector<5x16xf32>
    %c424 = arith.constant 424 : index
    %c0_314 = arith.constant 0 : index
    %890 = vector.load %arg2[%c424, %c0_314] : memref<696x128xf32, #tpu.memory_space<vmem>>, vector<1x16xf32>
    %891 = vector.broadcast %890 : vector<1x16xf32> to vector<5x16xf32>
    %892 = arith.addf %889, %891 : vector<5x16xf32>
    %c1552 = arith.constant 1552 : index
    %c0_315 = arith.constant 0 : index
    %893 = vector.load %arg1[%c1552, %c0_315] : memref<3600x128xbf16, #tpu.memory_space<vmem>>, vector<32x16xbf16>
    %894 = arith.truncf %886 : vector<16x32xf32> to vector<16x32xbf16>
    %cst_316 = arith.constant dense<0.000000e+00> : vector<16x16xf32>
    %895 = tpu.matmul %894, %893, %cst_316 {dimension_numbers = #tpu.dot_dimension_numbers<[1], [0], [0], [1], [0, 0, 1, 1], [], []>} : vector<16x32xbf16>, vector<32x16xbf16>, vector<16x16xf32> -> vector<16x16xf32>
    %c432 = arith.constant 432 : index
    %c0_317 = arith.constant 0 : index
    %896 = vector.load %arg2[%c432, %c0_317] : memref<696x128xf32, #tpu.memory_space<vmem>>, vector<1x16xf32>
    %897 = vector.broadcast %896 : vector<1x16xf32> to vector<16x16xf32>
    %898 = arith.addf %895, %897 : vector<16x16xf32>
    %c1584 = arith.constant 1584 : index
    %c0_318 = arith.constant 0 : index
    %899 = vector.load %arg1[%c1584, %c0_318] : memref<3600x128xbf16, #tpu.memory_space<vmem>>, vector<32x16xbf16>
    %900 = arith.truncf %786 : vector<16x32xf32> to vector<16x32xbf16>
    %cst_319 = arith.constant dense<0.000000e+00> : vector<16x16xf32>
    %901 = tpu.matmul %900, %899, %cst_319 {dimension_numbers = #tpu.dot_dimension_numbers<[1], [0], [0], [1], [0, 0, 1, 1], [], []>} : vector<16x32xbf16>, vector<32x16xbf16>, vector<16x16xf32> -> vector<16x16xf32>
    %c440 = arith.constant 440 : index
    %c0_320 = arith.constant 0 : index
    %902 = vector.load %arg2[%c440, %c0_320] : memref<696x128xf32, #tpu.memory_space<vmem>>, vector<1x16xf32>
    %903 = vector.broadcast %902 : vector<1x16xf32> to vector<16x16xf32>
    %904 = arith.addf %901, %903 : vector<16x16xf32>
    %905 = vector.extract_strided_slice %892 {offsets = [0, 0], sizes = [5, 8], strides = [1, 1]} : vector<5x16xf32> to vector<5x8xf32>
    %906 = vector.extract_strided_slice %898 {offsets = [0, 0], sizes = [16, 8], strides = [1, 1]} : vector<16x16xf32> to vector<16x8xf32>
    %907 = arith.truncf %905 : vector<5x8xf32> to vector<5x8xbf16>
    %908 = arith.truncf %906 : vector<16x8xf32> to vector<16x8xbf16>
    %cst_321 = arith.constant dense<0.000000e+00> : vector<5x16xf32>
    %909 = tpu.matmul %907, %908, %cst_321 {dimension_numbers = #tpu.dot_dimension_numbers<[1], [1], [0], [0], [0, 0, 1, 0], [], []>} : vector<5x8xbf16>, vector<16x8xbf16>, vector<5x16xf32> -> vector<5x16xf32>
    %cst_322 = arith.constant 0.353553385 : f32
    %910 = vector.broadcast %cst_322 : f32 to vector<5x16xf32>
    %911 = arith.mulf %909, %910 : vector<5x16xf32>
    %cst_323 = arith.constant dense<0xFF800000> : vector<5xf32>
    %912 = vector.multi_reduction <maximumf>, %911, %cst_323 [1] : vector<5x16xf32> to vector<5xf32>
    %913 = vector.shape_cast %912 : vector<5xf32> to vector<5x1xf32>
    %914 = vector.broadcast %913 : vector<5x1xf32> to vector<5x16xf32>
    %915 = arith.subf %911, %914 : vector<5x16xf32>
    %916 = math.exp %915 : vector<5x16xf32>
    %cst_324 = arith.constant dense<0.000000e+00> : vector<5xf32>
    %917 = vector.multi_reduction <add>, %916, %cst_324 [1] : vector<5x16xf32> to vector<5xf32>
    %918 = vector.shape_cast %917 : vector<5xf32> to vector<5x1xf32>
    %919 = tpu.reciprocal %918 {approx = true} : vector<5x1xf32> -> vector<5x1xf32>
    %920 = vector.broadcast %919 : vector<5x1xf32> to vector<5x16xf32>
    %921 = arith.mulf %916, %920 : vector<5x16xf32>
    %922 = vector.extract_strided_slice %904 {offsets = [0, 0], sizes = [16, 8], strides = [1, 1]} : vector<16x16xf32> to vector<16x8xf32>
    %923 = arith.truncf %921 : vector<5x16xf32> to vector<5x16xbf16>
    %924 = arith.truncf %922 : vector<16x8xf32> to vector<16x8xbf16>
    %cst_325 = arith.constant dense<0.000000e+00> : vector<5x8xf32>
    %925 = tpu.matmul %923, %924, %cst_325 {dimension_numbers = #tpu.dot_dimension_numbers<[1], [0], [0], [1], [0, 0, 1, 1], [], []>} : vector<5x16xbf16>, vector<16x8xbf16>, vector<5x8xf32> -> vector<5x8xf32>
    %c1616 = arith.constant 1616 : index
    %c0_326 = arith.constant 0 : index
    %926 = vector.load %arg1[%c1616, %c0_326] : memref<3600x128xbf16, #tpu.memory_space<vmem>>, vector<8x32xbf16>
    %927 = arith.truncf %925 : vector<5x8xf32> to vector<5x8xbf16>
    %cst_327 = arith.constant dense<0.000000e+00> : vector<5x32xf32>
    %928 = tpu.matmul %927, %926, %cst_327 {dimension_numbers = #tpu.dot_dimension_numbers<[1], [0], [0], [1], [0, 0, 1, 1], [], []>} : vector<5x8xbf16>, vector<8x32xbf16>, vector<5x32xf32> -> vector<5x32xf32>
    %929 = vector.extract_strided_slice %892 {offsets = [0, 8], sizes = [5, 8], strides = [1, 1]} : vector<5x16xf32> to vector<5x8xf32>
    %930 = vector.extract_strided_slice %898 {offsets = [0, 8], sizes = [16, 8], strides = [1, 1]} : vector<16x16xf32> to vector<16x8xf32>
    %931 = arith.truncf %929 : vector<5x8xf32> to vector<5x8xbf16>
    %932 = arith.truncf %930 : vector<16x8xf32> to vector<16x8xbf16>
    %cst_328 = arith.constant dense<0.000000e+00> : vector<5x16xf32>
    %933 = tpu.matmul %931, %932, %cst_328 {dimension_numbers = #tpu.dot_dimension_numbers<[1], [1], [0], [0], [0, 0, 1, 0], [], []>} : vector<5x8xbf16>, vector<16x8xbf16>, vector<5x16xf32> -> vector<5x16xf32>
    %cst_329 = arith.constant 0.353553385 : f32
    %934 = vector.broadcast %cst_329 : f32 to vector<5x16xf32>
    %935 = arith.mulf %933, %934 : vector<5x16xf32>
    %cst_330 = arith.constant dense<0xFF800000> : vector<5xf32>
    %936 = vector.multi_reduction <maximumf>, %935, %cst_330 [1] : vector<5x16xf32> to vector<5xf32>
    %937 = vector.shape_cast %936 : vector<5xf32> to vector<5x1xf32>
    %938 = vector.broadcast %937 : vector<5x1xf32> to vector<5x16xf32>
    %939 = arith.subf %935, %938 : vector<5x16xf32>
    %940 = math.exp %939 : vector<5x16xf32>
    %cst_331 = arith.constant dense<0.000000e+00> : vector<5xf32>
    %941 = vector.multi_reduction <add>, %940, %cst_331 [1] : vector<5x16xf32> to vector<5xf32>
    %942 = vector.shape_cast %941 : vector<5xf32> to vector<5x1xf32>
    %943 = tpu.reciprocal %942 {approx = true} : vector<5x1xf32> -> vector<5x1xf32>
    %944 = vector.broadcast %943 : vector<5x1xf32> to vector<5x16xf32>
    %945 = arith.mulf %940, %944 : vector<5x16xf32>
    %946 = vector.extract_strided_slice %904 {offsets = [0, 8], sizes = [16, 8], strides = [1, 1]} : vector<16x16xf32> to vector<16x8xf32>
    %947 = arith.truncf %945 : vector<5x16xf32> to vector<5x16xbf16>
    %948 = arith.truncf %946 : vector<16x8xf32> to vector<16x8xbf16>
    %cst_332 = arith.constant dense<0.000000e+00> : vector<5x8xf32>
    %949 = tpu.matmul %947, %948, %cst_332 {dimension_numbers = #tpu.dot_dimension_numbers<[1], [0], [0], [1], [0, 0, 1, 1], [], []>} : vector<5x16xbf16>, vector<16x8xbf16>, vector<5x8xf32> -> vector<5x8xf32>
    %c1632 = arith.constant 1632 : index
    %c0_333 = arith.constant 0 : index
    %950 = vector.load %arg1[%c1632, %c0_333] : memref<3600x128xbf16, #tpu.memory_space<vmem>>, vector<8x32xbf16>
    %951 = arith.truncf %949 : vector<5x8xf32> to vector<5x8xbf16>
    %cst_334 = arith.constant dense<0.000000e+00> : vector<5x32xf32>
    %952 = tpu.matmul %951, %950, %cst_334 {dimension_numbers = #tpu.dot_dimension_numbers<[1], [0], [0], [1], [0, 0, 1, 1], [], []>} : vector<5x8xbf16>, vector<8x32xbf16>, vector<5x32xf32> -> vector<5x32xf32>
    %953 = arith.addf %928, %952 : vector<5x32xf32>
    %c448_335 = arith.constant 448 : index
    %c0_336 = arith.constant 0 : index
    %954 = vector.load %arg2[%c448_335, %c0_336] : memref<696x128xf32, #tpu.memory_space<vmem>>, vector<1x32xf32>
    %955 = vector.broadcast %954 : vector<1x32xf32> to vector<5x32xf32>
    %956 = arith.addf %953, %955 : vector<5x32xf32>
    %957 = arith.addf %884, %956 : vector<5x32xf32>
    %c504 = arith.constant 504 : index
    %c0_337 = arith.constant 0 : index
    %958 = vector.load %arg2[%c504, %c0_337] : memref<696x128xf32, #tpu.memory_space<vmem>>, vector<1x32xf32>
    %c512_338 = arith.constant 512 : index
    %c0_339 = arith.constant 0 : index
    %959 = vector.load %arg2[%c512_338, %c0_339] : memref<696x128xf32, #tpu.memory_space<vmem>>, vector<1x32xf32>
    %cst_340 = arith.constant dense<0.000000e+00> : vector<5xf32>
    %960 = vector.multi_reduction <add>, %957, %cst_340 [1] : vector<5x32xf32> to vector<5xf32>
    %961 = vector.shape_cast %960 : vector<5xf32> to vector<5x1xf32>
    %cst_341 = arith.constant 3.200000e+01 : f32
    %962 = vector.broadcast %cst_341 : f32 to vector<5x1xf32>
    %963 = arith.divf %961, %962 : vector<5x1xf32>
    %964 = arith.mulf %957, %957 : vector<5x32xf32>
    %cst_342 = arith.constant dense<0.000000e+00> : vector<5xf32>
    %965 = vector.multi_reduction <add>, %964, %cst_342 [1] : vector<5x32xf32> to vector<5xf32>
    %966 = vector.shape_cast %965 : vector<5xf32> to vector<5x1xf32>
    %cst_343 = arith.constant 3.200000e+01 : f32
    %967 = vector.broadcast %cst_343 : f32 to vector<5x1xf32>
    %968 = arith.divf %966, %967 : vector<5x1xf32>
    %969 = arith.mulf %963, %963 : vector<5x1xf32>
    %970 = arith.subf %968, %969 : vector<5x1xf32>
    %cst_344 = arith.constant 0.000000e+00 : f32
    %971 = vector.broadcast %cst_344 : f32 to vector<5x1xf32>
    %972 = arith.maximumf %970, %971 : vector<5x1xf32>
    %973 = vector.broadcast %963 : vector<5x1xf32> to vector<5x32xf32>
    %974 = arith.subf %957, %973 : vector<5x32xf32>
    %cst_345 = arith.constant 9.99999974E-6 : f32
    %975 = vector.broadcast %cst_345 : f32 to vector<5x1xf32>
    %976 = arith.addf %972, %975 : vector<5x1xf32>
    %977 = math.rsqrt %976 : vector<5x1xf32>
    %978 = vector.broadcast %977 : vector<5x1xf32> to vector<5x32xf32>
    %979 = arith.mulf %974, %978 : vector<5x32xf32>
    %980 = vector.broadcast %958 : vector<1x32xf32> to vector<5x32xf32>
    %981 = arith.mulf %979, %980 : vector<5x32xf32>
    %982 = vector.broadcast %959 : vector<1x32xf32> to vector<5x32xf32>
    %983 = arith.addf %981, %982 : vector<5x32xf32>
    %c1776 = arith.constant 1776 : index
    %c0_346 = arith.constant 0 : index
    %984 = vector.load %arg1[%c1776, %c0_346] : memref<3600x128xbf16, #tpu.memory_space<vmem>>, vector<32x64xbf16>
    %985 = arith.truncf %983 : vector<5x32xf32> to vector<5x32xbf16>
    %cst_347 = arith.constant dense<0.000000e+00> : vector<5x64xf32>
    %986 = tpu.matmul %985, %984, %cst_347 {dimension_numbers = #tpu.dot_dimension_numbers<[1], [0], [0], [1], [0, 0, 1, 1], [], []>} : vector<5x32xbf16>, vector<32x64xbf16>, vector<5x64xf32> -> vector<5x64xf32>
    %c552 = arith.constant 552 : index
    %c0_348 = arith.constant 0 : index
    %987 = vector.load %arg2[%c552, %c0_348] : memref<696x128xf32, #tpu.memory_space<vmem>>, vector<1x64xf32>
    %988 = vector.broadcast %987 : vector<1x64xf32> to vector<5x64xf32>
    %989 = arith.addf %986, %988 : vector<5x64xf32>
    %cst_349 = arith.constant 0.000000e+00 : f32
    %990 = vector.broadcast %cst_349 : f32 to vector<5x64xf32>
    %991 = arith.maximumf %989, %990 : vector<5x64xf32>
    %c1808 = arith.constant 1808 : index
    %c0_350 = arith.constant 0 : index
    %992 = vector.load %arg1[%c1808, %c0_350] : memref<3600x128xbf16, #tpu.memory_space<vmem>>, vector<64x32xbf16>
    %993 = arith.truncf %991 : vector<5x64xf32> to vector<5x64xbf16>
    %cst_351 = arith.constant dense<0.000000e+00> : vector<5x32xf32>
    %994 = tpu.matmul %993, %992, %cst_351 {dimension_numbers = #tpu.dot_dimension_numbers<[1], [0], [0], [1], [0, 0, 1, 1], [], []>} : vector<5x64xbf16>, vector<64x32xbf16>, vector<5x32xf32> -> vector<5x32xf32>
    %995 = arith.addf %983, %994 : vector<5x32xf32>
    %c560 = arith.constant 560 : index
    %c0_352 = arith.constant 0 : index
    %996 = vector.load %arg2[%c560, %c0_352] : memref<696x128xf32, #tpu.memory_space<vmem>>, vector<1x32xf32>
    %997 = vector.broadcast %996 : vector<1x32xf32> to vector<5x32xf32>
    %998 = arith.addf %995, %997 : vector<5x32xf32>
    %c520 = arith.constant 520 : index
    %c0_353 = arith.constant 0 : index
    %999 = vector.load %arg2[%c520, %c0_353] : memref<696x128xf32, #tpu.memory_space<vmem>>, vector<1x32xf32>
    %c528 = arith.constant 528 : index
    %c0_354 = arith.constant 0 : index
    %1000 = vector.load %arg2[%c528, %c0_354] : memref<696x128xf32, #tpu.memory_space<vmem>>, vector<1x32xf32>
    %cst_355 = arith.constant dense<0.000000e+00> : vector<5xf32>
    %1001 = vector.multi_reduction <add>, %998, %cst_355 [1] : vector<5x32xf32> to vector<5xf32>
    %1002 = vector.shape_cast %1001 : vector<5xf32> to vector<5x1xf32>
    %cst_356 = arith.constant 3.200000e+01 : f32
    %1003 = vector.broadcast %cst_356 : f32 to vector<5x1xf32>
    %1004 = arith.divf %1002, %1003 : vector<5x1xf32>
    %1005 = arith.mulf %998, %998 : vector<5x32xf32>
    %cst_357 = arith.constant dense<0.000000e+00> : vector<5xf32>
    %1006 = vector.multi_reduction <add>, %1005, %cst_357 [1] : vector<5x32xf32> to vector<5xf32>
    %1007 = vector.shape_cast %1006 : vector<5xf32> to vector<5x1xf32>
    %cst_358 = arith.constant 3.200000e+01 : f32
    %1008 = vector.broadcast %cst_358 : f32 to vector<5x1xf32>
    %1009 = arith.divf %1007, %1008 : vector<5x1xf32>
    %1010 = arith.mulf %1004, %1004 : vector<5x1xf32>
    %1011 = arith.subf %1009, %1010 : vector<5x1xf32>
    %cst_359 = arith.constant 0.000000e+00 : f32
    %1012 = vector.broadcast %cst_359 : f32 to vector<5x1xf32>
    %1013 = arith.maximumf %1011, %1012 : vector<5x1xf32>
    %1014 = vector.broadcast %1004 : vector<5x1xf32> to vector<5x32xf32>
    %1015 = arith.subf %998, %1014 : vector<5x32xf32>
    %cst_360 = arith.constant 9.99999974E-6 : f32
    %1016 = vector.broadcast %cst_360 : f32 to vector<5x1xf32>
    %1017 = arith.addf %1013, %1016 : vector<5x1xf32>
    %1018 = math.rsqrt %1017 : vector<5x1xf32>
    %1019 = vector.broadcast %1018 : vector<5x1xf32> to vector<5x32xf32>
    %1020 = arith.mulf %1015, %1019 : vector<5x32xf32>
    %1021 = vector.broadcast %999 : vector<1x32xf32> to vector<5x32xf32>
    %1022 = arith.mulf %1020, %1021 : vector<5x32xf32>
    %1023 = vector.broadcast %1000 : vector<1x32xf32> to vector<5x32xf32>
    %1024 = arith.addf %1022, %1023 : vector<5x32xf32>
    %1025 = arith.addf %1024, %447 : vector<5x32xf32>
    %1026 = arith.addf %786, %451 : vector<16x32xf32>
    %c1648 = arith.constant 1648 : index
    %c0_361 = arith.constant 0 : index
    %1027 = vector.load %arg1[%c1648, %c0_361] : memref<3600x128xbf16, #tpu.memory_space<vmem>>, vector<32x16xbf16>
    %1028 = arith.truncf %1026 : vector<16x32xf32> to vector<16x32xbf16>
    %cst_362 = arith.constant dense<0.000000e+00> : vector<16x16xf32>
    %1029 = tpu.matmul %1028, %1027, %cst_362 {dimension_numbers = #tpu.dot_dimension_numbers<[1], [0], [0], [1], [0, 0, 1, 1], [], []>} : vector<16x32xbf16>, vector<32x16xbf16>, vector<16x16xf32> -> vector<16x16xf32>
    %c456 = arith.constant 456 : index
    %c0_363 = arith.constant 0 : index
    %1030 = vector.load %arg2[%c456, %c0_363] : memref<696x128xf32, #tpu.memory_space<vmem>>, vector<1x16xf32>
    %1031 = vector.broadcast %1030 : vector<1x16xf32> to vector<16x16xf32>
    %1032 = arith.addf %1029, %1031 : vector<16x16xf32>
    %c1680 = arith.constant 1680 : index
    %c0_364 = arith.constant 0 : index
    %1033 = vector.load %arg1[%c1680, %c0_364] : memref<3600x128xbf16, #tpu.memory_space<vmem>>, vector<32x16xbf16>
    %1034 = arith.truncf %1025 : vector<5x32xf32> to vector<5x32xbf16>
    %cst_365 = arith.constant dense<0.000000e+00> : vector<5x16xf32>
    %1035 = tpu.matmul %1034, %1033, %cst_365 {dimension_numbers = #tpu.dot_dimension_numbers<[1], [0], [0], [1], [0, 0, 1, 1], [], []>} : vector<5x32xbf16>, vector<32x16xbf16>, vector<5x16xf32> -> vector<5x16xf32>
    %c464_366 = arith.constant 464 : index
    %c0_367 = arith.constant 0 : index
    %1036 = vector.load %arg2[%c464_366, %c0_367] : memref<696x128xf32, #tpu.memory_space<vmem>>, vector<1x16xf32>
    %1037 = vector.broadcast %1036 : vector<1x16xf32> to vector<5x16xf32>
    %1038 = arith.addf %1035, %1037 : vector<5x16xf32>
    %c1712 = arith.constant 1712 : index
    %c0_368 = arith.constant 0 : index
    %1039 = vector.load %arg1[%c1712, %c0_368] : memref<3600x128xbf16, #tpu.memory_space<vmem>>, vector<32x16xbf16>
    %1040 = arith.truncf %1024 : vector<5x32xf32> to vector<5x32xbf16>
    %cst_369 = arith.constant dense<0.000000e+00> : vector<5x16xf32>
    %1041 = tpu.matmul %1040, %1039, %cst_369 {dimension_numbers = #tpu.dot_dimension_numbers<[1], [0], [0], [1], [0, 0, 1, 1], [], []>} : vector<5x32xbf16>, vector<32x16xbf16>, vector<5x16xf32> -> vector<5x16xf32>
    %c472 = arith.constant 472 : index
    %c0_370 = arith.constant 0 : index
    %1042 = vector.load %arg2[%c472, %c0_370] : memref<696x128xf32, #tpu.memory_space<vmem>>, vector<1x16xf32>
    %1043 = vector.broadcast %1042 : vector<1x16xf32> to vector<5x16xf32>
    %1044 = arith.addf %1041, %1043 : vector<5x16xf32>
    %1045 = vector.extract_strided_slice %1032 {offsets = [0, 0], sizes = [16, 8], strides = [1, 1]} : vector<16x16xf32> to vector<16x8xf32>
    %1046 = vector.extract_strided_slice %1038 {offsets = [0, 0], sizes = [5, 8], strides = [1, 1]} : vector<5x16xf32> to vector<5x8xf32>
    %1047 = arith.truncf %1045 : vector<16x8xf32> to vector<16x8xbf16>
    %1048 = arith.truncf %1046 : vector<5x8xf32> to vector<5x8xbf16>
    %cst_371 = arith.constant dense<0.000000e+00> : vector<16x5xf32>
    %1049 = tpu.matmul %1047, %1048, %cst_371 {dimension_numbers = #tpu.dot_dimension_numbers<[1], [1], [0], [0], [0, 0, 1, 0], [], []>} : vector<16x8xbf16>, vector<5x8xbf16>, vector<16x5xf32> -> vector<16x5xf32>
    %cst_372 = arith.constant 0.353553385 : f32
    %1050 = vector.broadcast %cst_372 : f32 to vector<16x5xf32>
    %1051 = arith.mulf %1049, %1050 : vector<16x5xf32>
    %cst_373 = arith.constant dense<0xFF800000> : vector<16xf32>
    %1052 = vector.multi_reduction <maximumf>, %1051, %cst_373 [1] : vector<16x5xf32> to vector<16xf32>
    %1053 = vector.shape_cast %1052 : vector<16xf32> to vector<16x1xf32>
    %1054 = vector.broadcast %1053 : vector<16x1xf32> to vector<16x5xf32>
    %1055 = arith.subf %1051, %1054 : vector<16x5xf32>
    %1056 = math.exp %1055 : vector<16x5xf32>
    %cst_374 = arith.constant dense<0.000000e+00> : vector<16xf32>
    %1057 = vector.multi_reduction <add>, %1056, %cst_374 [1] : vector<16x5xf32> to vector<16xf32>
    %1058 = vector.shape_cast %1057 : vector<16xf32> to vector<16x1xf32>
    %1059 = tpu.reciprocal %1058 {approx = true} : vector<16x1xf32> -> vector<16x1xf32>
    %1060 = vector.broadcast %1059 : vector<16x1xf32> to vector<16x5xf32>
    %1061 = arith.mulf %1056, %1060 : vector<16x5xf32>
    %1062 = vector.extract_strided_slice %1044 {offsets = [0, 0], sizes = [5, 8], strides = [1, 1]} : vector<5x16xf32> to vector<5x8xf32>
    %1063 = arith.truncf %1061 : vector<16x5xf32> to vector<16x5xbf16>
    %1064 = arith.truncf %1062 : vector<5x8xf32> to vector<5x8xbf16>
    %cst_375 = arith.constant dense<0.000000e+00> : vector<16x8xf32>
    %1065 = tpu.matmul %1063, %1064, %cst_375 {dimension_numbers = #tpu.dot_dimension_numbers<[1], [0], [0], [1], [0, 0, 1, 1], [], []>} : vector<16x5xbf16>, vector<5x8xbf16>, vector<16x8xf32> -> vector<16x8xf32>
    %c1744 = arith.constant 1744 : index
    %c0_376 = arith.constant 0 : index
    %1066 = vector.load %arg1[%c1744, %c0_376] : memref<3600x128xbf16, #tpu.memory_space<vmem>>, vector<8x32xbf16>
    %1067 = arith.truncf %1065 : vector<16x8xf32> to vector<16x8xbf16>
    %cst_377 = arith.constant dense<0.000000e+00> : vector<16x32xf32>
    %1068 = tpu.matmul %1067, %1066, %cst_377 {dimension_numbers = #tpu.dot_dimension_numbers<[1], [0], [0], [1], [0, 0, 1, 1], [], []>} : vector<16x8xbf16>, vector<8x32xbf16>, vector<16x32xf32> -> vector<16x32xf32>
    %1069 = vector.extract_strided_slice %1032 {offsets = [0, 8], sizes = [16, 8], strides = [1, 1]} : vector<16x16xf32> to vector<16x8xf32>
    %1070 = vector.extract_strided_slice %1038 {offsets = [0, 8], sizes = [5, 8], strides = [1, 1]} : vector<5x16xf32> to vector<5x8xf32>
    %1071 = arith.truncf %1069 : vector<16x8xf32> to vector<16x8xbf16>
    %1072 = arith.truncf %1070 : vector<5x8xf32> to vector<5x8xbf16>
    %cst_378 = arith.constant dense<0.000000e+00> : vector<16x5xf32>
    %1073 = tpu.matmul %1071, %1072, %cst_378 {dimension_numbers = #tpu.dot_dimension_numbers<[1], [1], [0], [0], [0, 0, 1, 0], [], []>} : vector<16x8xbf16>, vector<5x8xbf16>, vector<16x5xf32> -> vector<16x5xf32>
    %cst_379 = arith.constant 0.353553385 : f32
    %1074 = vector.broadcast %cst_379 : f32 to vector<16x5xf32>
    %1075 = arith.mulf %1073, %1074 : vector<16x5xf32>
    %cst_380 = arith.constant dense<0xFF800000> : vector<16xf32>
    %1076 = vector.multi_reduction <maximumf>, %1075, %cst_380 [1] : vector<16x5xf32> to vector<16xf32>
    %1077 = vector.shape_cast %1076 : vector<16xf32> to vector<16x1xf32>
    %1078 = vector.broadcast %1077 : vector<16x1xf32> to vector<16x5xf32>
    %1079 = arith.subf %1075, %1078 : vector<16x5xf32>
    %1080 = math.exp %1079 : vector<16x5xf32>
    %cst_381 = arith.constant dense<0.000000e+00> : vector<16xf32>
    %1081 = vector.multi_reduction <add>, %1080, %cst_381 [1] : vector<16x5xf32> to vector<16xf32>
    %1082 = vector.shape_cast %1081 : vector<16xf32> to vector<16x1xf32>
    %1083 = tpu.reciprocal %1082 {approx = true} : vector<16x1xf32> -> vector<16x1xf32>
    %1084 = vector.broadcast %1083 : vector<16x1xf32> to vector<16x5xf32>
    %1085 = arith.mulf %1080, %1084 : vector<16x5xf32>
    %1086 = vector.extract_strided_slice %1044 {offsets = [0, 8], sizes = [5, 8], strides = [1, 1]} : vector<5x16xf32> to vector<5x8xf32>
    %1087 = arith.truncf %1085 : vector<16x5xf32> to vector<16x5xbf16>
    %1088 = arith.truncf %1086 : vector<5x8xf32> to vector<5x8xbf16>
    %cst_382 = arith.constant dense<0.000000e+00> : vector<16x8xf32>
    %1089 = tpu.matmul %1087, %1088, %cst_382 {dimension_numbers = #tpu.dot_dimension_numbers<[1], [0], [0], [1], [0, 0, 1, 1], [], []>} : vector<16x5xbf16>, vector<5x8xbf16>, vector<16x8xf32> -> vector<16x8xf32>
    %c1760 = arith.constant 1760 : index
    %c0_383 = arith.constant 0 : index
    %1090 = vector.load %arg1[%c1760, %c0_383] : memref<3600x128xbf16, #tpu.memory_space<vmem>>, vector<8x32xbf16>
    %1091 = arith.truncf %1089 : vector<16x8xf32> to vector<16x8xbf16>
    %cst_384 = arith.constant dense<0.000000e+00> : vector<16x32xf32>
    %1092 = tpu.matmul %1091, %1090, %cst_384 {dimension_numbers = #tpu.dot_dimension_numbers<[1], [0], [0], [1], [0, 0, 1, 1], [], []>} : vector<16x8xbf16>, vector<8x32xbf16>, vector<16x32xf32> -> vector<16x32xf32>
    %1093 = arith.addf %1068, %1092 : vector<16x32xf32>
    %c480_385 = arith.constant 480 : index
    %c0_386 = arith.constant 0 : index
    %1094 = vector.load %arg2[%c480_385, %c0_386] : memref<696x128xf32, #tpu.memory_space<vmem>>, vector<1x32xf32>
    %1095 = vector.broadcast %1094 : vector<1x32xf32> to vector<16x32xf32>
    %1096 = arith.addf %1093, %1095 : vector<16x32xf32>
    %1097 = arith.addf %786, %1096 : vector<16x32xf32>
    %c536 = arith.constant 536 : index
    %c0_387 = arith.constant 0 : index
    %1098 = vector.load %arg2[%c536, %c0_387] : memref<696x128xf32, #tpu.memory_space<vmem>>, vector<1x32xf32>
    %c544 = arith.constant 544 : index
    %c0_388 = arith.constant 0 : index
    %1099 = vector.load %arg2[%c544, %c0_388] : memref<696x128xf32, #tpu.memory_space<vmem>>, vector<1x32xf32>
    %cst_389 = arith.constant dense<0.000000e+00> : vector<16xf32>
    %1100 = vector.multi_reduction <add>, %1097, %cst_389 [1] : vector<16x32xf32> to vector<16xf32>
    %1101 = vector.shape_cast %1100 : vector<16xf32> to vector<16x1xf32>
    %cst_390 = arith.constant 3.200000e+01 : f32
    %1102 = vector.broadcast %cst_390 : f32 to vector<16x1xf32>
    %1103 = arith.divf %1101, %1102 : vector<16x1xf32>
    %1104 = arith.mulf %1097, %1097 : vector<16x32xf32>
    %cst_391 = arith.constant dense<0.000000e+00> : vector<16xf32>
    %1105 = vector.multi_reduction <add>, %1104, %cst_391 [1] : vector<16x32xf32> to vector<16xf32>
    %1106 = vector.shape_cast %1105 : vector<16xf32> to vector<16x1xf32>
    %cst_392 = arith.constant 3.200000e+01 : f32
    %1107 = vector.broadcast %cst_392 : f32 to vector<16x1xf32>
    %1108 = arith.divf %1106, %1107 : vector<16x1xf32>
    %1109 = arith.mulf %1103, %1103 : vector<16x1xf32>
    %1110 = arith.subf %1108, %1109 : vector<16x1xf32>
    %cst_393 = arith.constant 0.000000e+00 : f32
    %1111 = vector.broadcast %cst_393 : f32 to vector<16x1xf32>
    %1112 = arith.maximumf %1110, %1111 : vector<16x1xf32>
    %1113 = vector.broadcast %1103 : vector<16x1xf32> to vector<16x32xf32>
    %1114 = arith.subf %1097, %1113 : vector<16x32xf32>
    %cst_394 = arith.constant 9.99999974E-6 : f32
    %1115 = vector.broadcast %cst_394 : f32 to vector<16x1xf32>
    %1116 = arith.addf %1112, %1115 : vector<16x1xf32>
    %1117 = math.rsqrt %1116 : vector<16x1xf32>
    %1118 = vector.broadcast %1117 : vector<16x1xf32> to vector<16x32xf32>
    %1119 = arith.mulf %1114, %1118 : vector<16x32xf32>
    %1120 = vector.broadcast %1098 : vector<1x32xf32> to vector<16x32xf32>
    %1121 = arith.mulf %1119, %1120 : vector<16x32xf32>
    %1122 = vector.broadcast %1099 : vector<1x32xf32> to vector<16x32xf32>
    %1123 = arith.addf %1121, %1122 : vector<16x32xf32>
    %1124 = arith.addf %1024, %447 : vector<5x32xf32>
    %1125 = arith.addf %1123, %451 : vector<16x32xf32>
    %c1872 = arith.constant 1872 : index
    %c0_395 = arith.constant 0 : index
    %1126 = vector.load %arg1[%c1872, %c0_395] : memref<3600x128xbf16, #tpu.memory_space<vmem>>, vector<32x16xbf16>
    %1127 = arith.truncf %1124 : vector<5x32xf32> to vector<5x32xbf16>
    %cst_396 = arith.constant dense<0.000000e+00> : vector<5x16xf32>
    %1128 = tpu.matmul %1127, %1126, %cst_396 {dimension_numbers = #tpu.dot_dimension_numbers<[1], [0], [0], [1], [0, 0, 1, 1], [], []>} : vector<5x32xbf16>, vector<32x16xbf16>, vector<5x16xf32> -> vector<5x16xf32>
    %c568 = arith.constant 568 : index
    %c0_397 = arith.constant 0 : index
    %1129 = vector.load %arg2[%c568, %c0_397] : memref<696x128xf32, #tpu.memory_space<vmem>>, vector<1x16xf32>
    %1130 = vector.broadcast %1129 : vector<1x16xf32> to vector<5x16xf32>
    %1131 = arith.addf %1128, %1130 : vector<5x16xf32>
    %c1904 = arith.constant 1904 : index
    %c0_398 = arith.constant 0 : index
    %1132 = vector.load %arg1[%c1904, %c0_398] : memref<3600x128xbf16, #tpu.memory_space<vmem>>, vector<32x16xbf16>
    %1133 = arith.truncf %1125 : vector<16x32xf32> to vector<16x32xbf16>
    %cst_399 = arith.constant dense<0.000000e+00> : vector<16x16xf32>
    %1134 = tpu.matmul %1133, %1132, %cst_399 {dimension_numbers = #tpu.dot_dimension_numbers<[1], [0], [0], [1], [0, 0, 1, 1], [], []>} : vector<16x32xbf16>, vector<32x16xbf16>, vector<16x16xf32> -> vector<16x16xf32>
    %c576 = arith.constant 576 : index
    %c0_400 = arith.constant 0 : index
    %1135 = vector.load %arg2[%c576, %c0_400] : memref<696x128xf32, #tpu.memory_space<vmem>>, vector<1x16xf32>
    %1136 = vector.broadcast %1135 : vector<1x16xf32> to vector<16x16xf32>
    %1137 = arith.addf %1134, %1136 : vector<16x16xf32>
    %c1936 = arith.constant 1936 : index
    %c0_401 = arith.constant 0 : index
    %1138 = vector.load %arg1[%c1936, %c0_401] : memref<3600x128xbf16, #tpu.memory_space<vmem>>, vector<32x16xbf16>
    %1139 = arith.truncf %1123 : vector<16x32xf32> to vector<16x32xbf16>
    %cst_402 = arith.constant dense<0.000000e+00> : vector<16x16xf32>
    %1140 = tpu.matmul %1139, %1138, %cst_402 {dimension_numbers = #tpu.dot_dimension_numbers<[1], [0], [0], [1], [0, 0, 1, 1], [], []>} : vector<16x32xbf16>, vector<32x16xbf16>, vector<16x16xf32> -> vector<16x16xf32>
    %c584 = arith.constant 584 : index
    %c0_403 = arith.constant 0 : index
    %1141 = vector.load %arg2[%c584, %c0_403] : memref<696x128xf32, #tpu.memory_space<vmem>>, vector<1x16xf32>
    %1142 = vector.broadcast %1141 : vector<1x16xf32> to vector<16x16xf32>
    %1143 = arith.addf %1140, %1142 : vector<16x16xf32>
    %1144 = vector.extract_strided_slice %1131 {offsets = [0, 0], sizes = [5, 8], strides = [1, 1]} : vector<5x16xf32> to vector<5x8xf32>
    %1145 = vector.extract_strided_slice %1137 {offsets = [0, 0], sizes = [16, 8], strides = [1, 1]} : vector<16x16xf32> to vector<16x8xf32>
    %1146 = arith.truncf %1144 : vector<5x8xf32> to vector<5x8xbf16>
    %1147 = arith.truncf %1145 : vector<16x8xf32> to vector<16x8xbf16>
    %cst_404 = arith.constant dense<0.000000e+00> : vector<5x16xf32>
    %1148 = tpu.matmul %1146, %1147, %cst_404 {dimension_numbers = #tpu.dot_dimension_numbers<[1], [1], [0], [0], [0, 0, 1, 0], [], []>} : vector<5x8xbf16>, vector<16x8xbf16>, vector<5x16xf32> -> vector<5x16xf32>
    %cst_405 = arith.constant 0.353553385 : f32
    %1149 = vector.broadcast %cst_405 : f32 to vector<5x16xf32>
    %1150 = arith.mulf %1148, %1149 : vector<5x16xf32>
    %cst_406 = arith.constant dense<0xFF800000> : vector<5xf32>
    %1151 = vector.multi_reduction <maximumf>, %1150, %cst_406 [1] : vector<5x16xf32> to vector<5xf32>
    %1152 = vector.shape_cast %1151 : vector<5xf32> to vector<5x1xf32>
    %1153 = vector.broadcast %1152 : vector<5x1xf32> to vector<5x16xf32>
    %1154 = arith.subf %1150, %1153 : vector<5x16xf32>
    %1155 = math.exp %1154 : vector<5x16xf32>
    %cst_407 = arith.constant dense<0.000000e+00> : vector<5xf32>
    %1156 = vector.multi_reduction <add>, %1155, %cst_407 [1] : vector<5x16xf32> to vector<5xf32>
    %1157 = vector.shape_cast %1156 : vector<5xf32> to vector<5x1xf32>
    %1158 = tpu.reciprocal %1157 {approx = true} : vector<5x1xf32> -> vector<5x1xf32>
    %1159 = vector.broadcast %1158 : vector<5x1xf32> to vector<5x16xf32>
    %1160 = arith.mulf %1155, %1159 : vector<5x16xf32>
    %1161 = vector.extract_strided_slice %1143 {offsets = [0, 0], sizes = [16, 8], strides = [1, 1]} : vector<16x16xf32> to vector<16x8xf32>
    %1162 = arith.truncf %1160 : vector<5x16xf32> to vector<5x16xbf16>
    %1163 = arith.truncf %1161 : vector<16x8xf32> to vector<16x8xbf16>
    %cst_408 = arith.constant dense<0.000000e+00> : vector<5x8xf32>
    %1164 = tpu.matmul %1162, %1163, %cst_408 {dimension_numbers = #tpu.dot_dimension_numbers<[1], [0], [0], [1], [0, 0, 1, 1], [], []>} : vector<5x16xbf16>, vector<16x8xbf16>, vector<5x8xf32> -> vector<5x8xf32>
    %c1968 = arith.constant 1968 : index
    %c0_409 = arith.constant 0 : index
    %1165 = vector.load %arg1[%c1968, %c0_409] : memref<3600x128xbf16, #tpu.memory_space<vmem>>, vector<8x32xbf16>
    %1166 = arith.truncf %1164 : vector<5x8xf32> to vector<5x8xbf16>
    %cst_410 = arith.constant dense<0.000000e+00> : vector<5x32xf32>
    %1167 = tpu.matmul %1166, %1165, %cst_410 {dimension_numbers = #tpu.dot_dimension_numbers<[1], [0], [0], [1], [0, 0, 1, 1], [], []>} : vector<5x8xbf16>, vector<8x32xbf16>, vector<5x32xf32> -> vector<5x32xf32>
    %1168 = vector.extract_strided_slice %1131 {offsets = [0, 8], sizes = [5, 8], strides = [1, 1]} : vector<5x16xf32> to vector<5x8xf32>
    %1169 = vector.extract_strided_slice %1137 {offsets = [0, 8], sizes = [16, 8], strides = [1, 1]} : vector<16x16xf32> to vector<16x8xf32>
    %1170 = arith.truncf %1168 : vector<5x8xf32> to vector<5x8xbf16>
    %1171 = arith.truncf %1169 : vector<16x8xf32> to vector<16x8xbf16>
    %cst_411 = arith.constant dense<0.000000e+00> : vector<5x16xf32>
    %1172 = tpu.matmul %1170, %1171, %cst_411 {dimension_numbers = #tpu.dot_dimension_numbers<[1], [1], [0], [0], [0, 0, 1, 0], [], []>} : vector<5x8xbf16>, vector<16x8xbf16>, vector<5x16xf32> -> vector<5x16xf32>
    %cst_412 = arith.constant 0.353553385 : f32
    %1173 = vector.broadcast %cst_412 : f32 to vector<5x16xf32>
    %1174 = arith.mulf %1172, %1173 : vector<5x16xf32>
    %cst_413 = arith.constant dense<0xFF800000> : vector<5xf32>
    %1175 = vector.multi_reduction <maximumf>, %1174, %cst_413 [1] : vector<5x16xf32> to vector<5xf32>
    %1176 = vector.shape_cast %1175 : vector<5xf32> to vector<5x1xf32>
    %1177 = vector.broadcast %1176 : vector<5x1xf32> to vector<5x16xf32>
    %1178 = arith.subf %1174, %1177 : vector<5x16xf32>
    %1179 = math.exp %1178 : vector<5x16xf32>
    %cst_414 = arith.constant dense<0.000000e+00> : vector<5xf32>
    %1180 = vector.multi_reduction <add>, %1179, %cst_414 [1] : vector<5x16xf32> to vector<5xf32>
    %1181 = vector.shape_cast %1180 : vector<5xf32> to vector<5x1xf32>
    %1182 = tpu.reciprocal %1181 {approx = true} : vector<5x1xf32> -> vector<5x1xf32>
    %1183 = vector.broadcast %1182 : vector<5x1xf32> to vector<5x16xf32>
    %1184 = arith.mulf %1179, %1183 : vector<5x16xf32>
    %1185 = vector.extract_strided_slice %1143 {offsets = [0, 8], sizes = [16, 8], strides = [1, 1]} : vector<16x16xf32> to vector<16x8xf32>
    %1186 = arith.truncf %1184 : vector<5x16xf32> to vector<5x16xbf16>
    %1187 = arith.truncf %1185 : vector<16x8xf32> to vector<16x8xbf16>
    %cst_415 = arith.constant dense<0.000000e+00> : vector<5x8xf32>
    %1188 = tpu.matmul %1186, %1187, %cst_415 {dimension_numbers = #tpu.dot_dimension_numbers<[1], [0], [0], [1], [0, 0, 1, 1], [], []>} : vector<5x16xbf16>, vector<16x8xbf16>, vector<5x8xf32> -> vector<5x8xf32>
    %c1984 = arith.constant 1984 : index
    %c0_416 = arith.constant 0 : index
    %1189 = vector.load %arg1[%c1984, %c0_416] : memref<3600x128xbf16, #tpu.memory_space<vmem>>, vector<8x32xbf16>
    %1190 = arith.truncf %1188 : vector<5x8xf32> to vector<5x8xbf16>
    %cst_417 = arith.constant dense<0.000000e+00> : vector<5x32xf32>
    %1191 = tpu.matmul %1190, %1189, %cst_417 {dimension_numbers = #tpu.dot_dimension_numbers<[1], [0], [0], [1], [0, 0, 1, 1], [], []>} : vector<5x8xbf16>, vector<8x32xbf16>, vector<5x32xf32> -> vector<5x32xf32>
    %1192 = arith.addf %1167, %1191 : vector<5x32xf32>
    %c592 = arith.constant 592 : index
    %c0_418 = arith.constant 0 : index
    %1193 = vector.load %arg2[%c592, %c0_418] : memref<696x128xf32, #tpu.memory_space<vmem>>, vector<1x32xf32>
    %1194 = vector.broadcast %1193 : vector<1x32xf32> to vector<5x32xf32>
    %1195 = arith.addf %1192, %1194 : vector<5x32xf32>
    %1196 = arith.addf %1024, %1195 : vector<5x32xf32>
    %c600 = arith.constant 600 : index
    %c0_419 = arith.constant 0 : index
    %1197 = vector.load %arg2[%c600, %c0_419] : memref<696x128xf32, #tpu.memory_space<vmem>>, vector<1x32xf32>
    %c608 = arith.constant 608 : index
    %c0_420 = arith.constant 0 : index
    %1198 = vector.load %arg2[%c608, %c0_420] : memref<696x128xf32, #tpu.memory_space<vmem>>, vector<1x32xf32>
    %cst_421 = arith.constant dense<0.000000e+00> : vector<5xf32>
    %1199 = vector.multi_reduction <add>, %1196, %cst_421 [1] : vector<5x32xf32> to vector<5xf32>
    %1200 = vector.shape_cast %1199 : vector<5xf32> to vector<5x1xf32>
    %cst_422 = arith.constant 3.200000e+01 : f32
    %1201 = vector.broadcast %cst_422 : f32 to vector<5x1xf32>
    %1202 = arith.divf %1200, %1201 : vector<5x1xf32>
    %1203 = arith.mulf %1196, %1196 : vector<5x32xf32>
    %cst_423 = arith.constant dense<0.000000e+00> : vector<5xf32>
    %1204 = vector.multi_reduction <add>, %1203, %cst_423 [1] : vector<5x32xf32> to vector<5xf32>
    %1205 = vector.shape_cast %1204 : vector<5xf32> to vector<5x1xf32>
    %cst_424 = arith.constant 3.200000e+01 : f32
    %1206 = vector.broadcast %cst_424 : f32 to vector<5x1xf32>
    %1207 = arith.divf %1205, %1206 : vector<5x1xf32>
    %1208 = arith.mulf %1202, %1202 : vector<5x1xf32>
    %1209 = arith.subf %1207, %1208 : vector<5x1xf32>
    %cst_425 = arith.constant 0.000000e+00 : f32
    %1210 = vector.broadcast %cst_425 : f32 to vector<5x1xf32>
    %1211 = arith.maximumf %1209, %1210 : vector<5x1xf32>
    %1212 = vector.broadcast %1202 : vector<5x1xf32> to vector<5x32xf32>
    %1213 = arith.subf %1196, %1212 : vector<5x32xf32>
    %cst_426 = arith.constant 9.99999974E-6 : f32
    %1214 = vector.broadcast %cst_426 : f32 to vector<5x1xf32>
    %1215 = arith.addf %1211, %1214 : vector<5x1xf32>
    %1216 = math.rsqrt %1215 : vector<5x1xf32>
    %1217 = vector.broadcast %1216 : vector<5x1xf32> to vector<5x32xf32>
    %1218 = arith.mulf %1213, %1217 : vector<5x32xf32>
    %1219 = vector.broadcast %1197 : vector<1x32xf32> to vector<5x32xf32>
    %1220 = arith.mulf %1218, %1219 : vector<5x32xf32>
    %1221 = vector.broadcast %1198 : vector<1x32xf32> to vector<5x32xf32>
    %1222 = arith.addf %1220, %1221 : vector<5x32xf32>
    %1223 = vector.extract_strided_slice %1222 {offsets = [0, 0], sizes = [1, 32], strides = [1, 1]} : vector<5x32xf32> to vector<1x32xf32>
    %1224 = vector.extract_strided_slice %1222 {offsets = [1, 0], sizes = [1, 32], strides = [1, 1]} : vector<5x32xf32> to vector<1x32xf32>
    %c2000 = arith.constant 2000 : index
    %c0_427 = arith.constant 0 : index
    %1225 = vector.load %arg1[%c2000, %c0_427] : memref<3600x128xbf16, #tpu.memory_space<vmem>>, vector<8x32xbf16>
    %1226 = arith.truncf %1123 : vector<16x32xf32> to vector<16x32xbf16>
    %cst_428 = arith.constant dense<0.000000e+00> : vector<8x16xf32>
    %1227 = tpu.matmul %1225, %1226, %cst_428 {dimension_numbers = #tpu.dot_dimension_numbers<[1], [1], [0], [0], [0, 0, 1, 0], [], []>} : vector<8x32xbf16>, vector<16x32xbf16>, vector<8x16xf32> -> vector<8x16xf32>
    %c2016 = arith.constant 2016 : index
    %c0_429 = arith.constant 0 : index
    %1228 = vector.load %arg1[%c2016, %c0_429] : memref<3600x128xbf16, #tpu.memory_space<vmem>>, vector<64x16xbf16>
    %1229 = arith.truncf %1227 : vector<8x16xf32> to vector<8x16xbf16>
    %cst_430 = arith.constant dense<0.000000e+00> : vector<8x64xf32>
    %1230 = tpu.matmul %1229, %1228, %cst_430 {dimension_numbers = #tpu.dot_dimension_numbers<[1], [1], [0], [0], [0, 0, 1, 0], [], []>} : vector<8x16xbf16>, vector<64x16xbf16>, vector<8x64xf32> -> vector<8x64xf32>
    %c2352 = arith.constant 2352 : index
    %c0_431 = arith.constant 0 : index
    %1231 = vector.load %arg1[%c2352, %c0_431] : memref<3600x128xbf16, #tpu.memory_space<vmem>>, vector<8x32xbf16>
    %1232 = arith.truncf %1123 : vector<16x32xf32> to vector<16x32xbf16>
    %cst_432 = arith.constant dense<0.000000e+00> : vector<8x16xf32>
    %1233 = tpu.matmul %1231, %1232, %cst_432 {dimension_numbers = #tpu.dot_dimension_numbers<[1], [1], [0], [0], [0, 0, 1, 0], [], []>} : vector<8x32xbf16>, vector<16x32xbf16>, vector<8x16xf32> -> vector<8x16xf32>
    %c2368 = arith.constant 2368 : index
    %c0_433 = arith.constant 0 : index
    %1234 = vector.load %arg1[%c2368, %c0_433] : memref<3600x128xbf16, #tpu.memory_space<vmem>>, vector<64x16xbf16>
    %1235 = arith.truncf %1233 : vector<8x16xf32> to vector<8x16xbf16>
    %cst_434 = arith.constant dense<0.000000e+00> : vector<8x64xf32>
    %1236 = tpu.matmul %1235, %1234, %cst_434 {dimension_numbers = #tpu.dot_dimension_numbers<[1], [1], [0], [0], [0, 0, 1, 0], [], []>} : vector<8x16xbf16>, vector<64x16xbf16>, vector<8x64xf32> -> vector<8x64xf32>
    %1237 = arith.addf %1230, %1236 : vector<8x64xf32>
    %c2704 = arith.constant 2704 : index
    %c0_435 = arith.constant 0 : index
    %1238 = vector.load %arg1[%c2704, %c0_435] : memref<3600x128xbf16, #tpu.memory_space<vmem>>, vector<8x32xbf16>
    %1239 = arith.truncf %1123 : vector<16x32xf32> to vector<16x32xbf16>
    %cst_436 = arith.constant dense<0.000000e+00> : vector<8x16xf32>
    %1240 = tpu.matmul %1238, %1239, %cst_436 {dimension_numbers = #tpu.dot_dimension_numbers<[1], [1], [0], [0], [0, 0, 1, 0], [], []>} : vector<8x32xbf16>, vector<16x32xbf16>, vector<8x16xf32> -> vector<8x16xf32>
    %c2720 = arith.constant 2720 : index
    %c0_437 = arith.constant 0 : index
    %1241 = vector.load %arg1[%c2720, %c0_437] : memref<3600x128xbf16, #tpu.memory_space<vmem>>, vector<64x16xbf16>
    %1242 = arith.truncf %1240 : vector<8x16xf32> to vector<8x16xbf16>
    %cst_438 = arith.constant dense<0.000000e+00> : vector<8x64xf32>
    %1243 = tpu.matmul %1242, %1241, %cst_438 {dimension_numbers = #tpu.dot_dimension_numbers<[1], [1], [0], [0], [0, 0, 1, 0], [], []>} : vector<8x16xbf16>, vector<64x16xbf16>, vector<8x64xf32> -> vector<8x64xf32>
    %1244 = arith.addf %1237, %1243 : vector<8x64xf32>
    %c3056 = arith.constant 3056 : index
    %c0_439 = arith.constant 0 : index
    %1245 = vector.load %arg1[%c3056, %c0_439] : memref<3600x128xbf16, #tpu.memory_space<vmem>>, vector<8x32xbf16>
    %1246 = arith.truncf %1123 : vector<16x32xf32> to vector<16x32xbf16>
    %cst_440 = arith.constant dense<0.000000e+00> : vector<8x16xf32>
    %1247 = tpu.matmul %1245, %1246, %cst_440 {dimension_numbers = #tpu.dot_dimension_numbers<[1], [1], [0], [0], [0, 0, 1, 0], [], []>} : vector<8x32xbf16>, vector<16x32xbf16>, vector<8x16xf32> -> vector<8x16xf32>
    %c3072 = arith.constant 3072 : index
    %c0_441 = arith.constant 0 : index
    %1248 = vector.load %arg1[%c3072, %c0_441] : memref<3600x128xbf16, #tpu.memory_space<vmem>>, vector<64x16xbf16>
    %1249 = arith.truncf %1247 : vector<8x16xf32> to vector<8x16xbf16>
    %cst_442 = arith.constant dense<0.000000e+00> : vector<8x64xf32>
    %1250 = tpu.matmul %1249, %1248, %cst_442 {dimension_numbers = #tpu.dot_dimension_numbers<[1], [1], [0], [0], [0, 0, 1, 0], [], []>} : vector<8x16xbf16>, vector<64x16xbf16>, vector<8x64xf32> -> vector<8x64xf32>
    %1251 = arith.addf %1244, %1250 : vector<8x64xf32>
    %c616 = arith.constant 616 : index
    %c0_443 = arith.constant 0 : index
    %1252 = vector.load %arg2[%c616, %c0_443] : memref<696x128xf32, #tpu.memory_space<vmem>>, vector<8x1xf32>
    %1253 = vector.broadcast %1252 : vector<8x1xf32> to vector<8x64xf32>
    %1254 = arith.addf %1251, %1253 : vector<8x64xf32>
    %c624 = arith.constant 624 : index
    %c0_444 = arith.constant 0 : index
    %1255 = vector.load %arg2[%c624, %c0_444] : memref<696x128xf32, #tpu.memory_space<vmem>>, vector<8x1xf32>
    %c632 = arith.constant 632 : index
    %c0_445 = arith.constant 0 : index
    %1256 = vector.load %arg2[%c632, %c0_445] : memref<696x128xf32, #tpu.memory_space<vmem>>, vector<8x1xf32>
    %cst_446 = arith.constant dense<0.000000e+00> : vector<64xf32>
    %1257 = vector.multi_reduction <add>, %1254, %cst_446 [0] : vector<8x64xf32> to vector<64xf32>
    %1258 = vector.shape_cast %1257 : vector<64xf32> to vector<1x64xf32>
    %cst_447 = arith.constant 8.000000e+00 : f32
    %1259 = vector.broadcast %cst_447 : f32 to vector<1x64xf32>
    %1260 = arith.divf %1258, %1259 : vector<1x64xf32>
    %1261 = arith.mulf %1254, %1254 : vector<8x64xf32>
    %cst_448 = arith.constant dense<0.000000e+00> : vector<64xf32>
    %1262 = vector.multi_reduction <add>, %1261, %cst_448 [0] : vector<8x64xf32> to vector<64xf32>
    %1263 = vector.shape_cast %1262 : vector<64xf32> to vector<1x64xf32>
    %cst_449 = arith.constant 8.000000e+00 : f32
    %1264 = vector.broadcast %cst_449 : f32 to vector<1x64xf32>
    %1265 = arith.divf %1263, %1264 : vector<1x64xf32>
    %1266 = arith.mulf %1260, %1260 : vector<1x64xf32>
    %1267 = arith.subf %1265, %1266 : vector<1x64xf32>
    %cst_450 = arith.constant 0.000000e+00 : f32
    %1268 = vector.broadcast %cst_450 : f32 to vector<1x64xf32>
    %1269 = arith.maximumf %1267, %1268 : vector<1x64xf32>
    %1270 = vector.broadcast %1260 : vector<1x64xf32> to vector<8x64xf32>
    %1271 = arith.subf %1254, %1270 : vector<8x64xf32>
    %cst_451 = arith.constant 9.99999997E-7 : f32
    %1272 = vector.broadcast %cst_451 : f32 to vector<1x64xf32>
    %1273 = arith.addf %1269, %1272 : vector<1x64xf32>
    %1274 = math.rsqrt %1273 : vector<1x64xf32>
    %1275 = vector.broadcast %1274 : vector<1x64xf32> to vector<8x64xf32>
    %1276 = arith.mulf %1271, %1275 : vector<8x64xf32>
    %1277 = vector.broadcast %1255 : vector<8x1xf32> to vector<8x64xf32>
    %1278 = arith.mulf %1276, %1277 : vector<8x64xf32>
    %1279 = vector.broadcast %1256 : vector<8x1xf32> to vector<8x64xf32>
    %1280 = arith.addf %1278, %1279 : vector<8x64xf32>
    %cst_452 = arith.constant 5.000000e-01 : f32
    %1281 = vector.broadcast %cst_452 : f32 to vector<8x64xf32>
    %1282 = arith.mulf %1281, %1280 : vector<8x64xf32>
    %cst_453 = arith.constant 0.707106769 : f32
    %1283 = vector.broadcast %cst_453 : f32 to vector<8x64xf32>
    %1284 = arith.mulf %1280, %1283 : vector<8x64xf32>
    %cst_454 = arith.constant 0.000000e+00 : f32
    %1285 = vector.broadcast %cst_454 : f32 to vector<8x64xf32>
    %1286 = arith.cmpf olt, %1284, %1285 : vector<8x64xf32>
    %cst_455 = arith.constant -1.000000e+00 : f32
    %cst_456 = arith.constant 1.000000e+00 : f32
    %1287 = vector.broadcast %cst_455 : f32 to vector<8x64xf32>
    %1288 = vector.broadcast %cst_456 : f32 to vector<8x64xf32>
    %1289 = arith.select %1286, %1287, %1288 : vector<8x64xi1>, vector<8x64xf32>
    %1290 = math.absf %1284 : vector<8x64xf32>
    %cst_457 = arith.constant 0.327591091 : f32
    %1291 = vector.broadcast %cst_457 : f32 to vector<8x64xf32>
    %1292 = arith.mulf %1291, %1290 : vector<8x64xf32>
    %cst_458 = arith.constant 1.000000e+00 : f32
    %1293 = vector.broadcast %cst_458 : f32 to vector<8x64xf32>
    %1294 = arith.addf %1293, %1292 : vector<8x64xf32>
    %cst_459 = arith.constant 1.000000e+00 : f32
    %1295 = vector.broadcast %cst_459 : f32 to vector<8x64xf32>
    %1296 = arith.divf %1295, %1294 : vector<8x64xf32>
    %cst_460 = arith.constant 1.06140542 : f32
    %1297 = vector.broadcast %cst_460 : f32 to vector<8x64xf32>
    %1298 = arith.mulf %1297, %1296 : vector<8x64xf32>
    %cst_461 = arith.constant -1.45315206 : f32
    %1299 = vector.broadcast %cst_461 : f32 to vector<8x64xf32>
    %1300 = arith.addf %1298, %1299 : vector<8x64xf32>
    %1301 = arith.mulf %1300, %1296 : vector<8x64xf32>
    %cst_462 = arith.constant 1.42141378 : f32
    %1302 = vector.broadcast %cst_462 : f32 to vector<8x64xf32>
    %1303 = arith.addf %1301, %1302 : vector<8x64xf32>
    %1304 = arith.mulf %1303, %1296 : vector<8x64xf32>
    %cst_463 = arith.constant -0.284496725 : f32
    %1305 = vector.broadcast %cst_463 : f32 to vector<8x64xf32>
    %1306 = arith.addf %1304, %1305 : vector<8x64xf32>
    %1307 = arith.mulf %1306, %1296 : vector<8x64xf32>
    %cst_464 = arith.constant 0.254829586 : f32
    %1308 = vector.broadcast %cst_464 : f32 to vector<8x64xf32>
    %1309 = arith.addf %1307, %1308 : vector<8x64xf32>
    %1310 = arith.mulf %1309, %1296 : vector<8x64xf32>
    %cst_465 = arith.constant 0.000000e+00 : f32
    %1311 = vector.broadcast %cst_465 : f32 to vector<8x64xf32>
    %1312 = arith.subf %1311, %1290 : vector<8x64xf32>
    %1313 = arith.mulf %1312, %1290 : vector<8x64xf32>
    %1314 = math.exp %1313 : vector<8x64xf32>
    %1315 = arith.mulf %1310, %1314 : vector<8x64xf32>
    %cst_466 = arith.constant 1.000000e+00 : f32
    %1316 = vector.broadcast %cst_466 : f32 to vector<8x64xf32>
    %1317 = arith.subf %1316, %1315 : vector<8x64xf32>
    %1318 = arith.mulf %1289, %1317 : vector<8x64xf32>
    %cst_467 = arith.constant 1.000000e+00 : f32
    %1319 = vector.broadcast %cst_467 : f32 to vector<8x64xf32>
    %1320 = arith.addf %1319, %1318 : vector<8x64xf32>
    %1321 = arith.mulf %1282, %1320 : vector<8x64xf32>
    %c2080 = arith.constant 2080 : index
    %c0_468 = arith.constant 0 : index
    %1322 = vector.load %arg1[%c2080, %c0_468] : memref<3600x128xbf16, #tpu.memory_space<vmem>>, vector<4x8xbf16>
    %1323 = arith.truncf %1321 : vector<8x64xf32> to vector<8x64xbf16>
    %cst_469 = arith.constant dense<0.000000e+00> : vector<4x64xf32>
    %1324 = tpu.matmul %1322, %1323, %cst_469 {dimension_numbers = #tpu.dot_dimension_numbers<[1], [0], [0], [1], [0, 0, 1, 1], [], []>} : vector<4x8xbf16>, vector<8x64xbf16>, vector<4x64xf32> -> vector<4x64xf32>
    %c2096 = arith.constant 2096 : index
    %c0_470 = arith.constant 0 : index
    %1325 = vector.load %arg1[%c2096, %c0_470] : memref<3600x128xbf16, #tpu.memory_space<vmem>>, vector<256x64xbf16>
    %1326 = arith.truncf %1324 : vector<4x64xf32> to vector<4x64xbf16>
    %cst_471 = arith.constant dense<0.000000e+00> : vector<4x256xf32>
    %1327 = tpu.matmul %1326, %1325, %cst_471 {dimension_numbers = #tpu.dot_dimension_numbers<[1], [1], [0], [0], [0, 0, 1, 0], [], []>} : vector<4x64xbf16>, vector<256x64xbf16>, vector<4x256xf32> -> vector<4x256xf32>
    %c2432 = arith.constant 2432 : index
    %c0_472 = arith.constant 0 : index
    %1328 = vector.load %arg1[%c2432, %c0_472] : memref<3600x128xbf16, #tpu.memory_space<vmem>>, vector<4x8xbf16>
    %1329 = arith.truncf %1321 : vector<8x64xf32> to vector<8x64xbf16>
    %cst_473 = arith.constant dense<0.000000e+00> : vector<4x64xf32>
    %1330 = tpu.matmul %1328, %1329, %cst_473 {dimension_numbers = #tpu.dot_dimension_numbers<[1], [0], [0], [1], [0, 0, 1, 1], [], []>} : vector<4x8xbf16>, vector<8x64xbf16>, vector<4x64xf32> -> vector<4x64xf32>
    %c2448 = arith.constant 2448 : index
    %c0_474 = arith.constant 0 : index
    %1331 = vector.load %arg1[%c2448, %c0_474] : memref<3600x128xbf16, #tpu.memory_space<vmem>>, vector<256x64xbf16>
    %1332 = arith.truncf %1330 : vector<4x64xf32> to vector<4x64xbf16>
    %cst_475 = arith.constant dense<0.000000e+00> : vector<4x256xf32>
    %1333 = tpu.matmul %1332, %1331, %cst_475 {dimension_numbers = #tpu.dot_dimension_numbers<[1], [1], [0], [0], [0, 0, 1, 0], [], []>} : vector<4x64xbf16>, vector<256x64xbf16>, vector<4x256xf32> -> vector<4x256xf32>
    %1334 = arith.addf %1327, %1333 : vector<4x256xf32>
    %c2784 = arith.constant 2784 : index
    %c0_476 = arith.constant 0 : index
    %1335 = vector.load %arg1[%c2784, %c0_476] : memref<3600x128xbf16, #tpu.memory_space<vmem>>, vector<4x8xbf16>
    %1336 = arith.truncf %1321 : vector<8x64xf32> to vector<8x64xbf16>
    %cst_477 = arith.constant dense<0.000000e+00> : vector<4x64xf32>
    %1337 = tpu.matmul %1335, %1336, %cst_477 {dimension_numbers = #tpu.dot_dimension_numbers<[1], [0], [0], [1], [0, 0, 1, 1], [], []>} : vector<4x8xbf16>, vector<8x64xbf16>, vector<4x64xf32> -> vector<4x64xf32>
    %c2800 = arith.constant 2800 : index
    %c0_478 = arith.constant 0 : index
    %1338 = vector.load %arg1[%c2800, %c0_478] : memref<3600x128xbf16, #tpu.memory_space<vmem>>, vector<256x64xbf16>
    %1339 = arith.truncf %1337 : vector<4x64xf32> to vector<4x64xbf16>
    %cst_479 = arith.constant dense<0.000000e+00> : vector<4x256xf32>
    %1340 = tpu.matmul %1339, %1338, %cst_479 {dimension_numbers = #tpu.dot_dimension_numbers<[1], [1], [0], [0], [0, 0, 1, 0], [], []>} : vector<4x64xbf16>, vector<256x64xbf16>, vector<4x256xf32> -> vector<4x256xf32>
    %1341 = arith.addf %1334, %1340 : vector<4x256xf32>
    %c3136 = arith.constant 3136 : index
    %c0_480 = arith.constant 0 : index
    %1342 = vector.load %arg1[%c3136, %c0_480] : memref<3600x128xbf16, #tpu.memory_space<vmem>>, vector<4x8xbf16>
    %1343 = arith.truncf %1321 : vector<8x64xf32> to vector<8x64xbf16>
    %cst_481 = arith.constant dense<0.000000e+00> : vector<4x64xf32>
    %1344 = tpu.matmul %1342, %1343, %cst_481 {dimension_numbers = #tpu.dot_dimension_numbers<[1], [0], [0], [1], [0, 0, 1, 1], [], []>} : vector<4x8xbf16>, vector<8x64xbf16>, vector<4x64xf32> -> vector<4x64xf32>
    %c3152 = arith.constant 3152 : index
    %c0_482 = arith.constant 0 : index
    %1345 = vector.load %arg1[%c3152, %c0_482] : memref<3600x128xbf16, #tpu.memory_space<vmem>>, vector<256x64xbf16>
    %1346 = arith.truncf %1344 : vector<4x64xf32> to vector<4x64xbf16>
    %cst_483 = arith.constant dense<0.000000e+00> : vector<4x256xf32>
    %1347 = tpu.matmul %1346, %1345, %cst_483 {dimension_numbers = #tpu.dot_dimension_numbers<[1], [1], [0], [0], [0, 0, 1, 0], [], []>} : vector<4x64xbf16>, vector<256x64xbf16>, vector<4x256xf32> -> vector<4x256xf32>
    %1348 = arith.addf %1341, %1347 : vector<4x256xf32>
    %c640_484 = arith.constant 640 : index
    %c0_485 = arith.constant 0 : index
    %1349 = vector.load %arg2[%c640_484, %c0_485] : memref<696x128xf32, #tpu.memory_space<vmem>>, vector<4x1xf32>
    %1350 = vector.broadcast %1349 : vector<4x1xf32> to vector<4x256xf32>
    %1351 = arith.addf %1348, %1350 : vector<4x256xf32>
    %cst_486 = arith.constant 5.000000e-01 : f32
    %1352 = vector.broadcast %cst_486 : f32 to vector<4x256xf32>
    %1353 = arith.mulf %1352, %1351 : vector<4x256xf32>
    %cst_487 = arith.constant 0.707106769 : f32
    %1354 = vector.broadcast %cst_487 : f32 to vector<4x256xf32>
    %1355 = arith.mulf %1351, %1354 : vector<4x256xf32>
    %cst_488 = arith.constant 0.000000e+00 : f32
    %1356 = vector.broadcast %cst_488 : f32 to vector<4x256xf32>
    %1357 = arith.cmpf olt, %1355, %1356 : vector<4x256xf32>
    %cst_489 = arith.constant -1.000000e+00 : f32
    %cst_490 = arith.constant 1.000000e+00 : f32
    %1358 = vector.broadcast %cst_489 : f32 to vector<4x256xf32>
    %1359 = vector.broadcast %cst_490 : f32 to vector<4x256xf32>
    %1360 = arith.select %1357, %1358, %1359 : vector<4x256xi1>, vector<4x256xf32>
    %1361 = math.absf %1355 : vector<4x256xf32>
    %cst_491 = arith.constant 0.327591091 : f32
    %1362 = vector.broadcast %cst_491 : f32 to vector<4x256xf32>
    %1363 = arith.mulf %1362, %1361 : vector<4x256xf32>
    %cst_492 = arith.constant 1.000000e+00 : f32
    %1364 = vector.broadcast %cst_492 : f32 to vector<4x256xf32>
    %1365 = arith.addf %1364, %1363 : vector<4x256xf32>
    %cst_493 = arith.constant 1.000000e+00 : f32
    %1366 = vector.broadcast %cst_493 : f32 to vector<4x256xf32>
    %1367 = arith.divf %1366, %1365 : vector<4x256xf32>
    %cst_494 = arith.constant 1.06140542 : f32
    %1368 = vector.broadcast %cst_494 : f32 to vector<4x256xf32>
    %1369 = arith.mulf %1368, %1367 : vector<4x256xf32>
    %cst_495 = arith.constant -1.45315206 : f32
    %1370 = vector.broadcast %cst_495 : f32 to vector<4x256xf32>
    %1371 = arith.addf %1369, %1370 : vector<4x256xf32>
    %1372 = arith.mulf %1371, %1367 : vector<4x256xf32>
    %cst_496 = arith.constant 1.42141378 : f32
    %1373 = vector.broadcast %cst_496 : f32 to vector<4x256xf32>
    %1374 = arith.addf %1372, %1373 : vector<4x256xf32>
    %1375 = arith.mulf %1374, %1367 : vector<4x256xf32>
    %cst_497 = arith.constant -0.284496725 : f32
    %1376 = vector.broadcast %cst_497 : f32 to vector<4x256xf32>
    %1377 = arith.addf %1375, %1376 : vector<4x256xf32>
    %1378 = arith.mulf %1377, %1367 : vector<4x256xf32>
    %cst_498 = arith.constant 0.254829586 : f32
    %1379 = vector.broadcast %cst_498 : f32 to vector<4x256xf32>
    %1380 = arith.addf %1378, %1379 : vector<4x256xf32>
    %1381 = arith.mulf %1380, %1367 : vector<4x256xf32>
    %cst_499 = arith.constant 0.000000e+00 : f32
    %1382 = vector.broadcast %cst_499 : f32 to vector<4x256xf32>
    %1383 = arith.subf %1382, %1361 : vector<4x256xf32>
    %1384 = arith.mulf %1383, %1361 : vector<4x256xf32>
    %1385 = math.exp %1384 : vector<4x256xf32>
    %1386 = arith.mulf %1381, %1385 : vector<4x256xf32>
    %cst_500 = arith.constant 1.000000e+00 : f32
    %1387 = vector.broadcast %cst_500 : f32 to vector<4x256xf32>
    %1388 = arith.subf %1387, %1386 : vector<4x256xf32>
    %1389 = arith.mulf %1360, %1388 : vector<4x256xf32>
    %cst_501 = arith.constant 1.000000e+00 : f32
    %1390 = vector.broadcast %cst_501 : f32 to vector<4x256xf32>
    %1391 = arith.addf %1390, %1389 : vector<4x256xf32>
    %1392 = arith.mulf %1353, %1391 : vector<4x256xf32>
    %c3408 = arith.constant 3408 : index
    %c0_502 = arith.constant 0 : index
    %1393 = vector.load %arg1[%c3408, %c0_502] : memref<3600x128xbf16, #tpu.memory_space<vmem>>, vector<32x32xbf16>
    %1394 = arith.truncf %1224 : vector<1x32xf32> to vector<1x32xbf16>
    %cst_503 = arith.constant dense<0.000000e+00> : vector<1x32xf32>
    %1395 = tpu.matmul %1394, %1393, %cst_503 {dimension_numbers = #tpu.dot_dimension_numbers<[1], [0], [0], [1], [0, 0, 1, 1], [], []>} : vector<1x32xbf16>, vector<32x32xbf16>, vector<1x32xf32> -> vector<1x32xf32>
    %c648 = arith.constant 648 : index
    %c0_504 = arith.constant 0 : index
    %1396 = vector.load %arg2[%c648, %c0_504] : memref<696x128xf32, #tpu.memory_space<vmem>>, vector<1x32xf32>
    %1397 = arith.addf %1395, %1396 : vector<1x32xf32>
    %cst_505 = arith.constant 0.000000e+00 : f32
    %1398 = vector.broadcast %cst_505 : f32 to vector<1x32xf32>
    %1399 = arith.maximumf %1397, %1398 : vector<1x32xf32>
    %c3440 = arith.constant 3440 : index
    %c0_506 = arith.constant 0 : index
    %1400 = vector.load %arg1[%c3440, %c0_506] : memref<3600x128xbf16, #tpu.memory_space<vmem>>, vector<32x32xbf16>
    %1401 = arith.truncf %1399 : vector<1x32xf32> to vector<1x32xbf16>
    %cst_507 = arith.constant dense<0.000000e+00> : vector<1x32xf32>
    %1402 = tpu.matmul %1401, %1400, %cst_507 {dimension_numbers = #tpu.dot_dimension_numbers<[1], [0], [0], [1], [0, 0, 1, 1], [], []>} : vector<1x32xbf16>, vector<32x32xbf16>, vector<1x32xf32> -> vector<1x32xf32>
    %c656 = arith.constant 656 : index
    %c0_508 = arith.constant 0 : index
    %1403 = vector.load %arg2[%c656, %c0_508] : memref<696x128xf32, #tpu.memory_space<vmem>>, vector<1x32xf32>
    %1404 = arith.addf %1402, %1403 : vector<1x32xf32>
    %cst_509 = arith.constant 0.000000e+00 : f32
    %1405 = vector.broadcast %cst_509 : f32 to vector<1x32xf32>
    %1406 = arith.maximumf %1404, %1405 : vector<1x32xf32>
    %c3472 = arith.constant 3472 : index
    %c0_510 = arith.constant 0 : index
    %1407 = vector.load %arg1[%c3472, %c0_510] : memref<3600x128xbf16, #tpu.memory_space<vmem>>, vector<32x4xbf16>
    %1408 = arith.truncf %1406 : vector<1x32xf32> to vector<1x32xbf16>
    %cst_511 = arith.constant dense<0.000000e+00> : vector<1x4xf32>
    %1409 = tpu.matmul %1408, %1407, %cst_511 {dimension_numbers = #tpu.dot_dimension_numbers<[1], [0], [0], [1], [0, 0, 1, 1], [], []>} : vector<1x32xbf16>, vector<32x4xbf16>, vector<1x4xf32> -> vector<1x4xf32>
    %c664 = arith.constant 664 : index
    %c0_512 = arith.constant 0 : index
    %1410 = vector.load %arg2[%c664, %c0_512] : memref<696x128xf32, #tpu.memory_space<vmem>>, vector<1x4xf32>
    %1411 = arith.addf %1409, %1410 : vector<1x4xf32>
    %1412 = arith.truncf %1411 : vector<1x4xf32> to vector<1x4xbf16>
    %1413 = arith.truncf %1392 : vector<4x256xf32> to vector<4x256xbf16>
    %cst_513 = arith.constant dense<0.000000e+00> : vector<1x256xf32>
    %1414 = tpu.matmul %1412, %1413, %cst_513 {dimension_numbers = #tpu.dot_dimension_numbers<[1], [0], [0], [1], [0, 0, 1, 1], [], []>} : vector<1x4xbf16>, vector<4x256xbf16>, vector<1x256xf32> -> vector<1x256xf32>
    %c3504 = arith.constant 3504 : index
    %c0_514 = arith.constant 0 : index
    %1415 = vector.load %arg1[%c3504, %c0_514] : memref<3600x128xbf16, #tpu.memory_space<vmem>>, vector<32x32xbf16>
    %1416 = arith.truncf %1223 : vector<1x32xf32> to vector<1x32xbf16>
    %cst_515 = arith.constant dense<0.000000e+00> : vector<1x32xf32>
    %1417 = tpu.matmul %1416, %1415, %cst_515 {dimension_numbers = #tpu.dot_dimension_numbers<[1], [0], [0], [1], [0, 0, 1, 1], [], []>} : vector<1x32xbf16>, vector<32x32xbf16>, vector<1x32xf32> -> vector<1x32xf32>
    %c672_516 = arith.constant 672 : index
    %c0_517 = arith.constant 0 : index
    %1418 = vector.load %arg2[%c672_516, %c0_517] : memref<696x128xf32, #tpu.memory_space<vmem>>, vector<1x32xf32>
    %1419 = arith.addf %1417, %1418 : vector<1x32xf32>
    %cst_518 = arith.constant 0.000000e+00 : f32
    %1420 = vector.broadcast %cst_518 : f32 to vector<1x32xf32>
    %1421 = arith.maximumf %1419, %1420 : vector<1x32xf32>
    %c3536 = arith.constant 3536 : index
    %c0_519 = arith.constant 0 : index
    %1422 = vector.load %arg1[%c3536, %c0_519] : memref<3600x128xbf16, #tpu.memory_space<vmem>>, vector<32x32xbf16>
    %1423 = arith.truncf %1421 : vector<1x32xf32> to vector<1x32xbf16>
    %cst_520 = arith.constant dense<0.000000e+00> : vector<1x32xf32>
    %1424 = tpu.matmul %1423, %1422, %cst_520 {dimension_numbers = #tpu.dot_dimension_numbers<[1], [0], [0], [1], [0, 0, 1, 1], [], []>} : vector<1x32xbf16>, vector<32x32xbf16>, vector<1x32xf32> -> vector<1x32xf32>
    %c680 = arith.constant 680 : index
    %c0_521 = arith.constant 0 : index
    %1425 = vector.load %arg2[%c680, %c0_521] : memref<696x128xf32, #tpu.memory_space<vmem>>, vector<1x32xf32>
    %1426 = arith.addf %1424, %1425 : vector<1x32xf32>
    %cst_522 = arith.constant 0.000000e+00 : f32
    %1427 = vector.broadcast %cst_522 : f32 to vector<1x32xf32>
    %1428 = arith.maximumf %1426, %1427 : vector<1x32xf32>
    %c3568 = arith.constant 3568 : index
    %c0_523 = arith.constant 0 : index
    %1429 = vector.load %arg1[%c3568, %c0_523] : memref<3600x128xbf16, #tpu.memory_space<vmem>>, vector<32x4xbf16>
    %1430 = arith.truncf %1428 : vector<1x32xf32> to vector<1x32xbf16>
    %cst_524 = arith.constant dense<0.000000e+00> : vector<1x4xf32>
    %1431 = tpu.matmul %1430, %1429, %cst_524 {dimension_numbers = #tpu.dot_dimension_numbers<[1], [0], [0], [1], [0, 0, 1, 1], [], []>} : vector<1x32xbf16>, vector<32x4xbf16>, vector<1x4xf32> -> vector<1x4xf32>
    %c688 = arith.constant 688 : index
    %c0_525 = arith.constant 0 : index
    %1432 = vector.load %arg2[%c688, %c0_525] : memref<696x128xf32, #tpu.memory_space<vmem>>, vector<1x4xf32>
    %1433 = arith.addf %1431, %1432 : vector<1x4xf32>
    %cst_526 = arith.constant 0.000000e+00 : f32
    %1434 = vector.broadcast %cst_526 : f32 to vector<2x256xf32>
    %c0_527 = arith.constant 0 : index
    %c0_528 = arith.constant 0 : index
    %1435 = vector.load %arg3[%c0_527, %c0_528] : memref<2x256xf32, #tpu.memory_space<vmem>>, vector<2x256xf32>
    tpu.vector_store %arg3[%c0_527, %c0_528], %1434 {strides = array<i32>} : memref<2x256xf32, #tpu.memory_space<vmem>>, vector<2x256xf32>,
    %c0_529 = arith.constant 0 : index
    %c0_530 = arith.constant 0 : index
    %1436 = vector.load %arg3[%c0_529, %c0_530] : memref<2x256xf32, #tpu.memory_space<vmem>>, vector<1x256xf32>
    tpu.vector_store %arg3[%c0_529, %c0_530], %1414 {strides = array<i32>} : memref<2x256xf32, #tpu.memory_space<vmem>>, vector<1x256xf32>,
    %c1 = arith.constant 1 : index
    %c0_531 = arith.constant 0 : index
    %1437 = vector.load %arg3[%c1, %c0_531] : memref<2x256xf32, #tpu.memory_space<vmem>>, vector<1x4xf32>
    tpu.vector_store %arg3[%c1, %c0_531], %1433 {strides = array<i32>} : memref<2x256xf32, #tpu.memory_space<vmem>>, vector<1x4xf32>,
    return
  }
}

</mosaic_0001>

<bundles_post_ra>
// kernel: fwd.1
= control target key start
LH: loop header
LB: loop body
LE: loop exit
PB: predicated region body
PF: predicated region fallthrough
CT: control target
= control target key end

     0   :  { %8 = vsyncpa [#allocation3], 0  ;;  %s11029_s12 = smov [#allocation2]   ;;  %s12416_s0 = inlined_call_operand.vmem [shape: f32[16,192], index: 0, kind: input, shape index: {}]   ;;  %s12417_s1 = inlined_call_operand.hbm [shape: bf16[3600,128], index: 1, kind: input, shape index: {}]   ;;  %s12418_s2 = inlined_call_operand.vmem [shape: f32[696,128], index: 2, kind: input, shape index: {}]   ;;  %s12419_s3 = inlined_call_operand.vmem [shape: f32[2,256], index: 3, kind: output, shape index: {}]  }
   0x1   :  { %s16_s13 = sshll.u32 %s11029_s12, 4  ;;  %s11005_s16 = scalar_lea.hbm %s12417_s1, 28800  ;;  %s17_s13 = int_to_ptr.vmem [resolvable:$true] %s16_s13 }
   0x2   :  { %p11006_p0 = scmp.ne.s32.totalorder %s12417_s1, %s11005_s16  ;;  %p11009_p1 = scmp.lt.u32.totalorder %s11005_s16, %s12417_s1 }
   0x4   :  { %p11011_p2 = pnand %p11009_p1, %p11006_p0 }
   0x6   :  { %11014 = shalt.err (!%p11011_p2)
}
   0x7   :  { %s11015_s21 = scalar_lea.vmem %s17_s13, 28800  ;;  %p11020_p4 = scmp.lt.s32.totalorder %s17_s13, %s17_s13 }
   0x8   :  { %p11016_p3 = scmp.ne.s32.totalorder %s17_s13, %s11015_s21  ;;  %p11021_p5 = scmp.lt.s32.totalorder %s11015_s21, %s11015_s21 }
   0xa   :  { %p11022_p6 = por %p11021_p5, %p11020_p4 }
   0xc   :  { %p11023_p7 = pnand %p11022_p6, %p11016_p3 }
   0xe   :  { %11026 = shalt.err (!%p11023_p7)
}
   0xf   :  { %s11030_s22 = smov 64   ;;  %s11031_s23 = smov 4  }
  0x10   :  { %22 = dma.hbm_to_vmem [thread:$0]  %s12417_s1, 28800, %s17_s13, [#allocation3], %s11030_s22, %s11030_s22, %s11031_s23  }
  0x11   :  { %11027 = dma.done.wait [#allocation3], 28800  }
  0x12   :  { %11028 = vsyncadd [#allocation3], 4294938496  ;;  %v11032_v0 = vmov 0   ;;  %v10613_v1 = vld [vmem:[#allocation2] sm:$0xff]   ;;  %v10614_v2 = vld [vmem:[#allocation2 + $0x8] sm:$0xff]   ;;  %vm136_vm0 = vcmask 523264  }
  0x13   :  { %140 = vmatprep.subr.bf16.mxu0 %v11032_v0  ;;  %10612 = vset.pattern.permute.xlu1 %v11032_v0  ;;  %v10615_v3 = vld [vmem:[#allocation2 + $0x10] sm:$0xff]   ;;  %v10616_v4 = vld [vmem:[#allocation2 + $0x18] sm:$0xff]   ;;  %v30_v5 = vld [vmem:[%s12416_s0 + $0x8] sm:$0xff]  ;;  %vm187_vm1 = vcmask 261120   ;;  %v11033_v37 = vmov 0.0   ;;  %vm11034_vm2 = vmmov 0  }
  0x14   :  { %10611 = vset.pattern.permute.xlu0 %v11032_v0  ;;  %141 = vmatpush1.bf16.msra.mxu0 %v10613_v1  ;;  %v32_v6 = vld [vmem:[%s12416_s0 + $0x18] sm:$0xff]  ;;  %v10617_v7 = vld [vmem:[#allocation2 + $0x20] sm:$0xff]   ;;  %v10618_v9 = vld [vmem:[#allocation2 + $0x28] sm:$0xff]   ;;  %8895 = vst [vmem:[%s12419_s3] sm:$0xf] %v11033_v37  ;;  %s11035_s19 = smov 96   ;;  %s11036_s20 = smov 80  }
  0x15   :  { %142 = vmatprep.subr.bf16.mxu0 %v11032_v0  ;;  %v58_v8 = vpack.c.bf16 %v32_v6, %v30_v5  ;;  %v10619_v10 = vld [vmem:[#allocation2 + $0x30] sm:$0xff]   ;;  %v10620_v11 = vld [vmem:[#allocation2 + $0x38] sm:$0xff]   ;;  %v10621_v12 = vld [vmem:[#allocation2 + $0x40] sm:$0xff]   ;;  %9699 = vmatprep.subr.bf16.mxu1 %v11033_v37  ;;  %s11037_s21 = smov 112   ;;  %vm303_vm3 = vcmask 130048   ;;  %s11038_s23 = smov 48  }
  0x16   :  { %v10622_v13 = vld [vmem:[#allocation2 + $0x48] sm:$0xff]   ;;  %v10623_v14 = vld [vmem:[#allocation2 + $0x50] sm:$0xff]   ;;  %v10624_v15 = vld [vmem:[#allocation2 + $0x58] sm:$0xff]   ;;  %9703 = vmatprep.mubr.msk.bf16.mxu1 %vm11034_vm2, %v11033_v37  ;;  %vm2785_vm8 = vcmask 1041408   ;;  %vm2786_vm9 = vcmask 1042432   ;;  %vm2767_vm10 = vcmask 36864  }
  0x17   :  { %8939 = vmatprep.mubr.msk.bf16.mxu0 %vm136_vm0, %v58_v8  ;;  %v29_v16 = vld [vmem:[%s12416_s0] sm:$0xff]  ;;  %v31_v17 = vld [vmem:[%s12416_s0 + $0x10] sm:$0xff]  ;;  %v181_v21 = vld [vmem:[%s12418_s2 + $0x8] sm:$0xff]  ;;  %vm2781_vm11 = vcmask 39936   ;;  %vm3058_vm12 = vcmask 258048   ;;  %vm3287_vm13 = vcmask 64512  }
  0x18   :  { %143 = vmatpush1.bf16.msra.mxu0 %v10614_v2  ;;  %v57_v18 = vpack.c.bf16 %v31_v17, %v29_v16  ;;  %v8926_v19 = vld [vmem:[%s12418_s2] ss:$0 sm:$0xff]  ;;  %v182_v25 = vld [vmem:[%s12418_s2 + $0x10] sm:$0xff]  ;;  %v10626_v38 = vld [vmem:[#allocation2 + $0x68] sm:$0xff]   ;;  %vm3335_vm14 = vcmask 126976   ;;  %vm3511_vm15 = vcmask 1043456  }
  0x19   :  { %144 = vmatprep.subr.bf16.mxu0 %v11032_v0  ;;  %v10625_v36 = vld [vmem:[#allocation2 + $0x60] sm:$0xff]   ;;  %v8940_v58 = vld [vmem:[%s12418_s2 + $0x18] ss:$0 sm:$0xff]  ;;  %v8942_v5 = vld [vmem:[%s12418_s2 + $0x28] ss:$0 sm:$0xff] }
  0x1a   :  { %9700 = vmatpush3.bf16.msra.mxu1 %v10625_v36  ;;  %v8941_v63 = vld [vmem:[%s12418_s2 + $0x20] ss:$0 sm:$0xff] }
  0x1b   :  { %9701 = vmatprep.subr.bf16.mxu1 %v11033_v37 }
  0x1c   :  { %145 = vmatpush1.bf16.msra.mxu0 %v10615_v3 }
  0x1d   :  { %146 = vmatprep.subr.bf16.mxu0 %v11032_v0 }
  0x1e   :  { %9702 = vmatpush3.bf16.msra.mxu1 %v10626_v38 }
  0x1f   :  { %9707 = vmatprep.subr.bf16.mxu1 %v11033_v37 }
  0x20   :  { %147 = vmatpush1.bf16.msra.mxu0 %v10616_v4 }
  0x21   :  { %148 = vmatprep.subr.bf16.mxu0 %v11032_v0 }
  0x24   :  { %149 = vmatpush1.bf16.msra.mxu0 %v10617_v7 }
  0x25   :  { %150 = vmatprep.subr.bf16.mxu0 %v11032_v0 }
  0x28   :  { %151 = vmatpush1.bf16.msra.mxu0 %v10618_v9 }
  0x29   :  { %152 = vmatprep.subr.bf16.mxu0 %v11032_v0 }
  0x2c   :  { %153 = vmatpush1.bf16.msra.mxu0 %v10619_v10 }
  0x2d   :  { %154 = vmatprep.subr.bf16.mxu0 %v11032_v0 }
  0x30   :  { %155 = vmatpush1.bf16.msra.mxu0 %v10620_v11 }
  0x31   :  { %156 = vmatprep.subr.bf16.mxu0 %v11032_v0 }
  0x34   :  { %157 = vmatpush1.bf16.msra.mxu0 %v10621_v12 }
  0x35   :  { %158 = vmatprep.subr.bf16.mxu0 %v11032_v0 }
  0x38   :  { %159 = vmatpush1.bf16.msra.mxu0 %v10622_v13 }
  0x39   :  { %160 = vmatprep.subr.bf16.mxu0 %v11032_v0 }
  0x3c   :  { %161 = vmatpush1.bf16.msra.mxu0 %v10623_v14 }
  0x3d   :  { %162 = vmatprep.subr.bf16.mxu0 %v11032_v0 }
  0x40   :  { %163 = vmatpush1.bf16.msra.mxu0 %v10624_v15 }
  0x41   :  { %9737 = vmatprep.subr.bf16.mxu0 %v11033_v37 }
  0x43   :  { %173 = vmatmul.mubr.bf16.vlgmr.msra.gmra.mrb[0].mxu0 %v57_v18 }
  0x44   :  { %9739 = vmatprep.mubr.msk.bf16.mxu0 %vm11034_vm2, %v11033_v37 }
 0x116   :  { %v174_v20 = vpop.f32.mrb[0].mxu0 }
 0x117   :  { %v175_v22 = vadd.f32 %v8926_v19, %v174_v20  ;;  %v176_v23 = vpop.f32.mrb[1].mxu0 }
 0x118   :  { %v177_v24 = vpop.f32.mrb[2].mxu0 }
 0x119   :  { %v11113_v26 = vadd.f32 %v181_v21, %v175_v22  ;;  %v178_v27 = vadd.f32 %v8926_v19, %v177_v24  ;;  %v179_v28 = vpop.f32.mrb[3].mxu0 }
 0x11b   :  { %v11115_v29 = vadd.f32 %v182_v25, %v178_v27  ;;  %v188_v30 = vsel %vm187_vm1, %v11113_v26, 0.0  ;;  %v197_v31 = vmul.f32 %v11113_v26, %v11113_v26 }
 0x11c   :  { %189 = vadd.xlane.f32.xlu0 %v188_v30 }
 0x11d   :  { %v199_v32 = vsel %vm187_vm1, %v197_v31, 0.0  ;;  %v198_v33 = vmul.f32 %v11115_v29, %v11115_v29  ;;  %v191_v34 = vsel %vm187_vm1, %v11115_v29, 0.0 }
 0x11e   :  { %200 = vadd.xlane.f32.xlu1 %v199_v32 }
 0x11f   :  { %v202_v35 = vsel %vm187_vm1, %v198_v33, 0.0 }
 0x120   :  { %192 = vadd.xlane.f32.xlu0 %v191_v34 }
 0x122   :  { %203 = vadd.xlane.f32.xlu1 %v202_v35 }
 0x1a9   :  { %v190_v39 = vpop.xlane.xlu0 %189 }
 0x1aa   :  { %v195_v40 = vmul.f32 0.03125, %v190_v39 }
 0x1ab   :  { %v201_v41 = vpop.xlane.xlu1 %200 }
 0x1ac   :  { %v207_v42 = vmul.f32 %v195_v40, %v195_v40  ;;  %v205_v43 = vmul.f32 0.03125, %v201_v41  ;;  %v213_v55 = vsub.f32 %v11113_v26, %v195_v40 }
 0x1ad   :  { %v193_v44 = vpop.xlane.xlu0 %192 }
 0x1ae   :  { %v209_v45 = vsub.f32 %v205_v43, %v207_v42  ;;  %v196_v46 = vmul.f32 0.03125, %v193_v44 }
 0x1af   :  { %v204_v47 = vpop.xlane.xlu1 %203 }
 0x1b0   :  { %v211_v48 = vmax.f32 %v209_v45, 0.0  ;;  %v208_v49 = vmul.f32 %v196_v46, %v196_v46  ;;  %v206_v50 = vmul.f32 0.03125, %v204_v47  ;;  %v214_v59 = vsub.f32 %v11115_v29, %v196_v46  ;;  %v10627_v47 = vld [vmem:[#allocation2 + $0x70] sm:$0xff]  }
 0x1b1   :  { %9738 = vmatpush3.bf16.msra.mxu0 %v10627_v47 }
 0x1b2   :  { %v215_v51 = vadd.f32 1e-06, %v211_v48  ;;  %v210_v52 = vsub.f32 %v206_v50, %v208_v49  ;;  %9751 = vmatprep.subr.bf16.mxu0 %v11033_v37 }
 0x1b4   :  { %10820 = vrsqrt.f32 %v215_v51  ;;  %v212_v53 = vmax.f32 %v210_v52, 0.0 }
 0x1b6   :  { %v216_v54 = vadd.f32 1e-06, %v212_v53 }
 0x1b8   :  { %10822 = vrsqrt.f32 %v216_v54 }
 0x1be   :  { %v10821_v56 = vpop.eup %10820 }
 0x1bf   :  { %v219_v57 = vmul.f32 %v10821_v56, %v213_v55 }
 0x1c1   :  { %v225_v62 = vmul.f32 %v8940_v58, %v219_v57 }
 0x1c2   :  { %v10823_v60 = vpop.eup %10822 }
 0x1c3   :  { %v220_v61 = vmul.f32 %v10823_v60, %v214_v59  ;;  %v231_v2 = vadd.f32 %v8941_v63, %v225_v62 }
 0x1c5   :  { %v226_v1 = vmul.f32 %v8940_v58, %v220_v61 }
 0x1c7   :  { %v232_v3 = vadd.f32 %v8941_v63, %v226_v1 }
 0x1c9   :  { %v237_v4 = vpack.c.bf16 %v232_v3, %v231_v2 }
 0x1cb   :  { %9704 = vmatmul.mubr.msk.bf16.vlgmr.msra.gmra.mrb[0].mxu1 %vm187_vm1, %v237_v4 }
 0x1cc   :  { %9709 = vmatprep.mubr.msk.bf16.mxu1 %vm11034_vm2, %v11033_v37 }
 0x29e   :  { %v292_v6 = vpop.f32.mrb[0].mxu1 }
 0x29f   :  { %v9705_v7 = vpop.f32.mrb[1].mxu1  ;;  %v293_v9 = vadd.f32 %v8942_v5, %v292_v6 }
 0x2a0   :  { %v295_v8 = vpop.f32.mrb[2].mxu1 }
 0x2a1   :  { %v296_v10 = vadd.f32 %v8942_v5, %v295_v8  ;;  %v9706_v11 = vpop.f32.mrb[3].mxu1 }
 0x2a3   :  { %v11153_v12 = vpack.c.bf16 %v296_v10, %v293_v9 }
 0x2a5   :  { %301 = vrot.lane.b32.xlu0 %v11153_v12, %s11035_s19 }
 0x2a9   :  { %428 = vrot.lane.b32.xlu0 %v11153_v12, %s11036_s20 }
 0x2ad   :  { %426 = vrot.lane.b32.xlu0 %v11153_v12, %s11037_s21 }
 0x317   :  { %v302_v13 = vpop.permute.xlu0 %301 }
 0x318   :  { %v308_v14 = vsel %vm303_vm3, %v302_v13, 0 }
 0x319   :  { %9708 = vmatpush3.bf16.xpose.msra.mxu1 %v308_v14 }
 0x31a   :  { %9713 = vmatprep.subr.bf16.mxu1 %v11033_v37 }
 0x31b   :  { %v429_v43 = vpop.permute.xlu0 %428 }
 0x31c   :  { %v434_v45 = vsel %vm303_vm3, %v429_v43, 0 }
 0x31f   :  { %v427_v46 = vpop.permute.xlu0 %426 }
 0x320   :  { %9710 = vmatmul.mubr.msk.bf16.vlgmr.msra.gmra.mrb[4].mxu1 %vm303_vm3, %v11153_v12 }
 0x321   :  { %9715 = vmatprep.mubr.msk.bf16.mxu1 %vm11034_vm2, %v11033_v37 }
 0x3f3   :  { %v344_v15 = vpop.f32.mrb[4].mxu1 }
 0x3f4   :  { %v351_v16 = vmul.f32 0.25, %v344_v15  ;;  %v9711_v17 = vpop.f32.mrb[5].mxu1 }
 0x3f5   :  { %v347_v18 = vpop.f32.mrb[6].mxu1 }
 0x3f6   :  { %v352_v19 = vmul.f32 0.25, %v347_v18  ;;  %v9712_v20 = vpop.f32.mrb[7].mxu1  ;;  %v353_v21 = vsel %vm303_vm3, %v351_v16, -inf }
 0x3f7   :  { %354 = vmax.xlane.f32.xlu1 %v353_v21 }
 0x3f8   :  { %v356_v22 = vsel %vm303_vm3, %v352_v19, -inf }
 0x3fb   :  { %357 = vmax.xlane.f32.xlu1 %v356_v22 }
 0x484   :  { %v355_v23 = vpop.xlane.xlu1 %354 }
 0x485   :  { %v359_v24 = vsub.f32 %v351_v16, %v355_v23 }
 0x487   :  { %v361_v25 = vmul.f32 1.442695, %v359_v24 }
 0x488   :  { %v358_v27 = vpop.xlane.xlu1 %357 }
 0x489   :  { %10824 = vpow2.f32 %v361_v25  ;;  %v360_v28 = vsub.f32 %v352_v19, %v358_v27 }
 0x48b   :  { %v363_v30 = vmul.f32 1.442695, %v360_v28 }
 0x48d   :  { %10826 = vpow2.f32 %v363_v30 }
 0x493   :  { %v10825_v31 = vpop.eup %10824 }
 0x494   :  { %v365_v32 = vsel %vm303_vm3, %v10825_v31, 0.0 }
 0x495   :  { %366 = vadd.xlane.f32.xlu1 %v365_v32 }
 0x497   :  { %v10827_v33 = vpop.eup %10826 }
 0x498   :  { %v368_v34 = vsel %vm303_vm3, %v10827_v33, 0.0 }
 0x499   :  { %369 = vadd.xlane.f32.xlu1 %v368_v34 }
 0x4aa   :  { %376 = vrot.lane.b32.xlu1 %v11153_v12, %s11030_s22 }
 0x522   :  { %v367_v35 = vpop.xlane.xlu1 %366 }
 0x523   :  { %10828 = vrcp.f32 %v367_v35 }
 0x526   :  { %v370_v36 = vpop.xlane.xlu1 %369 }
 0x527   :  { %10830 = vrcp.f32 %v370_v36 }
 0x52a   :  { %v377_v38 = vpop.permute.xlu1 %376 }
 0x52b   :  { %9714 = vmatpush3.bf16.msra.mxu1 %v377_v38 }
 0x52c   :  { %9719 = vmatprep.subr.bf16.mxu1 %v11033_v37 }
 0x52d   :  { %v10829_v39 = vpop.eup %10828 }
 0x52e   :  { %v373_v41 = vmul.f32 %v10829_v39, %v10825_v31  ;;  %v8954_v31 = vld [vmem:[%s12418_s2 + $0x30] ss:$0 sm:$0xff] }
 0x531   :  { %v10831_v40 = vpop.eup %10830 }
 0x532   :  { %v374_v42 = vmul.f32 %v10831_v40, %v10827_v33 }
 0x534   :  { %v375_v44 = vpack.c.bf16 %v374_v42, %v373_v41 }
 0x536   :  { %9716 = vmatmul.mubr.msk.bf16.vlgmr.msra.gmra.mrb[8].mxu1 %vm303_vm3, %v375_v44  ;;  %v10629_v44 = vld [vmem:[#allocation2 + $0x80] sm:$0xff]  }
 0x537   :  { %9720 = vmatpush3.bf16.xpose.msra.mxu1 %v434_v45  ;;  %9721 = vmatprep.mubr.msk.bf16.mxu1 %vm11034_vm2, %v11033_v37  ;;  %v10630_v45 = vld [vmem:[#allocation2 + $0x88] sm:$0xff]  }
 0x538   :  { %9725 = vmatprep.subr.bf16.mxu1 %v11033_v37 }
 0x53e   :  { %9722 = vmatmul.mubr.msk.bf16.vlgmr.msra.gmra.mrb[12].mxu1 %vm303_vm3, %v427_v46 }
 0x53f   :  { %9727 = vmatprep.mubr.msk.bf16.mxu1 %vm11034_vm2, %v11033_v37 }
 0x609   :  { %v416_v48 = vpop.f32.mrb[8].mxu1 }
 0x60a   :  { %v9717_v49 = vpop.f32.mrb[9].mxu1 }
 0x60b   :  { %v419_v50 = vpop.f32.mrb[10].mxu1 }
 0x60c   :  { %v425_v51 = vpack.c.bf16 %v419_v50, %v416_v48  ;;  %v9718_v52 = vpop.f32.mrb[11].mxu1 }
 0x60e   :  { %9740 = vmatmul.mubr.msk.bf16.vlgmr.msra.gmra.mrb[4].mxu0 %vm303_vm3, %v425_v51 }
 0x60f   :  { %9767 = vmatprep.mubr.msk.bf16.mxu0 %vm11034_vm2, %v11033_v37 }
 0x611   :  { %v470_v53 = vpop.f32.mrb[12].mxu1 }
 0x612   :  { %v477_v54 = vmul.f32 0.25, %v470_v53  ;;  %v9723_v55 = vpop.f32.mrb[13].mxu1 }
 0x613   :  { %v473_v56 = vpop.f32.mrb[14].mxu1 }
 0x614   :  { %v478_v57 = vmul.f32 0.25, %v473_v56  ;;  %v9724_v58 = vpop.f32.mrb[15].mxu1  ;;  %v479_v59 = vsel %vm303_vm3, %v477_v54, -inf }
 0x615   :  { %480 = vmax.xlane.f32.xlu0 %v479_v59 }
 0x616   :  { %v482_v60 = vsel %vm303_vm3, %v478_v57, -inf }
 0x617   :  { %483 = vmax.xlane.f32.xlu1 %v482_v60 }
 0x6a2   :  { %v481_v61 = vpop.xlane.xlu0 %480 }
 0x6a3   :  { %v485_v62 = vsub.f32 %v477_v54, %v481_v61 }
 0x6a4   :  { %v484_v63 = vpop.xlane.xlu1 %483 }
 0x6a5   :  { %v487_v1 = vmul.f32 1.442695, %v485_v62  ;;  %v486_v2 = vsub.f32 %v478_v57, %v484_v63 }
 0x6a7   :  { %10832 = vpow2.f32 %v487_v1  ;;  %v489_v3 = vmul.f32 1.442695, %v486_v2  ;;  %v8955_v2 = vld [vmem:[%s12418_s2 + $0x38] ss:$0 sm:$0xff] }
 0x6a9   :  { %10834 = vpow2.f32 %v489_v3 }
 0x6b1   :  { %v10833_v4 = vpop.eup %10832 }
 0x6b2   :  { %v491_v5 = vsel %vm303_vm3, %v10833_v4, 0.0 }
 0x6b3   :  { %v10835_v6 = vpop.eup %10834  ;;  %492 = vadd.xlane.f32.xlu0 %v491_v5 }
 0x6b4   :  { %v494_v7 = vsel %vm303_vm3, %v10835_v6, 0.0 }
 0x6b7   :  { %495 = vadd.xlane.f32.xlu0 %v494_v7  ;;  %v8956_v7 = vld [vmem:[%s12418_s2 + $0x40] ss:$0 sm:$0xff] }
 0x6cd   :  { %502 = vrot.lane.b32.xlu0 %v11153_v12, %s11038_s23  ;;  %v10628_v12 = vld [vmem:[#allocation2 + $0x78] sm:$0xff]  }
 0x6e1   :  { %v645_v8 = vpop.f32.mrb[4].mxu0 }
 0x6e2   :  { %v9741_v9 = vpop.f32.mrb[5].mxu0 }
 0x6e3   :  { %v648_v10 = vpop.f32.mrb[6].mxu0 }
 0x6e4   :  { %v9742_v11 = vpop.f32.mrb[7].mxu0 }
 0x740   :  { %v493_v13 = vpop.xlane.xlu0 %492 }
 0x741   :  { %10836 = vrcp.f32 %v493_v13  ;;  %v10631_v13 = vld [vmem:[#allocation2 + $0x90] sm:$0xff]  }
 0x742   :  { %9752 = vmatpush3.bf16.msra.mxu0 %v10631_v13 }
 0x743   :  { %9753 = vmatprep.subr.bf16.mxu0 %v11033_v37 }
 0x744   :  { %v496_v14 = vpop.xlane.xlu0 %495 }
 0x745   :  { %10838 = vrcp.f32 %v496_v14  ;;  %v10632_v14 = vld [vmem:[#allocation2 + $0x98] sm:$0xff]  }
 0x746   :  { %9754 = vmatpush3.bf16.msra.mxu0 %v10632_v14 }
 0x747   :  { %9755 = vmatprep.subr.bf16.mxu0 %v11033_v37 }
 0x748   :  { %v503_v15 = vpop.permute.xlu0 %502 }
 0x749   :  { %9726 = vmatpush3.bf16.msra.mxu1 %v503_v15  ;;  %v10633_v15 = vld [vmem:[#allocation2 + $0xa0] sm:$0xff]  }
 0x74a   :  { %9731 = vmatprep.subr.bf16.mxu1 %v11033_v37  ;;  %9756 = vmatpush3.bf16.msra.mxu0 %v10633_v15 }
 0x74b   :  { %v10837_v16 = vpop.eup %10836  ;;  %9757 = vmatprep.subr.bf16.mxu0 %v11033_v37 }
 0x74c   :  { %v499_v18 = vmul.f32 %v10837_v16, %v10833_v4  ;;  %v10634_v16 = vld [vmem:[#allocation2 + $0xa8] sm:$0xff]  }
 0x74e   :  { %9758 = vmatpush3.bf16.msra.mxu0 %v10634_v16 }
 0x74f   :  { %v10839_v17 = vpop.eup %10838  ;;  %9759 = vmatprep.subr.bf16.mxu0 %v11033_v37 }
 0x750   :  { %v500_v19 = vmul.f32 %v10839_v17, %v10835_v6  ;;  %v10635_v17 = vld [vmem:[#allocation2 + $0xb0] sm:$0xff]  }
 0x752   :  { %v501_v20 = vpack.c.bf16 %v500_v19, %v499_v18  ;;  %9760 = vmatpush3.bf16.msra.mxu0 %v10635_v17  ;;  %v10636_v18 = vld [vmem:[#allocation2 + $0xb8] sm:$0xff]   ;;  %v10637_v19 = vld [vmem:[#allocation2 + $0xc0] sm:$0xff]  }
 0x753   :  { %9761 = vmatprep.subr.bf16.mxu0 %v11033_v37 }
 0x754   :  { %9728 = vmatmul.mubr.msk.bf16.vlgmr.msra.gmra.mrb[16].mxu1 %vm303_vm3, %v501_v20  ;;  %v10638_v20 = vld [vmem:[#allocation2 + $0xc8] sm:$0xff]  }
 0x755   :  { %9733 = vmatprep.mubr.msk.bf16.mxu1 %vm11034_vm2, %v11033_v37  ;;  %9732 = vmatpush3.bf16.msra.mxu1 %v10628_v12  ;;  %v8957_v12 = vld [vmem:[%s12418_s2 + $0x48] ss:$0 sm:$0xff] }
 0x756   :  { %9743 = vmatprep.subr.bf16.mxu1 %v11033_v37  ;;  %9762 = vmatpush3.bf16.msra.mxu0 %v10636_v18 }
 0x757   :  { %9763 = vmatprep.subr.bf16.mxu0 %v11033_v37 }
 0x75a   :  { %9764 = vmatpush3.bf16.msra.mxu0 %v10637_v19 }
 0x75b   :  { %9765 = vmatprep.subr.bf16.mxu0 %v11033_v37 }
 0x75e   :  { %9766 = vmatpush3.bf16.msra.mxu0 %v10638_v20 }
 0x75f   :  { %9797 = vmatprep.subr.bf16.mxu0 %v11033_v37 }
 0x827   :  { %v542_v21 = vpop.f32.mrb[16].mxu1 }
 0x828   :  { %v9729_v22 = vpop.f32.mrb[17].mxu1 }
 0x829   :  { %v545_v23 = vpop.f32.mrb[18].mxu1 }
 0x82a   :  { %v551_v24 = vpack.c.bf16 %v545_v23, %v542_v21  ;;  %v9730_v25 = vpop.f32.mrb[19].mxu1 }
 0x82c   :  { %9734 = vmatmul.mubr.msk.bf16.vlgmr.msra.gmra.mrb[20].mxu1 %vm303_vm3, %v551_v24 }
 0x82d   :  { %9747 = vmatprep.mubr.msk.bf16.mxu1 %vm11034_vm2, %v11033_v37  ;;  %9744 = vmatpush3.bf16.msra.mxu1 %v10629_v44 }
 0x82e   :  { %9745 = vmatprep.subr.bf16.mxu1 %v11033_v37 }
 0x831   :  { %9746 = vmatpush3.bf16.msra.mxu1 %v10630_v45 }
 0x832   :  { %9771 = vmatprep.subr.bf16.mxu1 %v11033_v37 }
 0x8ff   :  { %v595_v27 = vpop.f32.mrb[20].mxu1 }
 0x900   :  { %v646_v28 = vadd.f32 %v645_v8, %v595_v27  ;;  %v9735_v30 = vpop.f32.mrb[21].mxu1 }
 0x901   :  { %v598_v32 = vpop.f32.mrb[22].mxu1 }
 0x902   :  { %v652_v33 = vadd.f32 %v646_v28, %v11113_v26  ;;  %v649_v34 = vadd.f32 %v648_v10, %v598_v32  ;;  %v9736_v35 = vpop.f32.mrb[23].mxu1 }
 0x904   :  { %v11204_v36 = vadd.f32 %v8954_v31, %v652_v33  ;;  %v653_v38 = vadd.f32 %v649_v34, %v11115_v29 }
 0x906   :  { %v11207_v39 = vadd.f32 %v8954_v31, %v653_v38  ;;  %v663_v40 = vsel %vm187_vm1, %v11204_v36, 0.0  ;;  %v671_v42 = vmul.f32 %v11204_v36, %v11204_v36 }
 0x907   :  { %664 = vadd.xlane.f32.xlu1 %v663_v40 }
 0x908   :  { %v666_v41 = vsel %vm187_vm1, %v11207_v39, 0.0  ;;  %v673_v26 = vsel %vm187_vm1, %v671_v42, 0.0  ;;  %v672_v43 = vmul.f32 %v11207_v39, %v11207_v39 }
 0x90a   :  { %v676_v29 = vsel %vm187_vm1, %v672_v43, 0.0 }
 0x90b   :  { %667 = vadd.xlane.f32.xlu1 %v666_v41 }
 0x90f   :  { %674 = vadd.xlane.f32.xlu1 %v673_v26 }
 0x913   :  { %677 = vadd.xlane.f32.xlu1 %v676_v29 }
 0x994   :  { %v665_v46 = vpop.xlane.xlu1 %664 }
 0x995   :  { %v669_v48 = vmul.f32 0.03125, %v665_v46 }
 0x997   :  { %v681_v50 = vmul.f32 %v669_v48, %v669_v48  ;;  %v687_v62 = vsub.f32 %v11204_v36, %v669_v48 }
 0x998   :  { %v668_v47 = vpop.xlane.xlu1 %667 }
 0x999   :  { %v670_v51 = vmul.f32 0.03125, %v668_v47 }
 0x99b   :  { %v682_v55 = vmul.f32 %v670_v51, %v670_v51  ;;  %v688_v3 = vsub.f32 %v11207_v39, %v670_v51 }
 0x99c   :  { %v675_v49 = vpop.xlane.xlu1 %674 }
 0x99d   :  { %v679_v52 = vmul.f32 0.03125, %v675_v49 }
 0x99f   :  { %v683_v53 = vsub.f32 %v679_v52, %v681_v50 }
 0x9a0   :  { %v678_v54 = vpop.xlane.xlu1 %677 }
 0x9a1   :  { %v685_v56 = vmax.f32 %v683_v53, 0.0  ;;  %v680_v57 = vmul.f32 0.03125, %v678_v54 }
 0x9a3   :  { %v689_v58 = vadd.f32 1e-06, %v685_v56  ;;  %v684_v59 = vsub.f32 %v680_v57, %v682_v55 }
 0x9a5   :  { %10840 = vrsqrt.f32 %v689_v58  ;;  %v686_v60 = vmax.f32 %v684_v59, 0.0 }
 0x9a7   :  { %v690_v61 = vadd.f32 1e-06, %v686_v60 }
 0x9a9   :  { %10842 = vrsqrt.f32 %v690_v61 }
 0x9af   :  { %v10841_v63 = vpop.eup %10840 }
 0x9b0   :  { %v693_v1 = vmul.f32 %v10841_v63, %v687_v62 }
 0x9b2   :  { %v699_v6 = vmul.f32 %v8955_v2, %v693_v1 }
 0x9b3   :  { %v10843_v4 = vpop.eup %10842 }
 0x9b4   :  { %v694_v5 = vmul.f32 %v10843_v4, %v688_v3  ;;  %v705_v9 = vadd.f32 %v8956_v7, %v699_v6 }
 0x9b6   :  { %v700_v8 = vmul.f32 %v8955_v2, %v694_v5  ;;  %v11039_v5 = vmov 1.0  }
 0x9b8   :  { %v706_v10 = vadd.f32 %v8956_v7, %v700_v8 }
 0x9ba   :  { %v711_v11 = vpack.c.bf16 %v706_v10, %v705_v9 }
 0x9bc   :  { %9748 = vmatmul.mubr.msk.bf16.vlgmr.msra.gmra.mrb[24].mxu1 %vm187_vm1, %v711_v11 }
 0x9bd   :  { %9775 = vmatprep.mubr.msk.bf16.mxu1 %vm11034_vm2, %v11033_v37 }
 0xa8f   :  { %v766_v21 = vpop.f32.mrb[24].mxu1 }
 0xa90   :  { %v767_v22 = vadd.f32 %v8957_v12, %v766_v21  ;;  %v9749_v23 = vpop.f32.mrb[25].mxu1 }
 0xa91   :  { %v769_v24 = vpop.f32.mrb[26].mxu1 }
 0xa92   :  { %v775_v25 = vmul.f32 0.70710677, %v767_v22  ;;  %v770_v27 = vadd.f32 %v8957_v12, %v769_v24  ;;  %v9750_v28 = vpop.f32.mrb[27].mxu1  ;;  %v773_v14 = vmul.f32 0.5, %v767_v22  ;;  %v8969_v12 = vld [vmem:[%s12418_s2 + $0x50] ss:$0 sm:$0xff] }
 0xa94   :  { %v781_v30 = vand.u32 2147483647, %v775_v25  ;;  %v776_v31 = vmul.f32 0.70710677, %v770_v27  ;;  %vm777_vm4 = vcmp.lt.f32.partialorder %v775_v25, 0.0  ;;  %v774_v15 = vmul.f32 0.5, %v770_v27 }
 0xa95   :  { %v779_v6 = vsel %vm777_vm4, -1.0, %v11039_v5 }
 0xa96   :  { %v783_v32 = vmul.f32 0.3275911, %v781_v30  ;;  %v782_v33 = vand.u32 2147483647, %v776_v31  ;;  %v809_v40 = vsub.f32 0.0, %v781_v30  ;;  %vm778_vm5 = vcmp.lt.f32.partialorder %v776_v31, 0.0 }
 0xa97   :  { %v780_v10 = vsel %vm778_vm5, -1.0, %v11039_v5  ;;  %vm8661_vm5 = vcmask 31744  }
 0xa98   :  { %v785_v34 = vadd.f32 1.0, %v783_v32  ;;  %v784_v35 = vmul.f32 0.3275911, %v782_v33  ;;  %v810_v41 = vsub.f32 0.0, %v782_v33  ;;  %v811_v26 = vmul.f32 %v809_v40, %v781_v30 }
 0xa9a   :  { %10844 = vrcp.f32 %v785_v34  ;;  %v786_v38 = vadd.f32 1.0, %v784_v35  ;;  %v812_v45 = vmul.f32 %v810_v41, %v782_v33  ;;  %v813_v46 = vmul.f32 1.442695, %v811_v26  ;;  %v10639_v34 = vld [vmem:[#allocation2 + $0xd0] sm:$0xff]   ;;  %v10640_v35 = vld [vmem:[#allocation2 + $0xd8] sm:$0xff]  }
 0xa9b   :  { %9772 = vmatpush3.bf16.msra.mxu1 %v10639_v34 }
 0xa9c   :  { %10846 = vrcp.f32 %v786_v38  ;;  %v815_v51 = vmul.f32 1.442695, %v812_v45  ;;  %9773 = vmatprep.subr.bf16.mxu1 %v11033_v37 }
 0xa9d   :  { %10848 = vpow2.f32 %v813_v46 }
 0xa9e   :  { %10850 = vpow2.f32 %v815_v51 }
 0xa9f   :  { %9774 = vmatpush3.bf16.msra.mxu1 %v10640_v35 }
 0xaa0   :  { %9779 = vmatprep.subr.bf16.mxu1 %v11033_v37 }
 0xaa4   :  { %v10845_v42 = vpop.eup %10844 }
 0xaa5   :  { %v791_v43 = vmul.f32 1.0614054, %v10845_v42 }
 0xaa6   :  { %v10847_v29 = vpop.eup %10846 }
 0xaa7   :  { %v793_v44 = vadd.f32 -1.4531521, %v791_v43  ;;  %v792_v47 = vmul.f32 1.0614054, %v10847_v29  ;;  %v10849_v62 = vpop.eup %10848 }
 0xaa8   :  { %v10851_v3 = vpop.eup %10850 }
 0xaa9   :  { %v795_v48 = vmul.f32 %v10845_v42, %v793_v44  ;;  %v794_v49 = vadd.f32 -1.4531521, %v792_v47 }
 0xaab   :  { %v797_v50 = vadd.f32 1.4214138, %v795_v48  ;;  %v796_v52 = vmul.f32 %v10847_v29, %v794_v49 }
 0xaad   :  { %v799_v53 = vmul.f32 %v10845_v42, %v797_v50  ;;  %v798_v54 = vadd.f32 1.4214138, %v796_v52 }
 0xaaf   :  { %v801_v55 = vadd.f32 -0.28449672, %v799_v53  ;;  %v800_v56 = vmul.f32 %v10847_v29, %v798_v54 }
 0xab1   :  { %v803_v57 = vmul.f32 %v10845_v42, %v801_v55  ;;  %v802_v58 = vadd.f32 -0.28449672, %v800_v56  ;;  %v8970_v56 = vld [vmem:[%s12418_s2 + $0x58] ss:$0 sm:$0xff] }
 0xab3   :  { %v805_v59 = vadd.f32 0.2548296, %v803_v57  ;;  %v804_v60 = vmul.f32 %v10847_v29, %v802_v58 }
 0xab5   :  { %v807_v61 = vmul.f32 %v10845_v42, %v805_v59  ;;  %v806_v63 = vadd.f32 0.2548296, %v804_v60 }
 0xab7   :  { %v817_v1 = vmul.f32 %v10849_v62, %v807_v61  ;;  %v808_v2 = vmul.f32 %v10847_v29, %v806_v63  ;;  %v8971_v61 = vld [vmem:[%s12418_s2 + $0x60] ss:$0 sm:$0xff] }
 0xab9   :  { %v819_v4 = vsub.f32 1.0, %v817_v1  ;;  %v818_v7 = vmul.f32 %v10851_v3, %v808_v2  ;;  %v8972_v3 = vld [vmem:[%s12418_s2 + $0x68] ss:$0 sm:$0xff] }
 0xabb   :  { %v821_v8 = vmul.f32 %v819_v4, %v779_v6  ;;  %v820_v9 = vsub.f32 1.0, %v818_v7 }
 0xabd   :  { %v823_v11 = vadd.f32 1.0, %v821_v8  ;;  %v822_v13 = vmul.f32 %v820_v9, %v780_v10 }
 0xabf   :  { %v824_v16 = vadd.f32 1.0, %v822_v13  ;;  %v825_v17 = vmul.f32 %v823_v11, %v773_v14 }
 0xac1   :  { %v826_v18 = vmul.f32 %v824_v16, %v774_v15 }
 0xac3   :  { %v843_v19 = vpack.c.bf16 %v826_v18, %v825_v17 }
 0xac5   :  { %9768 = vmatmul.mubr.bf16.vlgmr.msra.gmra.mrb[8].mxu0 %v843_v19 }
 0xac6   :  { %9799 = vmatprep.mubr.msk.bf16.mxu0 %vm11034_vm2, %v11033_v37 }
 0xb98   :  { %v926_v20 = vpop.f32.mrb[8].mxu0 }
 0xb99   :  { %v933_v21 = vadd.f32 %v926_v20, %v11204_v36  ;;  %v9769_v23 = vpop.f32.mrb[9].mxu0 }
 0xb9a   :  { %v929_v24 = vpop.f32.mrb[10].mxu0 }
 0xb9b   :  { %v11251_v25 = vadd.f32 %v8969_v12, %v933_v21  ;;  %v934_v22 = vadd.f32 %v929_v24, %v11207_v39  ;;  %v9770_v27 = vpop.f32.mrb[11].mxu0 }
 0xb9d   :  { %v11254_v28 = vadd.f32 %v8969_v12, %v934_v22  ;;  %v944_v30 = vsel %vm187_vm1, %v11251_v25, 0.0  ;;  %v952_v31 = vmul.f32 %v11251_v25, %v11251_v25 }
 0xb9e   :  { %945 = vadd.xlane.f32.xlu1 %v944_v30 }
 0xb9f   :  { %v954_v32 = vsel %vm187_vm1, %v952_v31, 0.0  ;;  %v947_v36 = vsel %vm187_vm1, %v11254_v28, 0.0  ;;  %v953_v33 = vmul.f32 %v11254_v28, %v11254_v28 }
 0xba0   :  { %955 = vadd.xlane.f32.xlu0 %v954_v32 }
 0xba1   :  { %v957_v39 = vsel %vm187_vm1, %v953_v33, 0.0 }
 0xba2   :  { %948 = vadd.xlane.f32.xlu1 %v947_v36 }
 0xba6   :  { %958 = vadd.xlane.f32.xlu1 %v957_v39 }
 0xc2b   :  { %v946_v38 = vpop.xlane.xlu1 %945 }
 0xc2c   :  { %v950_v40 = vmul.f32 0.03125, %v946_v38 }
 0xc2d   :  { %v956_v41 = vpop.xlane.xlu0 %955 }
 0xc2e   :  { %v962_v42 = vmul.f32 %v950_v40, %v950_v40  ;;  %v960_v26 = vmul.f32 0.03125, %v956_v41  ;;  %v968_v54 = vsub.f32 %v11251_v25, %v950_v40 }
 0xc2f   :  { %v949_v43 = vpop.xlane.xlu1 %948 }
 0xc30   :  { %v964_v29 = vsub.f32 %v960_v26, %v962_v42  ;;  %v951_v44 = vmul.f32 0.03125, %v949_v43 }
 0xc32   :  { %v966_v45 = vmax.f32 %v964_v29, 0.0  ;;  %v963_v48 = vmul.f32 %v951_v44, %v951_v44  ;;  %v969_v57 = vsub.f32 %v11254_v28, %v951_v44 }
 0xc33   :  { %v959_v46 = vpop.xlane.xlu1 %958 }
 0xc34   :  { %v970_v47 = vadd.f32 1e-06, %v966_v45  ;;  %v961_v49 = vmul.f32 0.03125, %v959_v46 }
 0xc36   :  { %10852 = vrsqrt.f32 %v970_v47  ;;  %v965_v50 = vsub.f32 %v961_v49, %v963_v48 }
 0xc38   :  { %v967_v51 = vmax.f32 %v965_v50, 0.0 }
 0xc3a   :  { %v971_v52 = vadd.f32 1e-06, %v967_v51 }
 0xc3c   :  { %10854 = vrsqrt.f32 %v971_v52 }
 0xc40   :  { %v10853_v53 = vpop.eup %10852 }
 0xc41   :  { %v974_v55 = vmul.f32 %v10853_v53, %v968_v54 }
 0xc43   :  { %v980_v60 = vmul.f32 %v8970_v56, %v974_v55 }
 0xc45   :  { %v986_v63 = vadd.f32 %v8971_v61, %v980_v60 }
 0xc46   :  { %v10855_v58 = vpop.eup %10854 }
 0xc47   :  { %v975_v59 = vmul.f32 %v10855_v58, %v969_v57 }
 0xc49   :  { %v981_v62 = vmul.f32 %v8970_v56, %v975_v59 }
 0xc4b   :  { %v987_v1 = vadd.f32 %v8971_v61, %v981_v62 }
 0xc4d   :  { %v992_v2 = vpack.c.bf16 %v987_v1, %v986_v63 }
 0xc4f   :  { %9776 = vmatmul.mubr.msk.bf16.vlgmr.msra.gmra.mrb[28].mxu1 %vm187_vm1, %v992_v2 }
 0xc50   :  { %9781 = vmatprep.mubr.msk.bf16.mxu1 %vm11034_vm2, %v11033_v37 }
 0xd22   :  { %v1047_v4 = vpop.f32.mrb[28].mxu1 }
 0xd23   :  { %v9777_v6 = vpop.f32.mrb[29].mxu1  ;;  %v1048_v8 = vadd.f32 %v8972_v3, %v1047_v4 }
 0xd24   :  { %v1050_v7 = vpop.f32.mrb[30].mxu1 }
 0xd25   :  { %v1051_v9 = vadd.f32 %v8972_v3, %v1050_v7  ;;  %v9778_v10 = vpop.f32.mrb[31].mxu1 }
 0xd27   :  { %v11282_v11 = vpack.c.bf16 %v1051_v9, %v1048_v8 }
 0xd29   :  { %1056 = vrot.lane.b32.xlu1 %v11282_v11, %s11035_s19 }
 0xd9b   :  { %v1057_v13 = vpop.permute.xlu1 %1056 }
 0xd9c   :  { %v1062_v14 = vsel %vm303_vm3, %v1057_v13, 0 }
 0xd9d   :  { %9780 = vmatpush3.bf16.xpose.msra.mxu1 %v1062_v14 }
 0xd9e   :  { %9785 = vmatprep.subr.bf16.mxu1 %v11033_v37 }
 0xda4   :  { %9782 = vmatmul.mubr.msk.bf16.vlgmr.msra.gmra.mrb[32].mxu1 %vm303_vm3, %v11282_v11 }
 0xda5   :  { %9787 = vmatprep.mubr.msk.bf16.mxu1 %vm11034_vm2, %v11033_v37 }
 0xe77   :  { %v1098_v15 = vpop.f32.mrb[32].mxu1 }
 0xe78   :  { %v1105_v16 = vmul.f32 0.25, %v1098_v15  ;;  %v9783_v17 = vpop.f32.mrb[33].mxu1 }
 0xe79   :  { %v1101_v18 = vpop.f32.mrb[34].mxu1 }
 0xe7a   :  { %v1106_v19 = vmul.f32 0.25, %v1101_v18  ;;  %v9784_v20 = vpop.f32.mrb[35].mxu1  ;;  %v1107_v12 = vsel %vm303_vm3, %v1105_v16, -inf }
 0xe7b   :  { %1108 = vmax.xlane.f32.xlu1 %v1107_v12 }
 0xe7c   :  { %v1110_v21 = vsel %vm303_vm3, %v1106_v19, -inf }
 0xe7d   :  { %1111 = vmax.xlane.f32.xlu0 %v1110_v21 }
 0xe8c   :  { %1182 = vrot.lane.b32.xlu1 %v11282_v11, %s11036_s20  ;;  %s11041_s20 = smov 120  }
 0xf08   :  { %v1109_v23 = vpop.xlane.xlu1 %1108 }
 0xf09   :  { %v1113_v24 = vsub.f32 %v1105_v16, %v1109_v23  ;;  %v10641_v16 = vld [vmem:[#allocation2 + $0xe0] sm:$0xff]  }
 0xf0a   :  { %v1112_v22 = vpop.xlane.xlu0 %1111 }
 0xf0b   :  { %v1115_v27 = vmul.f32 1.442695, %v1113_v24  ;;  %v1114_v30 = vsub.f32 %v1106_v19, %v1112_v22 }
 0xf0c   :  { %v1183_v43 = vpop.permute.xlu1 %1182 }
 0xf0d   :  { %10856 = vpow2.f32 %v1115_v27  ;;  %v1117_v31 = vmul.f32 1.442695, %v1114_v30  ;;  %v1188_v44 = vsel %vm303_vm3, %v1183_v43, 0 }
 0xf0f   :  { %10858 = vpow2.f32 %v1117_v31 }
 0xf17   :  { %v10857_v32 = vpop.eup %10856 }
 0xf18   :  { %v1119_v36 = vsel %vm303_vm3, %v10857_v32, 0.0 }
 0xf19   :  { %v10859_v33 = vpop.eup %10858  ;;  %1120 = vadd.xlane.f32.xlu0 %v1119_v36  ;;  %v8984_v36 = vld [vmem:[%s12418_s2 + $0x70] ss:$0 sm:$0xff] }
 0xf1a   :  { %v1122_v39 = vsel %vm303_vm3, %v10859_v33, 0.0 }
 0xf1d   :  { %1123 = vadd.xlane.f32.xlu0 %v1122_v39 }
 0xf33   :  { %1130 = vrot.lane.b32.xlu0 %v11282_v11, %s11030_s22 }
 0xf37   :  { %1180 = vrot.lane.b32.xlu0 %v11282_v11, %s11037_s21 }
 0xfa6   :  { %v1121_v34 = vpop.xlane.xlu0 %1120 }
 0xfa7   :  { %10860 = vrcp.f32 %v1121_v34 }
 0xfaa   :  { %v1124_v35 = vpop.xlane.xlu0 %1123 }
 0xfab   :  { %10862 = vrcp.f32 %v1124_v35 }
 0xfae   :  { %v1131_v38 = vpop.permute.xlu0 %1130 }
 0xfaf   :  { %9786 = vmatpush3.bf16.msra.mxu1 %v1131_v38 }
 0xfb0   :  { %9791 = vmatprep.subr.bf16.mxu1 %v11033_v37 }
 0xfb1   :  { %v10861_v40 = vpop.eup %10860 }
 0xfb2   :  { %v1127_v42 = vmul.f32 %v10861_v40, %v10857_v32  ;;  %v1181_v45 = vpop.permute.xlu0 %1180 }
 0xfb5   :  { %v10863_v41 = vpop.eup %10862 }
 0xfb6   :  { %v1128_v26 = vmul.f32 %v10863_v41, %v10859_v33 }
 0xfb8   :  { %v1129_v29 = vpack.c.bf16 %v1128_v26, %v1127_v42 }
 0xfba   :  { %9788 = vmatmul.mubr.msk.bf16.vlgmr.msra.gmra.mrb[36].mxu1 %vm303_vm3, %v1129_v29 }
 0xfbb   :  { %9792 = vmatpush3.bf16.xpose.msra.mxu1 %v1188_v44  ;;  %9793 = vmatprep.mubr.msk.bf16.mxu1 %vm11034_vm2, %v11033_v37  ;;  %v10643_v44 = vld [vmem:[#allocation2 + $0xf0] sm:$0xff]  }
 0xfbc   :  { %9803 = vmatprep.subr.bf16.mxu1 %v11033_v37 }
 0xfc2   :  { %9794 = vmatmul.mubr.msk.bf16.vlgmr.msra.gmra.mrb[40].mxu1 %vm303_vm3, %v1181_v45  ;;  %v10644_v45 = vld [vmem:[#allocation2 + $0xf8] sm:$0xff]  }
 0xfc3   :  { %9805 = vmatprep.mubr.msk.bf16.mxu1 %vm11034_vm2, %v11033_v37 }
0x108d   :  { %v1170_v46 = vpop.f32.mrb[36].mxu1 }
0x108e   :  { %v9789_v47 = vpop.f32.mrb[37].mxu1 }
0x108f   :  { %v1173_v48 = vpop.f32.mrb[38].mxu1 }
0x1090   :  { %v1179_v49 = vpack.c.bf16 %v1173_v48, %v1170_v46  ;;  %v9790_v50 = vpop.f32.mrb[39].mxu1 }
0x1095   :  { %v1224_v51 = vpop.f32.mrb[40].mxu1 }
0x1096   :  { %v1231_v52 = vmul.f32 0.25, %v1224_v51  ;;  %v9795_v53 = vpop.f32.mrb[41].mxu1 }
0x1097   :  { %v1227_v54 = vpop.f32.mrb[42].mxu1 }
0x1098   :  { %v1232_v55 = vmul.f32 0.25, %v1227_v54  ;;  %v9796_v56 = vpop.f32.mrb[43].mxu1  ;;  %v1233_v57 = vsel %vm303_vm3, %v1231_v52, -inf }
0x1099   :  { %1234 = vmax.xlane.f32.xlu0 %v1233_v57 }
0x109a   :  { %v1236_v58 = vsel %vm303_vm3, %v1232_v55, -inf }
0x109b   :  { %1237 = vmax.xlane.f32.xlu1 %v1236_v58 }
0x1126   :  { %v1235_v59 = vpop.xlane.xlu0 %1234 }
0x1127   :  { %v1239_v60 = vsub.f32 %v1231_v52, %v1235_v59 }
0x1128   :  { %v1238_v61 = vpop.xlane.xlu1 %1237 }
0x1129   :  { %v1241_v62 = vmul.f32 1.442695, %v1239_v60  ;;  %v1240_v63 = vsub.f32 %v1232_v55, %v1238_v61 }
0x112b   :  { %10864 = vpow2.f32 %v1241_v62  ;;  %v1243_v1 = vmul.f32 1.442695, %v1240_v63 }
0x112d   :  { %10866 = vpow2.f32 %v1243_v1 }
0x1135   :  { %v10865_v2 = vpop.eup %10864 }
0x1136   :  { %v1245_v3 = vsel %vm303_vm3, %v10865_v2, 0.0 }
0x1137   :  { %v10867_v4 = vpop.eup %10866  ;;  %1246 = vadd.xlane.f32.xlu0 %v1245_v3 }
0x1138   :  { %v1248_v6 = vsel %vm303_vm3, %v10867_v4, 0.0 }
0x113b   :  { %1249 = vadd.xlane.f32.xlu0 %v1248_v6 }
0x1151   :  { %1256 = vrot.lane.b32.xlu0 %v11282_v11, %s11038_s23  ;;  %v10642_v11 = vld [vmem:[#allocation2 + $0xe8] sm:$0xff]  }
0x1152   :  { %9804 = vmatpush3.bf16.msra.mxu1 %v10642_v11  ;;  %v10648_v11 = vld [vmem:[#allocation2 + $0x118] sm:$0xff]  }
0x1153   :  { %9815 = vmatprep.subr.bf16.mxu1 %v11033_v37 }
0x11c4   :  { %v1247_v7 = vpop.xlane.xlu0 %1246 }
0x11c5   :  { %10868 = vrcp.f32 %v1247_v7 }
0x11c8   :  { %v1250_v8 = vpop.xlane.xlu0 %1249 }
0x11c9   :  { %10870 = vrcp.f32 %v1250_v8  ;;  %v8986_v8 = vld [vmem:[%s12418_s2 + $0x80] ss:$0 sm:$0xff] }
0x11cc   :  { %v1257_v9 = vpop.permute.xlu0 %1256 }
0x11cd   :  { %9798 = vmatpush3.bf16.msra.mxu0 %v1257_v9 }
0x11ce   :  { %9809 = vmatprep.subr.bf16.mxu0 %v11033_v37 }
0x11cf   :  { %v10869_v10 = vpop.eup %10868 }
0x11d0   :  { %v1253_v14 = vmul.f32 %v10869_v10, %v10865_v2  ;;  %v8985_v2 = vld [vmem:[%s12418_s2 + $0x78] ss:$0 sm:$0xff] }
0x11d3   :  { %v10871_v13 = vpop.eup %10870 }
0x11d4   :  { %v1254_v15 = vmul.f32 %v10871_v13, %v10867_v4 }
0x11d6   :  { %v1255_v17 = vpack.c.bf16 %v1254_v15, %v1253_v14  ;;  %v10645_v15 = vld [vmem:[#allocation2 + $0x100] sm:$0xff]  }
0x11d8   :  { %9800 = vmatmul.mubr.msk.bf16.vlgmr.msra.gmra.mrb[12].mxu0 %vm303_vm3, %v1255_v17  ;;  %v10647_v17 = vld [vmem:[#allocation2 + $0x110] sm:$0xff]  }
0x11d9   :  { %9810 = vmatpush3.bf16.msra.mxu0 %v10641_v16  ;;  %9811 = vmatprep.mubr.msk.bf16.mxu0 %vm11034_vm2, %v11033_v37  ;;  %v10646_v16 = vld [vmem:[#allocation2 + $0x108] sm:$0xff]  }
0x11da   :  { %9823 = vmatprep.subr.bf16.mxu0 %v11033_v37 }
0x11e0   :  { %9812 = vmatmul.mubr.msk.bf16.vlgmr.msra.gmra.mrb[16].mxu0 %vm303_vm3, %v1179_v49 }
0x11e1   :  { %9839 = vmatprep.mubr.msk.bf16.mxu0 %vm11034_vm2, %v11033_v37  ;;  %9824 = vmatpush3.bf16.msra.mxu0 %v10645_v15 }
0x11e2   :  { %9825 = vmatprep.subr.bf16.mxu0 %v11033_v37 }
0x11e5   :  { %9826 = vmatpush3.bf16.msra.mxu0 %v10646_v16 }
0x11e6   :  { %9827 = vmatprep.subr.bf16.mxu0 %v11033_v37 }
0x11e9   :  { %9828 = vmatpush3.bf16.msra.mxu0 %v10647_v17 }
0x11ea   :  { %9829 = vmatprep.subr.bf16.mxu0 %v11033_v37 }
0x11ed   :  { %9830 = vmatpush3.bf16.msra.mxu0 %v10648_v11 }
0x11ee   :  { %9831 = vmatprep.subr.bf16.mxu0 %v11033_v37 }
0x12ab   :  { %v1296_v18 = vpop.f32.mrb[12].mxu0 }
0x12ac   :  { %v9801_v19 = vpop.f32.mrb[13].mxu0 }
0x12ad   :  { %v1299_v20 = vpop.f32.mrb[14].mxu0  ;;  %v10650_v19 = vld [vmem:[#allocation2 + $0x128] sm:$0xff]  }
0x12ae   :  { %v1305_v12 = vpack.c.bf16 %v1299_v20, %v1296_v18  ;;  %v9802_v21 = vpop.f32.mrb[15].mxu0  ;;  %v10649_v18 = vld [vmem:[#allocation2 + $0x120] sm:$0xff]   ;;  %v10651_v20 = vld [vmem:[#allocation2 + $0x130] sm:$0xff]  }
0x12af   :  { %9832 = vmatpush3.bf16.msra.mxu0 %v10649_v18  ;;  %v8987_v21 = vld [vmem:[%s12418_s2 + $0x88] ss:$0 sm:$0xff] }
0x12b0   :  { %9806 = vmatmul.mubr.msk.bf16.vlgmr.msra.gmra.mrb[44].mxu1 %vm303_vm3, %v1305_v12  ;;  %9833 = vmatprep.subr.bf16.mxu0 %v11033_v37  ;;  %v10652_v12 = vld [vmem:[#allocation2 + $0x138] sm:$0xff]  }
0x12b1   :  { %9819 = vmatprep.mubr.msk.bf16.mxu1 %vm11034_vm2, %v11033_v37  ;;  %9816 = vmatpush3.bf16.msra.mxu1 %v10643_v44 }
0x12b2   :  { %9817 = vmatprep.subr.bf16.mxu1 %v11033_v37 }
0x12b3   :  { %v1399_v23 = vpop.f32.mrb[16].mxu0  ;;  %9834 = vmatpush3.bf16.msra.mxu0 %v10650_v19 }
0x12b4   :  { %v9813_v24 = vpop.f32.mrb[17].mxu0  ;;  %9835 = vmatprep.subr.bf16.mxu0 %v11033_v37 }
0x12b5   :  { %v1402_v22 = vpop.f32.mrb[18].mxu0  ;;  %9818 = vmatpush3.bf16.msra.mxu1 %v10644_v45 }
0x12b6   :  { %v9814_v27 = vpop.f32.mrb[19].mxu0  ;;  %9843 = vmatprep.subr.bf16.mxu1 %v11033_v37 }
0x12b7   :  { %9836 = vmatpush3.bf16.msra.mxu0 %v10651_v20 }
0x12b8   :  { %9837 = vmatprep.subr.bf16.mxu0 %v11033_v37 }
0x12bb   :  { %9838 = vmatpush3.bf16.msra.mxu0 %v10652_v12  ;;  %v10653_v12 = vld [vmem:[#allocation2 + $0x140] sm:$0xff]  }
0x12bc   :  { %9877 = vmatprep.subr.bf16.mxu0 %v11033_v37 }
0x1383   :  { %v1349_v30 = vpop.f32.mrb[44].mxu1 }
0x1384   :  { %v1400_v31 = vadd.f32 %v1399_v23, %v1349_v30  ;;  %v9807_v32 = vpop.f32.mrb[45].mxu1 }
0x1385   :  { %v1352_v33 = vpop.f32.mrb[46].mxu1 }
0x1386   :  { %v1406_v39 = vadd.f32 %v1400_v31, %v11251_v25  ;;  %v1403_v34 = vadd.f32 %v1402_v22, %v1352_v33  ;;  %v9808_v35 = vpop.f32.mrb[47].mxu1 }
0x1388   :  { %v11333_v38 = vadd.f32 %v8984_v36, %v1406_v39  ;;  %v1407_v40 = vadd.f32 %v1403_v34, %v11254_v28 }
0x138a   :  { %v11336_v41 = vadd.f32 %v8984_v36, %v1407_v40  ;;  %v1417_v42 = vsel %vm187_vm1, %v11333_v38, 0.0  ;;  %v1425_v43 = vmul.f32 %v11333_v38, %v11333_v38 }
0x138b   :  { %1418 = vadd.xlane.f32.xlu1 %v1417_v42 }
0x138c   :  { %v1420_v26 = vsel %vm187_vm1, %v11336_v41, 0.0  ;;  %v1427_v25 = vsel %vm187_vm1, %v1425_v43, 0.0  ;;  %v1426_v29 = vmul.f32 %v11336_v41, %v11336_v41 }
0x138e   :  { %v1430_v28 = vsel %vm187_vm1, %v1426_v29, 0.0 }
0x138f   :  { %1421 = vadd.xlane.f32.xlu1 %v1420_v26 }
0x1393   :  { %1428 = vadd.xlane.f32.xlu1 %v1427_v25 }
0x1397   :  { %1431 = vadd.xlane.f32.xlu1 %v1430_v28 }
0x1418   :  { %v1419_v46 = vpop.xlane.xlu1 %1418 }
0x1419   :  { %v1423_v48 = vmul.f32 0.03125, %v1419_v46 }
0x141b   :  { %v1435_v50 = vmul.f32 %v1423_v48, %v1423_v48  ;;  %v1441_v62 = vsub.f32 %v11333_v38, %v1423_v48 }
0x141c   :  { %v1422_v47 = vpop.xlane.xlu1 %1421 }
0x141d   :  { %v1424_v51 = vmul.f32 0.03125, %v1422_v47 }
0x141f   :  { %v1436_v55 = vmul.f32 %v1424_v51, %v1424_v51  ;;  %v1442_v3 = vsub.f32 %v11336_v41, %v1424_v51 }
0x1420   :  { %v1429_v49 = vpop.xlane.xlu1 %1428 }
0x1421   :  { %v1433_v52 = vmul.f32 0.03125, %v1429_v49 }
0x1423   :  { %v1437_v53 = vsub.f32 %v1433_v52, %v1435_v50 }
0x1424   :  { %v1432_v54 = vpop.xlane.xlu1 %1431 }
0x1425   :  { %v1439_v56 = vmax.f32 %v1437_v53, 0.0  ;;  %v1434_v57 = vmul.f32 0.03125, %v1432_v54 }
0x1427   :  { %v1443_v58 = vadd.f32 1e-06, %v1439_v56  ;;  %v1438_v59 = vsub.f32 %v1434_v57, %v1436_v55 }
0x1429   :  { %10872 = vrsqrt.f32 %v1443_v58  ;;  %v1440_v60 = vmax.f32 %v1438_v59, 0.0 }
0x142b   :  { %v1444_v61 = vadd.f32 1e-06, %v1440_v60 }
0x142d   :  { %10874 = vrsqrt.f32 %v1444_v61 }
0x1433   :  { %v10873_v63 = vpop.eup %10872 }
0x1434   :  { %v1447_v1 = vmul.f32 %v10873_v63, %v1441_v62 }
0x1436   :  { %v1453_v7 = vmul.f32 %v8985_v2, %v1447_v1 }
0x1437   :  { %v10875_v4 = vpop.eup %10874 }
0x1438   :  { %v1448_v6 = vmul.f32 %v10875_v4, %v1442_v3  ;;  %v1459_v10 = vadd.f32 %v8986_v8, %v1453_v7 }
0x143a   :  { %v1454_v9 = vmul.f32 %v8985_v2, %v1448_v6 }
0x143c   :  { %v1460_v13 = vadd.f32 %v8986_v8, %v1454_v9 }
0x143e   :  { %v1465_v14 = vpack.c.bf16 %v1460_v13, %v1459_v10 }
0x1440   :  { %9820 = vmatmul.mubr.msk.bf16.vlgmr.msra.gmra.mrb[48].mxu1 %vm187_vm1, %v1465_v14 }
0x1441   :  { %9847 = vmatprep.mubr.msk.bf16.mxu1 %vm11034_vm2, %v11033_v37  ;;  %9844 = vmatpush3.bf16.msra.mxu1 %v10653_v12  ;;  %v10663_v12 = vld [vmem:[#allocation2 + $0x1d8] sm:$0xff]  }
0x1442   :  { %9845 = vmatprep.subr.bf16.mxu1 %v11033_v37 }
0x1513   :  { %v1520_v23 = vpop.f32.mrb[48].mxu1 }
0x1514   :  { %v1521_v24 = vadd.f32 %v8987_v21, %v1520_v23  ;;  %v9821_v22 = vpop.f32.mrb[49].mxu1 }
0x1515   :  { %v1523_v27 = vpop.f32.mrb[50].mxu1 }
0x1516   :  { %v1529_v30 = vmul.f32 0.70710677, %v1521_v24  ;;  %v1524_v31 = vadd.f32 %v8987_v21, %v1523_v27  ;;  %v9822_v32 = vpop.f32.mrb[51].mxu1  ;;  %v1527_v16 = vmul.f32 0.5, %v1521_v24  ;;  %v10654_v21 = vld [vmem:[#allocation2 + $0x148] sm:$0xff]  }
0x1517   :  { %9846 = vmatpush3.bf16.msra.mxu1 %v10654_v21  ;;  %v8999_v27 = vld [vmem:[%s12418_s2 + $0x90] ss:$0 sm:$0xff]  ;;  %v10664_v21 = vld [vmem:[#allocation2 + $0x1e0] sm:$0xff]  }
0x1518   :  { %v1535_v36 = vand.u32 2147483647, %v1529_v30  ;;  %v1530_v33 = vmul.f32 0.70710677, %v1524_v31  ;;  %vm1531_vm6 = vcmp.lt.f32.partialorder %v1529_v30, 0.0  ;;  %v1528_v17 = vmul.f32 0.5, %v1524_v31  ;;  %9851 = vmatprep.subr.bf16.mxu1 %v11033_v37 }
0x1519   :  { %v1533_v7 = vsel %vm1531_vm6, -1.0, %v11039_v5  ;;  %vm8919_vm6 = vcmask 24576  }
0x151a   :  { %v1537_v39 = vmul.f32 0.3275911, %v1535_v36  ;;  %v1536_v34 = vand.u32 2147483647, %v1530_v33  ;;  %v1563_v26 = vsub.f32 0.0, %v1535_v36  ;;  %vm1532_vm7 = vcmp.lt.f32.partialorder %v1530_v33, 0.0 }
0x151b   :  { %v1534_v13 = vsel %vm1532_vm7, -1.0, %v11039_v5 }
0x151c   :  { %v1539_v35 = vadd.f32 1.0, %v1537_v39  ;;  %v1538_v40 = vmul.f32 0.3275911, %v1536_v34  ;;  %v1564_v43 = vsub.f32 0.0, %v1536_v34  ;;  %v1565_v29 = vmul.f32 %v1563_v26, %v1535_v36 }
0x151e   :  { %10876 = vrcp.f32 %v1539_v35  ;;  %v1540_v42 = vadd.f32 1.0, %v1538_v40  ;;  %v1566_v46 = vmul.f32 %v1564_v43, %v1536_v34  ;;  %v1567_v47 = vmul.f32 1.442695, %v1565_v29 }
0x1520   :  { %10878 = vrcp.f32 %v1540_v42  ;;  %v1569_v52 = vmul.f32 1.442695, %v1566_v46  ;;  %v10658_v46 = vld [vmem:[#allocation2 + $0x168] sm:$0xff]  }
0x1521   :  { %10880 = vpow2.f32 %v1567_v47 }
0x1522   :  { %10882 = vpow2.f32 %v1569_v52 }
0x1528   :  { %v10877_v25 = vpop.eup %10876 }
0x1529   :  { %v1545_v28 = vmul.f32 1.0614054, %v10877_v25 }
0x152a   :  { %v10879_v44 = vpop.eup %10878 }
0x152b   :  { %v1547_v45 = vadd.f32 -1.4531521, %v1545_v28  ;;  %v1546_v48 = vmul.f32 1.0614054, %v10879_v44  ;;  %v10881_v63 = vpop.eup %10880  ;;  %v10655_v28 = vld [vmem:[#allocation2 + $0x150] sm:$0xff]  }
0x152c   :  { %v10883_v4 = vpop.eup %10882 }
0x152d   :  { %v1549_v49 = vmul.f32 %v10877_v25, %v1547_v45  ;;  %v1548_v50 = vadd.f32 -1.4531521, %v1546_v48  ;;  %v10657_v45 = vld [vmem:[#allocation2 + $0x158] sm:$0xff]  }
0x152f   :  { %v1551_v51 = vadd.f32 1.4214138, %v1549_v49  ;;  %v1550_v53 = vmul.f32 %v10879_v44, %v1548_v50 }
0x1531   :  { %v1553_v54 = vmul.f32 %v10877_v25, %v1551_v51  ;;  %v1552_v55 = vadd.f32 1.4214138, %v1550_v53 }
0x1533   :  { %v1555_v56 = vadd.f32 -0.28449672, %v1553_v54  ;;  %v1554_v57 = vmul.f32 %v10879_v44, %v1552_v55 }
0x1535   :  { %v1557_v58 = vmul.f32 %v10877_v25, %v1555_v56  ;;  %v1556_v59 = vadd.f32 -0.28449672, %v1554_v57 }
0x1537   :  { %v1559_v60 = vadd.f32 0.2548296, %v1557_v58  ;;  %v1558_v61 = vmul.f32 %v10879_v44, %v1556_v59 }
0x1539   :  { %v1561_v62 = vmul.f32 %v10877_v25, %v1559_v60  ;;  %v1560_v1 = vadd.f32 0.2548296, %v1558_v61 }
0x153b   :  { %v1571_v2 = vmul.f32 %v10881_v63, %v1561_v62  ;;  %v1562_v3 = vmul.f32 %v10879_v44, %v1560_v1  ;;  %v10656_v44 = vld [vmem:[#allocation2 + $0x160] sm:$0xff]  }
0x153d   :  { %v1573_v6 = vsub.f32 1.0, %v1571_v2  ;;  %v1572_v8 = vmul.f32 %v10883_v4, %v1562_v3  ;;  %v9003_v3 = vld [vmem:[%s12418_s2 + $0x98] ss:$0 sm:$0xff] }
0x153f   :  { %v1575_v9 = vmul.f32 %v1573_v6, %v1533_v7  ;;  %v1574_v10 = vsub.f32 1.0, %v1572_v8 }
0x1541   :  { %v1577_v14 = vadd.f32 1.0, %v1575_v9  ;;  %v1576_v15 = vmul.f32 %v1574_v10, %v1534_v13  ;;  %v9004_v9 = vld [vmem:[%s12418_s2 + $0xa0] ss:$0 sm:$0xff] }
0x1543   :  { %v1578_v11 = vadd.f32 1.0, %v1576_v15  ;;  %v1579_v18 = vmul.f32 %v1577_v14, %v1527_v16  ;;  %v10659_v15 = vld [vmem:[#allocation2 + $0x170] sm:$0xff]  }
0x1545   :  { %v1580_v19 = vmul.f32 %v1578_v11, %v1528_v17  ;;  %v10660_v17 = vld [vmem:[#allocation2 + $0x178] sm:$0xff]   ;;  %v10661_v11 = vld [vmem:[#allocation2 + $0x1c8] sm:$0xff]  }
0x1547   :  { %v1597_v20 = vpack.c.bf16 %v1580_v19, %v1579_v18  ;;  %v10662_v18 = vld [vmem:[#allocation2 + $0x1d0] sm:$0xff]  }
0x1548   :  { %v11414_v19 = vld [vmem:[%s12418_s2 + $0xd0] sm:$0x1f] }
0x1549   :  { %9840 = vmatmul.mubr.bf16.vlgmr.msra.gmra.mrb[20].mxu0 %v1597_v20  ;;  %v2535_v20 = vpack.c.bf16 %v11414_v19, %v11414_v19 }
0x154a   :  { %9881 = vmatprep.mubr.msk.bf16.mxu0 %vm11034_vm2, %v11033_v37  ;;  %9878 = vmatpush3.bf16.msra.mxu0 %v10656_v44 }
0x154b   :  { %9879 = vmatprep.subr.bf16.mxu0 %v11033_v37 }
0x154e   :  { %9880 = vmatpush3.bf16.msra.mxu0 %v10658_v46 }
0x154f   :  { %9903 = vmatprep.subr.bf16.mxu0 %v11033_v37 }
0x161c   :  { %v1680_v23 = vpop.f32.mrb[20].mxu0 }
0x161d   :  { %v1687_v24 = vadd.f32 %v1680_v23, %v11333_v38  ;;  %v9841_v22 = vpop.f32.mrb[21].mxu0  ;;  %v10665_v23 = vld [vmem:[#allocation2 + $0x1e8] sm:$0xff]  }
0x161e   :  { %v1683_v30 = vpop.f32.mrb[22].mxu0 }
0x161f   :  { %v1688_v31 = vadd.f32 %v1683_v30, %v11336_v41  ;;  %v9842_v32 = vpop.f32.mrb[23].mxu0  ;;  %v1694_v36 = vadd.f32 %v8999_v27, %v1687_v24  ;;  %v10666_v24 = vld [vmem:[#allocation2 + $0x1f0] sm:$0xff]  }
0x1621   :  { %v1695_v33 = vadd.f32 %v8999_v27, %v1688_v31 }
0x1623   :  { %v1700_v39 = vpack.c.bf16 %v1695_v33, %v1694_v36 }
0x1625   :  { %9848 = vmatmul.mubr.msk.bf16.vlgmr.msra.gmra.mrb[52].mxu1 %vm187_vm1, %v1700_v39 }
0x1626   :  { %9855 = vmatprep.mubr.msk.bf16.mxu1 %vm11034_vm2, %v11033_v37  ;;  %9852 = vmatpush3.bf16.msra.mxu1 %v10655_v28 }
0x1627   :  { %9853 = vmatprep.subr.bf16.mxu1 %v11033_v37 }
0x162a   :  { %9854 = vmatpush3.bf16.msra.mxu1 %v10657_v45 }
0x162b   :  { %9859 = vmatprep.subr.bf16.mxu1 %v11033_v37 }
0x16f8   :  { %v1750_v34 = vpop.f32.mrb[52].mxu1 }
0x16f9   :  { %v9849_v35 = vpop.f32.mrb[53].mxu1  ;;  %v1759_v38 = vsel %vm187_vm1, %v1750_v34, 0.0  ;;  %v1767_v40 = vmul.f32 %v1750_v34, %v1750_v34 }
0x16fa   :  { %1760 = vadd.xlane.f32.xlu1 %v1759_v38  ;;  %v1753_v42 = vpop.f32.mrb[54].mxu1 }
0x16fb   :  { %v9850_v26 = vpop.f32.mrb[55].mxu1  ;;  %v1762_v43 = vsel %vm187_vm1, %v1753_v42, 0.0  ;;  %v1769_v41 = vsel %vm187_vm1, %v1767_v40, 0.0  ;;  %v1768_v25 = vmul.f32 %v1753_v42, %v1753_v42 }
0x16fc   :  { %1763 = vadd.xlane.f32.xlu0 %v1762_v43 }
0x16fd   :  { %v1772_v29 = vsel %vm187_vm1, %v1768_v25, 0.0 }
0x16fe   :  { %1770 = vadd.xlane.f32.xlu1 %v1769_v41  ;;  %v9035_v41 = vld [vmem:[%s12418_s2 + $0xd8] ss:$0 sm:$0xff] }
0x1702   :  { %1773 = vadd.xlane.f32.xlu1 %v1772_v29 }
0x1787   :  { %v1761_v47 = vpop.xlane.xlu1 %1760 }
0x1788   :  { %v1765_v48 = vmul.f32 0.03125, %v1761_v47  ;;  %v9039_v47 = vld [vmem:[%s12418_s2 + $0xe0] ss:$0 sm:$0xff] }
0x1789   :  { %v1764_v49 = vpop.xlane.xlu0 %1763 }
0x178a   :  { %v1777_v51 = vmul.f32 %v1765_v48, %v1765_v48  ;;  %v1766_v52 = vmul.f32 0.03125, %v1764_v49  ;;  %v1783_v63 = vsub.f32 %v1750_v34, %v1765_v48 }
0x178b   :  { %v1771_v50 = vpop.xlane.xlu1 %1770 }
0x178c   :  { %v1775_v53 = vmul.f32 0.03125, %v1771_v50  ;;  %v1778_v56 = vmul.f32 %v1766_v52, %v1766_v52  ;;  %v1784_v4 = vsub.f32 %v1753_v42, %v1766_v52 }
0x178e   :  { %v1779_v54 = vsub.f32 %v1775_v53, %v1777_v51 }
0x178f   :  { %v1774_v55 = vpop.xlane.xlu1 %1773 }
0x1790   :  { %v1781_v57 = vmax.f32 %v1779_v54, 0.0  ;;  %v1776_v58 = vmul.f32 0.03125, %v1774_v55  ;;  %v9043_v55 = vld [vmem:[%s12418_s2 + $0xe8] ss:$0 sm:$0xff] }
0x1792   :  { %v1785_v59 = vadd.f32 1e-06, %v1781_v57  ;;  %v1780_v60 = vsub.f32 %v1776_v58, %v1778_v56  ;;  %v11040_v56 = vmov 65535  }
0x1793   :  { %v2787_v57 = vsel %vm2785_vm8, 4294967295, %v11040_v56 }
0x1794   :  { %10884 = vrsqrt.f32 %v1785_v59  ;;  %v1782_v61 = vmax.f32 %v1780_v60, 0.0 }
0x1796   :  { %v1786_v62 = vadd.f32 1e-06, %v1782_v61  ;;  %v11462_v61 = vsel %vm2786_vm9, %v2787_v57, 0 }
0x1798   :  { %10886 = vrsqrt.f32 %v1786_v62 }
0x179e   :  { %v10885_v1 = vpop.eup %10884 }
0x179f   :  { %v1789_v2 = vmul.f32 %v10885_v1, %v1783_v63 }
0x17a1   :  { %v1795_v8 = vmul.f32 %v9003_v3, %v1789_v2 }
0x17a2   :  { %v10887_v6 = vpop.eup %10886 }
0x17a3   :  { %v1790_v7 = vmul.f32 %v10887_v6, %v1784_v4  ;;  %v1801_v13 = vadd.f32 %v9004_v9, %v1795_v8  ;;  %v10667_v6 = vld [vmem:[#allocation2 + $0x188] sm:$0xff]  }
0x17a5   :  { %v1796_v10 = vmul.f32 %v9003_v3, %v1790_v7  ;;  %v10668_v7 = vld [vmem:[#allocation2 + $0x180] sm:$0xff]  }
0x17a7   :  { %v1802_v14 = vadd.f32 %v9004_v9, %v1796_v10  ;;  %v10669_v9 = vld [vmem:[#allocation2 + $0x190] sm:$0xff]   ;;  %v10670_v10 = vld [vmem:[#allocation2 + $0x198] sm:$0xff]  }
0x17a9   :  { %v1807_v16 = vpack.c.bf16 %v1802_v14, %v1801_v13  ;;  %v10671_v14 = vld [vmem:[#allocation2 + $0x1a0] sm:$0xff]  }
0x17ab   :  { %9856 = vmatmul.mubr.msk.bf16.vlgmr.msra.gmra.mrb[56].mxu1 %vm187_vm1, %v1807_v16  ;;  %9882 = vmatmul.mubr.msk.bf16.vlgmr.msra.gmra.mrb[24].mxu0 %vm187_vm1, %v1807_v16 }
0x17ac   :  { %9904 = vmatpush3.bf16.msra.mxu0 %v10659_v15  ;;  %9907 = vmatprep.mubr.msk.bf16.mxu0 %vm11034_vm2, %v11033_v37 }
0x17ad   :  { %9905 = vmatprep.subr.bf16.mxu0 %v11033_v37  ;;  %9861 = vmatprep.mubr.msk.bf16.mxu1 %vm11034_vm2, %v11033_v37 }
0x17b0   :  { %9906 = vmatpush3.bf16.msra.mxu0 %v10660_v17 }
0x17b1   :  { %9929 = vmatprep.subr.bf16.mxu0 %v11033_v37 }
0x17b3   :  { %9908 = vmatmul.mubr.msk.bf16.vlgmr.msra.gmra.mrb[28].mxu0 %vm187_vm1, %v1807_v16  ;;  %v10672_v16 = vld [vmem:[#allocation2 + $0x1a8] sm:$0xff]  }
0x17b4   :  { %9930 = vmatpush3.bf16.msra.mxu0 %v10661_v11  ;;  %9933 = vmatprep.mubr.msk.bf16.mxu0 %vm11034_vm2, %v11033_v37 }
0x17b5   :  { %9931 = vmatprep.subr.bf16.mxu0 %v11033_v37 }
0x17b8   :  { %9932 = vmatpush3.bf16.msra.mxu0 %v10662_v18 }
0x17b9   :  { %9937 = vmatprep.subr.bf16.mxu0 %v11033_v37 }
0x17bb   :  { %9934 = vmatmul.mubr.msk.bf16.vlgmr.msra.gmra.mrb[32].mxu0 %vm187_vm1, %v2535_v20 }
0x17bc   :  { %9938 = vmatpush3.bf16.msra.mxu0 %v10663_v12  ;;  %9941 = vmatprep.mubr.msk.bf16.mxu0 %vm11034_vm2, %v11033_v37 }
0x17bd   :  { %9939 = vmatprep.subr.bf16.mxu0 %v11033_v37 }
0x17c0   :  { %9940 = vmatpush3.bf16.msra.mxu0 %v10664_v21 }
0x17c1   :  { %9945 = vmatprep.subr.bf16.mxu0 %v11033_v37 }
0x17c3   :  { %9942 = vmatmul.mubr.msk.bf16.vlgmr.msra.gmra.mrb[36].mxu0 %vm187_vm1, %v2535_v20 }
0x17c4   :  { %9949 = vmatprep.mubr.msk.bf16.mxu0 %vm11034_vm2, %v11033_v37  ;;  %9946 = vmatpush3.bf16.msra.mxu0 %v10665_v23 }
0x17c5   :  { %9947 = vmatprep.subr.bf16.mxu0 %v11033_v37 }
0x17c8   :  { %9948 = vmatpush3.bf16.msra.mxu0 %v10666_v24 }
0x17c9   :  { %9953 = vmatprep.subr.bf16.mxu0 %v11033_v37 }
0x17cb   :  { %9950 = vmatmul.mubr.msk.bf16.vlgmr.msra.gmra.mrb[40].mxu0 %vm187_vm1, %v2535_v20 }
0x17cc   :  { %9955 = vmatprep.mubr.msk.bf16.mxu0 %vm11034_vm2, %v11033_v37 }
0x187e   :  { %v1857_v22 = vpop.f32.mrb[56].mxu1  ;;  %v2077_v27 = vpop.f32.mrb[24].mxu0 }
0x187f   :  { %v9857_v30 = vpop.f32.mrb[57].mxu1  ;;  %v9883_v31 = vpop.f32.mrb[25].mxu0 }
0x1880   :  { %v1860_v32 = vpop.f32.mrb[58].mxu1  ;;  %v2080_v36 = vpop.f32.mrb[26].mxu0 }
0x1881   :  { %v1866_v33 = vpack.c.bf16 %v1860_v32, %v1857_v22  ;;  %v11433_v39 = vpack.c.bf16 %v2080_v36, %v2077_v27  ;;  %v9858_v34 = vpop.f32.mrb[59].mxu1  ;;  %v9884_v35 = vpop.f32.mrb[27].mxu0 }
0x1882   :  { %v10673_v35 = vld [vmem:[#allocation2 + $0x1b0] sm:$0xff]  }
0x1886   :  { %v2301_v38 = vpop.f32.mrb[28].mxu0 }
0x1887   :  { %v9909_v40 = vpop.f32.mrb[29].mxu0 }
0x1888   :  { %v2304_v42 = vpop.f32.mrb[30].mxu0 }
0x1889   :  { %v11435_v26 = vpack.c.bf16 %v2304_v42, %v2301_v38  ;;  %v9910_v43 = vpop.f32.mrb[31].mxu0 }
0x188e   :  { %v2590_v25 = vpop.f32.mrb[32].mxu0 }
0x188f   :  { %v2591_v29 = vadd.f32 %v9035_v41, %v2590_v25  ;;  %v9935_v28 = vpop.f32.mrb[33].mxu0 }
0x1890   :  { %v2593_v44 = vpop.f32.mrb[34].mxu0 }
0x1891   :  { %v2718_v45 = vpack.c.bf16 %v2591_v29, %v2591_v29  ;;  %v9936_v46 = vpop.f32.mrb[35].mxu0 }
0x1893   :  { %2836 = vrot.lane.b32.xlu0 %v2718_v45, %s11037_s21 }
0x1896   :  { %v2651_v48 = vpop.f32.mrb[36].mxu0 }
0x1897   :  { %v2652_v49 = vadd.f32 %v9039_v47, %v2651_v48  ;;  %v9943_v50 = vpop.f32.mrb[37].mxu0  ;;  %1875 = vrot.lane.b32.xlu0 %v1866_v33, %s11035_s19 }
0x1898   :  { %v2654_v51 = vpop.f32.mrb[38].mxu0  ;;  %v10674_v50 = vld [vmem:[#allocation2 + $0x1b8] sm:$0xff]  }
0x1899   :  { %v11445_v52 = vpack.c.bf16 %v2652_v49, %v2652_v49  ;;  %v9944_v53 = vpop.f32.mrb[39].mxu0 }
0x189b   :  { %v2724_v54 = vsel %vm303_vm3, %v11445_v52, 0  ;;  %1978 = vrot.lane.b32.xlu0 %v1866_v33, %s11030_s22 }
0x189c   :  { %9954 = vmatpush3.bf16.xpose.msra.mxu0 %v2724_v54  ;;  %v10675_v54 = vld [vmem:[#allocation2 + $0x1c0] sm:$0xff]  }
0x189d   :  { %9959 = vmatprep.subr.bf16.mxu0 %v11033_v37 }
0x189e   :  { %v2712_v58 = vpop.f32.mrb[40].mxu0 }
0x189f   :  { %2146 = vrot.lane.b32.xlu0 %v11433_v39, %s11035_s19  ;;  %v2713_v59 = vadd.f32 %v9043_v55, %v2712_v58  ;;  %v9951_v60 = vpop.f32.mrb[41].mxu0 }
0x18a0   :  { %v2715_v62 = vpop.f32.mrb[42].mxu0 }
0x18a1   :  { %v11464_v63 = vpack.c.bf16 %v2713_v59, %v2713_v59  ;;  %v9952_v1 = vpop.f32.mrb[43].mxu0  ;;  %v10676_v59 = vld [vmem:[#allocation2 + $0x1f8] sm:$0xff]  }
0x18a3   :  { %9956 = vmatmul.mubr.msk.bf16.vlgmr.msra.gmra.mrb[44].mxu0 %vm303_vm3, %v2718_v45  ;;  %2202 = vrot.lane.b32.xlu0 %v11433_v39, %s11030_s22  ;;  %v2790_v2 = vand.u32 %v11462_v61, %v11464_v63 }
0x18a4   :  { %9961 = vmatprep.mubr.msk.bf16.mxu0 %vm11034_vm2, %v11033_v37 }
0x18a5   :  { %9960 = vmatpush3.bf16.msra.mxu0 %v2790_v2 }
0x18a6   :  { %9965 = vmatprep.subr.bf16.mxu0 %v11033_v37 }
0x1905   :  { %v11469_v3 = vpop.permute.xlu0 %2836 }
0x1909   :  { %v1876_v4 = vpop.permute.xlu0 %1875 }
0x190a   :  { %9860 = vmatpush3.bf16.msra.mxu1 %v1876_v4 }
0x190b   :  { %9865 = vmatprep.subr.bf16.mxu1 %v11033_v37 }
0x190d   :  { %9862 = vmatmul.mubr.msk.bf16.vlgmr.msra.gmra.mrb[60].mxu1 %vm303_vm3, %v10667_v6  ;;  %v1979_v8 = vpop.permute.xlu0 %1978 }
0x190e   :  { %9866 = vmatpush3.bf16.msra.mxu1 %v1866_v33  ;;  %9867 = vmatprep.mubr.msk.bf16.mxu1 %vm11034_vm2, %v11033_v37 }
0x190f   :  { %9871 = vmatprep.subr.bf16.mxu1 %v11033_v37 }
0x1911   :  { %v2147_v13 = vpop.permute.xlu0 %2146 }
0x1915   :  { %v2203_v15 = vpop.permute.xlu0 %2202 }
0x1919   :  { %9868 = vmatmul.mubr.msk.bf16.vlgmr.msra.gmra.mrb[60].mxu1 %vm303_vm3, %v10668_v7 }
0x191a   :  { %9872 = vmatpush3.bf16.msra.mxu1 %v1979_v8  ;;  %9873 = vmatprep.mubr.msk.bf16.mxu1 %vm11034_vm2, %v11033_v37 }
0x191b   :  { %9885 = vmatprep.subr.bf16.mxu1 %v11033_v37 }
0x1925   :  { %9874 = vmatmul.mubr.msk.bf16.vlgmr.msra.gmra.mrb[60].mxu1 %vm303_vm3, %v10669_v9 }
0x1926   :  { %9886 = vmatpush3.bf16.msra.mxu1 %v11433_v39  ;;  %9887 = vmatprep.mubr.msk.bf16.mxu1 %vm11034_vm2, %v11033_v37 }
0x1927   :  { %9891 = vmatprep.subr.bf16.mxu1 %v11033_v37 }
0x1931   :  { %9888 = vmatmul.mubr.msk.bf16.vlgmr.msra.gmra.mrb[60].mxu1 %vm303_vm3, %v10670_v10 }
0x1932   :  { %9892 = vmatpush3.bf16.msra.mxu1 %v2147_v13  ;;  %9893 = vmatprep.mubr.msk.bf16.mxu1 %vm11034_vm2, %v11033_v37  ;;  %v10677_v13 = vld [vmem:[#allocation2 + $0x200] sm:$0xff]  }
0x1933   :  { %9897 = vmatprep.subr.bf16.mxu1 %v11033_v37 }
0x193d   :  { %9894 = vmatmul.mubr.msk.bf16.vlgmr.msra.gmra.mrb[60].mxu1 %vm303_vm3, %v10671_v14  ;;  %v10678_v14 = vld [vmem:[#allocation2 + $0x218] sm:$0xff]  }
0x193e   :  { %9898 = vmatpush3.bf16.msra.mxu1 %v2203_v15  ;;  %9899 = vmatprep.mubr.msk.bf16.mxu1 %vm11034_vm2, %v11033_v37  ;;  %v10679_v15 = vld [vmem:[#allocation2 + $0x220] sm:$0xff]  }
0x193f   :  { %9911 = vmatprep.subr.bf16.mxu1 %v11033_v37 }
0x1949   :  { %9900 = vmatmul.mubr.msk.bf16.vlgmr.msra.gmra.mrb[60].mxu1 %vm303_vm3, %v10672_v16 }
0x194a   :  { %9912 = vmatpush3.bf16.msra.mxu1 %v11435_v26  ;;  %9913 = vmatprep.mubr.msk.bf16.mxu1 %vm11034_vm2, %v11033_v37 }
0x194b   :  { %9917 = vmatprep.subr.bf16.mxu1 %v11033_v37 }
0x1955   :  { %9914 = vmatmul.mubr.msk.bf16.vlgmr.msra.gmra.mrb[60].mxu1 %vm303_vm3, %v10673_v35 }
0x1956   :  { %9919 = vmatprep.mubr.msk.bf16.mxu1 %vm11034_vm2, %v11033_v37 }
0x1976   :  { %v2760_v17 = vpop.f32.mrb[44].mxu0 }
0x1977   :  { %v2766_v11 = vmul.f32 0.25, %v2760_v17  ;;  %v9957_v18 = vpop.f32.mrb[45].mxu0 }
0x1978   :  { %v2763_v20 = vpop.f32.mrb[46].mxu0 }
0x1979   :  { %v9958_v12 = vpop.f32.mrb[47].mxu0  ;;  %v2768_v21 = vsel %vm2767_vm10, %v2766_v11, -inf }
0x197a   :  { %2769 = vmax.xlane.f32.xlu1 %v2768_v21 }
0x1a07   :  { %v2770_v23 = vpop.xlane.xlu1 %2769 }
0x1a08   :  { %v2771_v24 = vsub.f32 %v2766_v11, %v2770_v23 }
0x1a0a   :  { %v2772_v22 = vmul.f32 1.442695, %v2771_v24 }
0x1a0c   :  { %10888 = vpow2.f32 %v2772_v22 }
0x1a16   :  { %v10889_v27 = vpop.eup %10888 }
0x1a17   :  { %v2774_v30 = vsel %vm2767_vm10, %v10889_v27, 0.0 }
0x1a18   :  { %2775 = vadd.xlane.f32.xlu1 %v2774_v30 }
0x1a29   :  { %2839 = vrot.lane.b32.xlu1 %v11445_v52, %s11037_s21 }
0x1aa5   :  { %v2776_v31 = vpop.xlane.xlu1 %2775 }
0x1aa6   :  { %10890 = vrcp.f32 %v2776_v31 }
0x1aa9   :  { %v2840_v33 = vpop.permute.xlu1 %2839 }
0x1aaa   :  { %v2845_v34 = vsel %vm303_vm3, %v2840_v33, 0 }
0x1ab0   :  { %v10891_v32 = vpop.eup %10890 }
0x1ab1   :  { %v2778_v36 = vmul.f32 %v10891_v32, %v10889_v27 }
0x1ab3   :  { %v2779_v39 = vpack.c.bf16 %v2778_v36, %v2778_v36 }
0x1ab5   :  { %9962 = vmatmul.mubr.msk.bf16.vlgmr.msra.gmra.mrb[48].mxu0 %vm2781_vm11, %v2779_v39 }
0x1ab6   :  { %9966 = vmatpush3.bf16.xpose.msra.mxu0 %v2845_v34  ;;  %9967 = vmatprep.mubr.msk.bf16.mxu0 %vm11034_vm2, %v11033_v37 }
0x1ab7   :  { %9977 = vmatprep.subr.bf16.mxu0 %v11033_v37 }
0x1abd   :  { %9968 = vmatmul.mubr.msk.bf16.vlgmr.msra.gmra.mrb[52].mxu0 %vm303_vm3, %v11469_v3 }
0x1abe   :  { %9979 = vmatprep.mubr.msk.bf16.mxu0 %vm11034_vm2, %v11033_v37  ;;  %9978 = vmatpush3.bf16.msra.mxu0 %v10677_v13 }
0x1abf   :  { %9989 = vmatprep.subr.bf16.mxu0 %v11033_v37 }
0x1b88   :  { %v2826_v38 = vpop.f32.mrb[48].mxu0 }
0x1b89   :  { %v9963_v40 = vpop.f32.mrb[49].mxu0  ;;  %v2834_v62 = vpack.c.bf16 %v2826_v38, %v2826_v38 }
0x1b8a   :  { %v2829_v42 = vpop.f32.mrb[50].mxu0 }
0x1b8b   :  { %v9964_v43 = vpop.f32.mrb[51].mxu0 }
0x1b90   :  { %v2881_v41 = vpop.f32.mrb[52].mxu0 }
0x1b91   :  { %v2887_v25 = vmul.f32 0.25, %v2881_v41  ;;  %v9969_v29 = vpop.f32.mrb[53].mxu0 }
0x1b92   :  { %v2884_v28 = vpop.f32.mrb[54].mxu0 }
0x1b93   :  { %v9970_v44 = vpop.f32.mrb[55].mxu0  ;;  %v2888_v45 = vsel %vm2767_vm10, %v2887_v25, -inf }
0x1b94   :  { %2889 = vmax.xlane.f32.xlu1 %v2888_v45  ;;  %v9032_v44 = vld [vmem:[%s12418_s2 + $0xa8] ss:$0 sm:$0xff] }
0x1ba5   :  { %2370 = vrot.lane.b32.xlu1 %v11435_v26, %s11035_s19 }
0x1ba9   :  { %2426 = vrot.lane.b32.xlu1 %v11435_v26, %s11030_s22 }
0x1bad   :  { %2901 = vrot.lane.b32.xlu1 %v11464_v63, %s11037_s21 }
0x1c21   :  { %v2890_v46 = vpop.xlane.xlu1 %2889 }
0x1c22   :  { %v2891_v47 = vsub.f32 %v2887_v25, %v2890_v46  ;;  %v9033_v46 = vld [vmem:[%s12418_s2 + $0xb0] ss:$0 sm:$0xff] }
0x1c24   :  { %v2892_v48 = vmul.f32 1.442695, %v2891_v47 }
0x1c25   :  { %v2371_v49 = vpop.permute.xlu1 %2370 }
0x1c26   :  { %10892 = vpow2.f32 %v2892_v48  ;;  %9918 = vmatpush3.bf16.msra.mxu1 %v2371_v49 }
0x1c27   :  { %9923 = vmatprep.subr.bf16.mxu1 %v11033_v37 }
0x1c29   :  { %v2427_v51 = vpop.permute.xlu1 %2426  ;;  %9920 = vmatmul.mubr.msk.bf16.vlgmr.msra.gmra.mrb[60].mxu1 %vm303_vm3, %v10674_v50 }
0x1c2a   :  { %9924 = vmatpush3.bf16.msra.mxu1 %v2427_v51  ;;  %9925 = vmatprep.mubr.msk.bf16.mxu1 %vm11034_vm2, %v11033_v37 }
0x1c2b   :  { %9971 = vmatprep.subr.bf16.mxu1 %v11033_v37 }
0x1c2d   :  { %v2902_v52 = vpop.permute.xlu1 %2901 }
0x1c2e   :  { %v2907_v55 = vand.u32 %v2902_v52, %v11462_v61 }
0x1c30   :  { %v10893_v26 = vpop.eup %10892 }
0x1c31   :  { %v2894_v53 = vsel %vm2767_vm10, %v10893_v26, 0.0 }
0x1c32   :  { %2895 = vadd.xlane.f32.xlu0 %v2894_v53 }
0x1c35   :  { %9926 = vmatmul.mubr.msk.bf16.vlgmr.msra.gmra.mrb[60].mxu1 %vm303_vm3, %v10675_v54 }
0x1c36   :  { %9972 = vmatpush3.bf16.msra.mxu1 %v2907_v55  ;;  %9973 = vmatprep.mubr.msk.bf16.mxu1 %vm11034_vm2, %v11033_v37  ;;  %v2529_v55 = vld [vmem:[%s12418_s2 + $0xc0] sm:$0xff] }
0x1c37   :  { %9983 = vmatprep.subr.bf16.mxu1 %v11033_v37 }
0x1cbf   :  { %v2896_v56 = vpop.xlane.xlu0 %2895 }
0x1cc0   :  { %10894 = vrcp.f32 %v2896_v56  ;;  %v2530_v56 = vld [vmem:[%s12418_s2 + $0xc8] sm:$0xff] }
0x1cca   :  { %v10895_v57 = vpop.eup %10894 }
0x1ccb   :  { %v2898_v58 = vmul.f32 %v10895_v57, %v10893_v26  ;;  %v9034_v26 = vld [vmem:[%s12418_s2 + $0xb8] ss:$0 sm:$0xff] }
0x1ccd   :  { %v2899_v60 = vpack.c.bf16 %v2898_v58, %v2898_v58 }
0x1ccf   :  { %9974 = vmatmul.mubr.msk.bf16.vlgmr.msra.gmra.mrb[64].mxu1 %vm2781_vm11, %v2899_v60 }
0x1cd0   :  { %9984 = vmatpush3.bf16.msra.mxu1 %v10676_v59  ;;  %9985 = vmatprep.mubr.msk.bf16.mxu1 %vm11034_vm2, %v11033_v37 }
0x1cd1   :  { %9997 = vmatprep.subr.bf16.mxu1 %v11033_v37 }
0x1cd7   :  { %9986 = vmatmul.mubr.msk.bf16.vlgmr.msra.gmra.mrb[68].mxu1 %vm303_vm3, %v2834_v62 }
0x1cd8   :  { %10001 = vmatprep.mubr.msk.bf16.mxu1 %vm11034_vm2, %v11033_v37  ;;  %9998 = vmatpush3.bf16.msra.mxu1 %v10678_v14 }
0x1cd9   :  { %9999 = vmatprep.subr.bf16.mxu1 %v11033_v37 }
0x1cdc   :  { %10000 = vmatpush3.bf16.msra.mxu1 %v10679_v15 }
0x1cdd   :  { %10013 = vmatprep.subr.bf16.mxu1 %v11033_v37 }
0x1d08   :  { %v2466_v63 = vpop.f32.mrb[60].mxu1 }
0x1d09   :  { %v9927_v1 = vpop.f32.mrb[61].mxu1  ;;  %v2477_v2 = vsel %vm187_vm1, %v2466_v63, 0.0  ;;  %v2485_v3 = vmul.f32 %v2466_v63, %v2466_v63 }
0x1d0a   :  { %2478 = vadd.xlane.f32.xlu1 %v2477_v2  ;;  %v2469_v4 = vpop.f32.mrb[62].mxu1 }
0x1d0b   :  { %v2480_v6 = vsel %vm187_vm1, %v2469_v4, 0.0  ;;  %v9928_v7 = vpop.f32.mrb[63].mxu1  ;;  %v2487_v8 = vsel %vm187_vm1, %v2485_v3, 0.0  ;;  %v2486_v9 = vmul.f32 %v2469_v4, %v2469_v4 }
0x1d0c   :  { %2481 = vadd.xlane.f32.xlu0 %v2480_v6 }
0x1d0d   :  { %v2490_v10 = vsel %vm187_vm1, %v2486_v9, 0.0 }
0x1d10   :  { %2488 = vadd.xlane.f32.xlu0 %v2487_v8 }
0x1d14   :  { %2491 = vadd.xlane.f32.xlu0 %v2490_v10  ;;  %v9062_v10 = vld [vmem:[%s12418_s2 + $0x100] ss:$0 sm:$0xff] }
0x1d97   :  { %v2479_v16 = vpop.xlane.xlu1 %2478 }
0x1d98   :  { %v2483_v11 = vmul.f32 0.03125, %v2479_v16 }
0x1d99   :  { %v2482_v17 = vpop.xlane.xlu0 %2481 }
0x1d9a   :  { %v2495_v18 = vmul.f32 %v2483_v11, %v2483_v11  ;;  %v2484_v12 = vmul.f32 0.03125, %v2482_v17  ;;  %v2501_v29 = vsub.f32 %v2466_v63, %v2483_v11  ;;  %v9055_v63 = vld [vmem:[%s12418_s2 + $0xf0] ss:$0 sm:$0xff] }
0x1d9c   :  { %v2496_v23 = vmul.f32 %v2484_v12, %v2484_v12  ;;  %v2502_v47 = vsub.f32 %v2469_v4, %v2484_v12  ;;  %v10680_v12 = vld [vmem:[#allocation2 + $0x208] sm:$0xff]  }
0x1d9d   :  { %v2489_v20 = vpop.xlane.xlu0 %2488 }
0x1d9e   :  { %v2493_v21 = vmul.f32 0.03125, %v2489_v20 }
0x1da0   :  { %v2497_v24 = vsub.f32 %v2493_v21, %v2495_v18  ;;  %v10681_v21 = vld [vmem:[#allocation2 + $0x210] sm:$0xff]  }
0x1da1   :  { %v2492_v22 = vpop.xlane.xlu0 %2491 }
0x1da2   :  { %v2499_v27 = vmax.f32 %v2497_v24, 0.0  ;;  %v2494_v30 = vmul.f32 0.03125, %v2492_v22  ;;  %v2943_v31 = vpop.f32.mrb[64].mxu1 }
0x1da3   :  { %v2951_v32 = vpack.c.bf16 %v2943_v31, %v2943_v31  ;;  %v9975_v36 = vpop.f32.mrb[65].mxu1 }
0x1da4   :  { %v2503_v33 = vadd.f32 1e-06, %v2499_v27  ;;  %v2498_v39 = vsub.f32 %v2494_v30, %v2496_v23  ;;  %v2946_v34 = vpop.f32.mrb[66].mxu1 }
0x1da5   :  { %v9976_v35 = vpop.f32.mrb[67].mxu1  ;;  %9980 = vmatmul.mubr.msk.bf16.vlgmr.msra.gmra.mrb[56].mxu0 %vm303_vm3, %v2951_v32  ;;  %v9056_v34 = vld [vmem:[%s12418_s2 + $0x138] ss:$0 sm:$0xff] }
0x1da6   :  { %10896 = vrsqrt.f32 %v2503_v33  ;;  %v2500_v38 = vmax.f32 %v2498_v39, 0.0  ;;  %9993 = vmatprep.mubr.msk.bf16.mxu0 %vm11034_vm2, %v11033_v37  ;;  %9990 = vmatpush3.bf16.msra.mxu0 %v10680_v12 }
0x1da7   :  { %9991 = vmatprep.subr.bf16.mxu0 %v11033_v37 }
0x1da8   :  { %v2504_v40 = vadd.f32 1e-06, %v2500_v38  ;;  %v9057_v38 = vld [vmem:[%s12418_s2 + $0x140] ss:$0 sm:$0xff] }
0x1daa   :  { %10898 = vrsqrt.f32 %v2504_v40  ;;  %v3044_v42 = vpop.f32.mrb[68].mxu1  ;;  %9992 = vmatpush3.bf16.msra.mxu0 %v10681_v21 }
0x1dab   :  { %v9987_v43 = vpop.f32.mrb[69].mxu1  ;;  %10005 = vmatprep.subr.bf16.mxu0 %v11033_v37 }
0x1dac   :  { %v3047_v41 = vpop.f32.mrb[70].mxu1 }
0x1dad   :  { %v9988_v25 = vpop.f32.mrb[71].mxu1  ;;  %v10682_v41 = vld [vmem:[#allocation2 + $0x228] sm:$0xff]  }
0x1db0   :  { %v10897_v28 = vpop.eup %10896 }
0x1db1   :  { %v2507_v45 = vmul.f32 %v10897_v28, %v2501_v29  ;;  %v10683_v29 = vld [vmem:[#allocation2 + $0x230] sm:$0xff]  }
0x1db3   :  { %v2513_v48 = vmul.f32 %v9032_v44, %v2507_v45 }
0x1db4   :  { %v10899_v49 = vpop.eup %10898 }
0x1db5   :  { %v2519_v50 = vadd.f32 %v9033_v46, %v2513_v48  ;;  %v2508_v51 = vmul.f32 %v10899_v49, %v2502_v47 }
0x1db7   :  { %v2514_v52 = vmul.f32 %v9032_v44, %v2508_v51  ;;  %v11558_v54 = vadd.f32 %v9034_v26, %v2519_v50 }
0x1db9   :  { %v2520_v53 = vadd.f32 %v9033_v46, %v2514_v52  ;;  %v3086_v58 = vadd.f32 %v2529_v55, %v11558_v54 }
0x1dbb   :  { %v11566_v57 = vadd.f32 %v9034_v26, %v2520_v53  ;;  %v9066_v26 = vld [vmem:[%s12418_s2 + $0x108] ss:$0 sm:$0xff] }
0x1dbd   :  { %v3087_v59 = vadd.f32 %v2530_v56, %v11566_v57  ;;  %v3223_v28 = vpack.c.bf16 %v11566_v57, %v11558_v54 }
0x1dbf   :  { %v11570_v60 = vpack.c.bf16 %v3087_v59, %v3086_v58 }
0x1dc1   :  { %10002 = vmatmul.mubr.msk.bf16.vlgmr.msra.gmra.mrb[72].mxu1 %vm187_vm1, %v11570_v60 }
0x1dc2   :  { %10015 = vmatprep.mubr.msk.bf16.mxu1 %vm11034_vm2, %v11033_v37 }
0x1e78   :  { %v2995_v62 = vpop.f32.mrb[56].mxu0 }
0x1e79   :  { %v3045_v1 = vadd.f32 %v3044_v42, %v2995_v62  ;;  %v9981_v2 = vpop.f32.mrb[57].mxu0 }
0x1e7a   :  { %v2998_v3 = vpop.f32.mrb[58].mxu0 }
0x1e7b   :  { %v3055_v4 = vadd.f32 %v9055_v63, %v3045_v1  ;;  %v9982_v6 = vpop.f32.mrb[59].mxu0 }
0x1e7d   :  { %v3059_v7 = vsel %vm3058_vm12, %v3055_v4, 0.0  ;;  %v3063_v8 = vmul.f32 %v3055_v4, %v3055_v4 }
0x1e7e   :  { %3060 = vadd.xlane.f32.xlu0 %v3059_v7 }
0x1e7f   :  { %v3064_v9 = vsel %vm3058_vm12, %v3063_v8, 0.0 }
0x1e82   :  { %3065 = vadd.xlane.f32.xlu0 %v3064_v9 }
0x1e94   :  { %v3212_v13 = vpop.f32.mrb[72].mxu1 }
0x1e95   :  { %v10003_v14 = vpop.f32.mrb[73].mxu1  ;;  %v3213_v16 = vadd.f32 %v9062_v10, %v3212_v13 }
0x1e96   :  { %v3215_v15 = vpop.f32.mrb[74].mxu1 }
0x1e97   :  { %v3216_v17 = vadd.f32 %v9062_v10, %v3215_v15  ;;  %v10004_v11 = vpop.f32.mrb[75].mxu1 }
0x1e99   :  { %v3286_v18 = vpack.c.bf16 %v3216_v17, %v3213_v16 }
0x1e9b   :  { %3398 = vrot.lane.b32.xlu0 %v3286_v18, %s11041_s20  ;;  %v3292_v20 = vsel %vm3287_vm13, %v3286_v18, 0 }
0x1e9c   :  { %10014 = vmatpush3.bf16.xpose.msra.mxu1 %v3292_v20 }
0x1e9d   :  { %10025 = vmatprep.subr.bf16.mxu1 %v11033_v37 }
0x1f0b   :  { %v3061_v23 = vpop.xlane.xlu0 %3060 }
0x1f0c   :  { %v3062_v24 = vmul.f32 0.03125, %v3061_v23 }
0x1f0e   :  { %v3068_v27 = vmul.f32 %v3062_v24, %v3062_v24  ;;  %v3071_v33 = vsub.f32 %v3055_v4, %v3062_v24 }
0x1f0f   :  { %v3066_v22 = vpop.xlane.xlu0 %3065 }
0x1f10   :  { %v3067_v30 = vmul.f32 0.03125, %v3066_v22 }
0x1f12   :  { %v3069_v31 = vsub.f32 %v3067_v30, %v3068_v27 }
0x1f13   :  { %v3399_v47 = vpop.permute.xlu0 %3398 }
0x1f14   :  { %v3070_v32 = vmax.f32 %v3069_v31, 0.0  ;;  %v3404_v51 = vsel %vm3287_vm13, %v3399_v47, 0 }
0x1f16   :  { %v3072_v36 = vadd.f32 1e-05, %v3070_v32 }
0x1f18   :  { %10900 = vrsqrt.f32 %v3072_v36 }
0x1f22   :  { %v10901_v39 = vpop.eup %10900 }
0x1f23   :  { %v3074_v35 = vmul.f32 %v10901_v39, %v3071_v33 }
0x1f25   :  { %v3079_v40 = vmul.f32 %v9056_v34, %v3074_v35  ;;  %v3392_v34 = vld [vmem:[#allocation2 + $0x238] sm:$0xf] }
0x1f27   :  { %v11595_v42 = vadd.f32 %v9057_v38, %v3079_v40  ;;  %v3559_v40 = vsel %vm3511_vm15, %v3392_v34, 0 }
0x1f29   :  { %v3085_v43 = vadd.f32 %v11595_v42, %v11414_v19  ;;  %v9058_v19 = vld [vmem:[%s12418_s2 + $0xf8] ss:$0 sm:$0xff] }
0x1f2b   :  { %v3092_v25 = vpack.c.bf16 %v3085_v43, %v3085_v43  ;;  %v3506_v43 = vld [vmem:[#allocation2 + $0x240] sm:$0xf] }
0x1f2d   :  { %9994 = vmatmul.mubr.msk.bf16.vlgmr.msra.gmra.mrb[60].mxu0 %vm187_vm1, %v3092_v25 }
0x1f2e   :  { %10006 = vmatpush3.bf16.msra.mxu0 %v10682_v41  ;;  %10009 = vmatprep.mubr.msk.bf16.mxu0 %vm11034_vm2, %v11033_v37  ;;  %v3513_v41 = vsel %vm3511_vm15, %v3506_v43, 0 }
0x1f2f   :  { %10007 = vmatprep.subr.bf16.mxu0 %v11033_v37 }
0x1f32   :  { %10008 = vmatpush3.bf16.msra.mxu0 %v10683_v29 }
0x1f33   :  { %10019 = vmatprep.subr.bf16.mxu0 %v11033_v37 }
0x1f35   :  { %10010 = vmatmul.mubr.msk.bf16.vlgmr.msra.gmra.mrb[64].mxu0 %vm187_vm1, %v3223_v28 }
0x1f36   :  { %10021 = vmatprep.mubr.msk.bf16.mxu0 %vm11034_vm2, %v11033_v37 }
0x2000   :  { %v3147_v44 = vpop.f32.mrb[60].mxu0 }
0x2001   :  { %v3148_v45 = vadd.f32 %v9058_v19, %v3147_v44  ;;  %v9995_v46 = vpop.f32.mrb[61].mxu0 }
0x2002   :  { %v3150_v48 = vpop.f32.mrb[62].mxu0 }
0x2003   :  { %v3285_v49 = vpack.c.bf16 %v3148_v45, %v3148_v45  ;;  %v9996_v50 = vpop.f32.mrb[63].mxu0 }
0x2005   :  { %3395 = vrot.lane.b32.xlu1 %v3285_v49, %s11041_s20  ;;  %10016 = vmatmul.mubr.msk.bf16.vlgmr.msra.gmra.mrb[76].mxu1 %vm3287_vm13, %v3285_v49 }
0x2006   :  { %10026 = vmatpush3.bf16.xpose.msra.mxu1 %v3404_v51  ;;  %10027 = vmatprep.mubr.msk.bf16.mxu1 %vm11034_vm2, %v11033_v37 }
0x2007   :  { %10037 = vmatprep.subr.bf16.mxu1 %v11033_v37 }
0x2008   :  { %v3278_v52 = vpop.f32.mrb[64].mxu0 }
0x2009   :  { %v10011_v53 = vpop.f32.mrb[65].mxu0  ;;  %v3279_v56 = vadd.f32 %v9066_v26, %v3278_v52 }
0x200a   :  { %v3281_v55 = vpop.f32.mrb[66].mxu0 }
0x200b   :  { %v3282_v58 = vadd.f32 %v9066_v26, %v3281_v55  ;;  %v10012_v59 = vpop.f32.mrb[67].mxu0  ;;  %v9076_v55 = vld [vmem:[%s12418_s2 + $0x110] ss:$0 sm:$0xff] }
0x200d   :  { %v3348_v62 = vpack.c.bf16 %v3282_v58, %v3279_v56 }
0x200f   :  { %10020 = vmatpush3.bf16.msra.mxu0 %v3348_v62 }
0x2010   :  { %10031 = vmatprep.subr.bf16.mxu0 %v11033_v37 }
0x2077   :  { %v3396_v63 = vpop.permute.xlu1 %3395 }
0x2078   :  { %10028 = vmatmul.mubr.msk.bf16.vlgmr.msra.gmra.mrb[80].mxu1 %vm3287_vm13, %v3396_v63 }
0x2079   :  { %10039 = vmatprep.mubr.msk.bf16.mxu1 %vm11034_vm2, %v11033_v37  ;;  %10038 = vmatpush3.bf16.msra.mxu1 %v3513_v41  ;;  %v9091_v41 = vld [vmem:[%s12418_s2 + $0x118] ss:$0 sm:$0xff] }
0x207a   :  { %10049 = vmatprep.subr.bf16.mxu1 %v11033_v37 }
0x20d8   :  { %v3328_v1 = vpop.f32.mrb[76].mxu1 }
0x20d9   :  { %v3334_v2 = vmul.f32 0.35355338, %v3328_v1  ;;  %v10017_v3 = vpop.f32.mrb[77].mxu1 }
0x20da   :  { %v3331_v4 = vpop.f32.mrb[78].mxu1 }
0x20db   :  { %v10018_v6 = vpop.f32.mrb[79].mxu1  ;;  %v3336_v7 = vsel %vm3335_vm14, %v3334_v2, -inf }
0x20dc   :  { %3337 = vmax.xlane.f32.xlu0 %v3336_v7  ;;  %v10684_v6 = vld [vmem:[#allocation2 + $0x288] sm:$0xff]   ;;  %v10685_v7 = vld [vmem:[#allocation2 + $0x290] sm:$0xff]  }
0x214b   :  { %v3440_v8 = vpop.f32.mrb[80].mxu1 }
0x214c   :  { %v3446_v9 = vmul.f32 0.35355338, %v3440_v8  ;;  %v10029_v10 = vpop.f32.mrb[81].mxu1  ;;  %v10688_v8 = vld [vmem:[#allocation2 + $0x298] sm:$0xff]  }
0x214d   :  { %v3443_v13 = vpop.f32.mrb[82].mxu1 }
0x214e   :  { %v10030_v14 = vpop.f32.mrb[83].mxu1  ;;  %v3447_v15 = vsel %vm3335_vm14, %v3446_v9, -inf }
0x214f   :  { %3448 = vmax.xlane.f32.xlu1 %v3447_v15 }
0x2169   :  { %v3338_v16 = vpop.xlane.xlu0 %3337 }
0x216a   :  { %v3339_v17 = vsub.f32 %v3334_v2, %v3338_v16 }
0x216c   :  { %v3340_v11 = vmul.f32 1.442695, %v3339_v17 }
0x216e   :  { %10902 = vpow2.f32 %v3340_v11 }
0x2178   :  { %v10903_v18 = vpop.eup %10902 }
0x2179   :  { %v3342_v20 = vsel %vm3335_vm14, %v10903_v18, 0.0 }
0x217a   :  { %3343 = vadd.xlane.f32.xlu0 %v3342_v20 }
0x21dc   :  { %v3449_v12 = vpop.xlane.xlu1 %3448 }
0x21dd   :  { %v3450_v21 = vsub.f32 %v3446_v9, %v3449_v12  ;;  %v10689_v9 = vld [vmem:[#allocation2 + $0x2a0] sm:$0xff]   ;;  %v9077_v12 = vld [vmem:[%s12418_s2 + $0x148] ss:$0 sm:$0xff] }
0x21df   :  { %v3451_v23 = vmul.f32 1.442695, %v3450_v21 }
0x21e1   :  { %10904 = vpow2.f32 %v3451_v23  ;;  %v9078_v23 = vld [vmem:[%s12418_s2 + $0x150] ss:$0 sm:$0xff] }
0x21eb   :  { %v10905_v24 = vpop.eup %10904 }
0x21ec   :  { %v3453_v22 = vsel %vm3335_vm14, %v10905_v24, 0.0 }
0x21ed   :  { %3454 = vadd.xlane.f32.xlu0 %v3453_v22 }
0x2203   :  { %3460 = vrot.lane.b32.xlu0 %v3348_v62, %s11041_s20 }
0x2207   :  { %v3344_v27 = vpop.xlane.xlu0 %3343 }
0x2208   :  { %10906 = vrcp.f32 %v3344_v27  ;;  %v10686_v27 = vld [vmem:[#allocation2 + $0x248] sm:$0xff]  }
0x2212   :  { %v10907_v30 = vpop.eup %10906 }
0x2213   :  { %v3346_v31 = vmul.f32 %v10907_v30, %v10903_v18 }
0x2215   :  { %v3347_v32 = vpack.c.bf16 %v3346_v31, %v3346_v31  ;;  %v10687_v31 = vld [vmem:[#allocation2 + $0x250] sm:$0xff]  }
0x2217   :  { %10022 = vmatmul.mubr.msk.bf16.vlgmr.msra.gmra.mrb[68].mxu0 %vm303_vm3, %v3347_v32  ;;  %v10690_v32 = vld [vmem:[#allocation2 + $0x2a8] sm:$0xff]  }
0x2218   :  { %10033 = vmatprep.mubr.msk.bf16.mxu0 %vm11034_vm2, %v11033_v37 }
0x227a   :  { %v3455_v36 = vpop.xlane.xlu0 %3454 }
0x227b   :  { %10908 = vrcp.f32 %v3455_v36  ;;  %v10691_v36 = vld [vmem:[#allocation2 + $0x2b0] sm:$0xff]  }
0x227e   :  { %v3461_v33 = vpop.permute.xlu0 %3460 }
0x227f   :  { %10032 = vmatpush3.bf16.msra.mxu0 %v3461_v33  ;;  %v9079_v33 = vld [vmem:[%s12418_s2 + $0x178] ss:$0 sm:$0xff] }
0x2280   :  { %10043 = vmatprep.subr.bf16.mxu0 %v11033_v37 }
0x2285   :  { %v10909_v39 = vpop.eup %10908 }
0x2286   :  { %v3457_v35 = vmul.f32 %v10909_v39, %v10905_v24 }
0x2288   :  { %v3458_v38 = vpack.c.bf16 %v3457_v35, %v3457_v35 }
0x228a   :  { %10034 = vmatmul.mubr.msk.bf16.vlgmr.msra.gmra.mrb[72].mxu0 %vm303_vm3, %v3458_v38 }
0x228b   :  { %10044 = vmatpush3.bf16.msra.mxu0 %v3559_v40  ;;  %10045 = vmatprep.mubr.msk.bf16.mxu0 %vm11034_vm2, %v11033_v37 }
0x228c   :  { %10057 = vmatprep.subr.bf16.mxu0 %v11033_v37 }
0x22ea   :  { %v3386_v25 = vpop.f32.mrb[68].mxu0 }
0x22eb   :  { %v3393_v29 = vpack.c.bf16 %v3386_v25, %v3386_v25  ;;  %v10023_v28 = vpop.f32.mrb[69].mxu0 }
0x22ec   :  { %v3389_v19 = vpop.f32.mrb[70].mxu0 }
0x22ed   :  { %v10024_v44 = vpop.f32.mrb[71].mxu0  ;;  %10046 = vmatmul.mubr.msk.bf16.vlgmr.msra.gmra.mrb[76].mxu0 %vm3287_vm13, %v3393_v29 }
0x22ee   :  { %10065 = vmatprep.mubr.msk.bf16.mxu0 %vm11034_vm2, %v11033_v37  ;;  %10058 = vmatpush3.bf16.msra.mxu0 %v10688_v8 }
0x22ef   :  { %10059 = vmatprep.subr.bf16.mxu0 %v11033_v37 }
0x22f2   :  { %10060 = vmatpush3.bf16.msra.mxu0 %v10689_v9 }
0x22f3   :  { %10061 = vmatprep.subr.bf16.mxu0 %v11033_v37 }
0x22f6   :  { %10062 = vmatpush3.bf16.msra.mxu0 %v10690_v32 }
0x22f7   :  { %10063 = vmatprep.subr.bf16.mxu0 %v11033_v37 }
0x22fa   :  { %10064 = vmatpush3.bf16.msra.mxu0 %v10691_v36 }
0x22fb   :  { %10085 = vmatprep.subr.bf16.mxu0 %v11033_v37 }
0x235d   :  { %v3500_v45 = vpop.f32.mrb[72].mxu0 }
0x235e   :  { %v3507_v46 = vpack.c.bf16 %v3500_v45, %v3500_v45  ;;  %v10035_v47 = vpop.f32.mrb[73].mxu0 }
0x235f   :  { %v3503_v48 = vpop.f32.mrb[74].mxu0 }
0x2360   :  { %v10036_v49 = vpop.f32.mrb[75].mxu0  ;;  %10040 = vmatmul.mubr.msk.bf16.vlgmr.msra.gmra.mrb[84].mxu1 %vm3287_vm13, %v3507_v46  ;;  %v9088_v48 = vld [vmem:[%s12418_s2 + $0x180] ss:$0 sm:$0xff] }
0x2361   :  { %10053 = vmatprep.mubr.msk.bf16.mxu1 %vm11034_vm2, %v11033_v37  ;;  %10050 = vmatpush3.bf16.msra.mxu1 %v10684_v6 }
0x2362   :  { %10051 = vmatprep.subr.bf16.mxu1 %v11033_v37 }
0x2365   :  { %10052 = vmatpush3.bf16.msra.mxu1 %v10685_v7 }
0x2366   :  { %10069 = vmatprep.subr.bf16.mxu1 %v11033_v37 }
0x23c0   :  { %v3595_v50 = vpop.f32.mrb[76].mxu0 }
0x23c1   :  { %v10047_v51 = vpop.f32.mrb[77].mxu0 }
0x23c2   :  { %v3598_v26 = vpop.f32.mrb[78].mxu0 }
0x23c3   :  { %v10048_v52 = vpop.f32.mrb[79].mxu0 }
0x2433   :  { %v3549_v53 = vpop.f32.mrb[84].mxu1 }
0x2434   :  { %v3596_v56 = vadd.f32 %v3595_v50, %v3549_v53  ;;  %v10041_v58 = vpop.f32.mrb[85].mxu1 }
0x2435   :  { %v3552_v59 = vpop.f32.mrb[86].mxu1  ;;  %v10692_v58 = vld [vmem:[#allocation2 + $0x268] sm:$0xff]  }
0x2436   :  { %v3606_v62 = vadd.f32 %v9076_v55, %v3596_v56  ;;  %v10042_v63 = vpop.f32.mrb[87].mxu1  ;;  %v10693_v59 = vld [vmem:[#allocation2 + $0x258] sm:$0xff]  }
0x2437   :  { %v10695_v63 = vld [vmem:[#allocation2 + $0x260] sm:$0xff]  }
0x2438   :  { %v3607_v1 = vadd.f32 %v3606_v62, %v11595_v42  ;;  %v10694_v62 = vld [vmem:[#allocation2 + $0x270] sm:$0xff]  }
0x243a   :  { %v3610_v2 = vsel %vm3058_vm12, %v3607_v1, 0.0  ;;  %v3614_v3 = vmul.f32 %v3607_v1, %v3607_v1 }
0x243b   :  { %3611 = vadd.xlane.f32.xlu1 %v3610_v2 }
0x243c   :  { %v3615_v4 = vsel %vm3058_vm12, %v3614_v3, 0.0 }
0x243f   :  { %3616 = vadd.xlane.f32.xlu1 %v3615_v4 }
0x24c8   :  { %v3612_v42 = vpop.xlane.xlu1 %3611 }
0x24c9   :  { %v3613_v10 = vmul.f32 0.03125, %v3612_v42 }
0x24cb   :  { %v3619_v14 = vmul.f32 %v3613_v10, %v3613_v10  ;;  %v3622_v18 = vsub.f32 %v3607_v1, %v3613_v10 }
0x24cc   :  { %v3617_v13 = vpop.xlane.xlu1 %3616 }
0x24cd   :  { %v3618_v15 = vmul.f32 0.03125, %v3617_v13  ;;  %v9089_v13 = vld [vmem:[%s12418_s2 + $0x158] ss:$0 sm:$0xff] }
0x24cf   :  { %v3620_v16 = vsub.f32 %v3618_v15, %v3619_v14  ;;  %v9090_v15 = vld [vmem:[%s12418_s2 + $0x160] ss:$0 sm:$0xff] }
0x24d1   :  { %v3621_v17 = vmax.f32 %v3620_v16, 0.0 }
0x24d3   :  { %v3623_v11 = vadd.f32 1e-05, %v3621_v17 }
0x24d5   :  { %10910 = vrsqrt.f32 %v3623_v11 }
0x24df   :  { %v10911_v20 = vpop.eup %10910 }
0x24e0   :  { %v3625_v21 = vmul.f32 %v10911_v20, %v3622_v18  ;;  %v11711_v18 = vld [vmem:[%s12418_s2 + $0xd0] sm:$0x1f] }
0x24e2   :  { %v3630_v24 = vmul.f32 %v9077_v12, %v3625_v21  ;;  %v9099_v21 = vld [vmem:[%s12418_s2 + $0x128] ss:$0 sm:$0xff] }
0x24e4   :  { %v3635_v22 = vadd.f32 %v9078_v23, %v3630_v24  ;;  %v9095_v24 = vld [vmem:[%s12418_s2 + $0x120] ss:$0 sm:$0xff] }
0x24e6   :  { %v3640_v30 = vpack.c.bf16 %v3635_v22, %v3635_v22 }
0x24e8   :  { %10054 = vmatmul.mubr.msk.bf16.vlgmr.msra.gmra.mrb[88].mxu1 %vm187_vm1, %v3640_v30 }
0x24e9   :  { %10070 = vmatpush3.bf16.msra.mxu1 %v10686_v27  ;;  %10073 = vmatprep.mubr.msk.bf16.mxu1 %vm11034_vm2, %v11033_v37 }
0x24ea   :  { %10071 = vmatprep.subr.bf16.mxu1 %v11033_v37 }
0x24ed   :  { %10072 = vmatpush3.bf16.msra.mxu1 %v10687_v31 }
0x24ee   :  { %10077 = vmatprep.subr.bf16.mxu1 %v11033_v37 }
0x24f0   :  { %10074 = vmatmul.mubr.msk.bf16.vlgmr.msra.gmra.mrb[92].mxu1 %vm187_vm1, %v11570_v60 }
0x24f1   :  { %10081 = vmatprep.mubr.msk.bf16.mxu1 %vm11034_vm2, %v11033_v37  ;;  %10078 = vmatpush3.bf16.msra.mxu1 %v10693_v59 }
0x24f2   :  { %10079 = vmatprep.subr.bf16.mxu1 %v11033_v37 }
0x24f5   :  { %10080 = vmatpush3.bf16.msra.mxu1 %v10695_v63 }
0x24f6   :  { %10093 = vmatprep.subr.bf16.mxu1 %v11033_v37 }
0x25bb   :  { %v3695_v39 = vpop.f32.mrb[88].mxu1 }
0x25bc   :  { %v3696_v34 = vadd.f32 %v9079_v33, %v3695_v39  ;;  %v10055_v35 = vpop.f32.mrb[89].mxu1 }
0x25bd   :  { %v3698_v38 = vpop.f32.mrb[90].mxu1 }
0x25be   :  { %v3701_v60 = vmax.f32 %v3696_v34, 0.0  ;;  %v10056_v40 = vpop.f32.mrb[91].mxu1 }
0x25c0   :  { %v3710_v43 = vpack.c.bf16 %v3701_v60, %v3701_v60 }
0x25c2   :  { %10066 = vmatmul.mubr.msk.bf16.vlgmr.msra.gmra.mrb[80].mxu0 %vm136_vm0, %v3710_v43 }
0x25c3   :  { %v3869_v25 = vpop.f32.mrb[92].mxu1  ;;  %10089 = vmatprep.mubr.msk.bf16.mxu0 %vm11034_vm2, %v11033_v37  ;;  %10086 = vmatpush3.bf16.msra.mxu0 %v10692_v58 }
0x25c4   :  { %v10075_v29 = vpop.f32.mrb[93].mxu1  ;;  %v3870_v19 = vadd.f32 %v9091_v41, %v3869_v25  ;;  %10087 = vmatprep.subr.bf16.mxu0 %v11033_v37 }
0x25c5   :  { %v3872_v28 = vpop.f32.mrb[94].mxu1 }
0x25c6   :  { %v3873_v44 = vadd.f32 %v9091_v41, %v3872_v28  ;;  %v10076_v45 = vpop.f32.mrb[95].mxu1 }
0x25c7   :  { %10088 = vmatpush3.bf16.msra.mxu0 %v10694_v62 }
0x25c8   :  { %v11683_v46 = vpack.c.bf16 %v3873_v44, %v3870_v19  ;;  %10099 = vmatprep.subr.bf16.mxu0 %v11033_v37 }
0x25ca   :  { %4131 = vrot.lane.b32.xlu0 %v11683_v46, %s11041_s20 }
0x263c   :  { %v4132_v25 = vpop.permute.xlu0 %4131 }
0x2695   :  { %v3772_v47 = vpop.f32.mrb[80].mxu0 }
0x2696   :  { %v3778_v49 = vadd.f32 %v3772_v47, %v3635_v22  ;;  %v10067_v50 = vpop.f32.mrb[81].mxu0 }
0x2697   :  { %v3775_v51 = vpop.f32.mrb[82].mxu0 }
0x2698   :  { %v3784_v26 = vadd.f32 %v9088_v48, %v3778_v49  ;;  %v10068_v52 = vpop.f32.mrb[83].mxu0 }
0x269a   :  { %v3787_v53 = vsel %vm3058_vm12, %v3784_v26, 0.0  ;;  %v3791_v55 = vmul.f32 %v3784_v26, %v3784_v26 }
0x269b   :  { %3788 = vadd.xlane.f32.xlu1 %v3787_v53 }
0x269c   :  { %v3792_v56 = vsel %vm3058_vm12, %v3791_v55, 0.0 }
0x269f   :  { %3793 = vadd.xlane.f32.xlu1 %v3792_v56 }
0x2728   :  { %v3789_v1 = vpop.xlane.xlu1 %3788 }
0x2729   :  { %v3790_v2 = vmul.f32 0.03125, %v3789_v1 }
0x272b   :  { %v3796_v4 = vmul.f32 %v3790_v2, %v3790_v2  ;;  %v3799_v42 = vsub.f32 %v3784_v26, %v3790_v2 }
0x272c   :  { %v3794_v3 = vpop.xlane.xlu1 %3793 }
0x272d   :  { %v3795_v6 = vmul.f32 0.03125, %v3794_v3 }
0x272f   :  { %v3797_v7 = vsub.f32 %v3795_v6, %v3796_v4 }
0x2731   :  { %v3798_v8 = vmax.f32 %v3797_v7, 0.0 }
0x2733   :  { %v3800_v9 = vadd.f32 1e-05, %v3798_v8 }
0x2735   :  { %10912 = vrsqrt.f32 %v3800_v9 }
0x273f   :  { %v10913_v10 = vpop.eup %10912 }
0x2740   :  { %v3802_v14 = vmul.f32 %v10913_v10, %v3799_v42 }
0x2742   :  { %v3807_v16 = vmul.f32 %v9089_v13, %v3802_v14 }
0x2744   :  { %v11702_v17 = vadd.f32 %v9090_v15, %v3807_v16 }
0x2746   :  { %v11706_v11 = vpack.c.bf16 %v11702_v17, %v11702_v17  ;;  %v3813_v20 = vadd.f32 %v11711_v18, %v11702_v17 }
0x2748   :  { %10090 = vmatmul.mubr.msk.bf16.vlgmr.msra.gmra.mrb[84].mxu0 %vm187_vm1, %v11706_v11  ;;  %v11717_v12 = vpack.c.bf16 %v3813_v20, %v3813_v20 }
0x2749   :  { %10101 = vmatprep.mubr.msk.bf16.mxu0 %vm11034_vm2, %v11033_v37 }
0x274a   :  { %10082 = vmatmul.mubr.msk.bf16.vlgmr.msra.gmra.mrb[96].mxu1 %vm187_vm1, %v11717_v12 }
0x274b   :  { %10095 = vmatprep.mubr.msk.bf16.mxu1 %vm11034_vm2, %v11033_v37 }
0x281b   :  { %v4000_v23 = vpop.f32.mrb[84].mxu0 }
0x281c   :  { %v4001_v22 = vadd.f32 %v9099_v21, %v4000_v23  ;;  %v10091_v27 = vpop.f32.mrb[85].mxu0 }
0x281d   :  { %v3935_v30 = vpop.f32.mrb[96].mxu1  ;;  %v4003_v31 = vpop.f32.mrb[86].mxu0 }
0x281e   :  { %v11731_v32 = vpack.c.bf16 %v4001_v22, %v4001_v22  ;;  %v3936_v36 = vadd.f32 %v9095_v24, %v3935_v30  ;;  %v10083_v33 = vpop.f32.mrb[97].mxu1  ;;  %v10092_v39 = vpop.f32.mrb[87].mxu0 }
0x281f   :  { %v3938_v34 = vpop.f32.mrb[98].mxu1 }
0x2820   :  { %v4085_v35 = vand.u32 %v11731_v32, %v11462_v61  ;;  %v4007_v38 = vpack.c.bf16 %v3936_v36, %v3936_v36  ;;  %v10084_v60 = vpop.f32.mrb[99].mxu1 }
0x2821   :  { %v4128_v60 = vld [vmem:[#allocation2 + $0x278] sm:$0xf] }
0x2822   :  { %v4012_v40 = vsel %vm3287_vm13, %v4007_v38, 0  ;;  %10100 = vmatpush3.bf16.msra.mxu0 %v4085_v35  ;;  %4134 = vrot.lane.b32.xlu1 %v4007_v38, %s11041_s20 }
0x2823   :  { %10094 = vmatpush3.bf16.xpose.msra.mxu1 %v4012_v40  ;;  %10111 = vmatprep.subr.bf16.mxu0 %v11033_v37 }
0x2824   :  { %10105 = vmatprep.subr.bf16.mxu1 %v11033_v37 }
0x282a   :  { %10096 = vmatmul.mubr.msk.bf16.vlgmr.msra.gmra.mrb[100].mxu1 %vm3287_vm13, %v11683_v46 }
0x282b   :  { %10107 = vmatprep.mubr.msk.bf16.mxu1 %vm11034_vm2, %v11033_v37 }
0x2894   :  { %v4135_v43 = vpop.permute.xlu1 %4134 }
0x2895   :  { %v4140_v41 = vsel %vm3287_vm13, %v4135_v43, 0 }
0x2896   :  { %10106 = vmatpush3.bf16.xpose.msra.mxu1 %v4140_v41 }
0x2897   :  { %10117 = vmatprep.subr.bf16.mxu1 %v11033_v37 }
0x289d   :  { %10108 = vmatmul.mubr.msk.bf16.vlgmr.msra.gmra.mrb[104].mxu1 %vm3287_vm13, %v4132_v25  ;;  %v4311_v25 = vsel %vm3511_vm15, %v4128_v60, 0 }
0x289e   :  { %10119 = vmatprep.mubr.msk.bf16.mxu1 %vm11034_vm2, %v11033_v37 }
0x28fd   :  { %v4048_v29 = vpop.f32.mrb[100].mxu1 }
0x28fe   :  { %v4055_v28 = vmul.f32 0.35355338, %v4048_v29  ;;  %v10097_v19 = vpop.f32.mrb[101].mxu1  ;;  %v4258_v29 = vld [vmem:[#allocation2 + $0x280] sm:$0xf] }
0x28ff   :  { %v4051_v44 = vpop.f32.mrb[102].mxu1 }
0x2900   :  { %v4056_v45 = vmul.f32 0.35355338, %v4051_v44  ;;  %v10098_v46 = vpop.f32.mrb[103].mxu1  ;;  %v4057_v47 = vsel %vm2781_vm11, %v4055_v28, -inf }
0x2901   :  { %4058 = vmax.xlane.f32.xlu0 %v4057_v47  ;;  %v10696_v46 = vld [vmem:[#allocation2 + $0x2c8] sm:$0xff]  }
0x2902   :  { %v4060_v48 = vsel %vm2781_vm11, %v4056_v45, -inf }
0x2903   :  { %4061 = vmax.xlane.f32.xlu1 %v4060_v48 }
0x2970   :  { %v4176_v49 = vpop.f32.mrb[104].mxu1 }
0x2971   :  { %v4183_v50 = vmul.f32 0.35355338, %v4176_v49  ;;  %v10109_v51 = vpop.f32.mrb[105].mxu1  ;;  %v10697_v49 = vld [vmem:[#allocation2 + $0x2d0] sm:$0xff]  }
0x2972   :  { %v4179_v26 = vpop.f32.mrb[106].mxu1 }
0x2973   :  { %v4184_v52 = vmul.f32 0.35355338, %v4179_v26  ;;  %v10110_v53 = vpop.f32.mrb[107].mxu1  ;;  %v4185_v55 = vsel %vm2781_vm11, %v4183_v50, -inf }
0x2974   :  { %4186 = vmax.xlane.f32.xlu0 %v4185_v55 }
0x2975   :  { %v4188_v56 = vsel %vm2781_vm11, %v4184_v52, -inf }
0x2978   :  { %4189 = vmax.xlane.f32.xlu0 %v4188_v56  ;;  %v10699_v56 = vld [vmem:[#allocation2 + $0x2c0] sm:$0xff]  }
0x298e   :  { %v4059_v58 = vpop.xlane.xlu0 %4058 }
0x298f   :  { %v4063_v59 = vsub.f32 %v4055_v28, %v4059_v58  ;;  %v4264_v28 = vsel %vm3511_vm15, %v4258_v29, 0  ;;  %v10700_v58 = vld [vmem:[#allocation2 + $0x2d8] sm:$0xff]  }
0x2990   :  { %v4062_v62 = vpop.xlane.xlu1 %4061  ;;  %10118 = vmatpush3.bf16.msra.mxu1 %v4264_v28 }
0x2991   :  { %v4065_v63 = vmul.f32 1.442695, %v4063_v59  ;;  %v4064_v1 = vsub.f32 %v4056_v45, %v4062_v62  ;;  %10129 = vmatprep.subr.bf16.mxu1 %v11033_v37  ;;  %v10701_v59 = vld [vmem:[#allocation2 + $0x2e0] sm:$0xff]  }
0x2993   :  { %10914 = vpow2.f32 %v4065_v63  ;;  %v4067_v2 = vmul.f32 1.442695, %v4064_v1 }
0x2995   :  { %10916 = vpow2.f32 %v4067_v2  ;;  %v9116_v2 = vld [vmem:[%s12418_s2 + $0x190] ss:$0 sm:$0xff] }
0x299d   :  { %v10915_v3 = vpop.eup %10914 }
0x299e   :  { %v4069_v4 = vsel %vm2781_vm11, %v10915_v3, 0.0 }
0x299f   :  { %v10917_v6 = vpop.eup %10916  ;;  %4070 = vadd.xlane.f32.xlu0 %v4069_v4 }
0x29a0   :  { %v4072_v7 = vsel %vm2781_vm11, %v10917_v6, 0.0 }
0x29a3   :  { %4073 = vadd.xlane.f32.xlu0 %v4072_v7 }
0x2a01   :  { %v4187_v8 = vpop.xlane.xlu0 %4186 }
0x2a02   :  { %v4191_v9 = vsub.f32 %v4183_v50, %v4187_v8 }
0x2a04   :  { %v4193_v42 = vmul.f32 1.442695, %v4191_v9 }
0x2a05   :  { %v4190_v10 = vpop.xlane.xlu0 %4189 }
0x2a06   :  { %10918 = vpow2.f32 %v4193_v42  ;;  %v4192_v13 = vsub.f32 %v4184_v52, %v4190_v10  ;;  %v10698_v52 = vld [vmem:[#allocation2 + $0x2b8] sm:$0xff]  }
0x2a08   :  { %v4195_v14 = vmul.f32 1.442695, %v4192_v13 }
0x2a0a   :  { %10920 = vpow2.f32 %v4195_v14 }
0x2a10   :  { %v10919_v15 = vpop.eup %10918 }
0x2a11   :  { %v4197_v16 = vsel %vm2781_vm11, %v10919_v15, 0.0 }
0x2a12   :  { %4198 = vadd.xlane.f32.xlu0 %v4197_v16 }
0x2a14   :  { %v10921_v20 = vpop.eup %10920 }
0x2a15   :  { %v4200_v21 = vsel %vm2781_vm11, %v10921_v20, 0.0 }
0x2a16   :  { %4201 = vadd.xlane.f32.xlu1 %v4200_v21 }
0x2a28   :  { %4209 = vrot.lane.b32.xlu0 %v11731_v32, %s11041_s20 }
0x2a2c   :  { %v4071_v23 = vpop.xlane.xlu0 %4070 }
0x2a2d   :  { %10922 = vrcp.f32 %v4071_v23 }
0x2a30   :  { %v4074_v24 = vpop.xlane.xlu0 %4073 }
0x2a31   :  { %10924 = vrcp.f32 %v4074_v24 }
0x2a37   :  { %v10923_v22 = vpop.eup %10922 }
0x2a38   :  { %v4077_v30 = vmul.f32 %v10923_v22, %v10915_v3 }
0x2a3b   :  { %v10925_v27 = vpop.eup %10924 }
0x2a3c   :  { %v4078_v31 = vmul.f32 %v10925_v27, %v10917_v6 }
0x2a3e   :  { %v4079_v36 = vpack.c.bf16 %v4078_v31, %v4077_v30 }
0x2a40   :  { %10102 = vmatmul.mubr.msk.bf16.vlgmr.msra.gmra.mrb[88].mxu0 %vm2781_vm11, %v4079_v36 }
0x2a41   :  { %10113 = vmatprep.mubr.msk.bf16.mxu0 %vm11034_vm2, %v11033_v37 }
0x2a9f   :  { %v4199_v33 = vpop.xlane.xlu0 %4198 }
0x2aa0   :  { %10926 = vrcp.f32 %v4199_v33  ;;  %v9120_v33 = vld [vmem:[%s12418_s2 + $0x198] ss:$0 sm:$0xff] }
0x2aa3   :  { %v4202_v39 = vpop.xlane.xlu1 %4201  ;;  %v4210_v34 = vpop.permute.xlu0 %4209 }
0x2aa4   :  { %10928 = vrcp.f32 %v4202_v39  ;;  %v4215_v32 = vand.u32 %v4210_v34, %v11462_v61 }
0x2aa6   :  { %10112 = vmatpush3.bf16.msra.mxu0 %v4215_v32 }
0x2aa7   :  { %10123 = vmatprep.subr.bf16.mxu0 %v11033_v37 }
0x2aaa   :  { %v10927_v35 = vpop.eup %10926 }
0x2aab   :  { %v4205_v40 = vmul.f32 %v10927_v35, %v10919_v15 }
0x2aae   :  { %v10929_v38 = vpop.eup %10928 }
0x2aaf   :  { %v4206_v43 = vmul.f32 %v10929_v38, %v10921_v20  ;;  %v9112_v20 = vld [vmem:[%s12418_s2 + $0x188] ss:$0 sm:$0xff] }
0x2ab1   :  { %v4207_v41 = vpack.c.bf16 %v4206_v43, %v4205_v40 }
0x2ab3   :  { %10114 = vmatmul.mubr.msk.bf16.vlgmr.msra.gmra.mrb[92].mxu0 %vm2781_vm11, %v4207_v41 }
0x2ab4   :  { %10124 = vmatpush3.bf16.msra.mxu0 %v4311_v25  ;;  %10125 = vmatprep.mubr.msk.bf16.mxu0 %vm11034_vm2, %v11033_v37 }
0x2ab5   :  { %10137 = vmatprep.subr.bf16.mxu0 %v11033_v37 }
0x2b13   :  { %v4121_v19 = vpop.f32.mrb[88].mxu0 }
0x2b14   :  { %v10103_v44 = vpop.f32.mrb[89].mxu0 }
0x2b15   :  { %v4124_v45 = vpop.f32.mrb[90].mxu0 }
0x2b16   :  { %v4129_v47 = vpack.c.bf16 %v4124_v45, %v4121_v19  ;;  %v10104_v48 = vpop.f32.mrb[91].mxu0 }
0x2b18   :  { %10126 = vmatmul.mubr.msk.bf16.vlgmr.msra.gmra.mrb[96].mxu0 %vm3287_vm13, %v4129_v47 }
0x2b19   :  { %10138 = vmatpush3.bf16.msra.mxu0 %v10696_v46  ;;  %10141 = vmatprep.mubr.msk.bf16.mxu0 %vm11034_vm2, %v11033_v37 }
0x2b1a   :  { %10139 = vmatprep.subr.bf16.mxu0 %v11033_v37 }
0x2b1d   :  { %10140 = vmatpush3.bf16.msra.mxu0 %v10697_v49 }
0x2b1e   :  { %10153 = vmatprep.subr.bf16.mxu0 %v11033_v37 }
0x2b20   :  { %10142 = vmatmul.mubr.msk.bf16.vlgmr.msra.gmra.mrb[100].mxu0 %vm187_vm1, %v11717_v12 }
0x2b21   :  { %10155 = vmatprep.mubr.msk.bf16.mxu0 %vm11034_vm2, %v11033_v37 }
0x2b86   :  { %v4251_v50 = vpop.f32.mrb[92].mxu0 }
0x2b87   :  { %v10115_v51 = vpop.f32.mrb[93].mxu0 }
0x2b88   :  { %v4254_v26 = vpop.f32.mrb[94].mxu0 }
0x2b89   :  { %v4259_v53 = vpack.c.bf16 %v4254_v26, %v4251_v50  ;;  %v10116_v55 = vpop.f32.mrb[95].mxu0 }
0x2b8b   :  { %10120 = vmatmul.mubr.msk.bf16.vlgmr.msra.gmra.mrb[108].mxu1 %vm3287_vm13, %v4259_v53 }
0x2b8c   :  { %10130 = vmatpush3.bf16.msra.mxu1 %v10698_v52  ;;  %10133 = vmatprep.mubr.msk.bf16.mxu1 %vm11034_vm2, %v11033_v37 }
0x2b8d   :  { %10131 = vmatprep.subr.bf16.mxu1 %v11033_v37 }
0x2b90   :  { %10132 = vmatpush3.bf16.msra.mxu1 %v10699_v56 }
0x2b91   :  { %10145 = vmatprep.subr.bf16.mxu1 %v11033_v37 }
0x2b93   :  { %10134 = vmatmul.mubr.msk.bf16.vlgmr.msra.gmra.mrb[112].mxu1 %vm187_vm1, %v11717_v12 }
0x2b94   :  { %10146 = vmatpush3.bf16.msra.mxu1 %v10700_v58  ;;  %10149 = vmatprep.mubr.msk.bf16.mxu1 %vm11034_vm2, %v11033_v37 }
0x2b95   :  { %10147 = vmatprep.subr.bf16.mxu1 %v11033_v37 }
0x2b98   :  { %10148 = vmatpush3.bf16.msra.mxu1 %v10701_v59 }
0x2b99   :  { %10159 = vmatprep.subr.bf16.mxu1 %v11033_v37 }
0x2b9b   :  { %10150 = vmatmul.mubr.msk.bf16.vlgmr.msra.gmra.mrb[116].mxu1 %vm187_vm1, %v11706_v11 }
0x2b9c   :  { %10161 = vmatprep.mubr.msk.bf16.mxu1 %vm11034_vm2, %v11033_v37 }
0x2beb   :  { %v4347_v62 = vpop.f32.mrb[96].mxu0 }
0x2bec   :  { %v10127_v63 = vpop.f32.mrb[97].mxu0 }
0x2bed   :  { %v4350_v1 = vpop.f32.mrb[98].mxu0 }
0x2bee   :  { %v10128_v12 = vpop.f32.mrb[99].mxu0 }
0x2bf3   :  { %v4525_v3 = vpop.f32.mrb[100].mxu0 }
0x2bf4   :  { %v4526_v4 = vadd.f32 %v9116_v2, %v4525_v3  ;;  %v10143_v6 = vpop.f32.mrb[101].mxu0 }
0x2bf5   :  { %v4528_v7 = vpop.f32.mrb[102].mxu0 }
0x2bf6   :  { %v4593_v8 = vpack.c.bf16 %v4526_v4, %v4526_v4  ;;  %v10144_v9 = vpop.f32.mrb[103].mxu0 }
0x2bf8   :  { %v4598_v42 = vsel %vm303_vm3, %v4593_v8, 0  ;;  %4707 = vrot.lane.b32.xlu1 %v4593_v8, %s11037_s21 }
0x2bf9   :  { %10154 = vmatpush3.bf16.xpose.msra.mxu0 %v4598_v42 }
0x2bfa   :  { %10165 = vmatprep.subr.bf16.mxu0 %v11033_v37 }
0x2c5e   :  { %v4300_v11 = vpop.f32.mrb[108].mxu1 }
0x2c5f   :  { %v4348_v10 = vadd.f32 %v4347_v62, %v4300_v11  ;;  %v10121_v13 = vpop.f32.mrb[109].mxu1  ;;  %v9109_v62 = vld [vmem:[%s12418_s2 + $0x130] ss:$0 sm:$0xff] }
0x2c60   :  { %v4303_v14 = vpop.f32.mrb[110].mxu1 }
0x2c61   :  { %v4351_v15 = vadd.f32 %v4350_v1, %v4303_v14  ;;  %v10122_v16 = vpop.f32.mrb[111].mxu1  ;;  %v4359_v63 = vadd.f32 %v9109_v62, %v4348_v10 }
0x2c63   :  { %v11825_v12 = vadd.f32 %v4359_v63, %v11558_v54  ;;  %v4360_v2 = vadd.f32 %v9109_v62, %v4351_v15  ;;  %v10704_v63 = vld [vmem:[#allocation2 + $0x310] sm:$0xff]  }
0x2c65   :  { %v4362_v4 = vadd.f32 %v4360_v2, %v11566_v57  ;;  %v4365_v6 = vsel %vm187_vm1, %v11825_v12, 0.0  ;;  %v4373_v8 = vmul.f32 %v11825_v12, %v11825_v12  ;;  %v11868_v2 = vld [vmem:[%s12418_s2 + $0xc0] sm:$0xff] }
0x2c66   :  { %v4464_v21 = vpop.f32.mrb[112].mxu1 }
0x2c67   :  { %v4465_v23 = vadd.f32 %v9112_v20, %v4464_v21  ;;  %v10135_v24 = vpop.f32.mrb[113].mxu1  ;;  %v4368_v7 = vsel %vm187_vm1, %v4362_v4, 0.0  ;;  %v4375_v9 = vsel %vm187_vm1, %v4373_v8, 0.0  ;;  %v4374_v54 = vmul.f32 %v4362_v4, %v4362_v4 }
0x2c68   :  { %v4467_v22 = vpop.f32.mrb[114].mxu1 }
0x2c69   :  { %v4592_v27 = vpack.c.bf16 %v4465_v23, %v4465_v23  ;;  %v10136_v30 = vpop.f32.mrb[115].mxu1  ;;  %v4378_v42 = vsel %vm187_vm1, %v4374_v54, 0.0  ;;  %v10702_v23 = vld [vmem:[#allocation2 + $0x2e8] sm:$0xff]  }
0x2c6a   :  { %v4708_v31 = vpop.permute.xlu1 %4707 }
0x2c6b   :  { %v4713_v36 = vsel %vm303_vm3, %v4708_v31, 0  ;;  %4704 = vrot.lane.b32.xlu1 %v4592_v27, %s11037_s21  ;;  %10156 = vmatmul.mubr.msk.bf16.vlgmr.msra.gmra.mrb[104].mxu0 %vm303_vm3, %v4592_v27 }
0x2c6c   :  { %10166 = vmatpush3.bf16.xpose.msra.mxu0 %v4713_v36  ;;  %10167 = vmatprep.mubr.msk.bf16.mxu0 %vm11034_vm2, %v11033_v37 }
0x2c6d   :  { %10177 = vmatprep.subr.bf16.mxu0 %v11033_v37 }
0x2c6e   :  { %v4586_v39 = vpop.f32.mrb[116].mxu1 }
0x2c6f   :  { %v4587_v34 = vadd.f32 %v9120_v33, %v4586_v39  ;;  %v10151_v32 = vpop.f32.mrb[117].mxu1 }
0x2c70   :  { %v4589_v35 = vpop.f32.mrb[118].mxu1 }
0x2c71   :  { %v4653_v38 = vpack.c.bf16 %v4587_v34, %v4587_v34  ;;  %v10152_v60 = vpop.f32.mrb[119].mxu1 }
0x2c73   :  { %v4658_v40 = vand.u32 %v4653_v38, %v11462_v61 }
0x2c75   :  { %10160 = vmatpush3.bf16.msra.mxu1 %v4658_v40 }
0x2c76   :  { %10171 = vmatprep.subr.bf16.mxu1 %v11033_v37 }
0x2cdd   :  { %v4705_v43 = vpop.permute.xlu1 %4704 }
0x2cde   :  { %10168 = vmatmul.mubr.msk.bf16.vlgmr.msra.gmra.mrb[108].mxu0 %vm303_vm3, %v4705_v43 }
0x2cdf   :  { %10179 = vmatprep.mubr.msk.bf16.mxu0 %vm11034_vm2, %v11033_v37 }
0x2d3e   :  { %v4634_v41 = vpop.f32.mrb[104].mxu0 }
0x2d3f   :  { %v4640_v25 = vmul.f32 0.25, %v4634_v41  ;;  %v10157_v29 = vpop.f32.mrb[105].mxu0 }
0x2d40   :  { %v4637_v28 = vpop.f32.mrb[106].mxu0  ;;  %v10705_v29 = vld [vmem:[#allocation2 + $0x2f0] sm:$0xff]  }
0x2d41   :  { %v10158_v19 = vpop.f32.mrb[107].mxu0  ;;  %v4641_v44 = vsel %vm2767_vm10, %v4640_v25, -inf  ;;  %10178 = vmatpush3.bf16.msra.mxu0 %v10705_v29 }
0x2d42   :  { %4642 = vmax.xlane.f32.xlu1 %v4641_v44  ;;  %10189 = vmatprep.subr.bf16.mxu0 %v11033_v37 }
0x2d53   :  { %4769 = vrot.lane.b32.xlu1 %v4653_v38, %s11037_s21 }
0x2db1   :  { %v4749_v45 = vpop.f32.mrb[108].mxu0 }
0x2db2   :  { %v4755_v46 = vmul.f32 0.25, %v4749_v45  ;;  %v10169_v47 = vpop.f32.mrb[109].mxu0 }
0x2db3   :  { %v4752_v48 = vpop.f32.mrb[110].mxu0 }
0x2db4   :  { %v10170_v49 = vpop.f32.mrb[111].mxu0  ;;  %v4756_v50 = vsel %vm2767_vm10, %v4755_v46, -inf  ;;  %v9110_v48 = vld [vmem:[%s12418_s2 + $0x168] ss:$0 sm:$0xff] }
0x2db5   :  { %4757 = vmax.xlane.f32.xlu0 %v4756_v50 }
0x2dcf   :  { %v4643_v51 = vpop.xlane.xlu1 %4642 }
0x2dd0   :  { %v4644_v26 = vsub.f32 %v4640_v25, %v4643_v51 }
0x2dd2   :  { %v4645_v52 = vmul.f32 1.442695, %v4644_v26  ;;  %v10703_v26 = vld [vmem:[#allocation2 + $0x308] sm:$0xff]  }
0x2dd3   :  { %v4770_v10 = vpop.permute.xlu1 %4769 }
0x2dd4   :  { %10930 = vpow2.f32 %v4645_v52  ;;  %v4775_v15 = vand.u32 %v4770_v10, %v11462_v61  ;;  %v9111_v52 = vld [vmem:[%s12418_s2 + $0x170] ss:$0 sm:$0xff] }
0x2dde   :  { %v10931_v53 = vpop.eup %10930 }
0x2ddf   :  { %v4647_v55 = vsel %vm2767_vm10, %v10931_v53, 0.0 }
0x2de0   :  { %4648 = vadd.xlane.f32.xlu0 %v4647_v55 }
0x2e42   :  { %v4758_v56 = vpop.xlane.xlu0 %4757 }
0x2e43   :  { %v4759_v58 = vsub.f32 %v4755_v46, %v4758_v56 }
0x2e45   :  { %v4760_v59 = vmul.f32 1.442695, %v4759_v58 }
0x2e47   :  { %10932 = vpow2.f32 %v4760_v59 }
0x2e51   :  { %v10933_v1 = vpop.eup %10932 }
0x2e52   :  { %v4762_v3 = vsel %vm2767_vm10, %v10933_v1, 0.0 }
0x2e53   :  { %4763 = vadd.xlane.f32.xlu0 %v4762_v3 }
0x2e57   :  { %4366 = vadd.xlane.f32.xlu0 %v4365_v6 }
0x2e5b   :  { %4369 = vadd.xlane.f32.xlu0 %v4368_v7 }
0x2e5f   :  { %4376 = vadd.xlane.f32.xlu0 %v4375_v9 }
0x2e63   :  { %4379 = vadd.xlane.f32.xlu0 %v4378_v42 }
0x2e6d   :  { %v4649_v11 = vpop.xlane.xlu0 %4648 }
0x2e6e   :  { %10934 = vrcp.f32 %v4649_v11 }
0x2e78   :  { %v10935_v57 = vpop.eup %10934 }
0x2e79   :  { %v4651_v13 = vmul.f32 %v10935_v57, %v10931_v53 }
0x2e7b   :  { %v4652_v14 = vpack.c.bf16 %v4651_v13, %v4651_v13  ;;  %v9139_v13 = vld [vmem:[%s12418_s2 + $0x1b0] ss:$0 sm:$0xff] }
0x2e7d   :  { %10162 = vmatmul.mubr.msk.bf16.vlgmr.msra.gmra.mrb[120].mxu1 %vm2781_vm11, %v4652_v14 }
0x2e7e   :  { %10172 = vmatpush3.bf16.msra.mxu1 %v4775_v15  ;;  %10173 = vmatprep.mubr.msk.bf16.mxu1 %vm11034_vm2, %v11033_v37 }
0x2e7f   :  { %10183 = vmatprep.subr.bf16.mxu1 %v11033_v37 }
0x2ee0   :  { %v4764_v16 = vpop.xlane.xlu0 %4763 }
0x2ee1   :  { %10936 = vrcp.f32 %v4764_v16 }
0x2ee4   :  { %v4367_v22 = vpop.xlane.xlu0 %4366 }
0x2ee5   :  { %v4371_v33 = vmul.f32 0.03125, %v4367_v22 }
0x2ee7   :  { %v4383_v35 = vmul.f32 %v4371_v33, %v4371_v33  ;;  %v4389_v45 = vsub.f32 %v11825_v12, %v4371_v33 }
0x2ee8   :  { %v4370_v27 = vpop.xlane.xlu0 %4369 }
0x2ee9   :  { %v4372_v36 = vmul.f32 0.03125, %v4370_v27 }
0x2eeb   :  { %v10937_v20 = vpop.eup %10936  ;;  %v4384_v34 = vmul.f32 %v4372_v36, %v4372_v36  ;;  %v4390_v19 = vsub.f32 %v4362_v4, %v4372_v36 }
0x2eec   :  { %v4766_v21 = vmul.f32 %v10937_v20, %v10933_v1  ;;  %v4377_v30 = vpop.xlane.xlu0 %4376  ;;  %v11001_v1 = vld [vmem:[%s12418_s2 + $0xc8] sm:$0xff] }
0x2eed   :  { %v4381_v32 = vmul.f32 0.03125, %v4377_v30  ;;  %v9132_v30 = vld [vmem:[%s12418_s2 + $0x1a0] ss:$0 sm:$0xff] }
0x2eee   :  { %v4767_v24 = vpack.c.bf16 %v4766_v21, %v4766_v21 }
0x2eef   :  { %v4385_v60 = vsub.f32 %v4381_v32, %v4383_v35 }
0x2ef0   :  { %10174 = vmatmul.mubr.msk.bf16.vlgmr.msra.gmra.mrb[124].mxu1 %vm2781_vm11, %v4767_v24  ;;  %v4380_v31 = vpop.xlane.xlu0 %4379 }
0x2ef1   :  { %10184 = vmatpush3.bf16.msra.mxu1 %v10702_v23  ;;  %10185 = vmatprep.mubr.msk.bf16.mxu1 %vm11034_vm2, %v11033_v37  ;;  %v4382_v39 = vmul.f32 0.03125, %v4380_v31  ;;  %v4387_v43 = vmax.f32 %v4385_v60, 0.0 }
0x2ef2   :  { %10197 = vmatprep.subr.bf16.mxu1 %v11033_v37 }
0x2ef3   :  { %v4386_v38 = vsub.f32 %v4382_v39, %v4384_v34  ;;  %v4391_v25 = vadd.f32 1e-05, %v4387_v43  ;;  %v10707_v43 = vld [vmem:[#allocation2 + $0x300] sm:$0xff]  }
0x2ef5   :  { %v4388_v40 = vmax.f32 %v4386_v38, 0.0 }
0x2ef7   :  { %v4392_v41 = vadd.f32 1e-05, %v4388_v40  ;;  %v10706_v40 = vld [vmem:[#allocation2 + $0x2f8] sm:$0xff]  }
0x2ef9   :  { %10938 = vrsqrt.f32 %v4392_v41 }
0x2efa   :  { %10940 = vrsqrt.f32 %v4391_v25 }
0x2f03   :  { %v10939_v28 = vpop.eup %10938 }
0x2f04   :  { %v10941_v44 = vpop.eup %10940  ;;  %v4396_v46 = vmul.f32 %v10939_v28, %v4390_v19 }
0x2f05   :  { %v4395_v47 = vmul.f32 %v10941_v44, %v4389_v45 }
0x2f06   :  { %v4402_v49 = vmul.f32 %v9110_v48, %v4396_v46 }
0x2f07   :  { %v4401_v50 = vmul.f32 %v9110_v48, %v4395_v47  ;;  %v9133_v48 = vld [vmem:[%s12418_s2 + $0x1e8] ss:$0 sm:$0xff] }
0x2f08   :  { %v11853_v56 = vadd.f32 %v9111_v52, %v4402_v49 }
0x2f09   :  { %v11856_v62 = vadd.f32 %v9111_v52, %v4401_v50  ;;  %v9134_v50 = vld [vmem:[%s12418_s2 + $0x1f0] ss:$0 sm:$0xff] }
0x2f0a   :  { %v4955_v12 = vadd.f32 %v11001_v1, %v11853_v56 }
0x2f0b   :  { %v4954_v3 = vadd.f32 %v11868_v2, %v11856_v62 }
0x2f0d   :  { %v11872_v4 = vpack.c.bf16 %v4955_v12, %v4954_v3 }
0x2f50   :  { %v4694_v51 = vpop.f32.mrb[120].mxu1 }
0x2f51   :  { %v4702_v53 = vpack.c.bf16 %v4694_v51, %v4694_v51  ;;  %v10163_v55 = vpop.f32.mrb[121].mxu1 }
0x2f52   :  { %v4697_v58 = vpop.f32.mrb[122].mxu1 }
0x2f53   :  { %v10164_v59 = vpop.f32.mrb[123].mxu1  ;;  %10186 = vmatmul.mubr.msk.bf16.vlgmr.msra.gmra.mrb[128].mxu1 %vm303_vm3, %v4702_v53  ;;  %v10708_v53 = vld [vmem:[#allocation2 + $0x318] sm:$0xff]   ;;  %v10709_v58 = vld [vmem:[#allocation2 + $0x320] sm:$0xff]  }
0x2f54   :  { %10198 = vmatpush3.bf16.msra.mxu1 %v10703_v26  ;;  %10201 = vmatprep.mubr.msk.bf16.mxu1 %vm11034_vm2, %v11033_v37  ;;  %v5091_v59 = vpack.c.bf16 %v11853_v56, %v11856_v62 }
0x2f55   :  { %10199 = vmatprep.subr.bf16.mxu1 %v11033_v37 }
0x2f58   :  { %10200 = vmatpush3.bf16.msra.mxu1 %v10704_v63 }
0x2f59   :  { %10213 = vmatprep.subr.bf16.mxu1 %v11033_v37 }
0x2f5b   :  { %10202 = vmatmul.mubr.msk.bf16.vlgmr.msra.gmra.mrb[132].mxu1 %vm187_vm1, %v11872_v4 }
0x2f5c   :  { %10215 = vmatprep.mubr.msk.bf16.mxu1 %vm11034_vm2, %v11033_v37 }
0x2fc3   :  { %v4811_v6 = vpop.f32.mrb[124].mxu1 }
0x2fc4   :  { %v4819_v7 = vpack.c.bf16 %v4811_v6, %v4811_v6  ;;  %v10175_v8 = vpop.f32.mrb[125].mxu1 }
0x2fc5   :  { %v4814_v9 = vpop.f32.mrb[126].mxu1 }
0x2fc6   :  { %v10176_v54 = vpop.f32.mrb[127].mxu1  ;;  %10180 = vmatmul.mubr.msk.bf16.vlgmr.msra.gmra.mrb[112].mxu0 %vm303_vm3, %v4819_v7 }
0x2fc7   :  { %10193 = vmatprep.mubr.msk.bf16.mxu0 %vm11034_vm2, %v11033_v37  ;;  %10190 = vmatpush3.bf16.msra.mxu0 %v10706_v40  ;;  %v9143_v54 = vld [vmem:[%s12418_s2 + $0x1b8] ss:$0 sm:$0xff] }
0x2fc8   :  { %10191 = vmatprep.subr.bf16.mxu0 %v11033_v37 }
0x2fcb   :  { %10192 = vmatpush3.bf16.msra.mxu0 %v10707_v43 }
0x2fcc   :  { %10205 = vmatprep.subr.bf16.mxu0 %v11033_v37 }
0x3026   :  { %v4912_v42 = vpop.f32.mrb[128].mxu1 }
0x3027   :  { %v10187_v11 = vpop.f32.mrb[129].mxu1 }
0x3028   :  { %v4915_v57 = vpop.f32.mrb[130].mxu1 }
0x3029   :  { %v10188_v10 = vpop.f32.mrb[131].mxu1 }
0x302e   :  { %v5080_v14 = vpop.f32.mrb[132].mxu1 }
0x302f   :  { %v10203_v15 = vpop.f32.mrb[133].mxu1  ;;  %v5081_v20 = vadd.f32 %v9139_v13, %v5080_v14 }
0x3030   :  { %v5083_v16 = vpop.f32.mrb[134].mxu1 }
0x3031   :  { %v5084_v21 = vadd.f32 %v9139_v13, %v5083_v16  ;;  %v10204_v23 = vpop.f32.mrb[135].mxu1 }
0x3033   :  { %v5154_v24 = vpack.c.bf16 %v5084_v21, %v5081_v20 }
0x3035   :  { %v5159_v22 = vsel %vm3287_vm13, %v5154_v24, 0 }
0x3036   :  { %10214 = vmatpush3.bf16.xpose.msra.mxu1 %v5159_v22 }
0x3037   :  { %10225 = vmatprep.subr.bf16.mxu1 %v11033_v37 }
0x3099   :  { %v4863_v27 = vpop.f32.mrb[112].mxu0 }
0x309a   :  { %v4913_v31 = vadd.f32 %v4912_v42, %v4863_v27  ;;  %v10181_v36 = vpop.f32.mrb[113].mxu0 }
0x309b   :  { %v4866_v33 = vpop.f32.mrb[114].mxu0 }
0x309c   :  { %v4923_v39 = vadd.f32 %v9132_v30, %v4913_v31  ;;  %v10182_v34 = vpop.f32.mrb[115].mxu0 }
0x309e   :  { %v4924_v32 = vadd.f32 %v4923_v39, %v11702_v17 }
0x30a0   :  { %v4927_v35 = vsel %vm3058_vm12, %v4924_v32, 0.0  ;;  %v4931_v38 = vmul.f32 %v4924_v32, %v4924_v32 }
0x30a1   :  { %4928 = vadd.xlane.f32.xlu1 %v4927_v35 }
0x30a2   :  { %v4932_v60 = vsel %vm3058_vm12, %v4931_v38, 0.0 }
0x30a3   :  { %4933 = vadd.xlane.f32.xlu0 %v4932_v60 }
0x30b9   :  { %5264 = vrot.lane.b32.xlu0 %v5154_v24, %s11041_s20 }
0x312e   :  { %v4929_v41 = vpop.xlane.xlu1 %4928 }
0x312f   :  { %v4930_v25 = vmul.f32 0.03125, %v4929_v41 }
0x3130   :  { %v4934_v17 = vpop.xlane.xlu0 %4933 }
0x3131   :  { %v4936_v29 = vmul.f32 %v4930_v25, %v4930_v25  ;;  %v4935_v28 = vmul.f32 0.03125, %v4934_v17  ;;  %v4939_v46 = vsub.f32 %v4924_v32, %v4930_v25 }
0x3133   :  { %v4937_v19 = vsub.f32 %v4935_v28, %v4936_v29 }
0x3134   :  { %v5265_v3 = vpop.permute.xlu0 %5264 }
0x3135   :  { %v4938_v44 = vmax.f32 %v4937_v19, 0.0  ;;  %v5270_v9 = vsel %vm3287_vm13, %v5265_v3, 0 }
0x3137   :  { %v4940_v45 = vadd.f32 1e-05, %v4938_v44 }
0x3139   :  { %10942 = vrsqrt.f32 %v4940_v45 }
0x3143   :  { %v10943_v47 = vpop.eup %10942 }
0x3144   :  { %v4942_v49 = vmul.f32 %v10943_v47, %v4939_v46 }
0x3146   :  { %v4947_v51 = vmul.f32 %v9133_v48, %v4942_v49  ;;  %v5258_v49 = vld [vmem:[#allocation2 + $0x328] sm:$0xf] }
0x3148   :  { %v11902_v26 = vadd.f32 %v9134_v50, %v4947_v51 }
0x314a   :  { %v4953_v52 = vadd.f32 %v11711_v18, %v11902_v26  ;;  %v9135_v18 = vld [vmem:[%s12418_s2 + $0x1a8] ss:$0 sm:$0xff] }
0x314c   :  { %v4960_v55 = vpack.c.bf16 %v4953_v52, %v4953_v52  ;;  %v5424_v52 = vsel %vm3511_vm15, %v5258_v49, 0 }
0x314e   :  { %10194 = vmatmul.mubr.msk.bf16.vlgmr.msra.gmra.mrb[116].mxu0 %vm187_vm1, %v4960_v55 }
0x314f   :  { %10206 = vmatpush3.bf16.msra.mxu0 %v10708_v53  ;;  %10209 = vmatprep.mubr.msk.bf16.mxu0 %vm11034_vm2, %v11033_v37  ;;  %v5372_v53 = vld [vmem:[#allocation2 + $0x330] sm:$0xf] }
0x3150   :  { %10207 = vmatprep.subr.bf16.mxu0 %v11033_v37  ;;  %v5378_v55 = vsel %vm3511_vm15, %v5372_v53, 0 }
0x3153   :  { %10208 = vmatpush3.bf16.msra.mxu0 %v10709_v58 }
0x3154   :  { %10219 = vmatprep.subr.bf16.mxu0 %v11033_v37 }
0x3156   :  { %10210 = vmatmul.mubr.msk.bf16.vlgmr.msra.gmra.mrb[120].mxu0 %vm187_vm1, %v5091_v59 }
0x3157   :  { %10221 = vmatprep.mubr.msk.bf16.mxu0 %vm11034_vm2, %v11033_v37 }
0x3221   :  { %v5015_v63 = vpop.f32.mrb[116].mxu0 }
0x3222   :  { %v5016_v1 = vadd.f32 %v9135_v18, %v5015_v63  ;;  %v10195_v12 = vpop.f32.mrb[117].mxu0 }
0x3223   :  { %v5018_v6 = vpop.f32.mrb[118].mxu0 }
0x3224   :  { %v5153_v7 = vpack.c.bf16 %v5016_v1, %v5016_v1  ;;  %v10196_v8 = vpop.f32.mrb[119].mxu0 }
0x3226   :  { %5261 = vrot.lane.b32.xlu0 %v5153_v7, %s11041_s20  ;;  %10216 = vmatmul.mubr.msk.bf16.vlgmr.msra.gmra.mrb[136].mxu1 %vm3287_vm13, %v5153_v7 }
0x3227   :  { %10226 = vmatpush3.bf16.xpose.msra.mxu1 %v5270_v9  ;;  %10227 = vmatprep.mubr.msk.bf16.mxu1 %vm11034_vm2, %v11033_v37 }
0x3228   :  { %10237 = vmatprep.subr.bf16.mxu1 %v11033_v37 }
0x3229   :  { %v5146_v42 = vpop.f32.mrb[120].mxu0 }
0x322a   :  { %v10211_v11 = vpop.f32.mrb[121].mxu0  ;;  %v5147_v10 = vadd.f32 %v9143_v54, %v5146_v42 }
0x322b   :  { %v5149_v57 = vpop.f32.mrb[122].mxu0 }
0x322c   :  { %v5150_v13 = vadd.f32 %v9143_v54, %v5149_v57  ;;  %v10212_v14 = vpop.f32.mrb[123].mxu0 }
0x322e   :  { %v5214_v15 = vpack.c.bf16 %v5150_v13, %v5147_v10  ;;  %v9153_v10 = vld [vmem:[%s12418_s2 + $0x1c0] ss:$0 sm:$0xff] }
0x3230   :  { %10220 = vmatpush3.bf16.msra.mxu0 %v5214_v15 }
0x3231   :  { %10231 = vmatprep.subr.bf16.mxu0 %v11033_v37 }
0x3298   :  { %v5262_v16 = vpop.permute.xlu0 %5261 }
0x3299   :  { %10228 = vmatmul.mubr.msk.bf16.vlgmr.msra.gmra.mrb[140].mxu1 %vm3287_vm13, %v5262_v16 }
0x329a   :  { %10239 = vmatprep.mubr.msk.bf16.mxu1 %vm11034_vm2, %v11033_v37  ;;  %10238 = vmatpush3.bf16.msra.mxu1 %v5378_v55 }
0x329b   :  { %10249 = vmatprep.subr.bf16.mxu1 %v11033_v37 }
0x32f9   :  { %v5195_v20 = vpop.f32.mrb[136].mxu1 }
0x32fa   :  { %v5201_v21 = vmul.f32 0.35355338, %v5195_v20  ;;  %v10217_v23 = vpop.f32.mrb[137].mxu1 }
0x32fb   :  { %v5198_v24 = vpop.f32.mrb[138].mxu1 }
0x32fc   :  { %v10218_v22 = vpop.f32.mrb[139].mxu1  ;;  %v5202_v27 = vsel %vm3335_vm14, %v5201_v21, -inf }
0x32fd   :  { %5203 = vmax.xlane.f32.xlu0 %v5202_v27  ;;  %v10710_v27 = vld [vmem:[#allocation2 + $0x378] sm:$0xff]  }
0x336c   :  { %v5306_v30 = vpop.f32.mrb[140].mxu1 }
0x336d   :  { %v5312_v31 = vmul.f32 0.35355338, %v5306_v30  ;;  %v10229_v36 = vpop.f32.mrb[141].mxu1  ;;  %v10711_v30 = vld [vmem:[#allocation2 + $0x380] sm:$0xff]  }
0x336e   :  { %v5309_v33 = vpop.f32.mrb[142].mxu1  ;;  %v10715_v36 = vld [vmem:[#allocation2 + $0x390] sm:$0xff]  }
0x336f   :  { %v10230_v39 = vpop.f32.mrb[143].mxu1  ;;  %v5313_v34 = vsel %vm3335_vm14, %v5312_v31, -inf }
0x3370   :  { %5314 = vmax.xlane.f32.xlu1 %v5313_v34 }
0x338a   :  { %v5204_v32 = vpop.xlane.xlu0 %5203 }
0x338b   :  { %v5205_v35 = vsub.f32 %v5201_v21, %v5204_v32 }
0x338d   :  { %v5206_v38 = vmul.f32 1.442695, %v5205_v35 }
0x338f   :  { %10944 = vpow2.f32 %v5206_v38 }
0x3399   :  { %v10945_v60 = vpop.eup %10944 }
0x339a   :  { %v5208_v40 = vsel %vm3335_vm14, %v10945_v60, 0.0 }
0x339b   :  { %5209 = vadd.xlane.f32.xlu1 %v5208_v40 }
0x33fd   :  { %v5315_v43 = vpop.xlane.xlu1 %5314 }
0x33fe   :  { %v5316_v41 = vsub.f32 %v5312_v31, %v5315_v43  ;;  %v10714_v31 = vld [vmem:[#allocation2 + $0x388] sm:$0xff]  }
0x3400   :  { %v5317_v25 = vmul.f32 1.442695, %v5316_v41  ;;  %v9154_v41 = vld [vmem:[%s12418_s2 + $0x1f8] ss:$0 sm:$0xff] }
0x3402   :  { %10946 = vpow2.f32 %v5317_v25 }
0x340c   :  { %v10947_v17 = vpop.eup %10946 }
0x340d   :  { %v5319_v29 = vsel %vm3335_vm14, %v10947_v17, 0.0 }
0x340e   :  { %5320 = vadd.xlane.f32.xlu1 %v5319_v29 }
0x341f   :  { %5326 = vrot.lane.b32.xlu1 %v5214_v15, %s11041_s20 }
0x3428   :  { %v5210_v28 = vpop.xlane.xlu1 %5209 }
0x3429   :  { %10948 = vrcp.f32 %v5210_v28 }
0x3433   :  { %v10949_v19 = vpop.eup %10948 }
0x3434   :  { %v5212_v44 = vmul.f32 %v10949_v19, %v10945_v60  ;;  %v10712_v19 = vld [vmem:[#allocation2 + $0x338] sm:$0xff]  }
0x3436   :  { %v5213_v45 = vpack.c.bf16 %v5212_v44, %v5212_v44 }
0x3438   :  { %10222 = vmatmul.mubr.msk.bf16.vlgmr.msra.gmra.mrb[124].mxu0 %vm303_vm3, %v5213_v45  ;;  %v10713_v45 = vld [vmem:[#allocation2 + $0x340] sm:$0xff]  }
0x3439   :  { %10233 = vmatprep.mubr.msk.bf16.mxu0 %vm11034_vm2, %v11033_v37 }
0x349b   :  { %v5321_v46 = vpop.xlane.xlu1 %5320 }
0x349c   :  { %10950 = vrcp.f32 %v5321_v46  ;;  %v10716_v46 = vld [vmem:[#allocation2 + $0x398] sm:$0xff]  }
0x349f   :  { %v5327_v47 = vpop.permute.xlu1 %5326 }
0x34a0   :  { %10232 = vmatpush3.bf16.msra.mxu0 %v5327_v47  ;;  %v10717_v47 = vld [vmem:[#allocation2 + $0x3a0] sm:$0xff]  }
0x34a1   :  { %10243 = vmatprep.subr.bf16.mxu0 %v11033_v37 }
0x34a6   :  { %v10951_v48 = vpop.eup %10950 }
0x34a7   :  { %v5323_v50 = vmul.f32 %v10951_v48, %v10947_v17  ;;  %v9155_v17 = vld [vmem:[%s12418_s2 + $0x200] ss:$0 sm:$0xff]  ;;  %v9156_v48 = vld [vmem:[%s12418_s2 + $0x228] ss:$0 sm:$0xff] }
0x34a9   :  { %v5324_v51 = vpack.c.bf16 %v5323_v50, %v5323_v50 }
0x34ab   :  { %10234 = vmatmul.mubr.msk.bf16.vlgmr.msra.gmra.mrb[128].mxu0 %vm303_vm3, %v5324_v51 }
0x34ac   :  { %10244 = vmatpush3.bf16.msra.mxu0 %v5424_v52  ;;  %10245 = vmatprep.mubr.msk.bf16.mxu0 %vm11034_vm2, %v11033_v37 }
0x34ad   :  { %10257 = vmatprep.subr.bf16.mxu0 %v11033_v37 }
0x350b   :  { %v5252_v58 = vpop.f32.mrb[124].mxu0 }
0x350c   :  { %v5259_v59 = vpack.c.bf16 %v5252_v58, %v5252_v58  ;;  %v10223_v18 = vpop.f32.mrb[125].mxu0  ;;  %v9168_v58 = vld [vmem:[%s12418_s2 + $0x1c8] ss:$0 sm:$0xff] }
0x350d   :  { %v5255_v63 = vpop.f32.mrb[126].mxu0 }
0x350e   :  { %v10224_v1 = vpop.f32.mrb[127].mxu0  ;;  %10246 = vmatmul.mubr.msk.bf16.vlgmr.msra.gmra.mrb[132].mxu0 %vm3287_vm13, %v5259_v59 }
0x350f   :  { %10265 = vmatprep.mubr.msk.bf16.mxu0 %vm11034_vm2, %v11033_v37  ;;  %10258 = vmatpush3.bf16.msra.mxu0 %v10714_v31 }
0x3510   :  { %10259 = vmatprep.subr.bf16.mxu0 %v11033_v37 }
0x3513   :  { %10260 = vmatpush3.bf16.msra.mxu0 %v10715_v36 }
0x3514   :  { %10261 = vmatprep.subr.bf16.mxu0 %v11033_v37 }
0x3517   :  { %10262 = vmatpush3.bf16.msra.mxu0 %v10716_v46 }
0x3518   :  { %10263 = vmatprep.subr.bf16.mxu0 %v11033_v37 }
0x351b   :  { %10264 = vmatpush3.bf16.msra.mxu0 %v10717_v47 }
0x351c   :  { %10285 = vmatprep.subr.bf16.mxu0 %v11033_v37 }
0x357e   :  { %v5366_v12 = vpop.f32.mrb[128].mxu0 }
0x357f   :  { %v5373_v3 = vpack.c.bf16 %v5366_v12, %v5366_v12  ;;  %v10235_v6 = vpop.f32.mrb[129].mxu0 }
0x3580   :  { %v5369_v7 = vpop.f32.mrb[130].mxu0 }
0x3581   :  { %v10236_v8 = vpop.f32.mrb[131].mxu0  ;;  %10240 = vmatmul.mubr.msk.bf16.vlgmr.msra.gmra.mrb[144].mxu1 %vm3287_vm13, %v5373_v3 }
0x3582   :  { %10253 = vmatprep.mubr.msk.bf16.mxu1 %vm11034_vm2, %v11033_v37  ;;  %10250 = vmatpush3.bf16.msra.mxu1 %v10710_v27  ;;  %v9165_v8 = vld [vmem:[%s12418_s2 + $0x230] ss:$0 sm:$0xff] }
0x3583   :  { %10251 = vmatprep.subr.bf16.mxu1 %v11033_v37 }
0x3586   :  { %10252 = vmatpush3.bf16.msra.mxu1 %v10711_v30 }
0x3587   :  { %10269 = vmatprep.subr.bf16.mxu1 %v11033_v37 }
0x35e1   :  { %v5460_v9 = vpop.f32.mrb[132].mxu0 }
0x35e2   :  { %v10247_v54 = vpop.f32.mrb[133].mxu0 }
0x35e3   :  { %v5463_v42 = vpop.f32.mrb[134].mxu0 }
0x35e4   :  { %v10248_v11 = vpop.f32.mrb[135].mxu0 }
0x3654   :  { %v5414_v57 = vpop.f32.mrb[144].mxu1 }
0x3655   :  { %v5461_v13 = vadd.f32 %v5460_v9, %v5414_v57  ;;  %v10241_v14 = vpop.f32.mrb[145].mxu1 }
0x3656   :  { %v5417_v15 = vpop.f32.mrb[146].mxu1 }
0x3657   :  { %v5471_v16 = vadd.f32 %v9153_v10, %v5461_v13  ;;  %v10242_v20 = vpop.f32.mrb[147].mxu1  ;;  %v10718_v15 = vld [vmem:[#allocation2 + $0x358] sm:$0xff]  }
0x3658   :  { %v10720_v20 = vld [vmem:[#allocation2 + $0x360] sm:$0xff]  }
0x3659   :  { %v5472_v21 = vadd.f32 %v5471_v16, %v11902_v26  ;;  %v10719_v16 = vld [vmem:[#allocation2 + $0x348] sm:$0xff]  }
0x365b   :  { %v5475_v23 = vsel %vm3058_vm12, %v5472_v21, 0.0  ;;  %v5479_v24 = vmul.f32 %v5472_v21, %v5472_v21 }
0x365c   :  { %5476 = vadd.xlane.f32.xlu0 %v5475_v23 }
0x365d   :  { %v5480_v22 = vsel %vm3058_vm12, %v5479_v24, 0.0 }
0x365e   :  { %5481 = vadd.xlane.f32.xlu1 %v5480_v22 }
0x36e9   :  { %v5477_v26 = vpop.xlane.xlu0 %5476 }
0x36ea   :  { %v5478_v33 = vmul.f32 0.03125, %v5477_v26 }
0x36eb   :  { %v5482_v39 = vpop.xlane.xlu1 %5481 }
0x36ec   :  { %v5484_v34 = vmul.f32 %v5478_v33, %v5478_v33  ;;  %v5483_v32 = vmul.f32 0.03125, %v5482_v39  ;;  %v5487_v40 = vsub.f32 %v5472_v21, %v5478_v33  ;;  %v10721_v21 = vld [vmem:[#allocation2 + $0x350] sm:$0xff]  }
0x36ee   :  { %v5485_v35 = vsub.f32 %v5483_v32, %v5484_v34  ;;  %v9166_v34 = vld [vmem:[%s12418_s2 + $0x208] ss:$0 sm:$0xff] }
0x36f0   :  { %v5486_v38 = vmax.f32 %v5485_v35, 0.0  ;;  %v9167_v35 = vld [vmem:[%s12418_s2 + $0x210] ss:$0 sm:$0xff] }
0x36f2   :  { %v5488_v60 = vadd.f32 1e-05, %v5486_v38 }
0x36f4   :  { %10952 = vrsqrt.f32 %v5488_v60 }
0x36fe   :  { %v10953_v43 = vpop.eup %10952 }
0x36ff   :  { %v5490_v25 = vmul.f32 %v10953_v43, %v5487_v40  ;;  %v11003_v43 = vld [vmem:[%s12418_s2 + $0xd0] sm:$0x1f] }
0x3701   :  { %v5495_v29 = vmul.f32 %v9154_v41, %v5490_v25 }
0x3703   :  { %v5500_v28 = vadd.f32 %v9155_v17, %v5495_v29  ;;  %v9176_v17 = vld [vmem:[%s12418_s2 + $0x1d8] ss:$0 sm:$0xff] }
0x3705   :  { %v5505_v44 = vpack.c.bf16 %v5500_v28, %v5500_v28 }
0x3707   :  { %10254 = vmatmul.mubr.msk.bf16.vlgmr.msra.gmra.mrb[148].mxu1 %vm187_vm1, %v5505_v44 }
0x3708   :  { %10270 = vmatpush3.bf16.msra.mxu1 %v10712_v19  ;;  %10273 = vmatprep.mubr.msk.bf16.mxu1 %vm11034_vm2, %v11033_v37 }
0x3709   :  { %10271 = vmatprep.subr.bf16.mxu1 %v11033_v37 }
0x370c   :  { %10272 = vmatpush3.bf16.msra.mxu1 %v10713_v45 }
0x370d   :  { %10277 = vmatprep.subr.bf16.mxu1 %v11033_v37 }
0x370f   :  { %10274 = vmatmul.mubr.msk.bf16.vlgmr.msra.gmra.mrb[152].mxu1 %vm187_vm1, %v11872_v4 }
0x3710   :  { %10281 = vmatprep.mubr.msk.bf16.mxu1 %vm11034_vm2, %v11033_v37  ;;  %10278 = vmatpush3.bf16.msra.mxu1 %v10719_v16 }
0x3711   :  { %10279 = vmatprep.subr.bf16.mxu1 %v11033_v37 }
0x3714   :  { %10280 = vmatpush3.bf16.msra.mxu1 %v10721_v21 }
0x3715   :  { %10293 = vmatprep.subr.bf16.mxu1 %v11033_v37 }
0x37da   :  { %v5560_v49 = vpop.f32.mrb[148].mxu1 }
0x37db   :  { %v5561_v50 = vadd.f32 %v9156_v48, %v5560_v49  ;;  %v10255_v51 = vpop.f32.mrb[149].mxu1 }
0x37dc   :  { %v5563_v52 = vpop.f32.mrb[150].mxu1 }
0x37dd   :  { %v5566_v4 = vmax.f32 %v5561_v50, 0.0  ;;  %v10256_v53 = vpop.f32.mrb[151].mxu1 }
0x37df   :  { %v5575_v55 = vpack.c.bf16 %v5566_v4, %v5566_v4 }
0x37e1   :  { %10266 = vmatmul.mubr.msk.bf16.vlgmr.msra.gmra.mrb[136].mxu0 %vm136_vm0, %v5575_v55 }
0x37e2   :  { %v5734_v59 = vpop.f32.mrb[152].mxu1  ;;  %10289 = vmatprep.mubr.msk.bf16.mxu0 %vm11034_vm2, %v11033_v37  ;;  %10286 = vmatpush3.bf16.msra.mxu0 %v10718_v15 }
0x37e3   :  { %v10275_v18 = vpop.f32.mrb[153].mxu1  ;;  %v5735_v1 = vadd.f32 %v9168_v58, %v5734_v59  ;;  %10287 = vmatprep.subr.bf16.mxu0 %v11033_v37 }
0x37e4   :  { %v5737_v63 = vpop.f32.mrb[154].mxu1 }
0x37e5   :  { %v5738_v12 = vadd.f32 %v9168_v58, %v5737_v63  ;;  %v10276_v3 = vpop.f32.mrb[155].mxu1 }
0x37e6   :  { %10288 = vmatpush3.bf16.msra.mxu0 %v10720_v20 }
0x37e7   :  { %v11990_v6 = vpack.c.bf16 %v5738_v12, %v5735_v1  ;;  %10299 = vmatprep.subr.bf16.mxu0 %v11033_v37 }
0x38b4   :  { %v5637_v7 = vpop.f32.mrb[136].mxu0 }
0x38b5   :  { %v5643_v9 = vadd.f32 %v5637_v7, %v5500_v28  ;;  %v10267_v54 = vpop.f32.mrb[137].mxu0  ;;  %v9172_v28 = vld [vmem:[%s12418_s2 + $0x1d0] ss:$0 sm:$0xff] }
0x38b6   :  { %v5640_v42 = vpop.f32.mrb[138].mxu0 }
0x38b7   :  { %v5649_v11 = vadd.f32 %v9165_v8, %v5643_v9  ;;  %v10268_v57 = vpop.f32.mrb[139].mxu0 }
0x38b9   :  { %v5652_v10 = vsel %vm3058_vm12, %v5649_v11, 0.0  ;;  %v5656_v13 = vmul.f32 %v5649_v11, %v5649_v11 }
0x38ba   :  { %5653 = vadd.xlane.f32.xlu0 %v5652_v10 }
0x38bb   :  { %v5657_v14 = vsel %vm3058_vm12, %v5656_v13, 0.0 }
0x38be   :  { %5658 = vadd.xlane.f32.xlu0 %v5657_v14 }
0x3947   :  { %v5654_v23 = vpop.xlane.xlu0 %5653 }
0x3948   :  { %v5655_v24 = vmul.f32 0.03125, %v5654_v23 }
0x394a   :  { %v5661_v27 = vmul.f32 %v5655_v24, %v5655_v24  ;;  %v5664_v33 = vsub.f32 %v5649_v11, %v5655_v24 }
0x394b   :  { %v5659_v22 = vpop.xlane.xlu0 %5658 }
0x394c   :  { %v5660_v30 = vmul.f32 0.03125, %v5659_v22 }
0x394e   :  { %v5662_v31 = vsub.f32 %v5660_v30, %v5661_v27 }
0x3950   :  { %v5663_v36 = vmax.f32 %v5662_v31, 0.0 }
0x3952   :  { %v5665_v26 = vadd.f32 1e-05, %v5663_v36 }
0x3954   :  { %10954 = vrsqrt.f32 %v5665_v26 }
0x395e   :  { %v10955_v39 = vpop.eup %10954 }
0x395f   :  { %v5667_v32 = vmul.f32 %v10955_v39, %v5664_v33 }
0x3961   :  { %v5672_v38 = vmul.f32 %v9166_v34, %v5667_v32 }
0x3963   :  { %v12007_v60 = vadd.f32 %v9167_v35, %v5672_v38 }
0x3965   :  { %v5810_v40 = vpack.c.bf16 %v12007_v60, %v12007_v60  ;;  %v5678_v41 = vadd.f32 %v11003_v43, %v12007_v60 }
0x3967   :  { %10290 = vmatmul.mubr.msk.bf16.vlgmr.msra.gmra.mrb[140].mxu0 %vm187_vm1, %v5810_v40  ;;  %v12016_v25 = vpack.c.bf16 %v5678_v41, %v5678_v41 }
0x3968   :  { %10301 = vmatprep.mubr.msk.bf16.mxu0 %vm11034_vm2, %v11033_v37 }
0x3969   :  { %10282 = vmatmul.mubr.msk.bf16.vlgmr.msra.gmra.mrb[156].mxu1 %vm187_vm1, %v12016_v25 }
0x396a   :  { %10295 = vmatprep.mubr.msk.bf16.mxu1 %vm11034_vm2, %v11033_v37 }
0x3a3a   :  { %v5865_v29 = vpop.f32.mrb[140].mxu0 }
0x3a3b   :  { %v5866_v19 = vadd.f32 %v9176_v17, %v5865_v29  ;;  %v10291_v44 = vpop.f32.mrb[141].mxu0 }
0x3a3c   :  { %v5800_v45 = vpop.f32.mrb[156].mxu1  ;;  %v5868_v46 = vpop.f32.mrb[142].mxu0 }
0x3a3d   :  { %v12030_v47 = vpack.c.bf16 %v5866_v19, %v5866_v19  ;;  %v5801_v48 = vadd.f32 %v9172_v28, %v5800_v45  ;;  %v10283_v49 = vpop.f32.mrb[157].mxu1  ;;  %v10292_v50 = vpop.f32.mrb[143].mxu0 }
0x3a3e   :  { %v5803_v51 = vpop.f32.mrb[158].mxu1 }
0x3a3f   :  { %v5950_v52 = vand.u32 %v12030_v47, %v11462_v61  ;;  %v5872_v4 = vpack.c.bf16 %v5801_v48, %v5801_v48  ;;  %v10284_v53 = vpop.f32.mrb[159].mxu1 }
0x3a41   :  { %v5877_v55 = vsel %vm3287_vm13, %v5872_v4, 0  ;;  %10300 = vmatpush3.bf16.msra.mxu0 %v5950_v52  ;;  %5999 = vrot.lane.b32.xlu0 %v5872_v4, %s11041_s20  ;;  %v5993_v4 = vld [vmem:[#allocation2 + $0x368] sm:$0xf] }
0x3a42   :  { %10294 = vmatpush3.bf16.xpose.msra.mxu1 %v5877_v55  ;;  %10311 = vmatprep.subr.bf16.mxu0 %v11033_v37 }
0x3a43   :  { %10305 = vmatprep.subr.bf16.mxu1 %v11033_v37 }
0x3a45   :  { %5996 = vrot.lane.b32.xlu0 %v11990_v6, %s11041_s20 }
0x3a49   :  { %10296 = vmatmul.mubr.msk.bf16.vlgmr.msra.gmra.mrb[160].mxu1 %vm3287_vm13, %v11990_v6 }
0x3a4a   :  { %10307 = vmatprep.mubr.msk.bf16.mxu1 %vm11034_vm2, %v11033_v37 }
0x3ab3   :  { %v6000_v58 = vpop.permute.xlu0 %5999 }
0x3ab4   :  { %v6005_v59 = vsel %vm3287_vm13, %v6000_v58, 0 }
0x3ab5   :  { %10306 = vmatpush3.bf16.xpose.msra.mxu1 %v6005_v59  ;;  %v6176_v59 = vsel %vm3511_vm15, %v5993_v4, 0 }
0x3ab6   :  { %10317 = vmatprep.subr.bf16.mxu1 %v11033_v37 }
0x3ab7   :  { %v5997_v18 = vpop.permute.xlu0 %5996 }
0x3abc   :  { %10308 = vmatmul.mubr.msk.bf16.vlgmr.msra.gmra.mrb[164].mxu1 %vm3287_vm13, %v5997_v18 }
0x3abd   :  { %10319 = vmatprep.mubr.msk.bf16.mxu1 %vm11034_vm2, %v11033_v37 }
0x3b1c   :  { %v5913_v63 = vpop.f32.mrb[160].mxu1 }
0x3b1d   :  { %v5920_v1 = vmul.f32 0.35355338, %v5913_v63  ;;  %v10297_v12 = vpop.f32.mrb[161].mxu1 }
0x3b1e   :  { %v5916_v3 = vpop.f32.mrb[162].mxu1 }
0x3b1f   :  { %v5921_v6 = vmul.f32 0.35355338, %v5916_v3  ;;  %v10298_v7 = vpop.f32.mrb[163].mxu1  ;;  %v5922_v8 = vsel %vm2781_vm11, %v5920_v1, -inf }
0x3b20   :  { %5923 = vmax.xlane.f32.xlu1 %v5922_v8 }
0x3b21   :  { %v5925_v9 = vsel %vm2781_vm11, %v5921_v6, -inf }
0x3b22   :  { %5926 = vmax.xlane.f32.xlu0 %v5925_v9 }
0x3b8f   :  { %v6041_v54 = vpop.f32.mrb[164].mxu1 }
0x3b90   :  { %v6048_v42 = vmul.f32 0.35355338, %v6041_v54  ;;  %v10309_v11 = vpop.f32.mrb[165].mxu1  ;;  %v10722_v54 = vld [vmem:[#allocation2 + $0x3a8] sm:$0xff]  }
0x3b91   :  { %v6044_v57 = vpop.f32.mrb[166].mxu1 }
0x3b92   :  { %v6049_v10 = vmul.f32 0.35355338, %v6044_v57  ;;  %v10310_v13 = vpop.f32.mrb[167].mxu1  ;;  %v6050_v14 = vsel %vm2781_vm11, %v6048_v42, -inf  ;;  %v10723_v57 = vld [vmem:[#allocation2 + $0x3b0] sm:$0xff]  }
0x3b93   :  { %6051 = vmax.xlane.f32.xlu1 %v6050_v14 }
0x3b94   :  { %v6053_v15 = vsel %vm2781_vm11, %v6049_v10, -inf }
0x3b97   :  { %6054 = vmax.xlane.f32.xlu1 %v6053_v15 }
0x3bad   :  { %v5924_v16 = vpop.xlane.xlu1 %5923 }
0x3bae   :  { %v5928_v20 = vsub.f32 %v5920_v1, %v5924_v16 }
0x3baf   :  { %v5927_v21 = vpop.xlane.xlu0 %5926 }
0x3bb0   :  { %v5930_v23 = vmul.f32 1.442695, %v5928_v20  ;;  %v5929_v24 = vsub.f32 %v5921_v6, %v5927_v21  ;;  %v9186_v20 = vld [vmem:[%s12418_s2 + $0x1e0] ss:$0 sm:$0xff] }
0x3bb2   :  { %10956 = vpow2.f32 %v5930_v23  ;;  %v5932_v22 = vmul.f32 1.442695, %v5929_v24 }
0x3bb4   :  { %10958 = vpow2.f32 %v5932_v22 }
0x3bbc   :  { %v10957_v27 = vpop.eup %10956 }
0x3bbd   :  { %v5934_v30 = vsel %vm2781_vm11, %v10957_v27, 0.0 }
0x3bbe   :  { %v10959_v31 = vpop.eup %10958  ;;  %5935 = vadd.xlane.f32.xlu1 %v5934_v30 }
0x3bbf   :  { %v5937_v36 = vsel %vm2781_vm11, %v10959_v31, 0.0 }
0x3bc2   :  { %5938 = vadd.xlane.f32.xlu1 %v5937_v36 }
0x3c20   :  { %v6052_v26 = vpop.xlane.xlu1 %6051 }
0x3c21   :  { %v6056_v33 = vsub.f32 %v6048_v42, %v6052_v26 }
0x3c23   :  { %v6058_v39 = vmul.f32 1.442695, %v6056_v33 }
0x3c24   :  { %v6055_v34 = vpop.xlane.xlu1 %6054 }
0x3c25   :  { %10960 = vpow2.f32 %v6058_v39  ;;  %v6057_v32 = vsub.f32 %v6049_v10, %v6055_v34 }
0x3c27   :  { %v6060_v35 = vmul.f32 1.442695, %v6057_v32 }
0x3c29   :  { %10962 = vpow2.f32 %v6060_v35 }
0x3c2f   :  { %v10961_v38 = vpop.eup %10960 }
0x3c30   :  { %v6062_v40 = vsel %vm2781_vm11, %v10961_v38, 0.0 }
0x3c31   :  { %6063 = vadd.xlane.f32.xlu1 %v6062_v40 }
0x3c33   :  { %v10963_v43 = vpop.eup %10962 }
0x3c34   :  { %v6065_v41 = vsel %vm2781_vm11, %v10963_v43, 0.0 }
0x3c35   :  { %6066 = vadd.xlane.f32.xlu1 %v6065_v41 }
0x3c46   :  { %6074 = vrot.lane.b32.xlu1 %v12030_v47, %s11041_s20 }
0x3c4b   :  { %v5936_v17 = vpop.xlane.xlu1 %5935 }
0x3c4c   :  { %10964 = vrcp.f32 %v5936_v17 }
0x3c4f   :  { %v5939_v29 = vpop.xlane.xlu1 %5938 }
0x3c50   :  { %10966 = vrcp.f32 %v5939_v29  ;;  %v10724_v29 = vld [vmem:[#allocation2 + $0x3c8] sm:$0xff]  }
0x3c56   :  { %v10965_v28 = vpop.eup %10964 }
0x3c57   :  { %v5942_v44 = vmul.f32 %v10965_v28, %v10957_v27  ;;  %v10725_v28 = vld [vmem:[#allocation2 + $0x3b8] sm:$0xff]  }
0x3c5a   :  { %v10967_v19 = vpop.eup %10966 }
0x3c5b   :  { %v5943_v45 = vmul.f32 %v10967_v19, %v10959_v31  ;;  %v10726_v19 = vld [vmem:[#allocation2 + $0x3d0] sm:$0xff]  }
0x3c5d   :  { %v5944_v46 = vpack.c.bf16 %v5943_v45, %v5942_v44  ;;  %v10727_v44 = vld [vmem:[#allocation2 + $0x3c0] sm:$0xff]  }
0x3c5f   :  { %10302 = vmatmul.mubr.msk.bf16.vlgmr.msra.gmra.mrb[144].mxu0 %vm2781_vm11, %v5944_v46 }
0x3c60   :  { %10313 = vmatprep.mubr.msk.bf16.mxu0 %vm11034_vm2, %v11033_v37 }
0x3cbe   :  { %v6064_v48 = vpop.xlane.xlu1 %6063 }
0x3cbf   :  { %10968 = vrcp.f32 %v6064_v48 }
0x3cc2   :  { %v6067_v49 = vpop.xlane.xlu1 %6066 }
0x3cc3   :  { %10970 = vrcp.f32 %v6067_v49 }
0x3cc6   :  { %v6075_v50 = vpop.permute.xlu1 %6074 }
0x3cc7   :  { %v6080_v47 = vand.u32 %v6075_v50, %v11462_v61  ;;  %v6123_v61 = vld [vmem:[#allocation2 + $0x370] sm:$0xf] }
0x3cc8   :  { %v6129_v18 = vsel %vm3511_vm15, %v6123_v61, 0 }
0x3cc9   :  { %10312 = vmatpush3.bf16.msra.mxu0 %v6080_v47  ;;  %v10969_v51 = vpop.eup %10968  ;;  %10318 = vmatpush3.bf16.msra.mxu1 %v6129_v18 }
0x3cca   :  { %10323 = vmatprep.subr.bf16.mxu0 %v11033_v37  ;;  %v6070_v53 = vmul.f32 %v10969_v51, %v10961_v38  ;;  %10329 = vmatprep.subr.bf16.mxu1 %v11033_v37 }
0x3ccd   :  { %v10971_v52 = vpop.eup %10970 }
0x3cce   :  { %v6071_v55 = vmul.f32 %v10971_v52, %v10963_v43 }
0x3cd0   :  { %v6072_v58 = vpack.c.bf16 %v6071_v55, %v6070_v53 }
0x3cd2   :  { %10314 = vmatmul.mubr.msk.bf16.vlgmr.msra.gmra.mrb[148].mxu0 %vm2781_vm11, %v6072_v58 }
0x3cd3   :  { %10324 = vmatpush3.bf16.msra.mxu0 %v6176_v59  ;;  %10325 = vmatprep.mubr.msk.bf16.mxu0 %vm11034_vm2, %v11033_v37 }
0x3cd4   :  { %10337 = vmatprep.subr.bf16.mxu0 %v11033_v37 }
0x3d32   :  { %v5986_v63 = vpop.f32.mrb[144].mxu0 }
0x3d33   :  { %v10303_v1 = vpop.f32.mrb[145].mxu0 }
0x3d34   :  { %v5989_v12 = vpop.f32.mrb[146].mxu0 }
0x3d35   :  { %v5994_v3 = vpack.c.bf16 %v5989_v12, %v5986_v63  ;;  %v10304_v6 = vpop.f32.mrb[147].mxu0 }
0x3d37   :  { %10326 = vmatmul.mubr.msk.bf16.vlgmr.msra.gmra.mrb[152].mxu0 %vm3287_vm13, %v5994_v3  ;;  %v9187_v3 = vld [vmem:[%s12418_s2 + $0x218] ss:$0 sm:$0xff] }
0x3d38   :  { %10341 = vmatprep.mubr.msk.bf16.mxu0 %vm11034_vm2, %v11033_v37  ;;  %10338 = vmatpush3.bf16.msra.mxu0 %v10725_v28 }
0x3d39   :  { %10339 = vmatprep.subr.bf16.mxu0 %v11033_v37 }
0x3d3c   :  { %10340 = vmatpush3.bf16.msra.mxu0 %v10727_v44 }
0x3d3d   :  { %10353 = vmatprep.subr.bf16.mxu0 %v11033_v37 }
0x3da5   :  { %v6116_v7 = vpop.f32.mrb[148].mxu0 }
0x3da6   :  { %v10315_v8 = vpop.f32.mrb[149].mxu0 }
0x3da7   :  { %v6119_v9 = vpop.f32.mrb[150].mxu0 }
0x3da8   :  { %v6124_v42 = vpack.c.bf16 %v6119_v9, %v6116_v7  ;;  %v10316_v11 = vpop.f32.mrb[151].mxu0 }
0x3daa   :  { %10320 = vmatmul.mubr.msk.bf16.vlgmr.msra.gmra.mrb[168].mxu1 %vm3287_vm13, %v6124_v42 }
0x3dab   :  { %10330 = vmatpush3.bf16.msra.mxu1 %v10722_v54  ;;  %10333 = vmatprep.mubr.msk.bf16.mxu1 %vm11034_vm2, %v11033_v37  ;;  %v9188_v54 = vld [vmem:[%s12418_s2 + $0x220] ss:$0 sm:$0xff] }
0x3dac   :  { %10331 = vmatprep.subr.bf16.mxu1 %v11033_v37 }
0x3daf   :  { %10332 = vmatpush3.bf16.msra.mxu1 %v10723_v57 }
0x3db0   :  { %10345 = vmatprep.subr.bf16.mxu1 %v11033_v37 }
0x3db2   :  { %10334 = vmatmul.mubr.msk.bf16.vlgmr.msra.gmra.mrb[172].mxu1 %vm187_vm1, %v12016_v25 }
0x3db3   :  { %10349 = vmatprep.mubr.msk.bf16.mxu1 %vm11034_vm2, %v11033_v37  ;;  %10346 = vmatpush3.bf16.msra.mxu1 %v10724_v29 }
0x3db4   :  { %10347 = vmatprep.subr.bf16.mxu1 %v11033_v37 }
0x3db7   :  { %10348 = vmatpush3.bf16.msra.mxu1 %v10726_v19 }
0x3db8   :  { %10359 = vmatprep.subr.bf16.mxu1 %v11033_v37 }
0x3e0a   :  { %v6212_v10 = vpop.f32.mrb[152].mxu0 }
0x3e0b   :  { %v10327_v13 = vpop.f32.mrb[153].mxu0 }
0x3e0c   :  { %v6215_v14 = vpop.f32.mrb[154].mxu0 }
0x3e0d   :  { %v10328_v15 = vpop.f32.mrb[155].mxu0 }
0x3e0e   :  { %v11004_v15 = vld [vmem:[%s12418_s2 + $0xc8] sm:$0xff] }
0x3e7d   :  { %v6165_v16 = vpop.f32.mrb[168].mxu1 }
0x3e7e   :  { %v6213_v21 = vadd.f32 %v6212_v10, %v6165_v16  ;;  %v10321_v23 = vpop.f32.mrb[169].mxu1 }
0x3e7f   :  { %v6168_v24 = vpop.f32.mrb[170].mxu1 }
0x3e80   :  { %v6224_v22 = vadd.f32 %v9186_v20, %v6213_v21  ;;  %v6216_v27 = vadd.f32 %v6215_v14, %v6168_v24  ;;  %v10322_v30 = vpop.f32.mrb[171].mxu1  ;;  %v9193_v24 = vld [vmem:[%s12418_s2 + $0x240] ss:$0 sm:$0xff] }
0x3e82   :  { %v6226_v25 = vadd.f32 %v6224_v22, %v11856_v62  ;;  %v6225_v31 = vadd.f32 %v9186_v20, %v6216_v27 }
0x3e84   :  { %v6227_v36 = vadd.f32 %v6225_v31, %v11853_v56  ;;  %v6230_v26 = vsel %vm187_vm1, %v6226_v25, 0.0  ;;  %v6238_v38 = vmul.f32 %v6226_v25, %v6226_v25  ;;  %v9189_v56 = vld [vmem:[%s12418_s2 + $0x238] ss:$0 sm:$0xff] }
0x3e85   :  { %6231 = vadd.xlane.f32.xlu0 %v6230_v26  ;;  %v6331_v33 = vpop.f32.mrb[172].mxu1 }
0x3e86   :  { %v10335_v39 = vpop.f32.mrb[173].mxu1  ;;  %v6233_v35 = vsel %vm187_vm1, %v6227_v36, 0.0  ;;  %v6240_v40 = vsel %vm187_vm1, %v6238_v38, 0.0  ;;  %v6239_v43 = vmul.f32 %v6227_v36, %v6227_v36  ;;  %v6332_v41 = vadd.f32 %v9189_v56, %v6331_v33 }
0x3e87   :  { %v6334_v34 = vpop.f32.mrb[174].mxu1 }
0x3e88   :  { %v10336_v32 = vpop.f32.mrb[175].mxu1  ;;  %v6243_v62 = vsel %vm187_vm1, %v6239_v43, 0.0  ;;  %v12095_v17 = vpack.c.bf16 %v6332_v41, %v6332_v41 }
0x3e89   :  { %6234 = vadd.xlane.f32.xlu0 %v6233_v35 }
0x3e8d   :  { %6241 = vadd.xlane.f32.xlu0 %v6240_v40 }
0x3e91   :  { %6244 = vadd.xlane.f32.xlu0 %v6243_v62 }
0x3ea7   :  { %6577 = vrot.lane.b32.xlu0 %v12095_v17, %s11041_s20 }
0x3f12   :  { %v6232_v45 = vpop.xlane.xlu0 %6231 }
0x3f13   :  { %v6236_v48 = vmul.f32 0.03125, %v6232_v45 }
0x3f15   :  { %v6248_v50 = vmul.f32 %v6236_v48, %v6236_v48  ;;  %v6254_v1 = vsub.f32 %v6226_v25, %v6236_v48 }
0x3f16   :  { %v6235_v46 = vpop.xlane.xlu0 %6234 }
0x3f17   :  { %v6237_v47 = vmul.f32 0.03125, %v6235_v46 }
0x3f19   :  { %v6249_v53 = vmul.f32 %v6237_v47, %v6237_v47  ;;  %v6255_v7 = vsub.f32 %v6227_v36, %v6237_v47 }
0x3f1a   :  { %v6242_v49 = vpop.xlane.xlu0 %6241 }
0x3f1b   :  { %v6246_v51 = vmul.f32 0.03125, %v6242_v49 }
0x3f1d   :  { %v6250_v52 = vsub.f32 %v6246_v51, %v6248_v50 }
0x3f1e   :  { %v6245_v4 = vpop.xlane.xlu0 %6244 }
0x3f1f   :  { %v6252_v55 = vmax.f32 %v6250_v52, 0.0  ;;  %v6247_v58 = vmul.f32 0.03125, %v6245_v4 }
0x3f21   :  { %v6256_v59 = vadd.f32 1e-05, %v6252_v55  ;;  %v6251_v61 = vsub.f32 %v6247_v58, %v6249_v53 }
0x3f22   :  { %v6578_v62 = vpop.permute.xlu0 %6577 }
0x3f23   :  { %10972 = vrsqrt.f32 %v6256_v59  ;;  %v6253_v18 = vmax.f32 %v6251_v61, 0.0 }
0x3f25   :  { %v6257_v63 = vadd.f32 1e-05, %v6253_v18 }
0x3f27   :  { %10974 = vrsqrt.f32 %v6257_v63 }
0x3f2d   :  { %v10973_v12 = vpop.eup %10972 }
0x3f2e   :  { %v6260_v6 = vmul.f32 %v10973_v12, %v6254_v1 }
0x3f30   :  { %v6266_v8 = vmul.f32 %v9187_v3, %v6260_v6  ;;  %v6688_v6 = vld [vmem:[#allocation2 + $0x3e0] sm:$0xf] }
0x3f31   :  { %v10975_v9 = vpop.eup %10974 }
0x3f32   :  { %v6261_v42 = vmul.f32 %v10975_v9, %v6255_v7  ;;  %v6272_v57 = vadd.f32 %v9188_v54, %v6266_v8  ;;  %v6694_v7 = vsel %vm3511_vm15, %v6688_v6, 0 }
0x3f34   :  { %v6267_v11 = vmul.f32 %v9187_v3, %v6261_v42  ;;  %v6274_v14 = vadd.f32 %v11868_v2, %v6272_v57  ;;  %v9197_v2 = vld [vmem:[%s12418_s2 + $0x248] ss:$0 sm:$0xff]  ;;  %v6574_v42 = vld [vmem:[#allocation2 + $0x3d8] sm:$0xf] }
0x3f36   :  { %v6273_v10 = vadd.f32 %v9188_v54, %v6267_v11 }
0x3f38   :  { %v12109_v13 = vpack.c.bf16 %v6273_v10, %v6272_v57  ;;  %v6275_v16 = vadd.f32 %v11004_v15, %v6273_v10  ;;  %v6740_v10 = vsel %vm3511_vm15, %v6574_v42, 0 }
0x3f3a   :  { %10350 = vmatmul.mubr.msk.bf16.vlgmr.msra.gmra.mrb[176].mxu1 %vm187_vm1, %v12109_v13  ;;  %v6341_v20 = vpack.c.bf16 %v6275_v16, %v6274_v14 }
0x3f3b   :  { %10361 = vmatprep.mubr.msk.bf16.mxu1 %vm11034_vm2, %v11033_v37 }
0x3f3c   :  { %10342 = vmatmul.mubr.msk.bf16.vlgmr.msra.gmra.mrb[156].mxu0 %vm187_vm1, %v6341_v20 }
0x3f3d   :  { %10355 = vmatprep.mubr.msk.bf16.mxu0 %vm11034_vm2, %v11033_v37 }
0x400d   :  { %v6462_v21 = vpop.f32.mrb[176].mxu1 }
0x400e   :  { %v10351_v23 = vpop.f32.mrb[177].mxu1  ;;  %v6463_v30 = vadd.f32 %v9197_v2, %v6462_v21  ;;  %v12160_v21 = vsel %vm187_vm1, %v12109_v13, 0  ;;  %v7331_v13 = vld [vmem:[%s12418_s2 + $0x268] sm:$0xff] }
0x400f   :  { %v6396_v22 = vpop.f32.mrb[156].mxu0  ;;  %v6465_v27 = vpop.f32.mrb[178].mxu1  ;;  %v6870_v23 = vld [vmem:[#allocation2 + $0x498] sm:$0xf] }
0x4010   :  { %v6466_v25 = vadd.f32 %v9197_v2, %v6465_v27  ;;  %v10343_v31 = vpop.f32.mrb[157].mxu0  ;;  %v10352_v36 = vpop.f32.mrb[179].mxu1  ;;  %v6397_v33 = vadd.f32 %v9193_v24, %v6396_v22  ;;  %v10732_v22 = vld [vmem:[#allocation2 + $0x3f0] sm:$0xff]  }
0x4011   :  { %v6399_v26 = vpop.f32.mrb[158].mxu0  ;;  %v7022_v36 = vsel %vm303_vm3, %v10732_v22, 0 }
0x4012   :  { %v6530_v39 = vpack.c.bf16 %v6466_v25, %v6463_v30  ;;  %v6400_v34 = vadd.f32 %v9193_v24, %v6399_v26  ;;  %v10344_v32 = vpop.f32.mrb[159].mxu0  ;;  %v7338_v24 = vld [vmem:[%s12418_s2 + $0x270] sm:$0xff]  ;;  %v7339_v30 = vld [vmem:[%s12418_s2 + $0x278] sm:$0xff] }
0x4014   :  { %v6470_v35 = vpack.c.bf16 %v6400_v34, %v6397_v33  ;;  %10360 = vmatpush3.bf16.msra.mxu1 %v6530_v39  ;;  %v10728_v34 = vld [vmem:[#allocation2 + $0x4a0] sm:$0xff]  }
0x4015   :  { %10371 = vmatprep.subr.bf16.mxu1 %v11033_v37 }
0x4016   :  { %6580 = vrot.lane.b32.xlu1 %v6470_v35, %s11041_s20  ;;  %v6475_v38 = vsel %vm3287_vm13, %v6470_v35, 0  ;;  %v6817_v35 = vld [vmem:[#allocation2 + $0x3e8] sm:$0xf] }
0x4017   :  { %10354 = vmatpush3.bf16.xpose.msra.mxu0 %v6475_v38  ;;  %v6947_v38 = vsel %vm303_vm3, %v10728_v34, 0 }
0x4018   :  { %10365 = vmatprep.subr.bf16.mxu0 %v11033_v37 }
0x401e   :  { %10356 = vmatmul.mubr.msk.bf16.vlgmr.msra.gmra.mrb[160].mxu0 %vm3287_vm13, %v12095_v17 }
0x401f   :  { %10367 = vmatprep.mubr.msk.bf16.mxu0 %vm11034_vm2, %v11033_v37 }
0x4088   :  { %v6581_v40 = vpop.permute.xlu1 %6580 }
0x4089   :  { %v6586_v43 = vsel %vm3287_vm13, %v6581_v40, 0  ;;  %v10734_v40 = vld [vmem:[#allocation2 + $0x400] sm:$0xff]  }
0x408a   :  { %10366 = vmatpush3.bf16.xpose.msra.mxu0 %v6586_v43  ;;  %v10729_v43 = vld [vmem:[#allocation2 + $0x4a8] sm:$0xff]  }
0x408b   :  { %10377 = vmatprep.subr.bf16.mxu0 %v11033_v37 }
0x4091   :  { %10368 = vmatmul.mubr.msk.bf16.vlgmr.msra.gmra.mrb[164].mxu0 %vm3287_vm13, %v6578_v62  ;;  %v7028_v62 = vsel %vm303_vm3, %v10734_v40, 0 }
0x4092   :  { %10379 = vmatprep.mubr.msk.bf16.mxu0 %vm11034_vm2, %v11033_v37  ;;  %10378 = vmatpush3.bf16.msra.mxu0 %v6694_v7  ;;  %v9207_v7 = vld [vmem:[%s12418_s2 + $0x250] ss:$0 sm:$0xff] }
0x4093   :  { %10389 = vmatprep.subr.bf16.mxu0 %v11033_v37 }
0x40f1   :  { %v6511_v56 = vpop.f32.mrb[160].mxu0 }
0x40f2   :  { %v6517_v41 = vmul.f32 0.35355338, %v6511_v56  ;;  %v10357_v29 = vpop.f32.mrb[161].mxu0  ;;  %v6950_v56 = vsel %vm303_vm3, %v10729_v43, 0 }
0x40f3   :  { %v6514_v28 = vpop.f32.mrb[162].mxu0 }
0x40f4   :  { %v10358_v17 = vpop.f32.mrb[163].mxu0  ;;  %v6518_v19 = vsel %vm3335_vm14, %v6517_v41, -inf  ;;  %v10731_v28 = vld [vmem:[#allocation2 + $0x4b8] sm:$0xff]  }
0x40f5   :  { %6519 = vmax.xlane.f32.xlu1 %v6518_v19  ;;  %v6956_v17 = vsel %vm303_vm3, %v10731_v28, 0  ;;  %v10735_v19 = vld [vmem:[#allocation2 + $0x408] sm:$0xff]  }
0x4164   :  { %v6622_v44 = vpop.f32.mrb[164].mxu0 }
0x4165   :  { %v6628_v45 = vmul.f32 0.35355338, %v6622_v44  ;;  %v10369_v46 = vpop.f32.mrb[165].mxu0  ;;  %v7031_v44 = vsel %vm303_vm3, %v10735_v19, 0 }
0x4166   :  { %v6625_v48 = vpop.f32.mrb[166].mxu0 }
0x4167   :  { %v10370_v49 = vpop.f32.mrb[167].mxu0  ;;  %v6629_v50 = vsel %vm3335_vm14, %v6628_v45, -inf }
0x4168   :  { %6630 = vmax.xlane.f32.xlu1 %v6629_v50 }
0x4182   :  { %v6520_v47 = vpop.xlane.xlu1 %6519 }
0x4183   :  { %v6521_v51 = vsub.f32 %v6517_v41, %v6520_v47  ;;  %v10730_v41 = vld [vmem:[#allocation2 + $0x4b0] sm:$0xff]  }
0x4184   :  { %v6953_v29 = vsel %vm303_vm3, %v10730_v41, 0 }
0x4185   :  { %v6522_v52 = vmul.f32 1.442695, %v6521_v51 }
0x4187   :  { %10976 = vpow2.f32 %v6522_v52 }
0x4191   :  { %v10977_v4 = vpop.eup %10976 }
0x4192   :  { %v6524_v53 = vsel %vm3335_vm14, %v10977_v4, 0.0 }
0x4193   :  { %6525 = vadd.xlane.f32.xlu0 %v6524_v53  ;;  %v7073_v53 = vld [vmem:[#allocation2 + $0x548] sm:$0xf] }
0x41a9   :  { %7334 = vperm.xlu0 %10611, %v7331_v13   ;;  %v10737_v13 = vld [vmem:[#allocation2 + $0x558] sm:$0xff]  }
0x41aa   :  { %v7153_v22 = vsel %vm303_vm3, %v10737_v13, 0  ;;  %v10762_v13 = vld [vmem:[#allocation2 + $0x528] sm:$0xff]  }
0x41f5   :  { %v6631_v55 = vpop.xlane.xlu1 %6630 }
0x41f6   :  { %v6632_v58 = vsub.f32 %v6628_v45, %v6631_v55  ;;  %v10738_v55 = vld [vmem:[#allocation2 + $0x600] sm:$0xff]  }
0x41f8   :  { %v6633_v59 = vmul.f32 1.442695, %v6632_v58  ;;  %v7202_v58 = vld [vmem:[#allocation2 + $0x5f8] sm:$0xf] }
0x41fa   :  { %10978 = vpow2.f32 %v6633_v59  ;;  %v7279_v59 = vsel %vm303_vm3, %v10738_v55, 0 }
0x4204   :  { %v10979_v61 = vpop.eup %10978 }
0x4205   :  { %v6635_v18 = vsel %vm3335_vm14, %v10979_v61, 0.0 }
0x4206   :  { %6636 = vadd.xlane.f32.xlu1 %v6635_v18 }
0x4217   :  { %6642 = vrot.lane.b32.xlu1 %v6530_v39, %s11041_s20  ;;  %v10733_v39 = vld [vmem:[#allocation2 + $0x3f8] sm:$0xff]  }
0x4218   :  { %v7025_v32 = vsel %vm303_vm3, %v10733_v39, 0 }
0x421b   :  { %7367 = vperm.xlu1 %10612, %v7338_v24  }
0x421f   :  { %7373 = vperm.xlu1 %10612, %v7339_v30  }
0x4220   :  { %v6526_v63 = vpop.xlane.xlu0 %6525 }
0x4221   :  { %10980 = vrcp.f32 %v6526_v63  ;;  %v10742_v63 = vld [vmem:[#allocation2 + $0x610] sm:$0xff]  }
0x422b   :  { %v10981_v1 = vpop.eup %10980 }
0x422c   :  { %v6528_v12 = vmul.f32 %v10981_v1, %v10977_v4  ;;  %v7285_v1 = vsel %vm303_vm3, %v10742_v63, 0 }
0x422e   :  { %v6529_v3 = vpack.c.bf16 %v6528_v12, %v6528_v12  ;;  %v10743_v12 = vld [vmem:[#allocation2 + $0x618] sm:$0xff]  }
0x4230   :  { %10362 = vmatmul.mubr.msk.bf16.vlgmr.msra.gmra.mrb[180].mxu1 %vm303_vm3, %v6529_v3  ;;  %v7288_v3 = vsel %vm303_vm3, %v10743_v12, 0 }
0x4231   :  { %10373 = vmatprep.mubr.msk.bf16.mxu1 %vm11034_vm2, %v11033_v37 }
0x4293   :  { %v6637_v8 = vpop.xlane.xlu1 %6636 }
0x4294   :  { %10982 = vrcp.f32 %v6637_v8 }
0x4297   :  { %v6643_v9 = vpop.permute.xlu1 %6642 }
0x4298   :  { %10372 = vmatpush3.bf16.msra.mxu1 %v6643_v9 }
0x4299   :  { %10383 = vmatprep.subr.bf16.mxu1 %v11033_v37 }
0x429e   :  { %v10983_v54 = vpop.eup %10982 }
0x429f   :  { %v6639_v11 = vmul.f32 %v10983_v54, %v10979_v61  ;;  %v10740_v61 = vld [vmem:[#allocation2 + $0x608] sm:$0xff]  }
0x42a0   :  { %v7282_v18 = vsel %vm303_vm3, %v10740_v61, 0  ;;  %v10754_v61 = vld [vmem:[#allocation2 + $0x518] sm:$0xff]  }
0x42a1   :  { %v6640_v57 = vpack.c.bf16 %v6639_v11, %v6639_v11 }
0x42a3   :  { %10374 = vmatmul.mubr.msk.bf16.vlgmr.msra.gmra.mrb[184].mxu1 %vm303_vm3, %v6640_v57 }
0x42a4   :  { %10384 = vmatpush3.bf16.msra.mxu1 %v6740_v10  ;;  %10385 = vmatprep.mubr.msk.bf16.mxu1 %vm11034_vm2, %v11033_v37  ;;  %v10736_v10 = vld [vmem:[#allocation2 + $0x550] sm:$0xff]  }
0x42a5   :  { %10395 = vmatprep.subr.bf16.mxu1 %v11033_v37 }
0x4303   :  { %v6568_v14 = vpop.f32.mrb[180].mxu1 }
0x4304   :  { %v6575_v15 = vpack.c.bf16 %v6568_v14, %v6568_v14  ;;  %v10363_v16 = vpop.f32.mrb[181].mxu1 }
0x4305   :  { %v6571_v20 = vpop.f32.mrb[182].mxu1 }
0x4306   :  { %v10364_v2 = vpop.f32.mrb[183].mxu1  ;;  %10386 = vmatmul.mubr.msk.bf16.vlgmr.msra.gmra.mrb[188].mxu1 %vm3287_vm13, %v6575_v15 }
0x4307   :  { %10396 = vmatpush3.bf16.xpose.msra.mxu1 %v12160_v21  ;;  %10397 = vmatprep.mubr.msk.bf16.mxu1 %vm11034_vm2, %v11033_v37 }
0x4308   :  { %10413 = vmatprep.subr.bf16.mxu1 %v11033_v37 }
0x430e   :  { %10398 = vmatmul.mubr.msk.bf16.vlgmr.msra.gmra.mrb[192].mxu1 %vm187_vm1, %v6870_v23  ;;  %v7150_v23 = vsel %vm303_vm3, %v10736_v10, 0 }
0x430f   :  { %10421 = vmatprep.mubr.msk.bf16.mxu1 %vm11034_vm2, %v11033_v37  ;;  %10414 = vmatpush3.bf16.xpose.msra.mxu1 %v7022_v36  ;;  %v8408_v36 = vld [vmem:[%s12418_s2 + $0x280] sm:$0xf] }
0x4310   :  { %10415 = vmatprep.subr.bf16.mxu1 %v11033_v37 }
0x4317   :  { %10416 = vmatpush3.bf16.xpose.msra.mxu1 %v7025_v32 }
0x4318   :  { %10417 = vmatprep.subr.bf16.mxu1 %v11033_v37 }
0x431f   :  { %10418 = vmatpush3.bf16.xpose.msra.mxu1 %v7028_v62 }
0x4320   :  { %10419 = vmatprep.subr.bf16.mxu1 %v11033_v37 }
0x4327   :  { %10420 = vmatpush3.bf16.xpose.msra.mxu1 %v7031_v44 }
0x4328   :  { %10431 = vmatprep.subr.bf16.mxu1 %v11033_v37 }
0x4376   :  { %v6682_v27 = vpop.f32.mrb[184].mxu1 }
0x4377   :  { %v6689_v25 = vpack.c.bf16 %v6682_v27, %v6682_v27  ;;  %v10375_v31 = vpop.f32.mrb[185].mxu1  ;;  %v10739_v27 = vld [vmem:[#allocation2 + $0x560] sm:$0xff]  }
0x4378   :  { %v6685_v26 = vpop.f32.mrb[186].mxu1  ;;  %v7156_v30 = vsel %vm303_vm3, %v10739_v27, 0 }
0x4379   :  { %v10376_v33 = vpop.f32.mrb[187].mxu1  ;;  %10380 = vmatmul.mubr.msk.bf16.vlgmr.msra.gmra.mrb[168].mxu0 %vm3287_vm13, %v6689_v25  ;;  %v10741_v25 = vld [vmem:[#allocation2 + $0x568] sm:$0xff]  }
0x437a   :  { %10390 = vmatpush3.bf16.xpose.msra.mxu0 %v12160_v21  ;;  %10391 = vmatprep.mubr.msk.bf16.mxu0 %vm11034_vm2, %v11033_v37  ;;  %v7159_v31 = vsel %vm303_vm3, %v10741_v25, 0 }
0x437b   :  { %10401 = vmatprep.subr.bf16.mxu0 %v11033_v37 }
0x4381   :  { %10392 = vmatmul.mubr.msk.bf16.vlgmr.msra.gmra.mrb[172].mxu0 %vm187_vm1, %v6817_v35 }
0x4382   :  { %10402 = vmatpush3.bf16.xpose.msra.mxu0 %v6947_v38  ;;  %10409 = vmatprep.mubr.msk.bf16.mxu0 %vm11034_vm2, %v11033_v37 }
0x4383   :  { %10403 = vmatprep.subr.bf16.mxu0 %v11033_v37 }
0x438a   :  { %10404 = vmatpush3.bf16.xpose.msra.mxu0 %v6950_v56 }
0x438b   :  { %10405 = vmatprep.subr.bf16.mxu0 %v11033_v37 }
0x4392   :  { %10406 = vmatpush3.bf16.xpose.msra.mxu0 %v6953_v29 }
0x4393   :  { %10407 = vmatprep.subr.bf16.mxu0 %v11033_v37 }
0x439a   :  { %10408 = vmatpush3.bf16.xpose.msra.mxu0 %v6956_v17 }
0x439b   :  { %10425 = vmatprep.subr.bf16.mxu0 %v11033_v37 }
0x43d9   :  { %v6776_v45 = vpop.f32.mrb[188].mxu1 }
0x43da   :  { %v10387_v46 = vpop.f32.mrb[189].mxu1 }
0x43db   :  { %v6779_v48 = vpop.f32.mrb[190].mxu1 }
0x43dc   :  { %v10388_v49 = vpop.f32.mrb[191].mxu1  ;;  %v10746_v48 = vld [vmem:[#allocation2 + $0x508] sm:$0xff]  }
0x43dd   :  { %v10747_v49 = vld [vmem:[#allocation2 + $0x4c8] sm:$0xff]  }
0x43e1   :  { %v6908_v50 = vpop.f32.mrb[192].mxu1 }
0x43e2   :  { %v6922_v47 = vpack.c.bf16 %v6908_v50, %v6908_v50  ;;  %v10399_v51 = vpop.f32.mrb[193].mxu1  ;;  %v7646_v50 = vsel %vm136_vm0, %v10747_v49, 0 }
0x43e3   :  { %v6911_v52 = vpop.f32.mrb[194].mxu1  ;;  %v10751_v51 = vld [vmem:[#allocation2 + $0x4d0] sm:$0xff]  }
0x43e4   :  { %v10400_v4 = vpop.f32.mrb[195].mxu1  ;;  %10410 = vmatmul.mubr.msk.bf16.vlgmr.msra.gmra.mrb[176].mxu0 %vm303_vm3, %v6922_v47  ;;  %v10750_v47 = vld [vmem:[#allocation2 + $0x510] sm:$0xff]   ;;  %v7649_v52 = vsel %vm136_vm0, %v10751_v51, 0 }
0x43e5   :  { %10426 = vmatpush3.bf16.xpose.msra.mxu0 %v12160_v21  ;;  %10427 = vmatprep.mubr.msk.bf16.mxu0 %vm11034_vm2, %v11033_v37 }
0x43e6   :  { %10443 = vmatprep.subr.bf16.mxu0 %v11033_v37 }
0x43ec   :  { %10428 = vmatmul.mubr.msk.bf16.vlgmr.msra.gmra.mrb[180].mxu0 %vm187_vm1, %v7073_v53 }
0x43ed   :  { %10444 = vmatpush3.bf16.xpose.msra.mxu0 %v12160_v21  ;;  %10445 = vmatprep.mubr.msk.bf16.mxu0 %vm11034_vm2, %v11033_v37 }
0x43ee   :  { %10449 = vmatprep.subr.bf16.mxu0 %v11033_v37 }
0x43f4   :  { %10446 = vmatmul.mubr.msk.bf16.vlgmr.msra.gmra.mrb[184].mxu0 %vm187_vm1, %v7202_v58 }
0x43f5   :  { %10450 = vmatpush3.bf16.xpose.msra.mxu0 %v7279_v59  ;;  %10457 = vmatprep.mubr.msk.bf16.mxu0 %vm11034_vm2, %v11033_v37 }
0x43f6   :  { %10451 = vmatprep.subr.bf16.mxu0 %v11033_v37 }
0x43fd   :  { %10452 = vmatpush3.bf16.xpose.msra.mxu0 %v7282_v18  ;;  %v10755_v18 = vld [vmem:[#allocation2 + $0x4d8] sm:$0xff]  }
0x43fe   :  { %10453 = vmatprep.subr.bf16.mxu0 %v11033_v37  ;;  %v7652_v63 = vsel %vm136_vm0, %v10755_v18, 0 }
0x4405   :  { %10454 = vmatpush3.bf16.xpose.msra.mxu0 %v7285_v1 }
0x4406   :  { %10455 = vmatprep.subr.bf16.mxu0 %v11033_v37 }
0x440d   :  { %10456 = vmatpush3.bf16.xpose.msra.mxu0 %v7288_v3 }
0x440e   :  { %10565 = vmatprep.subr.msk.bf16.mxu0 %vm136_vm0, %v10746_v48 }
0x444c   :  { %v6730_v6 = vpop.f32.mrb[168].mxu0 }
0x444d   :  { %v6777_v8 = vadd.f32 %v6776_v45, %v6730_v6  ;;  %v10381_v9 = vpop.f32.mrb[169].mxu0  ;;  %v7335_v6 = vpop.permute.xlu0 %7334 }
0x444e   :  { %v6733_v54 = vpop.f32.mrb[170].mxu0 }
0x444f   :  { %v6787_v42 = vadd.f32 %v9207_v7, %v6777_v8  ;;  %v10382_v11 = vpop.f32.mrb[171].mxu0  ;;  %v10758_v54 = vld [vmem:[#allocation2 + $0x520] sm:$0xff]  }
0x4451   :  { %v12226_v57 = vadd.f32 %v6787_v42, %v12007_v60  ;;  %v10759_v42 = vld [vmem:[#allocation2 + $0x4e0] sm:$0xff]  }
0x4453   :  { %v6791_v14 = vsel %vm3058_vm12, %v12226_v57, 0.0  ;;  %v6795_v15 = vmul.f32 %v12226_v57, %v12226_v57 }
0x4454   :  { %v6855_v16 = vpop.f32.mrb[172].mxu0  ;;  %6792 = vadd.xlane.f32.xlu1 %v6791_v14 }
0x4455   :  { %v6869_v20 = vpack.c.bf16 %v6855_v16, %v6855_v16  ;;  %v6796_v2 = vsel %vm3058_vm12, %v6795_v15, 0.0  ;;  %v10393_v21 = vpop.f32.mrb[173].mxu0  ;;  %v7655_v15 = vsel %vm136_vm0, %v10759_v42, 0 }
0x4456   :  { %6797 = vadd.xlane.f32.xlu0 %v6796_v2  ;;  %v6858_v24 = vpop.f32.mrb[174].mxu0 }
0x4457   :  { %10422 = vmatmul.mubr.msk.bf16.vlgmr.msra.gmra.mrb[196].mxu1 %vm303_vm3, %v6869_v20  ;;  %v10394_v60 = vpop.f32.mrb[175].mxu0 }
0x4458   :  { %10432 = vmatpush3.bf16.xpose.msra.mxu1 %v7150_v23  ;;  %10439 = vmatprep.mubr.msk.bf16.mxu1 %vm11034_vm2, %v11033_v37 }
0x4459   :  { %10433 = vmatprep.subr.bf16.mxu1 %v11033_v37 }
0x4460   :  { %10434 = vmatpush3.bf16.xpose.msra.mxu1 %v7153_v22  ;;  %v10763_v22 = vld [vmem:[#allocation2 + $0x4e8] sm:$0xff]  }
0x4461   :  { %10435 = vmatprep.subr.bf16.mxu1 %v11033_v37  ;;  %v7658_v25 = vsel %vm136_vm0, %v10763_v22, 0 }
0x4465   :  { %8411 = vperm.xlu1 %10612, %v8408_v36  }
0x4468   :  { %10436 = vmatpush3.bf16.xpose.msra.mxu1 %v7156_v30 }
0x4469   :  { %10437 = vmatprep.subr.bf16.mxu1 %v11033_v37 }
0x4470   :  { %10438 = vmatpush3.bf16.xpose.msra.mxu1 %v7159_v31 }
0x4471   :  { %10461 = vmatprep.subr.bf16.mxu1 %v11033_v37 }
0x44b7   :  { %v6992_v26 = vpop.f32.mrb[176].mxu0 }
0x44b8   :  { %v10411_v33 = vpop.f32.mrb[177].mxu0 }
0x44b9   :  { %v6995_v39 = vpop.f32.mrb[178].mxu0 }
0x44ba   :  { %v10412_v34 = vpop.f32.mrb[179].mxu0 }
0x44bf   :  { %v7111_v32 = vpop.f32.mrb[180].mxu0 }
0x44c0   :  { %v7125_v35 = vpack.c.bf16 %v7111_v32, %v7111_v32  ;;  %v10429_v38 = vpop.f32.mrb[181].mxu0  ;;  %v10766_v32 = vld [vmem:[#allocation2 + $0x530] sm:$0xff]  }
0x44c1   :  { %v7114_v40 = vpop.f32.mrb[182].mxu0 }
0x44c2   :  { %v10430_v43 = vpop.f32.mrb[183].mxu0  ;;  %10440 = vmatmul.mubr.msk.bf16.vlgmr.msra.gmra.mrb[200].mxu1 %vm303_vm3, %v7125_v35  ;;  %v10767_v35 = vld [vmem:[#allocation2 + $0x4f0] sm:$0xff]  }
0x44c3   :  { %10463 = vmatprep.mubr.msk.bf16.mxu1 %vm11034_vm2, %v11033_v37  ;;  %v7661_v40 = vsel %vm136_vm0, %v10767_v35, 0  ;;  %v10765_v35 = vld [vmem:[#allocation2 + $0x440] sm:$0xff]  }
0x44c7   :  { %v7240_v62 = vpop.f32.mrb[184].mxu0 }
0x44c8   :  { %v7254_v56 = vpack.c.bf16 %v7240_v62, %v7240_v62  ;;  %v10447_v41 = vpop.f32.mrb[185].mxu0 }
0x44c9   :  { %v7243_v29 = vpop.f32.mrb[186].mxu0  ;;  %v10771_v41 = vld [vmem:[#allocation2 + $0x4f8] sm:$0xff]  }
0x44ca   :  { %v10448_v28 = vpop.f32.mrb[187].mxu0  ;;  %10458 = vmatmul.mubr.msk.bf16.vlgmr.msra.gmra.mrb[188].mxu0 %vm303_vm3, %v7254_v56  ;;  %v10770_v56 = vld [vmem:[#allocation2 + $0x538] sm:$0xff]   ;;  %v7664_v29 = vsel %vm136_vm0, %v10771_v41, 0  ;;  %v10773_v41 = vld [vmem:[#allocation2 + $0x450] sm:$0xff]  }
0x44cb   :  { %9606 = vmatpush3.bf16.xpose.msra.mxu0 %v7646_v50  ;;  %v7368_v28 = vpop.permute.xlu1 %7367 }
0x44cc   :  { %10566 = vmatprep.subr.msk.bf16.mxu0 %vm136_vm0, %v10750_v47 }
0x44d3   :  { %9608 = vmatpush3.bf16.xpose.msra.mxu0 %v7649_v52 }
0x44d4   :  { %10567 = vmatprep.subr.msk.bf16.mxu0 %vm136_vm0, %v10754_v61 }
0x44db   :  { %9610 = vmatpush3.bf16.xpose.msra.mxu0 %v7652_v63 }
0x44dc   :  { %10568 = vmatprep.subr.msk.bf16.mxu0 %vm136_vm0, %v10758_v54 }
0x44e3   :  { %9612 = vmatpush3.bf16.xpose.msra.mxu0 %v7655_v15 }
0x44e4   :  { %10569 = vmatprep.subr.msk.bf16.mxu0 %vm136_vm0, %v10762_v13  ;;  %v10749_v13 = vld [vmem:[#allocation2 + $0x420] sm:$0xff]  }
0x44e5   :  { %v7821_v22 = vsel %vm136_vm0, %v10749_v13, 0 }
0x44eb   :  { %9614 = vmatpush3.bf16.xpose.msra.mxu0 %v7658_v25 }
0x44ec   :  { %10570 = vmatprep.subr.msk.bf16.mxu0 %vm136_vm0, %v10766_v32  ;;  %v10764_v32 = vld [vmem:[#allocation2 + $0x480] sm:$0xff]  }
0x44f3   :  { %9616 = vmatpush3.bf16.xpose.msra.mxu0 %v7661_v40  ;;  %v10768_v40 = vld [vmem:[#allocation2 + $0x488] sm:$0xff]  }
0x44f4   :  { %10571 = vmatprep.subr.msk.bf16.mxu0 %vm136_vm0, %v10770_v56  ;;  %v10772_v56 = vld [vmem:[#allocation2 + $0x490] sm:$0xff]  }
0x44fb   :  { %9618 = vmatpush3.bf16.xpose.msra.mxu0 %v7664_v29  ;;  %v7839_v29 = vsel %vm136_vm0, %v10773_v41, 0 }
0x452a   :  { %v7067_v17 = vpop.f32.mrb[196].mxu1 }
0x452b   :  { %v7068_v19 = vadd.f32 %v7067_v17, %v6992_v26  ;;  %v10423_v44 = vpop.f32.mrb[197].mxu1 }
0x452c   :  { %v7070_v45 = vpop.f32.mrb[198].mxu1 }
0x452d   :  { %v10424_v46 = vpop.f32.mrb[199].mxu1 }
0x452e   :  { %v7374_v46 = vpop.permute.xlu1 %7373 }
0x4595   :  { %v7195_v4 = vpop.f32.mrb[200].mxu1 }
0x4596   :  { %v7201_v53 = vadd.f32 %v7195_v4, %v7068_v19  ;;  %v10441_v55 = vpop.f32.mrb[201].mxu1 }
0x4597   :  { %v7198_v58 = vpop.f32.mrb[202].mxu1 }
0x4598   :  { %v10442_v59 = vpop.f32.mrb[203].mxu1 }
0x459d   :  { %v7324_v1 = vpop.f32.mrb[188].mxu0 }
0x459e   :  { %v7330_v12 = vadd.f32 %v7324_v1, %v7201_v53  ;;  %v10459_v3 = vpop.f32.mrb[189].mxu0 }
0x459f   :  { %v7327_v7 = vpop.f32.mrb[190].mxu0 }
0x45a0   :  { %v7337_v8 = vadd.f32 %v7335_v6, %v7330_v12  ;;  %v10460_v9 = vpop.f32.mrb[191].mxu0 }
0x45a2   :  { %v7340_v11 = vsel %vm136_vm0, %v7337_v8, 0.0  ;;  %v7349_v10 = vmul.f32 %v7337_v8, %v7337_v8 }
0x45a3   :  { %v7341_v14 = vrot.slane %v7340_v11, 4 }
0x45a4   :  { %v7350_v16 = vsel %vm136_vm0, %v7349_v10, 0.0 }
0x45a5   :  { %v7342_v20 = vadd.f32 %v7341_v14, %v7340_v11  ;;  %v7351_v2 = vrot.slane %v7350_v16, 4 }
0x45a7   :  { %v7343_v21 = vrot.slane %v7342_v20, 2  ;;  %v7352_v23 = vadd.f32 %v7351_v2, %v7350_v16  ;;  %v10744_v2 = vld [vmem:[#allocation2 + $0x458] sm:$0xff]  }
0x45a9   :  { %v7344_v24 = vadd.f32 %v7343_v21, %v7342_v20  ;;  %v7353_v60 = vrot.slane %v7352_v23, 2  ;;  %v7404_v20 = vld [vmem:[#allocation2 + $0x410] sm:$0x3]  ;;  %v10745_v21 = vld [vmem:[#allocation2 + $0x418] sm:$0xff]  }
0x45ab   :  { %v7345_v27 = vrot.slane %v7344_v24, 1  ;;  %v7354_v30 = vadd.f32 %v7353_v60, %v7352_v23  ;;  %v7485_v23 = vld [vmem:[#allocation2 + $0x4c0] sm:$0x3] }
0x45ac   :  { %v10748_v60 = vld [vmem:[#allocation2 + $0x460] sm:$0xff]  }
0x45ad   :  { %v7346_v31 = vadd.f32 %v7345_v27, %v7344_v24  ;;  %v7355_v36 = vrot.slane %v7354_v30, 1  ;;  %v7818_v24 = vsel %vm136_vm0, %v10745_v21, 0  ;;  %v10752_v27 = vld [vmem:[#allocation2 + $0x468] sm:$0xff]  }
0x45af   :  { %v7348_v26 = vmul.f32 0.125, %v7346_v31  ;;  %v7356_v33 = vadd.f32 %v7355_v36, %v7354_v30  ;;  %v10753_v30 = vld [vmem:[#allocation2 + $0x428] sm:$0xff]   ;;  %v10756_v31 = vld [vmem:[#allocation2 + $0x470] sm:$0xff]  }
0x45b0   :  { %v7824_v25 = vsel %vm136_vm0, %v10753_v30, 0  ;;  %v10757_v36 = vld [vmem:[#allocation2 + $0x430] sm:$0xff]   ;;  %v10793_v30 = vld [vmem:[#allocation2 + $0x640] sm:$0xff]  }
0x45b1   :  { %v7357_v39 = vmul.f32 0.125, %v7356_v33  ;;  %v7358_v34 = vmul.f32 %v7348_v26, %v7348_v26  ;;  %v7361_v17 = vsub.f32 %v7337_v8, %v7348_v26  ;;  %v7827_v26 = vsel %vm136_vm0, %v10757_v36, 0  ;;  %v10760_v33 = vld [vmem:[#allocation2 + $0x478] sm:$0xff]   ;;  %v10797_v36 = vld [vmem:[#allocation2 + $0x648] sm:$0xff]  }
0x45b3   :  { %v7359_v38 = vsub.f32 %v7357_v39, %v7358_v34  ;;  %v10761_v39 = vld [vmem:[#allocation2 + $0x438] sm:$0xff]  }
0x45b4   :  { %v7830_v34 = vsel %vm136_vm0, %v10761_v39, 0  ;;  %v10799_v39 = vld [vmem:[#allocation2 + $0x690] sm:$0xff]  }
0x45b5   :  { %v7360_v43 = vmax.f32 %v7359_v38, 0.0  ;;  %v7833_v38 = vsel %vm136_vm0, %v10765_v35, 0 }
0x45b7   :  { %v7362_v62 = vadd.f32 1e-06, %v7360_v43  ;;  %v10769_v43 = vld [vmem:[#allocation2 + $0x448] sm:$0xff]  }
0x45b9   :  { %10984 = vrsqrt.f32 %v7362_v62  ;;  %v7836_v62 = vsel %vm136_vm0, %v10769_v43, 0  ;;  %v10803_v43 = vld [vmem:[#allocation2 + $0x698] sm:$0xff]  }
0x45c3   :  { %v10985_v19 = vpop.eup %10984 }
0x45c4   :  { %v7364_v44 = vmul.f32 %v10985_v19, %v7361_v17  ;;  %v10775_v17 = vld [vmem:[#allocation2 + $0x500] sm:$0xff]  }
0x45c5   :  { %v7667_v19 = vsel %vm136_vm0, %v10775_v17, 0  ;;  %v10807_v17 = vld [vmem:[#allocation2 + $0x660] sm:$0xff]  }
0x45c6   :  { %v7370_v45 = vmul.f32 %v7368_v28, %v7364_v44  ;;  %v10774_v28 = vld [vmem:[#allocation2 + $0x540] sm:$0xff]   ;;  %v10776_v44 = vld [vmem:[#allocation2 + $0x5b8] sm:$0xff]  }
0x45c7   :  { %10572 = vmatprep.subr.msk.bf16.mxu0 %vm136_vm0, %v10774_v28  ;;  %v10806_v28 = vld [vmem:[#allocation2 + $0x6a0] sm:$0xff]  }
0x45c8   :  { %v7376_v48 = vadd.f32 %v7374_v46, %v7370_v45  ;;  %9620 = vmatpush3.bf16.xpose.msra.mxu0 %v7667_v19  ;;  %v10777_v45 = vld [vmem:[#allocation2 + $0x578] sm:$0xff]   ;;  %v8339_v19 = vsel %vm136_vm0, %v10807_v17, 0 }
0x45c9   :  { %10473 = vmatprep.subr.bf16.mxu0 %v11033_v37 }
0x45ca   :  { %v7378_v49 = vmul.f32 0.70710677, %v7376_v48  ;;  %v7377_v11 = vmul.f32 0.5, %v7376_v48 }
0x45cc   :  { %v7381_v50 = vand.u32 2147483647, %v7378_v49  ;;  %vm7379_vm3 = vcmp.lt.f32.partialorder %v7378_v49, 0.0 }
0x45cd   :  { %v7380_v54 = vsel %vm7379_vm3, -1.0, %v11039_v5 }
0x45ce   :  { %v7382_v47 = vmul.f32 0.3275911, %v7381_v50  ;;  %v7395_v52 = vsub.f32 0.0, %v7381_v50 }
0x45d0   :  { %v7383_v51 = vadd.f32 1.0, %v7382_v47  ;;  %v7396_v53 = vmul.f32 %v7395_v52, %v7381_v50  ;;  %v8067_v47 = vsel %vm136_vm0, %v10777_v45, 0 }
0x45d2   :  { %10986 = vrcp.f32 %v7383_v51  ;;  %v7397_v59 = vmul.f32 1.442695, %v7396_v53  ;;  %v10778_v51 = vld [vmem:[#allocation2 + $0x5c0] sm:$0xff]  }
0x45d4   :  { %10988 = vpow2.f32 %v7397_v59 }
0x45dc   :  { %v10987_v4 = vpop.eup %10986 }
0x45dd   :  { %v7386_v55 = vmul.f32 1.0614054, %v10987_v4 }
0x45de   :  { %v10989_v7 = vpop.eup %10988 }
0x45df   :  { %v7387_v58 = vadd.f32 -1.4531521, %v7386_v55 }
0x45e1   :  { %v7388_v61 = vmul.f32 %v10987_v4, %v7387_v58 }
0x45e3   :  { %v7389_v18 = vadd.f32 1.4214138, %v7388_v61 }
0x45e5   :  { %v7390_v63 = vmul.f32 %v10987_v4, %v7389_v18 }
0x45e7   :  { %v7391_v1 = vadd.f32 -0.28449672, %v7390_v63  ;;  %v10782_v63 = vld [vmem:[#allocation2 + $0x5c8] sm:$0xff]  }
0x45e9   :  { %v7392_v12 = vmul.f32 %v10987_v4, %v7391_v1  ;;  %v10784_v1 = vld [vmem:[#allocation2 + $0x588] sm:$0xff]  }
0x45eb   :  { %v7393_v3 = vadd.f32 0.2548296, %v7392_v12  ;;  %v7906_v12 = vld [vmem:[#allocation2 + $0x570] sm:$0x3] }
0x45ed   :  { %v7394_v6 = vmul.f32 %v10987_v4, %v7393_v3  ;;  %v10780_v4 = vld [vmem:[#allocation2 + $0x580] sm:$0xff]   ;;  %v10779_v3 = vld [vmem:[#allocation2 + $0x668] sm:$0xff]  }
0x45ee   :  { %v8070_v18 = vsel %vm136_vm0, %v10780_v4, 0 }
0x45ef   :  { %v7399_v8 = vmul.f32 %v10989_v7, %v7394_v6  ;;  %v8073_v6 = vsel %vm136_vm0, %v10784_v1, 0  ;;  %v10786_v7 = vld [vmem:[#allocation2 + $0x5d0] sm:$0xff]  }
0x45f1   :  { %v7400_v9 = vsub.f32 1.0, %v7399_v8  ;;  %v10781_v8 = vld [vmem:[#allocation2 + $0x628] sm:$0xff]  }
0x45f3   :  { %v7401_v42 = vmul.f32 %v7400_v9, %v7380_v54  ;;  %v10788_v9 = vld [vmem:[#allocation2 + $0x590] sm:$0xff]   ;;  %v8157_v54 = vld [vmem:[#allocation2 + $0x620] sm:$0x3] }
0x45f5   :  { %v7402_v10 = vadd.f32 1.0, %v7401_v42  ;;  %v8318_v42 = vsel %vm136_vm0, %v10781_v8, 0 }
0x45f7   :  { %v7403_v14 = vmul.f32 %v7402_v10, %v7377_v11  ;;  %v10783_v11 = vld [vmem:[#allocation2 + $0x670] sm:$0xff]   ;;  %v8076_v10 = vsel %vm136_vm0, %v10788_v9, 0  ;;  %v9209_v9 = vld [vmem:[%s12418_s2 + $0x260] ss:$0 sm:$0xff] }
0x45f9   :  { %v7405_v15 = vpack.c.bf16 %v7403_v14, %v7403_v14  ;;  %v10790_v14 = vld [vmem:[#allocation2 + $0x5d8] sm:$0xff]  }
0x45fb   :  { %v12269_v16 = vsel %vm3511_vm15, %v7405_v15, 0  ;;  %v10785_v15 = vld [vmem:[#allocation2 + $0x630] sm:$0xff]  }
0x45fc   :  { %10462 = vmatpush3.bf16.msra.mxu1 %v12269_v16 }
0x45fd   :  { %10467 = vmatprep.subr.bf16.mxu1 %v11033_v37 }
0x45ff   :  { %10464 = vmatmul.mubr.msk.bf16.vlgmr.msra.gmra.mrb[204].mxu1 %vm3287_vm13, %v7404_v20  ;;  %v8321_v20 = vsel %vm136_vm0, %v10785_v15, 0 }
0x4600   :  { %10468 = vmatpush3.bf16.msra.mxu1 %v12269_v16  ;;  %10469 = vmatprep.mubr.msk.bf16.mxu1 %vm11034_vm2, %v11033_v37 }
0x4601   :  { %10573 = vmatprep.subr.msk.bf16.mxu1 %vm136_vm0, %v10744_v2  ;;  %v10787_v2 = vld [vmem:[#allocation2 + $0x678] sm:$0xff]  }
0x4607   :  { %10470 = vmatmul.mubr.msk.bf16.vlgmr.msra.gmra.mrb[208].mxu1 %vm3287_vm13, %v7485_v23  ;;  %v10794_v23 = vld [vmem:[#allocation2 + $0x5e0] sm:$0xff]  }
0x4609   :  { %9624 = vmatpush3.bf16.xpose.msra.mxu1 %v7818_v24  ;;  %v10789_v24 = vld [vmem:[#allocation2 + $0x638] sm:$0xff]  }
0x460a   :  { %10574 = vmatprep.subr.msk.bf16.mxu1 %vm136_vm0, %v10748_v60  ;;  %v10796_v60 = vld [vmem:[#allocation2 + $0x5a0] sm:$0xff]   ;;  %v8324_v13 = vsel %vm136_vm0, %v10789_v24, 0 }
0x4611   :  { %9626 = vmatpush3.bf16.xpose.msra.mxu1 %v7821_v22  ;;  %v10791_v22 = vld [vmem:[#allocation2 + $0x680] sm:$0xff]  }
0x4612   :  { %10575 = vmatprep.subr.msk.bf16.mxu1 %vm136_vm0, %v10752_v27  ;;  %v8082_v27 = vsel %vm136_vm0, %v10796_v60, 0 }
0x4619   :  { %9628 = vmatpush3.bf16.xpose.msra.mxu1 %v7824_v25  ;;  %v8327_v25 = vsel %vm136_vm0, %v10793_v30, 0 }
0x461a   :  { %10576 = vmatprep.subr.msk.bf16.mxu1 %vm136_vm0, %v10756_v31  ;;  %v10795_v31 = vld [vmem:[#allocation2 + $0x688] sm:$0xff]  }
0x4621   :  { %9630 = vmatpush3.bf16.xpose.msra.mxu1 %v7827_v26  ;;  %v8330_v26 = vsel %vm136_vm0, %v10797_v36, 0 }
0x4622   :  { %10577 = vmatprep.subr.msk.bf16.mxu1 %vm136_vm0, %v10760_v33  ;;  %v10798_v33 = vld [vmem:[#allocation2 + $0x5e8] sm:$0xff]  }
0x4629   :  { %9632 = vmatpush3.bf16.xpose.msra.mxu1 %v7830_v34  ;;  %v10800_v34 = vld [vmem:[#allocation2 + $0x5a8] sm:$0xff]  }
0x462a   :  { %10578 = vmatprep.subr.msk.bf16.mxu1 %vm136_vm0, %v10764_v32  ;;  %v10801_v32 = vld [vmem:[#allocation2 + $0x650] sm:$0xff]   ;;  %v8085_v35 = vsel %vm136_vm0, %v10800_v34, 0 }
0x4631   :  { %9634 = vmatpush3.bf16.xpose.msra.mxu1 %v7833_v38  ;;  %v8333_v38 = vsel %vm136_vm0, %v10801_v32, 0 }
0x4632   :  { %10579 = vmatprep.subr.msk.bf16.mxu1 %vm136_vm0, %v10768_v40  ;;  %v10802_v40 = vld [vmem:[#allocation2 + $0x5f0] sm:$0xff]  }
0x4639   :  { %9636 = vmatpush3.bf16.xpose.msra.mxu1 %v7836_v62  ;;  %v10804_v62 = vld [vmem:[#allocation2 + $0x5b0] sm:$0xff]  }
0x463a   :  { %10580 = vmatprep.subr.msk.bf16.mxu1 %vm136_vm0, %v10772_v56  ;;  %v10805_v56 = vld [vmem:[#allocation2 + $0x658] sm:$0xff]   ;;  %v8088_v41 = vsel %vm136_vm0, %v10804_v62, 0 }
0x4641   :  { %9638 = vmatpush3.bf16.xpose.msra.mxu1 %v7839_v29  ;;  %v8336_v29 = vsel %vm136_vm0, %v10805_v56, 0 }
0x4642   :  { %10581 = vmatprep.subr.msk.bf16.mxu1 %vm136_vm0, %v10776_v44  ;;  %v6793_v44 = vpop.xlane.xlu1 %6792 }
0x4643   :  { %v6794_v45 = vmul.f32 0.03125, %v6793_v44 }
0x4646   :  { %v8412_v34 = vpop.permute.xlu1 %8411 }
0x46d2   :  { %v7446_v46 = vpop.f32.mrb[204].mxu1 }
0x46d3   :  { %v7484_v48 = vpack.c.bf16 %v7446_v46, %v7446_v46  ;;  %v10465_v49 = vpop.f32.mrb[205].mxu1  ;;  %v6798_v46 = vpop.xlane.xlu0 %6797 }
0x46d4   :  { %v7449_v50 = vpop.f32.mrb[206].mxu1  ;;  %v6799_v49 = vmul.f32 0.03125, %v6798_v46 }
0x46d5   :  { %9639 = vmatprep.mubr.msk.bf16.mxu1 %vm136_vm0, %v7484_v48  ;;  %v10466_v52 = vpop.f32.mrb[207].mxu1 }
0x46d6   :  { %9640 = vmatmul.mubr.msk.bf16.vlgmr.msra.gmra.mrb[212].mxu1 %vm136_vm0, %v7484_v48  ;;  %v6800_v48 = vmul.f32 %v6794_v45, %v6794_v45 }
0x46d7   :  { %9644 = vmatpush3.bf16.xpose.msra.mxu1 %v8067_v47 }
0x46d8   :  { %10582 = vmatprep.subr.msk.bf16.mxu1 %vm136_vm0, %v10778_v51  ;;  %v6801_v50 = vsub.f32 %v6799_v49, %v6800_v48 }
0x46da   :  { %v7523_v53 = vpop.f32.mrb[208].mxu1  ;;  %v6802_v47 = vmax.f32 %v6801_v50, 0.0 }
0x46db   :  { %v7561_v55 = vpack.c.bf16 %v7523_v53, %v7523_v53  ;;  %v10471_v58 = vpop.f32.mrb[209].mxu1 }
0x46dc   :  { %v7526_v59 = vpop.f32.mrb[210].mxu1  ;;  %v6804_v51 = vadd.f32 1e-05, %v6802_v47 }
0x46dd   :  { %9621 = vmatprep.mubr.msk.bf16.mxu0 %vm136_vm0, %v7561_v55  ;;  %v10472_v61 = vpop.f32.mrb[211].mxu1  ;;  %v6803_v59 = vsub.f32 %v12226_v57, %v6794_v45  ;;  %v10808_v57 = vld [vmem:[#allocation2 + $0x6a8] sm:$0xff]  }
0x46de   :  { %9622 = vmatmul.mubr.msk.bf16.vlgmr.msra.gmra.mrb[192].mxu0 %vm136_vm0, %v7561_v55  ;;  %10990 = vrsqrt.f32 %v6804_v51 }
0x46df   :  { %10474 = vmatpush3.bf16.msra.mxu0 %v12269_v16  ;;  %10475 = vmatprep.mubr.msk.bf16.mxu0 %vm11034_vm2, %v11033_v37 }
0x46e0   :  { %10479 = vmatprep.subr.bf16.mxu0 %v11033_v37  ;;  %9646 = vmatpush3.bf16.xpose.msra.mxu1 %v8070_v18 }
0x46e1   :  { %10583 = vmatprep.subr.msk.bf16.mxu1 %vm136_vm0, %v10782_v63 }
0x46e6   :  { %10476 = vmatmul.mubr.msk.bf16.vlgmr.msra.gmra.mrb[196].mxu0 %vm3287_vm13, %v7906_v12 }
0x46e7   :  { %10480 = vmatpush3.bf16.msra.mxu0 %v12269_v16  ;;  %10481 = vmatprep.mubr.msk.bf16.mxu0 %vm11034_vm2, %v11033_v37  ;;  %v10792_v16 = vld [vmem:[#allocation2 + $0x598] sm:$0xff]  }
0x46e8   :  { %10589 = vmatprep.subr.msk.bf16.mxu0 %vm136_vm0, %v10779_v3  ;;  %9648 = vmatpush3.bf16.xpose.msra.mxu1 %v8073_v6  ;;  %v8079_v21 = vsel %vm136_vm0, %v10792_v16, 0  ;;  %v10991_v58 = vpop.eup %10990  ;;  %v9208_v6 = vld [vmem:[%s12418_s2 + $0x258] ss:$0 sm:$0xff]  ;;  %v10809_v16 = vld [vmem:[#allocation2 + $0x6b0] sm:$0xff]  }
0x46e9   :  { %10584 = vmatprep.subr.msk.bf16.mxu1 %vm136_vm0, %v10786_v7  ;;  %v6806_v1 = vmul.f32 %v10991_v58, %v6803_v59 }
0x46eb   :  { %v6811_v8 = vmul.f32 %v9208_v6, %v6806_v1 }
0x46ee   :  { %10482 = vmatmul.mubr.msk.bf16.vlgmr.msra.gmra.mrb[200].mxu0 %vm3287_vm13, %v8157_v54 }
0x46f0   :  { %9664 = vmatpush3.bf16.xpose.msra.mxu0 %v8318_v42  ;;  %9650 = vmatpush3.bf16.xpose.msra.mxu1 %v8076_v10 }
0x46f1   :  { %10590 = vmatprep.subr.msk.bf16.mxu0 %vm136_vm0, %v10783_v11  ;;  %10585 = vmatprep.subr.msk.bf16.mxu1 %vm136_vm0, %v10790_v14  ;;  %v6816_v14 = vadd.f32 %v9209_v9, %v6811_v8 }
0x46f8   :  { %9666 = vmatpush3.bf16.xpose.msra.mxu0 %v8321_v20  ;;  %9652 = vmatpush3.bf16.xpose.msra.mxu1 %v8079_v21  ;;  %v12356_v20 = vpack.c.bf16 %v6816_v14, %v6816_v14 }
0x46f9   :  { %10591 = vmatprep.subr.msk.bf16.mxu0 %vm136_vm0, %v10787_v2  ;;  %10586 = vmatprep.subr.msk.bf16.mxu1 %vm136_vm0, %v10794_v23 }
0x46fa   :  { %v8477_v24 = vshrl.u32 %v12356_v20, 16 }
0x4700   :  { %9668 = vmatpush3.bf16.xpose.msra.mxu0 %v8324_v13  ;;  %9654 = vmatpush3.bf16.xpose.msra.mxu1 %v8082_v27  ;;  %v10811_v27 = vld [vmem:[#allocation2 + $0x6c0] sm:$0xff]  }
0x4701   :  { %10592 = vmatprep.subr.msk.bf16.mxu0 %vm136_vm0, %v10791_v22  ;;  %10587 = vmatprep.subr.msk.bf16.mxu1 %vm136_vm0, %v10798_v33  ;;  %v10810_v22 = vld [vmem:[#allocation2 + $0x6b8] sm:$0xff]  }
0x4708   :  { %9670 = vmatpush3.bf16.xpose.msra.mxu0 %v8327_v25  ;;  %9656 = vmatpush3.bf16.xpose.msra.mxu1 %v8085_v35 }
0x4709   :  { %10593 = vmatprep.subr.msk.bf16.mxu0 %vm136_vm0, %v10795_v31  ;;  %10588 = vmatprep.subr.msk.bf16.mxu1 %vm136_vm0, %v10802_v40 }
0x4710   :  { %9672 = vmatpush3.bf16.xpose.msra.mxu0 %v8330_v26  ;;  %9658 = vmatpush3.bf16.xpose.msra.mxu1 %v8088_v41 }
0x4711   :  { %10594 = vmatprep.subr.msk.bf16.mxu0 %vm136_vm0, %v10799_v39  ;;  %10485 = vmatprep.subr.bf16.mxu1 %v11033_v37  ;;  %v8475_v39 = vld [vmem:[%s12418_s2 + $0x288] sm:$0x1] }
0x4718   :  { %9674 = vmatpush3.bf16.xpose.msra.mxu0 %v8333_v38 }
0x4719   :  { %10595 = vmatprep.subr.msk.bf16.mxu0 %vm136_vm0, %v10803_v43 }
0x4720   :  { %9676 = vmatpush3.bf16.xpose.msra.mxu0 %v8336_v29 }
0x4721   :  { %10596 = vmatprep.subr.msk.bf16.mxu0 %vm136_vm0, %v10806_v28 }
0x4728   :  { %9678 = vmatpush3.bf16.xpose.msra.mxu0 %v8339_v19 }
0x4729   :  { %10501 = vmatprep.subr.bf16.mxu0 %v11033_v37 }
0x47a9   :  { %v7899_v52 = vpop.f32.mrb[212].mxu1 }
0x47aa   :  { %v7901_v4 = vpop.f32.mrb[213].mxu1 }
0x47ab   :  { %v7903_v53 = vpop.f32.mrb[214].mxu1 }
0x47ac   :  { %v7904_v55 = vpop.f32.mrb[215].mxu1 }
0x47b1   :  { %v7727_v61 = vpop.f32.mrb[192].mxu0 }
0x47b2   :  { %v7900_v18 = vadd.f32 %v7899_v52, %v7727_v61  ;;  %v7729_v63 = vpop.f32.mrb[193].mxu0 }
0x47b3   :  { %v7902_v12 = vadd.f32 %v7901_v4, %v7729_v63  ;;  %v7731_v3 = vpop.f32.mrb[194].mxu0 }
0x47b4   :  { %v7732_v7 = vpop.f32.mrb[195].mxu0 }
0x47b9   :  { %v7944_v54 = vpop.f32.mrb[196].mxu0 }
0x47ba   :  { %v7982_v42 = vpack.c.bf16 %v7944_v54, %v7944_v54  ;;  %v10477_v11 = vpop.f32.mrb[197].mxu0 }
0x47bb   :  { %v7947_v10 = vpop.f32.mrb[198].mxu0 }
0x47bc   :  { %9659 = vmatprep.mubr.msk.bf16.mxu1 %vm136_vm0, %v7982_v42  ;;  %v10478_v15 = vpop.f32.mrb[199].mxu0 }
0x47bd   :  { %9660 = vmatmul.mubr.msk.bf16.vlgmr.msra.gmra.mrb[216].mxu1 %vm136_vm0, %v7982_v42 }
0x47be   :  { %10486 = vmatpush3.bf16.msra.mxu1 %v10808_v57  ;;  %10489 = vmatprep.mubr.msk.bf16.mxu1 %vm11034_vm2, %v11033_v37 }
0x47bf   :  { %10487 = vmatprep.subr.bf16.mxu1 %v11033_v37 }
0x47c1   :  { %v8195_v2 = vpop.f32.mrb[200].mxu0 }
0x47c2   :  { %v8233_v21 = vpack.c.bf16 %v8195_v2, %v8195_v2  ;;  %10488 = vmatpush3.bf16.msra.mxu1 %v10809_v16  ;;  %v10483_v23 = vpop.f32.mrb[201].mxu0 }
0x47c3   :  { %v8198_v60 = vpop.f32.mrb[202].mxu0  ;;  %10493 = vmatprep.subr.bf16.mxu1 %v11033_v37 }
0x47c4   :  { %9679 = vmatprep.mubr.msk.bf16.mxu0 %vm136_vm0, %v8233_v21  ;;  %v10484_v13 = vpop.f32.mrb[203].mxu0 }
0x47c5   :  { %9680 = vmatmul.mubr.msk.bf16.vlgmr.msra.gmra.mrb[204].mxu0 %vm136_vm0, %v8233_v21  ;;  %10490 = vmatmul.mubr.msk.bf16.vlgmr.msra.gmra.mrb[220].mxu1 %vm187_vm1, %v8477_v24 }
0x47c6   :  { %10497 = vmatprep.mubr.msk.bf16.mxu1 %vm11034_vm2, %v11033_v37  ;;  %10505 = vmatprep.mubr.msk.bf16.mxu0 %vm11034_vm2, %v11033_v37 }
0x47c7   :  { %10494 = vmatpush3.bf16.msra.mxu1 %v10810_v22 }
0x47c8   :  { %10495 = vmatprep.subr.bf16.mxu1 %v11033_v37 }
0x47cb   :  { %10496 = vmatpush3.bf16.msra.mxu1 %v10811_v27 }
0x4890   :  { %v8148_v30 = vpop.f32.mrb[216].mxu1 }
0x4891   :  { %v8155_v25 = vadd.f32 %v8148_v30, %v7900_v18  ;;  %v8150_v31 = vpop.f32.mrb[217].mxu1 }
0x4892   :  { %v8156_v36 = vadd.f32 %v8150_v31, %v7902_v12  ;;  %v8152_v26 = vpop.f32.mrb[218].mxu1 }
0x4893   :  { %v8153_v33 = vpop.f32.mrb[219].mxu1 }
0x4898   :  { %v8399_v32 = vpop.f32.mrb[204].mxu0  ;;  %v8528_v35 = vpop.f32.mrb[220].mxu1 }
0x4899   :  { %v8406_v38 = vadd.f32 %v8399_v32, %v8155_v25  ;;  %v8529_v40 = vadd.f32 %v8528_v35, %v8475_v39  ;;  %v8401_v43 = vpop.f32.mrb[205].mxu0  ;;  %v10491_v62 = vpop.f32.mrb[221].mxu1 }
0x489a   :  { %v8407_v56 = vadd.f32 %v8401_v43, %v8156_v36  ;;  %v8531_v41 = vpop.f32.mrb[222].mxu1  ;;  %v8403_v29 = vpop.f32.mrb[206].mxu0 }
0x489b   :  { %v8414_v28 = vadd.f32 %v8412_v34, %v8406_v38  ;;  %v8534_v17 = vmax.f32 %v8529_v40, 0.0  ;;  %v10492_v19 = vpop.f32.mrb[223].mxu1  ;;  %v8404_v44 = vpop.f32.mrb[207].mxu0  ;;  %v10812_v41 = vld [vmem:[#allocation2 + $0x6c8] sm:$0xff]   ;;  %v8540_v29 = vld [vmem:[%s12418_s2 + $0x290] sm:$0x1] }
0x489c   :  { %v8415_v45 = vadd.f32 %v8412_v34, %v8407_v56  ;;  %10502 = vmatpush3.bf16.msra.mxu0 %v10812_v41 }
0x489d   :  { %v8418_v46 = vmul.f32 0.70710677, %v8414_v28  ;;  %v8539_v48 = vpack.c.bf16 %v8534_v17, %v8534_v17  ;;  %v8416_v39 = vmul.f32 0.5, %v8414_v28  ;;  %10503 = vmatprep.subr.bf16.mxu0 %v11033_v37 }
0x489e   :  { %v8419_v49 = vmul.f32 0.70710677, %v8415_v45  ;;  %v8417_v32 = vmul.f32 0.5, %v8415_v45 }
0x489f   :  { %v8424_v50 = vand.u32 2147483647, %v8418_v46  ;;  %10498 = vmatmul.mubr.msk.bf16.vlgmr.msra.gmra.mrb[224].mxu1 %vm187_vm1, %v8539_v48  ;;  %vm8420_vm0 = vcmp.lt.f32.partialorder %v8418_v46, 0.0  ;;  %v10814_v48 = vld [vmem:[#allocation2 + $0x6d8] sm:$0xff]  }
0x48a0   :  { %v8425_v47 = vand.u32 2147483647, %v8419_v49  ;;  %8703 = vmatprep.mubr.bf16.mxu1 %v11032_v0  ;;  %vm8421_vm4 = vcmp.lt.f32.partialorder %v8419_v49, 0.0  ;;  %v8422_v25 = vsel %vm8420_vm0, -1.0, %v11039_v5 }
0x48a1   :  { %v8426_v51 = vmul.f32 0.3275911, %v8424_v50  ;;  %v8452_v55 = vsub.f32 0.0, %v8424_v50  ;;  %v8423_v36 = vsel %vm8421_vm4, -1.0, %v11039_v5  ;;  %v10813_v5 = vld [vmem:[#allocation2 + $0x6d0] sm:$0xff]  }
0x48a2   :  { %v8427_v52 = vmul.f32 0.3275911, %v8425_v47  ;;  %v8453_v58 = vsub.f32 0.0, %v8425_v47  ;;  %10504 = vmatpush3.bf16.msra.mxu0 %v10813_v5 }
0x48a3   :  { %v8428_v4 = vadd.f32 1.0, %v8426_v51  ;;  %v8454_v61 = vmul.f32 %v8452_v55, %v8424_v50  ;;  %10509 = vmatprep.subr.bf16.mxu0 %v11033_v37  ;;  %v10815_v50 = vld [vmem:[#allocation2 + $0x6e0] sm:$0xff]   ;;  %v10816_v55 = vld [vmem:[#allocation2 + $0x6e8] sm:$0xff]  }
0x48a4   :  { %v8429_v53 = vadd.f32 1.0, %v8427_v52  ;;  %v8455_v63 = vmul.f32 %v8453_v58, %v8425_v47  ;;  %v8602_v47 = vld [vmem:[%s12418_s2 + $0x298] sm:$0x1] }
0x48a5   :  { %10992 = vrcp.f32 %v8428_v4  ;;  %v8456_v6 = vmul.f32 1.442695, %v8454_v61  ;;  %v10817_v61 = vld [vmem:[#allocation2 + $0x6f0] sm:$0xff]  }
0x48a6   :  { %10994 = vrcp.f32 %v8429_v53  ;;  %v8458_v8 = vmul.f32 1.442695, %v8455_v63 }
0x48a7   :  { %10996 = vpow2.f32 %v8456_v6 }
0x48a8   :  { %10998 = vpow2.f32 %v8458_v8  ;;  %v10818_v8 = vld [vmem:[#allocation2 + $0x6f8] sm:$0xff]  }
0x48af   :  { %v10993_v59 = vpop.eup %10992 }
0x48b0   :  { %v10995_v18 = vpop.eup %10994  ;;  %v8434_v1 = vmul.f32 1.0614054, %v10993_v59 }
0x48b1   :  { %v8435_v12 = vmul.f32 1.0614054, %v10995_v18  ;;  %v10997_v24 = vpop.eup %10996 }
0x48b2   :  { %v8436_v3 = vadd.f32 -1.4531521, %v8434_v1  ;;  %v10999_v13 = vpop.eup %10998 }
0x48b3   :  { %v8437_v7 = vadd.f32 -1.4531521, %v8435_v12 }
0x48b4   :  { %v8438_v9 = vmul.f32 %v10993_v59, %v8436_v3 }
0x48b5   :  { %v8439_v0 = vmul.f32 %v10995_v18, %v8437_v7 }
0x48b6   :  { %v8440_v54 = vadd.f32 1.4214138, %v8438_v9  ;;  %v10819_v9 = vld [vmem:[#allocation2 + $0x700] sm:$0xff]  }
0x48b7   :  { %v8441_v42 = vadd.f32 1.4214138, %v8439_v0  ;;  %v11042_v0 = vmov 1966171168  }
0x48b8   :  { %v8442_v11 = vmul.f32 %v10993_v59, %v8440_v54  ;;  %v8900_v54 = vunpack.c.l.s4 %v11042_v0 }
0x48b9   :  { %v8443_v57 = vmul.f32 %v10995_v18, %v8441_v42  ;;  %v8902_v42 = vlaneseq }
0x48ba   :  { %v8444_v10 = vadd.f32 -0.28449672, %v8442_v11  ;;  %v8901_v11 = vunpack.c.0.s8 %v8900_v54 }
0x48bb   :  { %v8445_v14 = vadd.f32 -0.28449672, %v8443_v57  ;;  %v8903_v57 = vshrl.u32 %v8902_v42, 7 }
0x48bc   :  { %v8446_v15 = vmul.f32 %v10993_v59, %v8444_v10 }
0x48bd   :  { %v8447_v16 = vmul.f32 %v10995_v18, %v8445_v14  ;;  %v8904_v14 = vsub.s32 %v8901_v11, %v8903_v57 }
0x48be   :  { %v8448_v2 = vadd.f32 0.2548296, %v8446_v15 }
0x48bf   :  { %v8449_v21 = vadd.f32 0.2548296, %v8447_v16 }
0x48c0   :  { %v8450_v23 = vmul.f32 %v10993_v59, %v8448_v2 }
0x48c1   :  { %v8451_v60 = vmul.f32 %v10995_v18, %v8449_v21 }
0x48c2   :  { %v8460_v22 = vmul.f32 %v10997_v24, %v8450_v23 }
0x48c3   :  { %v8461_v27 = vmul.f32 %v10999_v13, %v8451_v60 }
0x48c4   :  { %v8462_v30 = vsub.f32 1.0, %v8460_v22 }
0x48c5   :  { %v8463_v31 = vsub.f32 1.0, %v8461_v27 }
0x48c6   :  { %v8464_v26 = vmul.f32 %v8462_v30, %v8422_v25 }
0x48c7   :  { %v8465_v33 = vmul.f32 %v8463_v31, %v8423_v36  ;;  %v8839_v36 = vld [vmem:[%s12418_s2 + $0x2b0] sm:$0x1] }
0x48c8   :  { %v8466_v34 = vadd.f32 1.0, %v8464_v26 }
0x48c9   :  { %v8467_v35 = vadd.f32 1.0, %v8465_v33 }
0x48ca   :  { %v8468_v38 = vmul.f32 %v8466_v34, %v8416_v39 }
0x48cb   :  { %v8469_v40 = vmul.f32 %v8467_v35, %v8417_v32 }
0x48cc   :  { %v8659_v43 = vpack.c.bf16 %v8468_v38, %v8468_v38 }
0x48cd   :  { %v8660_v62 = vpack.c.bf16 %v8469_v40, %v8469_v40 }
0x48ce   :  { %v8666_v56 = vsel %vm2785_vm8, %v8659_v43, 0 }
0x48cf   :  { %9315 = vmatprep.subr.msk.bf16.mxu1 %vm2785_vm8, %v8660_v62 }
0x48d0   :  { %8672 = vmatpush1.bf16.msra.mxu1 %v8666_v56 }
0x48d1   :  { %10517 = vmatprep.subr.bf16.mxu1 %v11033_v37 }
0x4972   :  { %v8590_v28 = vpop.f32.mrb[224].mxu1 }
0x4973   :  { %v8591_v17 = vadd.f32 %v8590_v28, %v8540_v29  ;;  %v10499_v19 = vpop.f32.mrb[225].mxu1 }
0x4974   :  { %v8593_v44 = vpop.f32.mrb[226].mxu1 }
0x4975   :  { %v8596_v45 = vmax.f32 %v8591_v17, 0.0  ;;  %v10500_v46 = vpop.f32.mrb[227].mxu1 }
0x4977   :  { %v8601_v49 = vpack.c.bf16 %v8596_v45, %v8596_v45 }
0x4979   :  { %10506 = vmatmul.mubr.msk.bf16.vlgmr.msra.gmra.mrb[208].mxu0 %vm187_vm1, %v8601_v49 }
0x497a   :  { %10510 = vmatpush3.bf16.msra.mxu0 %v10814_v48  ;;  %10513 = vmatprep.mubr.msk.bf16.mxu0 %vm11034_vm2, %v11033_v37 }
0x497b   :  { %10511 = vmatprep.subr.bf16.mxu0 %v11033_v37 }
0x497e   :  { %10512 = vmatpush3.bf16.msra.mxu0 %v10815_v50 }
0x497f   :  { %10525 = vmatprep.subr.bf16.mxu0 %v11033_v37 }
0x4981   :  { %10514 = vmatmul.mubr.msk.bf16.vlgmr.msra.gmra.mrb[212].mxu0 %vm187_vm1, %v12356_v20  ;;  %v8716_v20 = vld [vmem:[%s12418_s2 + $0x2a0] sm:$0x1] }
0x4982   :  { %10529 = vmatprep.mubr.msk.bf16.mxu0 %vm11034_vm2, %v11033_v37  ;;  %10526 = vmatpush3.bf16.msra.mxu0 %v10818_v8 }
0x4983   :  { %10527 = vmatprep.subr.bf16.mxu0 %v11033_v37 }
0x4986   :  { %10528 = vmatpush3.bf16.msra.mxu0 %v10819_v9 }
0x4a4c   :  { %v8652_v51 = vpop.f32.mrb[208].mxu0 }
0x4a4d   :  { %v8653_v52 = vadd.f32 %v8652_v51, %v8602_v47  ;;  %v10507_v4 = vpop.f32.mrb[209].mxu0 }
0x4a4e   :  { %v8655_v53 = vpop.f32.mrb[210].mxu0 }
0x4a4f   :  { %v8658_v58 = vpack.c.bf16 %v8653_v52, %v8653_v52  ;;  %v10508_v59 = vpop.f32.mrb[211].mxu0 }
0x4a51   :  { %9316 = vmatmul.mubr.msk.bf16.vlgmr.msra.gmra.mrb[228].mxu1 %vm8661_vm5, %v8658_v58 }
0x4a52   :  { %10518 = vmatpush3.bf16.msra.mxu1 %v10816_v55  ;;  %10521 = vmatprep.mubr.msk.bf16.mxu1 %vm11034_vm2, %v11033_v37  ;;  %vm8916_vm2 = vcmp.lt.s32.totalorder %v8902_v42, 256 }
0x4a53   :  { %10519 = vmatprep.subr.bf16.mxu1 %v11033_v37  ;;  %v8777_v37 = vld [vmem:[%s12418_s2 + $0x2a8] sm:$0x1] }
0x4a54   :  { %v8765_v18 = vpop.f32.mrb[212].mxu0 }
0x4a55   :  { %v8766_v63 = vadd.f32 %v8765_v18, %v8716_v20  ;;  %v10515_v1 = vpop.f32.mrb[213].mxu0 }
0x4a56   :  { %v8768_v12 = vpop.f32.mrb[214].mxu0  ;;  %10520 = vmatpush3.bf16.msra.mxu1 %v10817_v61 }
0x4a57   :  { %v8771_v3 = vmax.f32 %v8766_v63, 0.0  ;;  %v10516_v6 = vpop.f32.mrb[215].mxu0 }
0x4a59   :  { %v8776_v7 = vpack.c.bf16 %v8771_v3, %v8771_v3 }
0x4a5b   :  { %10522 = vmatmul.mubr.msk.bf16.vlgmr.msra.gmra.mrb[232].mxu1 %vm187_vm1, %v8776_v7 }
0x4b24   :  { %v8705_v10 = vpop.f32.mrb[228].mxu1 }
0x4b25   :  { %v8707_v15 = vpop.f32.mrb[229].mxu1 }
0x4b26   :  { %v8898_v16 = vcombine.low %v8705_v10, %v8707_v15  ;;  %v8709_v2 = vpop.f32.mrb[230].mxu1 }
0x4b27   :  { %v8710_v21 = vpop.f32.mrb[231].mxu1 }
0x4b28   :  { %v8905_v23 = vrot.slane %v8898_v16, %v8904_v14 }
0x4b2a   :  { %v8912_v24 = vrot.slane %v8905_v23, %v8904_v14 }
0x4b2c   :  { %8918 = vst.msk [vmem:[%s12419_s3] ss:$2 sm:$0x3] %vm8916_vm2, %v8912_v24 }
0x4b2e   :  { %v8827_v60 = vpop.f32.mrb[232].mxu1 }
0x4b2f   :  { %v8828_v13 = vadd.f32 %v8827_v60, %v8777_v37  ;;  %v10523_v22 = vpop.f32.mrb[233].mxu1 }
0x4b30   :  { %v8830_v27 = vpop.f32.mrb[234].mxu1 }
0x4b31   :  { %v8833_v30 = vmax.f32 %v8828_v13, 0.0  ;;  %v10524_v25 = vpop.f32.mrb[235].mxu1 }
0x4b33   :  { %v8838_v31 = vpack.c.bf16 %v8833_v30, %v8833_v30 }
0x4b35   :  { %10530 = vmatmul.mubr.msk.bf16.vlgmr.msra.gmra.mrb[216].mxu0 %vm187_vm1, %v8838_v31 }
0x4c08   :  { %v8889_v26 = vpop.f32.mrb[216].mxu0 }
0x4c09   :  { %v8890_v33 = vadd.f32 %v8889_v26, %v8839_v36  ;;  %v10531_v39 = vpop.f32.mrb[217].mxu0 }
0x4c0a   :  { %v8892_v34 = vpop.f32.mrb[218].mxu0 }
0x4c0b   :  { %8920 = vst.msk [vmem:[%s12419_s3 + $0x1] sm:$0x1] %vm8919_vm6, %v8890_v33  ;;  %v10532_v32 = vpop.f32.mrb[219].mxu0 }
0x4c0c   :  { %8925 = vsyncpa [#allocation3], 1 }

</bundles_post_ra>
